<compile_context>
chip_gen: v7x
topology: tpu7x:2x2x1
jax: 0.10.0
libtpu: 0.0.40
codegen_flags: <defaults>
</compile_context>

<pallas_src>
import functools

import jax
import jax.numpy as jnp
from jax.experimental import pallas as pl
from jax.experimental.pallas import tpu as pltpu


# ----------------------------------------------------------------------------
# Pallas kernels
# ----------------------------------------------------------------------------
def _conv_taps_kernel(x_ref, w_ref, shift_ref, o_ref, *, offsets, m):
    """Direct convolution on a flattened, padded per-image activation.

    x_ref:     (R, Cin)        bf16 -- padded NHWC image with H/W flattened
    w_ref:     (T, Cin, Cout)  bf16 -- per-tap weights (BN scale folded in)
    shift_ref: (1, Cout)       f32  -- folded BN shift
    o_ref:     (M, Cout)       bf16 -- "wide" output rows, M = Ho * Wp

    Output row p gets contribution x[p + offsets[t]] @ w[t] for every tap t;
    accumulation is f32 on the MXU, epilogue (+shift, ReLU) on the VPU.
    """
    acc = jnp.dot(x_ref[pl.ds(offsets[0], m), :], w_ref[0],
                  preferred_element_type=jnp.float32)
    for t in range(1, len(offsets)):
        acc = acc + jnp.dot(x_ref[pl.ds(offsets[t], m), :], w_ref[t],
                            preferred_element_type=jnp.float32)
    y = jnp.maximum(acc + shift_ref[...], 0.0)
    o_ref[...] = y.astype(o_ref.dtype)


def _conv_taps_call(x2, w_tio, shift, offsets, m):
    """x2: (N, R, Cin) bf16, w_tio: (T, Cin, Cout) bf16, shift: (Cout,) f32."""
    n, r, ci = x2.shape
    t, _, co = w_tio.shape
    kernel = functools.partial(_conv_taps_kernel, offsets=tuple(offsets), m=m)
    return pl.pallas_call(
        kernel,
        out_shape=jax.ShapeDtypeStruct((n, m, co), jnp.bfloat16),
        grid=(n,),
        in_specs=[
            pl.BlockSpec((None, r, ci), lambda b: (b, 0, 0)),   # per-image act.
            pl.BlockSpec((t, ci, co), lambda b: (0, 0, 0)),     # shared weights
            pl.BlockSpec((1, co), lambda b: (0, 0)),            # folded BN shift
        ],
        out_specs=pl.BlockSpec((None, m, co), lambda b: (b, 0, 0)),
        compiler_params=pltpu.CompilerParams(
            dimension_semantics=("parallel",),          # 2 images -> 2 v7x TCs
            vmem_limit_bytes=48 * 1024 * 1024,
        ),
    )(x2, w_tio, shift.reshape(1, co))


def _tail_kernel(x_ref, w1_ref, s1_ref, w2_ref, b2_ref, o_ref):
    """Fused tail: global avg pool + fc1(+BN1d+ReLU) + fc2(+bias) + log_softmax."""
    # global average pool over the flattened spatial axis
    g = jnp.mean(x_ref[...].astype(jnp.float32), axis=1)           # (N, C)
    h = jnp.dot(g.astype(jnp.bfloat16), w1_ref[...],
                preferred_element_type=jnp.float32)
    h = jnp.maximum(h + s1_ref[...], 0.0)                          # BN folded
    logits = jnp.dot(h.astype(jnp.bfloat16), w2_ref[...],
                     preferred_element_type=jnp.float32) + b2_ref[...]
    mx = jnp.max(logits, axis=-1, keepdims=True)
    s = logits - mx
    lse = jnp.log(jnp.sum(jnp.exp(s), axis=-1, keepdims=True))
    o_ref[...] = (s - lse).astype(o_ref.dtype)


# ----------------------------------------------------------------------------
# Glue: BN folding, weight reshaping, space-to-depth, layer wrappers
# ----------------------------------------------------------------------------
def bn_fold(gamma, beta, mean, var, eps=1e-5):
    scale = gamma / jnp.sqrt(var + eps)
    shift = beta - mean * scale
    return scale, shift


def oihw_to_tio(w_oihw):
    """(O, I, KH, KW) -> (KH*KW, I, O), tap-major (kh, kw) order."""
    o, i, kh, kw = w_oihw.shape
    return jnp.transpose(w_oihw, (2, 3, 1, 0)).reshape(kh * kw, i, o)


def k2s2_to_1x1(w_oihw):
    """Re-express a kernel=2, stride=2 conv as a 1x1 conv on space-to-depth input."""
    o, i, _, _ = w_oihw.shape
    return oihw_to_tio(w_oihw).reshape(1, 4 * i, o)


def space_to_depth2(x):
    """(N, H, W, C) -> (N, H/2, W/2, 4C) with channel order (kh, kw, c)."""
    n, h, w, c = x.shape
    x = x.reshape(n, h // 2, 2, w // 2, 2, c)
    x = jnp.transpose(x, (0, 1, 3, 2, 4, 5))
    return x.reshape(n, h // 2, w // 2, 4 * c)


def conv_bn_relu(x, w_tio, kh, kw, bn, pad):
    """Conv2d(stride=1, bias=False) + BatchNorm2d(eval) + ReLU; NHWC bf16 in/out."""
    n, h, w, ci = x.shape
    t, ci_w, co = w_tio.shape
    assert t == kh * kw and ci_w == ci

    scale, shift = bn_fold(*bn)
    w_tio = (w_tio * scale[None, None, :]).astype(jnp.bfloat16)

    cpad = (-ci) % 128                 # lane-pad tiny channel counts (conv0: 3 -> 128)
    wp = w + 2 * pad
    ho = h + 2 * pad - kh + 1
    wo = wp - kw + 1
    extra = 1 if kw > 1 else 0         # one extra zero row absorbs flat-slice overrun
    xp = jnp.pad(x.astype(jnp.bfloat16),
                 ((0, 0), (pad, pad + extra), (pad, pad), (0, cpad)))
    if cpad:
        w_tio = jnp.pad(w_tio, ((0, 0), (0, cpad), (0, 0)))
    x2 = xp.reshape(n, (h + 2 * pad + extra) * wp, ci + cpad)

    m = ho * wp                        # compute over all padded columns ("wide")
    offsets = tuple(i * wp + j for i in range(kh) for j in range(kw))
    y2 = _conv_taps_call(x2, w_tio, shift, offsets, m)          # (n, m, co) bf16
    y = y2.reshape(n, ho, wp, co)
    if wo != wp:
        y = y[:, :, :wo, :]            # drop the kw-1 invalid wide columns
    return y


def tail(x_nhwc, params):
    """Global average pool + fc1+BN+ReLU + fc2+bias + log_softmax (one kernel)."""
    n, ho, wo, c = x_nhwc.shape
    num_classes = params["fc2_w"].shape[1]
    scale, shift = bn_fold(*params["bng"])
    w1 = (params["fc1_w"] * scale[None, :]).astype(jnp.bfloat16)   # fold BN scale
    w2 = params["fc2_w"].astype(jnp.bfloat16)
    b2 = params["fc2_b"].reshape(1, num_classes)
    x3 = x_nhwc.reshape(n, ho * wo, c)
    return pl.pallas_call(
        _tail_kernel,
        out_shape=jax.ShapeDtypeStruct((n, num_classes), jnp.float32),
        compiler_params=pltpu.CompilerParams(
            vmem_limit_bytes=48 * 1024 * 1024),
    )(x3, w1, shift.reshape(1, -1), w2, b2)


# ----------------------------------------------------------------------------
# Parameter construction (deterministic, matching module __init__ shapes)
# ----------------------------------------------------------------------------
def make_params(key, num_classes, width_num, channels):
    c16 = 16 * width_num
    c32 = 32 * width_num
    keys = jax.random.split(key, 16)

    def conv_w(k, o, i, kh, kw):
        return jax.random.normal(k, (o, i, kh, kw), jnp.float32) * 0.08

    def bn_params(k, c):
        g = 1.0 + 0.1 * jax.random.normal(k, (c,), jnp.float32)
        b = 0.05 * jax.random.normal(jax.random.fold_in(k, 1), (c,), jnp.float32)
        mean = jnp.zeros((c,), jnp.float32)      # fresh-init running stats (eval)
        var = jnp.ones((c,), jnp.float32)
        return (g, b, mean, var)

    return {
        "conv0": conv_w(keys[0], c16, channels, 3, 3),
        "conv1": conv_w(keys[1], c32, c16, 2, 2),
        "conv2": conv_w(keys[2], c32, c32, 3, 3),
        "conv3": conv_w(keys[3], c32, c32, 3, 3),
        "conv4": conv_w(keys[4], c32, c32, 2, 2),
        "conv5": conv_w(keys[5], c32, c32, 3, 3),
        "bn0": bn_params(keys[6], c16),
        "bn1": bn_params(keys[7], c32),
        "bn2": bn_params(keys[8], c32),
        "bn3": bn_params(keys[9], c32),
        "bn4": bn_params(keys[10], c32),
        "bn5": bn_params(keys[11], c32),
        "fc1_w": jax.random.normal(keys[12], (c32, 200), jnp.float32) * 0.05,
        "bng": bn_params(keys[13], 200),
        "fc2_w": jax.random.normal(keys[14], (200, num_classes), jnp.float32) * 0.05,
        "fc2_b": 0.05 * jax.random.normal(keys[15], (num_classes,), jnp.float32),
    }


# ----------------------------------------------------------------------------
# Full forward (CNN.forward == base_forward + log_softmax, eval-mode BN)
# ----------------------------------------------------------------------------
def cnn_forward(params, x_nchw):
    x = jnp.transpose(x_nchw, (0, 2, 3, 1)).astype(jnp.bfloat16)   # NCHW -> NHWC

    x = conv_bn_relu(x, oihw_to_tio(params["conv0"]), 3, 3, params["bn0"], pad=1)
    x = conv_bn_relu(space_to_depth2(x), k2s2_to_1x1(params["conv1"]), 1, 1,
                     params["bn1"], pad=0)
    x = conv_bn_relu(x, oihw_to_tio(params["conv2"]), 3, 3, params["bn2"], pad=1)
    x = conv_bn_relu(x, oihw_to_tio(params["conv3"]), 3, 3, params["bn3"], pad=1)
    x = conv_bn_relu(space_to_depth2(x), k2s2_to_1x1(params["conv4"]), 1, 1,
                     params["bn4"], pad=0)
    x = conv_bn_relu(x, oihw_to_tio(params["conv5"]), 3, 3, params["bn5"], pad=0)

    # avg_pool2d(size//4 - 2) is exactly a global average pool for this
    # architecture (conv5 output spatial size == size//4 - 2), so the fused
    # tail kernel (GAP + fc1+BN+ReLU + fc2+bias + log_softmax) is exact.
    return tail(x, params)


# ----------------------------------------------------------------------------
if __name__ == "__main__":
    num_classes = 10
    width_num = 8          # 16*w = 128, 32*w = 256 channels (lane-friendly)
    channels = 3
    size = 16              # conv5 output spatial == size//4 - 2 == pool kernel
    batch = 2

    key = jax.random.PRNGKey(0)
    k_params, k_x = jax.random.split(key)
    params = make_params(k_params, num_classes, width_num, channels)
    x = jax.random.normal(k_x, (batch, channels, size, size), jnp.float32)

    out = jax.jit(cnn_forward)(params, x)
    out = jax.block_until_ready(out)
    assert out.shape == (batch, num_classes)
    assert bool(jnp.all(jnp.isfinite(out)))
    # log_softmax rows must (approximately) exp-sum to 1
    assert bool(jnp.allclose(jnp.sum(jnp.exp(out), axis=1), 1.0, atol=1e-4))
    print("KERNEL_OK")
</pallas_src>

<mosaic_0001>
module attributes {stable_mosaic.version = 11 : i64} {
  func.func @_conv_taps_kernel(%arg0: i32, %arg1: memref<1x342x128xbf16, #tpu.memory_space<vmem>>, %arg2: memref<9x128x128xbf16, #tpu.memory_space<vmem>>, %arg3: memref<1x128xf32, #tpu.memory_space<vmem>>, %arg4: memref<1x288x128xbf16, #tpu.memory_space<vmem>>) attributes {dimension_semantics = [#tpu.dimension_semantics<parallel>], iteration_bounds = array<i64: 2>, scalar_prefetch = 0 : i64, scratch_operands = 0 : i64, tpu.core_type = #tpu.core_type<tc>, window_params = [{transform_indices = @transform_0, window_bounds = array<i64: 1, 342, 128>}, {pipeline_mode = #tpu.pipeline_mode<synchronous>, transform_indices = @transform_1, window_bounds = array<i64: 9, 128, 128>}, {pipeline_mode = #tpu.pipeline_mode<synchronous>, transform_indices = @transform_2, window_bounds = array<i64: 1, 128>}, {transform_indices = @transform_3, window_bounds = array<i64: 1, 288, 128>}]} {
    %c0 = arith.constant 0 : index
    %c0_0 = arith.constant 0 : index
    %c0_1 = arith.constant 0 : index
    %0 = vector.load %arg1[%c0, %c0_0, %c0_1] : memref<1x342x128xbf16, #tpu.memory_space<vmem>>, vector<1x288x128xbf16>
    %1 = vector.shape_cast %0 : vector<1x288x128xbf16> to vector<288x128xbf16>
    %c0_2 = arith.constant 0 : index
    %c0_3 = arith.constant 0 : index
    %c0_4 = arith.constant 0 : index
    %2 = vector.load %arg2[%c0_2, %c0_3, %c0_4] : memref<9x128x128xbf16, #tpu.memory_space<vmem>>, vector<1x128x128xbf16>
    %3 = vector.shape_cast %2 : vector<1x128x128xbf16> to vector<128x128xbf16>
    %cst = arith.constant dense<0.000000e+00> : vector<288x128xf32>
    %4 = tpu.matmul %1, %3, %cst {dimension_numbers = #tpu.dot_dimension_numbers<[1], [0], [0], [1], [0, 0, 1, 1], [], []>} : vector<288x128xbf16>, vector<128x128xbf16>, vector<288x128xf32> -> vector<288x128xf32>
    %c0_5 = arith.constant 0 : index
    %c1 = arith.constant 1 : index
    %c0_6 = arith.constant 0 : index
    %5 = vector.load %arg1[%c0_5, %c1, %c0_6] : memref<1x342x128xbf16, #tpu.memory_space<vmem>>, vector<1x288x128xbf16>
    %6 = vector.shape_cast %5 : vector<1x288x128xbf16> to vector<288x128xbf16>
    %c1_7 = arith.constant 1 : index
    %c0_8 = arith.constant 0 : index
    %c0_9 = arith.constant 0 : index
    %7 = vector.load %arg2[%c1_7, %c0_8, %c0_9] : memref<9x128x128xbf16, #tpu.memory_space<vmem>>, vector<1x128x128xbf16>
    %8 = vector.shape_cast %7 : vector<1x128x128xbf16> to vector<128x128xbf16>
    %cst_10 = arith.constant dense<0.000000e+00> : vector<288x128xf32>
    %9 = tpu.matmul %6, %8, %cst_10 {dimension_numbers = #tpu.dot_dimension_numbers<[1], [0], [0], [1], [0, 0, 1, 1], [], []>} : vector<288x128xbf16>, vector<128x128xbf16>, vector<288x128xf32> -> vector<288x128xf32>
    %10 = arith.addf %4, %9 : vector<288x128xf32>
    %c0_11 = arith.constant 0 : index
    %c2 = arith.constant 2 : index
    %c0_12 = arith.constant 0 : index
    %11 = vector.load %arg1[%c0_11, %c2, %c0_12] : memref<1x342x128xbf16, #tpu.memory_space<vmem>>, vector<1x288x128xbf16>
    %12 = vector.shape_cast %11 : vector<1x288x128xbf16> to vector<288x128xbf16>
    %c2_13 = arith.constant 2 : index
    %c0_14 = arith.constant 0 : index
    %c0_15 = arith.constant 0 : index
    %13 = vector.load %arg2[%c2_13, %c0_14, %c0_15] : memref<9x128x128xbf16, #tpu.memory_space<vmem>>, vector<1x128x128xbf16>
    %14 = vector.shape_cast %13 : vector<1x128x128xbf16> to vector<128x128xbf16>
    %cst_16 = arith.constant dense<0.000000e+00> : vector<288x128xf32>
    %15 = tpu.matmul %12, %14, %cst_16 {dimension_numbers = #tpu.dot_dimension_numbers<[1], [0], [0], [1], [0, 0, 1, 1], [], []>} : vector<288x128xbf16>, vector<128x128xbf16>, vector<288x128xf32> -> vector<288x128xf32>
    %16 = arith.addf %10, %15 : vector<288x128xf32>
    %c0_17 = arith.constant 0 : index
    %c18 = arith.constant 18 : index
    %c0_18 = arith.constant 0 : index
    %17 = vector.load %arg1[%c0_17, %c18, %c0_18] : memref<1x342x128xbf16, #tpu.memory_space<vmem>>, vector<1x288x128xbf16>
    %18 = vector.shape_cast %17 : vector<1x288x128xbf16> to vector<288x128xbf16>
    %c3 = arith.constant 3 : index
    %c0_19 = arith.constant 0 : index
    %c0_20 = arith.constant 0 : index
    %19 = vector.load %arg2[%c3, %c0_19, %c0_20] : memref<9x128x128xbf16, #tpu.memory_space<vmem>>, vector<1x128x128xbf16>
    %20 = vector.shape_cast %19 : vector<1x128x128xbf16> to vector<128x128xbf16>
    %cst_21 = arith.constant dense<0.000000e+00> : vector<288x128xf32>
    %21 = tpu.matmul %18, %20, %cst_21 {dimension_numbers = #tpu.dot_dimension_numbers<[1], [0], [0], [1], [0, 0, 1, 1], [], []>} : vector<288x128xbf16>, vector<128x128xbf16>, vector<288x128xf32> -> vector<288x128xf32>
    %22 = arith.addf %16, %21 : vector<288x128xf32>
    %c0_22 = arith.constant 0 : index
    %c19 = arith.constant 19 : index
    %c0_23 = arith.constant 0 : index
    %23 = vector.load %arg1[%c0_22, %c19, %c0_23] : memref<1x342x128xbf16, #tpu.memory_space<vmem>>, vector<1x288x128xbf16>
    %24 = vector.shape_cast %23 : vector<1x288x128xbf16> to vector<288x128xbf16>
    %c4 = arith.constant 4 : index
    %c0_24 = arith.constant 0 : index
    %c0_25 = arith.constant 0 : index
    %25 = vector.load %arg2[%c4, %c0_24, %c0_25] : memref<9x128x128xbf16, #tpu.memory_space<vmem>>, vector<1x128x128xbf16>
    %26 = vector.shape_cast %25 : vector<1x128x128xbf16> to vector<128x128xbf16>
    %cst_26 = arith.constant dense<0.000000e+00> : vector<288x128xf32>
    %27 = tpu.matmul %24, %26, %cst_26 {dimension_numbers = #tpu.dot_dimension_numbers<[1], [0], [0], [1], [0, 0, 1, 1], [], []>} : vector<288x128xbf16>, vector<128x128xbf16>, vector<288x128xf32> -> vector<288x128xf32>
    %28 = arith.addf %22, %27 : vector<288x128xf32>
    %c0_27 = arith.constant 0 : index
    %c20 = arith.constant 20 : index
    %c0_28 = arith.constant 0 : index
    %29 = vector.load %arg1[%c0_27, %c20, %c0_28] : memref<1x342x128xbf16, #tpu.memory_space<vmem>>, vector<1x288x128xbf16>
    %30 = vector.shape_cast %29 : vector<1x288x128xbf16> to vector<288x128xbf16>
    %c5 = arith.constant 5 : index
    %c0_29 = arith.constant 0 : index
    %c0_30 = arith.constant 0 : index
    %31 = vector.load %arg2[%c5, %c0_29, %c0_30] : memref<9x128x128xbf16, #tpu.memory_space<vmem>>, vector<1x128x128xbf16>
    %32 = vector.shape_cast %31 : vector<1x128x128xbf16> to vector<128x128xbf16>
    %cst_31 = arith.constant dense<0.000000e+00> : vector<288x128xf32>
    %33 = tpu.matmul %30, %32, %cst_31 {dimension_numbers = #tpu.dot_dimension_numbers<[1], [0], [0], [1], [0, 0, 1, 1], [], []>} : vector<288x128xbf16>, vector<128x128xbf16>, vector<288x128xf32> -> vector<288x128xf32>
    %34 = arith.addf %28, %33 : vector<288x128xf32>
    %c0_32 = arith.constant 0 : index
    %c36 = arith.constant 36 : index
    %c0_33 = arith.constant 0 : index
    %35 = vector.load %arg1[%c0_32, %c36, %c0_33] : memref<1x342x128xbf16, #tpu.memory_space<vmem>>, vector<1x288x128xbf16>
    %36 = vector.shape_cast %35 : vector<1x288x128xbf16> to vector<288x128xbf16>
    %c6 = arith.constant 6 : index
    %c0_34 = arith.constant 0 : index
    %c0_35 = arith.constant 0 : index
    %37 = vector.load %arg2[%c6, %c0_34, %c0_35] : memref<9x128x128xbf16, #tpu.memory_space<vmem>>, vector<1x128x128xbf16>
    %38 = vector.shape_cast %37 : vector<1x128x128xbf16> to vector<128x128xbf16>
    %cst_36 = arith.constant dense<0.000000e+00> : vector<288x128xf32>
    %39 = tpu.matmul %36, %38, %cst_36 {dimension_numbers = #tpu.dot_dimension_numbers<[1], [0], [0], [1], [0, 0, 1, 1], [], []>} : vector<288x128xbf16>, vector<128x128xbf16>, vector<288x128xf32> -> vector<288x128xf32>
    %40 = arith.addf %34, %39 : vector<288x128xf32>
    %c0_37 = arith.constant 0 : index
    %c37 = arith.constant 37 : index
    %c0_38 = arith.constant 0 : index
    %41 = vector.load %arg1[%c0_37, %c37, %c0_38] : memref<1x342x128xbf16, #tpu.memory_space<vmem>>, vector<1x288x128xbf16>
    %42 = vector.shape_cast %41 : vector<1x288x128xbf16> to vector<288x128xbf16>
    %c7 = arith.constant 7 : index
    %c0_39 = arith.constant 0 : index
    %c0_40 = arith.constant 0 : index
    %43 = vector.load %arg2[%c7, %c0_39, %c0_40] : memref<9x128x128xbf16, #tpu.memory_space<vmem>>, vector<1x128x128xbf16>
    %44 = vector.shape_cast %43 : vector<1x128x128xbf16> to vector<128x128xbf16>
    %cst_41 = arith.constant dense<0.000000e+00> : vector<288x128xf32>
    %45 = tpu.matmul %42, %44, %cst_41 {dimension_numbers = #tpu.dot_dimension_numbers<[1], [0], [0], [1], [0, 0, 1, 1], [], []>} : vector<288x128xbf16>, vector<128x128xbf16>, vector<288x128xf32> -> vector<288x128xf32>
    %46 = arith.addf %40, %45 : vector<288x128xf32>
    %c0_42 = arith.constant 0 : index
    %c38 = arith.constant 38 : index
    %c0_43 = arith.constant 0 : index
    %47 = vector.load %arg1[%c0_42, %c38, %c0_43] : memref<1x342x128xbf16, #tpu.memory_space<vmem>>, vector<1x288x128xbf16>
    %48 = vector.shape_cast %47 : vector<1x288x128xbf16> to vector<288x128xbf16>
    %c8 = arith.constant 8 : index
    %c0_44 = arith.constant 0 : index
    %c0_45 = arith.constant 0 : index
    %49 = vector.load %arg2[%c8, %c0_44, %c0_45] : memref<9x128x128xbf16, #tpu.memory_space<vmem>>, vector<1x128x128xbf16>
    %50 = vector.shape_cast %49 : vector<1x128x128xbf16> to vector<128x128xbf16>
    %cst_46 = arith.constant dense<0.000000e+00> : vector<288x128xf32>
    %51 = tpu.matmul %48, %50, %cst_46 {dimension_numbers = #tpu.dot_dimension_numbers<[1], [0], [0], [1], [0, 0, 1, 1], [], []>} : vector<288x128xbf16>, vector<128x128xbf16>, vector<288x128xf32> -> vector<288x128xf32>
    %52 = arith.addf %46, %51 : vector<288x128xf32>
    %c0_47 = arith.constant 0 : index
    %c0_48 = arith.constant 0 : index
    %53 = vector.load %arg3[%c0_47, %c0_48] : memref<1x128xf32, #tpu.memory_space<vmem>>, vector<1x128xf32>
    %54 = vector.broadcast %53 : vector<1x128xf32> to vector<288x128xf32>
    %55 = arith.addf %52, %54 : vector<288x128xf32>
    %cst_49 = arith.constant 0.000000e+00 : f32
    %56 = vector.broadcast %cst_49 : f32 to vector<288x128xf32>
    %57 = arith.maximumf %55, %56 : vector<288x128xf32>
    %58 = arith.truncf %57 : vector<288x128xf32> to vector<288x128xbf16>
    %c0_50 = arith.constant 0 : index
    %c0_51 = arith.constant 0 : index
    %c0_52 = arith.constant 0 : index
    %59 = vector.load %arg4[%c0_50, %c0_51, %c0_52] : memref<1x288x128xbf16, #tpu.memory_space<vmem>>, vector<1x288x128xbf16>
    %60 = vector.shape_cast %59 : vector<1x288x128xbf16> to vector<288x128xbf16>
    %61 = vector.shape_cast %58 : vector<288x128xbf16> to vector<1x288x128xbf16>
    tpu.vector_store %arg4[%c0_50, %c0_51, %c0_52], %61 {strides = array<i32>} : memref<1x288x128xbf16, #tpu.memory_space<vmem>>, vector<1x288x128xbf16>,
    return
  }
  func.func @transform_0(%arg0: i32) -> (i32, i32, i32) {
    %c0_i32 = arith.constant 0 : i32
    %c0_i32_0 = arith.constant 0 : i32
    %c0_i32_1 = arith.constant 0 : i32
    return %arg0, %c0_i32, %c0_i32_0 : i32, i32, i32
  }
  func.func @transform_1(%arg0: i32) -> (i32, i32, i32) {
    %c0_i32 = arith.constant 0 : i32
    %c0_i32_0 = arith.constant 0 : i32
    %c0_i32_1 = arith.constant 0 : i32
    %c0_i32_2 = arith.constant 0 : i32
    return %c0_i32, %c0_i32_0, %c0_i32_1 : i32, i32, i32
  }
  func.func @transform_2(%arg0: i32) -> (i32, i32) {
    %c0_i32 = arith.constant 0 : i32
    %c0_i32_0 = arith.constant 0 : i32
    %c0_i32_1 = arith.constant 0 : i32
    return %c0_i32, %c0_i32_0 : i32, i32
  }
  func.func @transform_3(%arg0: i32) -> (i32, i32, i32) {
    %c0_i32 = arith.constant 0 : i32
    %c0_i32_0 = arith.constant 0 : i32
    %c0_i32_1 = arith.constant 0 : i32
    return %arg0, %c0_i32, %c0_i32_0 : i32, i32, i32
  }
}

module attributes {stable_mosaic.version = 11 : i64} {
  func.func @_conv_taps_kernel(%arg0: i32, %arg1: memref<1x64x512xbf16, #tpu.memory_space<vmem>>, %arg2: memref<1x512x256xbf16, #tpu.memory_space<vmem>>, %arg3: memref<1x256xf32, #tpu.memory_space<vmem>>, %arg4: memref<1x64x256xbf16, #tpu.memory_space<vmem>>) attributes {dimension_semantics = [#tpu.dimension_semantics<parallel>], iteration_bounds = array<i64: 2>, scalar_prefetch = 0 : i64, scratch_operands = 0 : i64, tpu.core_type = #tpu.core_type<tc>, window_params = [{transform_indices = @transform_0, window_bounds = array<i64: 1, 64, 512>}, {pipeline_mode = #tpu.pipeline_mode<synchronous>, transform_indices = @transform_1, window_bounds = array<i64: 1, 512, 256>}, {pipeline_mode = #tpu.pipeline_mode<synchronous>, transform_indices = @transform_2, window_bounds = array<i64: 1, 256>}, {transform_indices = @transform_3, window_bounds = array<i64: 1, 64, 256>}]} {
    %c0 = arith.constant 0 : index
    %c0_0 = arith.constant 0 : index
    %c0_1 = arith.constant 0 : index
    %0 = vector.load %arg1[%c0, %c0_0, %c0_1] : memref<1x64x512xbf16, #tpu.memory_space<vmem>>, vector<1x64x512xbf16>
    %1 = vector.shape_cast %0 : vector<1x64x512xbf16> to vector<64x512xbf16>
    %c0_2 = arith.constant 0 : index
    %c0_3 = arith.constant 0 : index
    %c0_4 = arith.constant 0 : index
    %2 = vector.load %arg2[%c0_2, %c0_3, %c0_4] : memref<1x512x256xbf16, #tpu.memory_space<vmem>>, vector<1x512x256xbf16>
    %3 = vector.shape_cast %2 : vector<1x512x256xbf16> to vector<512x256xbf16>
    %cst = arith.constant dense<0.000000e+00> : vector<64x256xf32>
    %4 = tpu.matmul %1, %3, %cst {dimension_numbers = #tpu.dot_dimension_numbers<[1], [0], [0], [1], [0, 0, 1, 1], [], []>} : vector<64x512xbf16>, vector<512x256xbf16>, vector<64x256xf32> -> vector<64x256xf32>
    %c0_5 = arith.constant 0 : index
    %c0_6 = arith.constant 0 : index
    %5 = vector.load %arg3[%c0_5, %c0_6] : memref<1x256xf32, #tpu.memory_space<vmem>>, vector<1x256xf32>
    %6 = vector.broadcast %5 : vector<1x256xf32> to vector<64x256xf32>
    %7 = arith.addf %4, %6 : vector<64x256xf32>
    %cst_7 = arith.constant 0.000000e+00 : f32
    %8 = vector.broadcast %cst_7 : f32 to vector<64x256xf32>
    %9 = arith.maximumf %7, %8 : vector<64x256xf32>
    %10 = arith.truncf %9 : vector<64x256xf32> to vector<64x256xbf16>
    %c0_8 = arith.constant 0 : index
    %c0_9 = arith.constant 0 : index
    %c0_10 = arith.constant 0 : index
    %11 = vector.load %arg4[%c0_8, %c0_9, %c0_10] : memref<1x64x256xbf16, #tpu.memory_space<vmem>>, vector<1x64x256xbf16>
    %12 = vector.shape_cast %11 : vector<1x64x256xbf16> to vector<64x256xbf16>
    %13 = vector.shape_cast %10 : vector<64x256xbf16> to vector<1x64x256xbf16>
    tpu.vector_store %arg4[%c0_8, %c0_9, %c0_10], %13 {strides = array<i32>} : memref<1x64x256xbf16, #tpu.memory_space<vmem>>, vector<1x64x256xbf16>,
    return
  }
  func.func @transform_0(%arg0: i32) -> (i32, i32, i32) {
    %c0_i32 = arith.constant 0 : i32
    %c0_i32_0 = arith.constant 0 : i32
    %c0_i32_1 = arith.constant 0 : i32
    return %arg0, %c0_i32, %c0_i32_0 : i32, i32, i32
  }
  func.func @transform_1(%arg0: i32) -> (i32, i32, i32) {
    %c0_i32 = arith.constant 0 : i32
    %c0_i32_0 = arith.constant 0 : i32
    %c0_i32_1 = arith.constant 0 : i32
    %c0_i32_2 = arith.constant 0 : i32
    return %c0_i32, %c0_i32_0, %c0_i32_1 : i32, i32, i32
  }
  func.func @transform_2(%arg0: i32) -> (i32, i32) {
    %c0_i32 = arith.constant 0 : i32
    %c0_i32_0 = arith.constant 0 : i32
    %c0_i32_1 = arith.constant 0 : i32
    return %c0_i32, %c0_i32_0 : i32, i32
  }
  func.func @transform_3(%arg0: i32) -> (i32, i32, i32) {
    %c0_i32 = arith.constant 0 : i32
    %c0_i32_0 = arith.constant 0 : i32
    %c0_i32_1 = arith.constant 0 : i32
    return %arg0, %c0_i32, %c0_i32_0 : i32, i32, i32
  }
}

module attributes {stable_mosaic.version = 11 : i64} {
  func.func @_conv_taps_kernel(%arg0: i32, %arg1: memref<1x110x256xbf16, #tpu.memory_space<vmem>>, %arg2: memref<9x256x256xbf16, #tpu.memory_space<vmem>>, %arg3: memref<1x256xf32, #tpu.memory_space<vmem>>, %arg4: memref<1x80x256xbf16, #tpu.memory_space<vmem>>) attributes {dimension_semantics = [#tpu.dimension_semantics<parallel>], iteration_bounds = array<i64: 2>, scalar_prefetch = 0 : i64, scratch_operands = 0 : i64, tpu.core_type = #tpu.core_type<tc>, window_params = [{transform_indices = @transform_0, window_bounds = array<i64: 1, 110, 256>}, {pipeline_mode = #tpu.pipeline_mode<synchronous>, transform_indices = @transform_1, window_bounds = array<i64: 9, 256, 256>}, {pipeline_mode = #tpu.pipeline_mode<synchronous>, transform_indices = @transform_2, window_bounds = array<i64: 1, 256>}, {transform_indices = @transform_3, window_bounds = array<i64: 1, 80, 256>}]} {
    %c0 = arith.constant 0 : index
    %c0_0 = arith.constant 0 : index
    %c0_1 = arith.constant 0 : index
    %0 = vector.load %arg1[%c0, %c0_0, %c0_1] : memref<1x110x256xbf16, #tpu.memory_space<vmem>>, vector<1x80x256xbf16>
    %1 = vector.shape_cast %0 : vector<1x80x256xbf16> to vector<80x256xbf16>
    %c0_2 = arith.constant 0 : index
    %c0_3 = arith.constant 0 : index
    %c0_4 = arith.constant 0 : index
    %2 = vector.load %arg2[%c0_2, %c0_3, %c0_4] : memref<9x256x256xbf16, #tpu.memory_space<vmem>>, vector<1x256x256xbf16>
    %3 = vector.shape_cast %2 : vector<1x256x256xbf16> to vector<256x256xbf16>
    %cst = arith.constant dense<0.000000e+00> : vector<80x256xf32>
    %4 = tpu.matmul %1, %3, %cst {dimension_numbers = #tpu.dot_dimension_numbers<[1], [0], [0], [1], [0, 0, 1, 1], [], []>} : vector<80x256xbf16>, vector<256x256xbf16>, vector<80x256xf32> -> vector<80x256xf32>
    %c0_5 = arith.constant 0 : index
    %c1 = arith.constant 1 : index
    %c0_6 = arith.constant 0 : index
    %5 = vector.load %arg1[%c0_5, %c1, %c0_6] : memref<1x110x256xbf16, #tpu.memory_space<vmem>>, vector<1x80x256xbf16>
    %6 = vector.shape_cast %5 : vector<1x80x256xbf16> to vector<80x256xbf16>
    %c1_7 = arith.constant 1 : index
    %c0_8 = arith.constant 0 : index
    %c0_9 = arith.constant 0 : index
    %7 = vector.load %arg2[%c1_7, %c0_8, %c0_9] : memref<9x256x256xbf16, #tpu.memory_space<vmem>>, vector<1x256x256xbf16>
    %8 = vector.shape_cast %7 : vector<1x256x256xbf16> to vector<256x256xbf16>
    %cst_10 = arith.constant dense<0.000000e+00> : vector<80x256xf32>
    %9 = tpu.matmul %6, %8, %cst_10 {dimension_numbers = #tpu.dot_dimension_numbers<[1], [0], [0], [1], [0, 0, 1, 1], [], []>} : vector<80x256xbf16>, vector<256x256xbf16>, vector<80x256xf32> -> vector<80x256xf32>
    %10 = arith.addf %4, %9 : vector<80x256xf32>
    %c0_11 = arith.constant 0 : index
    %c2 = arith.constant 2 : index
    %c0_12 = arith.constant 0 : index
    %11 = vector.load %arg1[%c0_11, %c2, %c0_12] : memref<1x110x256xbf16, #tpu.memory_space<vmem>>, vector<1x80x256xbf16>
    %12 = vector.shape_cast %11 : vector<1x80x256xbf16> to vector<80x256xbf16>
    %c2_13 = arith.constant 2 : index
    %c0_14 = arith.constant 0 : index
    %c0_15 = arith.constant 0 : index
    %13 = vector.load %arg2[%c2_13, %c0_14, %c0_15] : memref<9x256x256xbf16, #tpu.memory_space<vmem>>, vector<1x256x256xbf16>
    %14 = vector.shape_cast %13 : vector<1x256x256xbf16> to vector<256x256xbf16>
    %cst_16 = arith.constant dense<0.000000e+00> : vector<80x256xf32>
    %15 = tpu.matmul %12, %14, %cst_16 {dimension_numbers = #tpu.dot_dimension_numbers<[1], [0], [0], [1], [0, 0, 1, 1], [], []>} : vector<80x256xbf16>, vector<256x256xbf16>, vector<80x256xf32> -> vector<80x256xf32>
    %16 = arith.addf %10, %15 : vector<80x256xf32>
    %c0_17 = arith.constant 0 : index
    %c10 = arith.constant 10 : index
    %c0_18 = arith.constant 0 : index
    %17 = vector.load %arg1[%c0_17, %c10, %c0_18] : memref<1x110x256xbf16, #tpu.memory_space<vmem>>, vector<1x80x256xbf16>
    %18 = vector.shape_cast %17 : vector<1x80x256xbf16> to vector<80x256xbf16>
    %c3 = arith.constant 3 : index
    %c0_19 = arith.constant 0 : index
    %c0_20 = arith.constant 0 : index
    %19 = vector.load %arg2[%c3, %c0_19, %c0_20] : memref<9x256x256xbf16, #tpu.memory_space<vmem>>, vector<1x256x256xbf16>
    %20 = vector.shape_cast %19 : vector<1x256x256xbf16> to vector<256x256xbf16>
    %cst_21 = arith.constant dense<0.000000e+00> : vector<80x256xf32>
    %21 = tpu.matmul %18, %20, %cst_21 {dimension_numbers = #tpu.dot_dimension_numbers<[1], [0], [0], [1], [0, 0, 1, 1], [], []>} : vector<80x256xbf16>, vector<256x256xbf16>, vector<80x256xf32> -> vector<80x256xf32>
    %22 = arith.addf %16, %21 : vector<80x256xf32>
    %c0_22 = arith.constant 0 : index
    %c11 = arith.constant 11 : index
    %c0_23 = arith.constant 0 : index
    %23 = vector.load %arg1[%c0_22, %c11, %c0_23] : memref<1x110x256xbf16, #tpu.memory_space<vmem>>, vector<1x80x256xbf16>
    %24 = vector.shape_cast %23 : vector<1x80x256xbf16> to vector<80x256xbf16>
    %c4 = arith.constant 4 : index
    %c0_24 = arith.constant 0 : index
    %c0_25 = arith.constant 0 : index
    %25 = vector.load %arg2[%c4, %c0_24, %c0_25] : memref<9x256x256xbf16, #tpu.memory_space<vmem>>, vector<1x256x256xbf16>
    %26 = vector.shape_cast %25 : vector<1x256x256xbf16> to vector<256x256xbf16>
    %cst_26 = arith.constant dense<0.000000e+00> : vector<80x256xf32>
    %27 = tpu.matmul %24, %26, %cst_26 {dimension_numbers = #tpu.dot_dimension_numbers<[1], [0], [0], [1], [0, 0, 1, 1], [], []>} : vector<80x256xbf16>, vector<256x256xbf16>, vector<80x256xf32> -> vector<80x256xf32>
    %28 = arith.addf %22, %27 : vector<80x256xf32>
    %c0_27 = arith.constant 0 : index
    %c12 = arith.constant 12 : index
    %c0_28 = arith.constant 0 : index
    %29 = vector.load %arg1[%c0_27, %c12, %c0_28] : memref<1x110x256xbf16, #tpu.memory_space<vmem>>, vector<1x80x256xbf16>
    %30 = vector.shape_cast %29 : vector<1x80x256xbf16> to vector<80x256xbf16>
    %c5 = arith.constant 5 : index
    %c0_29 = arith.constant 0 : index
    %c0_30 = arith.constant 0 : index
    %31 = vector.load %arg2[%c5, %c0_29, %c0_30] : memref<9x256x256xbf16, #tpu.memory_space<vmem>>, vector<1x256x256xbf16>
    %32 = vector.shape_cast %31 : vector<1x256x256xbf16> to vector<256x256xbf16>
    %cst_31 = arith.constant dense<0.000000e+00> : vector<80x256xf32>
    %33 = tpu.matmul %30, %32, %cst_31 {dimension_numbers = #tpu.dot_dimension_numbers<[1], [0], [0], [1], [0, 0, 1, 1], [], []>} : vector<80x256xbf16>, vector<256x256xbf16>, vector<80x256xf32> -> vector<80x256xf32>
    %34 = arith.addf %28, %33 : vector<80x256xf32>
    %c0_32 = arith.constant 0 : index
    %c20 = arith.constant 20 : index
    %c0_33 = arith.constant 0 : index
    %35 = vector.load %arg1[%c0_32, %c20, %c0_33] : memref<1x110x256xbf16, #tpu.memory_space<vmem>>, vector<1x80x256xbf16>
    %36 = vector.shape_cast %35 : vector<1x80x256xbf16> to vector<80x256xbf16>
    %c6 = arith.constant 6 : index
    %c0_34 = arith.constant 0 : index
    %c0_35 = arith.constant 0 : index
    %37 = vector.load %arg2[%c6, %c0_34, %c0_35] : memref<9x256x256xbf16, #tpu.memory_space<vmem>>, vector<1x256x256xbf16>
    %38 = vector.shape_cast %37 : vector<1x256x256xbf16> to vector<256x256xbf16>
    %cst_36 = arith.constant dense<0.000000e+00> : vector<80x256xf32>
    %39 = tpu.matmul %36, %38, %cst_36 {dimension_numbers = #tpu.dot_dimension_numbers<[1], [0], [0], [1], [0, 0, 1, 1], [], []>} : vector<80x256xbf16>, vector<256x256xbf16>, vector<80x256xf32> -> vector<80x256xf32>
    %40 = arith.addf %34, %39 : vector<80x256xf32>
    %c0_37 = arith.constant 0 : index
    %c21 = arith.constant 21 : index
    %c0_38 = arith.constant 0 : index
    %41 = vector.load %arg1[%c0_37, %c21, %c0_38] : memref<1x110x256xbf16, #tpu.memory_space<vmem>>, vector<1x80x256xbf16>
    %42 = vector.shape_cast %41 : vector<1x80x256xbf16> to vector<80x256xbf16>
    %c7 = arith.constant 7 : index
    %c0_39 = arith.constant 0 : index
    %c0_40 = arith.constant 0 : index
    %43 = vector.load %arg2[%c7, %c0_39, %c0_40] : memref<9x256x256xbf16, #tpu.memory_space<vmem>>, vector<1x256x256xbf16>
    %44 = vector.shape_cast %43 : vector<1x256x256xbf16> to vector<256x256xbf16>
    %cst_41 = arith.constant dense<0.000000e+00> : vector<80x256xf32>
    %45 = tpu.matmul %42, %44, %cst_41 {dimension_numbers = #tpu.dot_dimension_numbers<[1], [0], [0], [1], [0, 0, 1, 1], [], []>} : vector<80x256xbf16>, vector<256x256xbf16>, vector<80x256xf32> -> vector<80x256xf32>
    %46 = arith.addf %40, %45 : vector<80x256xf32>
    %c0_42 = arith.constant 0 : index
    %c22 = arith.constant 22 : index
    %c0_43 = arith.constant 0 : index
    %47 = vector.load %arg1[%c0_42, %c22, %c0_43] : memref<1x110x256xbf16, #tpu.memory_space<vmem>>, vector<1x80x256xbf16>
    %48 = vector.shape_cast %47 : vector<1x80x256xbf16> to vector<80x256xbf16>
    %c8 = arith.constant 8 : index
    %c0_44 = arith.constant 0 : index
    %c0_45 = arith.constant 0 : index
    %49 = vector.load %arg2[%c8, %c0_44, %c0_45] : memref<9x256x256xbf16, #tpu.memory_space<vmem>>, vector<1x256x256xbf16>
    %50 = vector.shape_cast %49 : vector<1x256x256xbf16> to vector<256x256xbf16>
    %cst_46 = arith.constant dense<0.000000e+00> : vector<80x256xf32>
    %51 = tpu.matmul %48, %50, %cst_46 {dimension_numbers = #tpu.dot_dimension_numbers<[1], [0], [0], [1], [0, 0, 1, 1], [], []>} : vector<80x256xbf16>, vector<256x256xbf16>, vector<80x256xf32> -> vector<80x256xf32>
    %52 = arith.addf %46, %51 : vector<80x256xf32>
    %c0_47 = arith.constant 0 : index
    %c0_48 = arith.constant 0 : index
    %53 = vector.load %arg3[%c0_47, %c0_48] : memref<1x256xf32, #tpu.memory_space<vmem>>, vector<1x256xf32>
    %54 = vector.broadcast %53 : vector<1x256xf32> to vector<80x256xf32>
    %55 = arith.addf %52, %54 : vector<80x256xf32>
    %cst_49 = arith.constant 0.000000e+00 : f32
    %56 = vector.broadcast %cst_49 : f32 to vector<80x256xf32>
    %57 = arith.maximumf %55, %56 : vector<80x256xf32>
    %58 = arith.truncf %57 : vector<80x256xf32> to vector<80x256xbf16>
    %c0_50 = arith.constant 0 : index
    %c0_51 = arith.constant 0 : index
    %c0_52 = arith.constant 0 : index
    %59 = vector.load %arg4[%c0_50, %c0_51, %c0_52] : memref<1x80x256xbf16, #tpu.memory_space<vmem>>, vector<1x80x256xbf16>
    %60 = vector.shape_cast %59 : vector<1x80x256xbf16> to vector<80x256xbf16>
    %61 = vector.shape_cast %58 : vector<80x256xbf16> to vector<1x80x256xbf16>
    tpu.vector_store %arg4[%c0_50, %c0_51, %c0_52], %61 {strides = array<i32>} : memref<1x80x256xbf16, #tpu.memory_space<vmem>>, vector<1x80x256xbf16>,
    return
  }
  func.func @transform_0(%arg0: i32) -> (i32, i32, i32) {
    %c0_i32 = arith.constant 0 : i32
    %c0_i32_0 = arith.constant 0 : i32
    %c0_i32_1 = arith.constant 0 : i32
    return %arg0, %c0_i32, %c0_i32_0 : i32, i32, i32
  }
  func.func @transform_1(%arg0: i32) -> (i32, i32, i32) {
    %c0_i32 = arith.constant 0 : i32
    %c0_i32_0 = arith.constant 0 : i32
    %c0_i32_1 = arith.constant 0 : i32
    %c0_i32_2 = arith.constant 0 : i32
    return %c0_i32, %c0_i32_0, %c0_i32_1 : i32, i32, i32
  }
  func.func @transform_2(%arg0: i32) -> (i32, i32) {
    %c0_i32 = arith.constant 0 : i32
    %c0_i32_0 = arith.constant 0 : i32
    %c0_i32_1 = arith.constant 0 : i32
    return %c0_i32, %c0_i32_0 : i32, i32
  }
  func.func @transform_3(%arg0: i32) -> (i32, i32, i32) {
    %c0_i32 = arith.constant 0 : i32
    %c0_i32_0 = arith.constant 0 : i32
    %c0_i32_1 = arith.constant 0 : i32
    return %arg0, %c0_i32, %c0_i32_0 : i32, i32, i32
  }
}

module attributes {stable_mosaic.version = 11 : i64} {
  func.func @_conv_taps_kernel(%arg0: i32, %arg1: memref<1x16x1024xbf16, #tpu.memory_space<vmem>>, %arg2: memref<1x1024x256xbf16, #tpu.memory_space<vmem>>, %arg3: memref<1x256xf32, #tpu.memory_space<vmem>>, %arg4: memref<1x16x256xbf16, #tpu.memory_space<vmem>>) attributes {dimension_semantics = [#tpu.dimension_semantics<parallel>], iteration_bounds = array<i64: 2>, scalar_prefetch = 0 : i64, scratch_operands = 0 : i64, tpu.core_type = #tpu.core_type<tc>, window_params = [{transform_indices = @transform_0, window_bounds = array<i64: 1, 16, 1024>}, {pipeline_mode = #tpu.pipeline_mode<synchronous>, transform_indices = @transform_1, window_bounds = array<i64: 1, 1024, 256>}, {pipeline_mode = #tpu.pipeline_mode<synchronous>, transform_indices = @transform_2, window_bounds = array<i64: 1, 256>}, {transform_indices = @transform_3, window_bounds = array<i64: 1, 16, 256>}]} {
    %c0 = arith.constant 0 : index
    %c0_0 = arith.constant 0 : index
    %c0_1 = arith.constant 0 : index
    %0 = vector.load %arg1[%c0, %c0_0, %c0_1] : memref<1x16x1024xbf16, #tpu.memory_space<vmem>>, vector<1x16x1024xbf16>
    %1 = vector.shape_cast %0 : vector<1x16x1024xbf16> to vector<16x1024xbf16>
    %c0_2 = arith.constant 0 : index
    %c0_3 = arith.constant 0 : index
    %c0_4 = arith.constant 0 : index
    %2 = vector.load %arg2[%c0_2, %c0_3, %c0_4] : memref<1x1024x256xbf16, #tpu.memory_space<vmem>>, vector<1x1024x256xbf16>
    %3 = vector.shape_cast %2 : vector<1x1024x256xbf16> to vector<1024x256xbf16>
    %cst = arith.constant dense<0.000000e+00> : vector<16x256xf32>
    %4 = tpu.matmul %1, %3, %cst {dimension_numbers = #tpu.dot_dimension_numbers<[1], [0], [0], [1], [0, 0, 1, 1], [], []>} : vector<16x1024xbf16>, vector<1024x256xbf16>, vector<16x256xf32> -> vector<16x256xf32>
    %c0_5 = arith.constant 0 : index
    %c0_6 = arith.constant 0 : index
    %5 = vector.load %arg3[%c0_5, %c0_6] : memref<1x256xf32, #tpu.memory_space<vmem>>, vector<1x256xf32>
    %6 = vector.broadcast %5 : vector<1x256xf32> to vector<16x256xf32>
    %7 = arith.addf %4, %6 : vector<16x256xf32>
    %cst_7 = arith.constant 0.000000e+00 : f32
    %8 = vector.broadcast %cst_7 : f32 to vector<16x256xf32>
    %9 = arith.maximumf %7, %8 : vector<16x256xf32>
    %10 = arith.truncf %9 : vector<16x256xf32> to vector<16x256xbf16>
    %c0_8 = arith.constant 0 : index
    %c0_9 = arith.constant 0 : index
    %c0_10 = arith.constant 0 : index
    %11 = vector.load %arg4[%c0_8, %c0_9, %c0_10] : memref<1x16x256xbf16, #tpu.memory_space<vmem>>, vector<1x16x256xbf16>
    %12 = vector.shape_cast %11 : vector<1x16x256xbf16> to vector<16x256xbf16>
    %13 = vector.shape_cast %10 : vector<16x256xbf16> to vector<1x16x256xbf16>
    tpu.vector_store %arg4[%c0_8, %c0_9, %c0_10], %13 {strides = array<i32>} : memref<1x16x256xbf16, #tpu.memory_space<vmem>>, vector<1x16x256xbf16>,
    return
  }
  func.func @transform_0(%arg0: i32) -> (i32, i32, i32) {
    %c0_i32 = arith.constant 0 : i32
    %c0_i32_0 = arith.constant 0 : i32
    %c0_i32_1 = arith.constant 0 : i32
    return %arg0, %c0_i32, %c0_i32_0 : i32, i32, i32
  }
  func.func @transform_1(%arg0: i32) -> (i32, i32, i32) {
    %c0_i32 = arith.constant 0 : i32
    %c0_i32_0 = arith.constant 0 : i32
    %c0_i32_1 = arith.constant 0 : i32
    %c0_i32_2 = arith.constant 0 : i32
    return %c0_i32, %c0_i32_0, %c0_i32_1 : i32, i32, i32
  }
  func.func @transform_2(%arg0: i32) -> (i32, i32) {
    %c0_i32 = arith.constant 0 : i32
    %c0_i32_0 = arith.constant 0 : i32
    %c0_i32_1 = arith.constant 0 : i32
    return %c0_i32, %c0_i32_0 : i32, i32
  }
  func.func @transform_3(%arg0: i32) -> (i32, i32, i32) {
    %c0_i32 = arith.constant 0 : i32
    %c0_i32_0 = arith.constant 0 : i32
    %c0_i32_1 = arith.constant 0 : i32
    return %arg0, %c0_i32, %c0_i32_0 : i32, i32, i32
  }
}

module attributes {stable_mosaic.version = 11 : i64} {
  func.func @_conv_taps_kernel(%arg0: i32, %arg1: memref<1x20x256xbf16, #tpu.memory_space<vmem>>, %arg2: memref<9x256x256xbf16, #tpu.memory_space<vmem>>, %arg3: memref<1x256xf32, #tpu.memory_space<vmem>>, %arg4: memref<1x8x256xbf16, #tpu.memory_space<vmem>>) attributes {dimension_semantics = [#tpu.dimension_semantics<parallel>], iteration_bounds = array<i64: 2>, scalar_prefetch = 0 : i64, scratch_operands = 0 : i64, tpu.core_type = #tpu.core_type<tc>, window_params = [{transform_indices = @transform_0, window_bounds = array<i64: 1, 20, 256>}, {pipeline_mode = #tpu.pipeline_mode<synchronous>, transform_indices = @transform_1, window_bounds = array<i64: 9, 256, 256>}, {pipeline_mode = #tpu.pipeline_mode<synchronous>, transform_indices = @transform_2, window_bounds = array<i64: 1, 256>}, {transform_indices = @transform_3, window_bounds = array<i64: 1, 8, 256>}]} {
    %c0 = arith.constant 0 : index
    %c0_0 = arith.constant 0 : index
    %c0_1 = arith.constant 0 : index
    %0 = vector.load %arg1[%c0, %c0_0, %c0_1] : memref<1x20x256xbf16, #tpu.memory_space<vmem>>, vector<1x8x256xbf16>
    %1 = vector.shape_cast %0 : vector<1x8x256xbf16> to vector<8x256xbf16>
    %c0_2 = arith.constant 0 : index
    %c0_3 = arith.constant 0 : index
    %c0_4 = arith.constant 0 : index
    %2 = vector.load %arg2[%c0_2, %c0_3, %c0_4] : memref<9x256x256xbf16, #tpu.memory_space<vmem>>, vector<1x256x256xbf16>
    %3 = vector.shape_cast %2 : vector<1x256x256xbf16> to vector<256x256xbf16>
    %cst = arith.constant dense<0.000000e+00> : vector<8x256xf32>
    %4 = tpu.matmul %1, %3, %cst {dimension_numbers = #tpu.dot_dimension_numbers<[1], [0], [0], [1], [0, 0, 1, 1], [], []>} : vector<8x256xbf16>, vector<256x256xbf16>, vector<8x256xf32> -> vector<8x256xf32>
    %c0_5 = arith.constant 0 : index
    %c1 = arith.constant 1 : index
    %c0_6 = arith.constant 0 : index
    %5 = vector.load %arg1[%c0_5, %c1, %c0_6] : memref<1x20x256xbf16, #tpu.memory_space<vmem>>, vector<1x8x256xbf16>
    %6 = vector.shape_cast %5 : vector<1x8x256xbf16> to vector<8x256xbf16>
    %c1_7 = arith.constant 1 : index
    %c0_8 = arith.constant 0 : index
    %c0_9 = arith.constant 0 : index
    %7 = vector.load %arg2[%c1_7, %c0_8, %c0_9] : memref<9x256x256xbf16, #tpu.memory_space<vmem>>, vector<1x256x256xbf16>
    %8 = vector.shape_cast %7 : vector<1x256x256xbf16> to vector<256x256xbf16>
    %cst_10 = arith.constant dense<0.000000e+00> : vector<8x256xf32>
    %9 = tpu.matmul %6, %8, %cst_10 {dimension_numbers = #tpu.dot_dimension_numbers<[1], [0], [0], [1], [0, 0, 1, 1], [], []>} : vector<8x256xbf16>, vector<256x256xbf16>, vector<8x256xf32> -> vector<8x256xf32>
    %10 = arith.addf %4, %9 : vector<8x256xf32>
    %c0_11 = arith.constant 0 : index
    %c2 = arith.constant 2 : index
    %c0_12 = arith.constant 0 : index
    %11 = vector.load %arg1[%c0_11, %c2, %c0_12] : memref<1x20x256xbf16, #tpu.memory_space<vmem>>, vector<1x8x256xbf16>
    %12 = vector.shape_cast %11 : vector<1x8x256xbf16> to vector<8x256xbf16>
    %c2_13 = arith.constant 2 : index
    %c0_14 = arith.constant 0 : index
    %c0_15 = arith.constant 0 : index
    %13 = vector.load %arg2[%c2_13, %c0_14, %c0_15] : memref<9x256x256xbf16, #tpu.memory_space<vmem>>, vector<1x256x256xbf16>
    %14 = vector.shape_cast %13 : vector<1x256x256xbf16> to vector<256x256xbf16>
    %cst_16 = arith.constant dense<0.000000e+00> : vector<8x256xf32>
    %15 = tpu.matmul %12, %14, %cst_16 {dimension_numbers = #tpu.dot_dimension_numbers<[1], [0], [0], [1], [0, 0, 1, 1], [], []>} : vector<8x256xbf16>, vector<256x256xbf16>, vector<8x256xf32> -> vector<8x256xf32>
    %16 = arith.addf %10, %15 : vector<8x256xf32>
    %c0_17 = arith.constant 0 : index
    %c4 = arith.constant 4 : index
    %c0_18 = arith.constant 0 : index
    %17 = vector.load %arg1[%c0_17, %c4, %c0_18] : memref<1x20x256xbf16, #tpu.memory_space<vmem>>, vector<1x8x256xbf16>
    %18 = vector.shape_cast %17 : vector<1x8x256xbf16> to vector<8x256xbf16>
    %c3 = arith.constant 3 : index
    %c0_19 = arith.constant 0 : index
    %c0_20 = arith.constant 0 : index
    %19 = vector.load %arg2[%c3, %c0_19, %c0_20] : memref<9x256x256xbf16, #tpu.memory_space<vmem>>, vector<1x256x256xbf16>
    %20 = vector.shape_cast %19 : vector<1x256x256xbf16> to vector<256x256xbf16>
    %cst_21 = arith.constant dense<0.000000e+00> : vector<8x256xf32>
    %21 = tpu.matmul %18, %20, %cst_21 {dimension_numbers = #tpu.dot_dimension_numbers<[1], [0], [0], [1], [0, 0, 1, 1], [], []>} : vector<8x256xbf16>, vector<256x256xbf16>, vector<8x256xf32> -> vector<8x256xf32>
    %22 = arith.addf %16, %21 : vector<8x256xf32>
    %c0_22 = arith.constant 0 : index
    %c5 = arith.constant 5 : index
    %c0_23 = arith.constant 0 : index
    %23 = vector.load %arg1[%c0_22, %c5, %c0_23] : memref<1x20x256xbf16, #tpu.memory_space<vmem>>, vector<1x8x256xbf16>
    %24 = vector.shape_cast %23 : vector<1x8x256xbf16> to vector<8x256xbf16>
    %c4_24 = arith.constant 4 : index
    %c0_25 = arith.constant 0 : index
    %c0_26 = arith.constant 0 : index
    %25 = vector.load %arg2[%c4_24, %c0_25, %c0_26] : memref<9x256x256xbf16, #tpu.memory_space<vmem>>, vector<1x256x256xbf16>
    %26 = vector.shape_cast %25 : vector<1x256x256xbf16> to vector<256x256xbf16>
    %cst_27 = arith.constant dense<0.000000e+00> : vector<8x256xf32>
    %27 = tpu.matmul %24, %26, %cst_27 {dimension_numbers = #tpu.dot_dimension_numbers<[1], [0], [0], [1], [0, 0, 1, 1], [], []>} : vector<8x256xbf16>, vector<256x256xbf16>, vector<8x256xf32> -> vector<8x256xf32>
    %28 = arith.addf %22, %27 : vector<8x256xf32>
    %c0_28 = arith.constant 0 : index
    %c6 = arith.constant 6 : index
    %c0_29 = arith.constant 0 : index
    %29 = vector.load %arg1[%c0_28, %c6, %c0_29] : memref<1x20x256xbf16, #tpu.memory_space<vmem>>, vector<1x8x256xbf16>
    %30 = vector.shape_cast %29 : vector<1x8x256xbf16> to vector<8x256xbf16>
    %c5_30 = arith.constant 5 : index
    %c0_31 = arith.constant 0 : index
    %c0_32 = arith.constant 0 : index
    %31 = vector.load %arg2[%c5_30, %c0_31, %c0_32] : memref<9x256x256xbf16, #tpu.memory_space<vmem>>, vector<1x256x256xbf16>
    %32 = vector.shape_cast %31 : vector<1x256x256xbf16> to vector<256x256xbf16>
    %cst_33 = arith.constant dense<0.000000e+00> : vector<8x256xf32>
    %33 = tpu.matmul %30, %32, %cst_33 {dimension_numbers = #tpu.dot_dimension_numbers<[1], [0], [0], [1], [0, 0, 1, 1], [], []>} : vector<8x256xbf16>, vector<256x256xbf16>, vector<8x256xf32> -> vector<8x256xf32>
    %34 = arith.addf %28, %33 : vector<8x256xf32>
    %c0_34 = arith.constant 0 : index
    %c8 = arith.constant 8 : index
    %c0_35 = arith.constant 0 : index
    %35 = vector.load %arg1[%c0_34, %c8, %c0_35] : memref<1x20x256xbf16, #tpu.memory_space<vmem>>, vector<1x8x256xbf16>
    %36 = vector.shape_cast %35 : vector<1x8x256xbf16> to vector<8x256xbf16>
    %c6_36 = arith.constant 6 : index
    %c0_37 = arith.constant 0 : index
    %c0_38 = arith.constant 0 : index
    %37 = vector.load %arg2[%c6_36, %c0_37, %c0_38] : memref<9x256x256xbf16, #tpu.memory_space<vmem>>, vector<1x256x256xbf16>
    %38 = vector.shape_cast %37 : vector<1x256x256xbf16> to vector<256x256xbf16>
    %cst_39 = arith.constant dense<0.000000e+00> : vector<8x256xf32>
    %39 = tpu.matmul %36, %38, %cst_39 {dimension_numbers = #tpu.dot_dimension_numbers<[1], [0], [0], [1], [0, 0, 1, 1], [], []>} : vector<8x256xbf16>, vector<256x256xbf16>, vector<8x256xf32> -> vector<8x256xf32>
    %40 = arith.addf %34, %39 : vector<8x256xf32>
    %c0_40 = arith.constant 0 : index
    %c9 = arith.constant 9 : index
    %c0_41 = arith.constant 0 : index
    %41 = vector.load %arg1[%c0_40, %c9, %c0_41] : memref<1x20x256xbf16, #tpu.memory_space<vmem>>, vector<1x8x256xbf16>
    %42 = vector.shape_cast %41 : vector<1x8x256xbf16> to vector<8x256xbf16>
    %c7 = arith.constant 7 : index
    %c0_42 = arith.constant 0 : index
    %c0_43 = arith.constant 0 : index
    %43 = vector.load %arg2[%c7, %c0_42, %c0_43] : memref<9x256x256xbf16, #tpu.memory_space<vmem>>, vector<1x256x256xbf16>
    %44 = vector.shape_cast %43 : vector<1x256x256xbf16> to vector<256x256xbf16>
    %cst_44 = arith.constant dense<0.000000e+00> : vector<8x256xf32>
    %45 = tpu.matmul %42, %44, %cst_44 {dimension_numbers = #tpu.dot_dimension_numbers<[1], [0], [0], [1], [0, 0, 1, 1], [], []>} : vector<8x256xbf16>, vector<256x256xbf16>, vector<8x256xf32> -> vector<8x256xf32>
    %46 = arith.addf %40, %45 : vector<8x256xf32>
    %c0_45 = arith.constant 0 : index
    %c10 = arith.constant 10 : index
    %c0_46 = arith.constant 0 : index
    %47 = vector.load %arg1[%c0_45, %c10, %c0_46] : memref<1x20x256xbf16, #tpu.memory_space<vmem>>, vector<1x8x256xbf16>
    %48 = vector.shape_cast %47 : vector<1x8x256xbf16> to vector<8x256xbf16>
    %c8_47 = arith.constant 8 : index
    %c0_48 = arith.constant 0 : index
    %c0_49 = arith.constant 0 : index
    %49 = vector.load %arg2[%c8_47, %c0_48, %c0_49] : memref<9x256x256xbf16, #tpu.memory_space<vmem>>, vector<1x256x256xbf16>
    %50 = vector.shape_cast %49 : vector<1x256x256xbf16> to vector<256x256xbf16>
    %cst_50 = arith.constant dense<0.000000e+00> : vector<8x256xf32>
    %51 = tpu.matmul %48, %50, %cst_50 {dimension_numbers = #tpu.dot_dimension_numbers<[1], [0], [0], [1], [0, 0, 1, 1], [], []>} : vector<8x256xbf16>, vector<256x256xbf16>, vector<8x256xf32> -> vector<8x256xf32>
    %52 = arith.addf %46, %51 : vector<8x256xf32>
    %c0_51 = arith.constant 0 : index
    %c0_52 = arith.constant 0 : index
    %53 = vector.load %arg3[%c0_51, %c0_52] : memref<1x256xf32, #tpu.memory_space<vmem>>, vector<1x256xf32>
    %54 = vector.broadcast %53 : vector<1x256xf32> to vector<8x256xf32>
    %55 = arith.addf %52, %54 : vector<8x256xf32>
    %cst_53 = arith.constant 0.000000e+00 : f32
    %56 = vector.broadcast %cst_53 : f32 to vector<8x256xf32>
    %57 = arith.maximumf %55, %56 : vector<8x256xf32>
    %58 = arith.truncf %57 : vector<8x256xf32> to vector<8x256xbf16>
    %c0_54 = arith.constant 0 : index
    %c0_55 = arith.constant 0 : index
    %c0_56 = arith.constant 0 : index
    %59 = vector.load %arg4[%c0_54, %c0_55, %c0_56] : memref<1x8x256xbf16, #tpu.memory_space<vmem>>, vector<1x8x256xbf16>
    %60 = vector.shape_cast %59 : vector<1x8x256xbf16> to vector<8x256xbf16>
    %61 = vector.shape_cast %58 : vector<8x256xbf16> to vector<1x8x256xbf16>
    tpu.vector_store %arg4[%c0_54, %c0_55, %c0_56], %61 {strides = array<i32>} : memref<1x8x256xbf16, #tpu.memory_space<vmem>>, vector<1x8x256xbf16>,
    return
  }
  func.func @transform_0(%arg0: i32) -> (i32, i32, i32) {
    %c0_i32 = arith.constant 0 : i32
    %c0_i32_0 = arith.constant 0 : i32
    %c0_i32_1 = arith.constant 0 : i32
    return %arg0, %c0_i32, %c0_i32_0 : i32, i32, i32
  }
  func.func @transform_1(%arg0: i32) -> (i32, i32, i32) {
    %c0_i32 = arith.constant 0 : i32
    %c0_i32_0 = arith.constant 0 : i32
    %c0_i32_1 = arith.constant 0 : i32
    %c0_i32_2 = arith.constant 0 : i32
    return %c0_i32, %c0_i32_0, %c0_i32_1 : i32, i32, i32
  }
  func.func @transform_2(%arg0: i32) -> (i32, i32) {
    %c0_i32 = arith.constant 0 : i32
    %c0_i32_0 = arith.constant 0 : i32
    %c0_i32_1 = arith.constant 0 : i32
    return %c0_i32, %c0_i32_0 : i32, i32
  }
  func.func @transform_3(%arg0: i32) -> (i32, i32, i32) {
    %c0_i32 = arith.constant 0 : i32
    %c0_i32_0 = arith.constant 0 : i32
    %c0_i32_1 = arith.constant 0 : i32
    return %arg0, %c0_i32, %c0_i32_0 : i32, i32, i32
  }
}

module attributes {stable_mosaic.version = 11 : i64} {
  func.func @_tail_kernel(%arg0: memref<2x4x256xbf16, #tpu.memory_space<vmem>>, %arg1: memref<256x200xbf16, #tpu.memory_space<vmem>>, %arg2: memref<1x200xf32, #tpu.memory_space<vmem>>, %arg3: memref<200x10xbf16, #tpu.memory_space<vmem>>, %arg4: memref<1x10xf32, #tpu.memory_space<vmem>>, %arg5: memref<2x10xf32, #tpu.memory_space<vmem>>) attributes {dimension_semantics = [], scalar_prefetch = 0 : i64, scratch_operands = 0 : i64, tpu.core_type = #tpu.core_type<tc>} {
    %c0 = arith.constant 0 : index
    %c0_0 = arith.constant 0 : index
    %c0_1 = arith.constant 0 : index
    %0 = vector.load %arg0[%c0, %c0_0, %c0_1] : memref<2x4x256xbf16, #tpu.memory_space<vmem>>, vector<2x4x256xbf16>
    %1 = arith.extf %0 : vector<2x4x256xbf16> to vector<2x4x256xf32>
    %cst = arith.constant dense<0.000000e+00> : vector<2x256xf32>
    %2 = vector.multi_reduction <add>, %1, %cst [1] : vector<2x4x256xf32> to vector<2x256xf32>
    %cst_2 = arith.constant 4.000000e+00 : f32
    %3 = vector.broadcast %cst_2 : f32 to vector<2x256xf32>
    %4 = arith.divf %2, %3 : vector<2x256xf32>
    %5 = arith.truncf %4 : vector<2x256xf32> to vector<2x256xbf16>
    %c0_3 = arith.constant 0 : index
    %c0_4 = arith.constant 0 : index
    %6 = vector.load %arg1[%c0_3, %c0_4] : memref<256x200xbf16, #tpu.memory_space<vmem>>, vector<256x200xbf16>
    %cst_5 = arith.constant dense<0.000000e+00> : vector<2x200xf32>
    %7 = tpu.matmul %5, %6, %cst_5 {dimension_numbers = #tpu.dot_dimension_numbers<[1], [0], [0], [1], [0, 0, 1, 1], [], []>} : vector<2x256xbf16>, vector<256x200xbf16>, vector<2x200xf32> -> vector<2x200xf32>
    %c0_6 = arith.constant 0 : index
    %c0_7 = arith.constant 0 : index
    %8 = vector.load %arg2[%c0_6, %c0_7] : memref<1x200xf32, #tpu.memory_space<vmem>>, vector<1x200xf32>
    %9 = vector.broadcast %8 : vector<1x200xf32> to vector<2x200xf32>
    %10 = arith.addf %7, %9 : vector<2x200xf32>
    %cst_8 = arith.constant 0.000000e+00 : f32
    %11 = vector.broadcast %cst_8 : f32 to vector<2x200xf32>
    %12 = arith.maximumf %10, %11 : vector<2x200xf32>
    %13 = arith.truncf %12 : vector<2x200xf32> to vector<2x200xbf16>
    %c0_9 = arith.constant 0 : index
    %c0_10 = arith.constant 0 : index
    %14 = vector.load %arg3[%c0_9, %c0_10] : memref<200x10xbf16, #tpu.memory_space<vmem>>, vector<200x10xbf16>
    %cst_11 = arith.constant dense<0.000000e+00> : vector<2x10xf32>
    %15 = tpu.matmul %13, %14, %cst_11 {dimension_numbers = #tpu.dot_dimension_numbers<[1], [0], [0], [1], [0, 0, 1, 1], [], []>} : vector<2x200xbf16>, vector<200x10xbf16>, vector<2x10xf32> -> vector<2x10xf32>
    %c0_12 = arith.constant 0 : index
    %c0_13 = arith.constant 0 : index
    %16 = vector.load %arg4[%c0_12, %c0_13] : memref<1x10xf32, #tpu.memory_space<vmem>>, vector<1x10xf32>
    %17 = vector.broadcast %16 : vector<1x10xf32> to vector<2x10xf32>
    %18 = arith.addf %15, %17 : vector<2x10xf32>
    %cst_14 = arith.constant dense<0xFF800000> : vector<2xf32>
    %19 = vector.multi_reduction <maximumf>, %18, %cst_14 [1] : vector<2x10xf32> to vector<2xf32>
    %20 = vector.shape_cast %19 : vector<2xf32> to vector<2x1xf32>
    %21 = vector.broadcast %20 : vector<2x1xf32> to vector<2x10xf32>
    %22 = arith.subf %18, %21 : vector<2x10xf32>
    %23 = math.exp %22 : vector<2x10xf32>
    %cst_15 = arith.constant dense<0.000000e+00> : vector<2xf32>
    %24 = vector.multi_reduction <add>, %23, %cst_15 [1] : vector<2x10xf32> to vector<2xf32>
    %25 = vector.shape_cast %24 : vector<2xf32> to vector<2x1xf32>
    %26 = math.log %25 : vector<2x1xf32>
    %27 = vector.broadcast %26 : vector<2x1xf32> to vector<2x10xf32>
    %28 = arith.subf %22, %27 : vector<2x10xf32>
    %c0_16 = arith.constant 0 : index
    %c0_17 = arith.constant 0 : index
    %29 = vector.load %arg5[%c0_16, %c0_17] : memref<2x10xf32, #tpu.memory_space<vmem>>, vector<2x10xf32>
    tpu.vector_store %arg5[%c0_16, %c0_17], %28 {strides = array<i32>} : memref<2x10xf32, #tpu.memory_space<vmem>>, vector<2x10xf32>,
    return
  }
}

</mosaic_0001>

<bundles_post_ra>
// kernel: cnn_forward.8
= control target key start
LH: loop header
LB: loop body
LE: loop exit
PB: predicated region body
PF: predicated region fallthrough
CT: control target
= control target key end

     0   :  { %s1233_s12 = smov 0   ;;  %s1501_s0 = inlined_call_operand.vmem [shape: bf16[2,64,512], index: 0, kind: input, shape index: {}]   ;;  %s1502_s1 = inlined_call_operand.vmem [shape: bf16[1,512,256], index: 1, kind: input, shape index: {}]   ;;  %s1503_s2 = inlined_call_operand.vmem [shape: f32[1,256], index: 2, kind: input, shape index: {}]   ;;  %s1504_s3 = inlined_call_operand.vmem [shape: bf16[2,64,256], index: 3, kind: output, shape index: {}]  }
   0x1 LB: > { %s936_s13 = sadd.s32 4294967295, %s1211_s12   ;;  %p940_p0 = scmp.ge.s32.totalorder %s1211_s12, 1  ;;  %s1211_s12 = sphi %s1233_s12, %s13_s12  }
   0x2   : > { %p137_p1 = scmp.lt.s32.totalorder %s1211_s12, 3 }
   0x4   : > { %p138_p2 = pnand %p940_p0, %p137_p1 }
   0x5   : > { %v1085_v0 = vld [vmem:[%s1502_s1 + $0x4] ss:$8 sps:$4 sm:$0xff] (!%p138_p2)   ;;  %v1089_v2 = vld [vmem:[%s1502_s1] ss:$8 sps:$4 sm:$0xff] (!%p138_p2)   ;;  %v1091_v4 = vld [vmem:[%s1502_s1 + $0x14] ss:$8 sps:$4 sm:$0xff] (!%p138_p2)  }
   0x6   : > { %141 = sbr.rel (%p138_p2) target bundleno = 318 (0x13e), region = 32  ;;  %v1087_v1 = vld [vmem:[%s1502_s1 + $0x104] ss:$8 sps:$4 sm:$0xff] (!%p138_p2)   ;;  %663 = vmatprep.subr.bf16.mxu1 (!%p138_p2), %v1085_v0  ;;  %v1090_v3 = vld [vmem:[%s1502_s1 + $0x100] ss:$8 sps:$4 sm:$0xff] (!%p138_p2)   ;;  %p161_p3 = scmp.lt.s32.totalorder (!%p138_p2), %s936_s13, 1 }
   0x7   : > { %736 = vmatprep.subr.bf16.mxu0 (!%p138_p2), %v1087_v1  ;;  %664 = vmatpush1.bf16.msra.mxu1 (!%p138_p2), %v1089_v2  ;;  %v1093_v5 = vld [vmem:[%s1502_s1 + $0x114] ss:$8 sps:$4 sm:$0xff] (!%p138_p2)   ;;  %v1095_v6 = vld [vmem:[%s1502_s1 + $0x10] ss:$8 sps:$4 sm:$0xff] (!%p138_p2)   ;;  %v1097_v8 = vld [vmem:[%s1502_s1 + $0x24] ss:$8 sps:$4 sm:$0xff] (!%p138_p2)  }
   0x8   : > { %737 = vmatpush1.bf16.msra.mxu0 (!%p138_p2), %v1090_v3  ;;  %665 = vmatprep.subr.bf16.mxu1 (!%p138_p2), %v1091_v4  ;;  %v1096_v7 = vld [vmem:[%s1502_s1 + $0x110] ss:$8 sps:$4 sm:$0xff] (!%p138_p2)   ;;  %v1099_v9 = vld [vmem:[%s1502_s1 + $0x124] ss:$8 sps:$4 sm:$0xff] (!%p138_p2)   ;;  %v1101_v10 = vld [vmem:[%s1502_s1 + $0x20] ss:$8 sps:$4 sm:$0xff] (!%p138_p2)  }
   0x9   : > { %738 = vmatprep.subr.bf16.mxu0 (!%p138_p2), %v1093_v5  ;;  %v1102_v11 = vld [vmem:[%s1502_s1 + $0x120] ss:$8 sps:$4 sm:$0xff] (!%p138_p2)   ;;  %v1103_v12 = vld [vmem:[%s1502_s1 + $0x34] ss:$8 sps:$4 sm:$0xff] (!%p138_p2)   ;;  %v1107_v14 = vld [vmem:[%s1502_s1 + $0x30] ss:$8 sps:$4 sm:$0xff] (!%p138_p2)  }
   0xa   : > { %v1105_v13 = vld [vmem:[%s1502_s1 + $0x134] ss:$8 sps:$4 sm:$0xff] (!%p138_p2)   ;;  %v1108_v15 = vld [vmem:[%s1502_s1 + $0x130] ss:$8 sps:$4 sm:$0xff] (!%p138_p2)   ;;  %v1109_v16 = vld [vmem:[%s1502_s1 + $0x44] ss:$8 sps:$4 sm:$0xff] (!%p138_p2)  }
   0xb   : > { %666 = vmatpush1.bf16.msra.mxu1 (!%p138_p2), %v1095_v6  ;;  %v1111_v17 = vld [vmem:[%s1502_s1 + $0x144] ss:$8 sps:$4 sm:$0xff] (!%p138_p2)   ;;  %v1113_v18 = vld [vmem:[%s1502_s1 + $0x40] ss:$8 sps:$4 sm:$0xff] (!%p138_p2)   ;;  %v1115_v20 = vld [vmem:[%s1502_s1 + $0x54] ss:$8 sps:$4 sm:$0xff] (!%p138_p2)  }
   0xc   : > { %739 = vmatpush1.bf16.msra.mxu0 (!%p138_p2), %v1096_v7  ;;  %667 = vmatprep.subr.bf16.mxu1 (!%p138_p2), %v1097_v8  ;;  %v1114_v19 = vld [vmem:[%s1502_s1 + $0x140] ss:$8 sps:$4 sm:$0xff] (!%p138_p2)   ;;  %v1117_v21 = vld [vmem:[%s1502_s1 + $0x154] ss:$8 sps:$4 sm:$0xff] (!%p138_p2)   ;;  %v1119_v22 = vld [vmem:[%s1502_s1 + $0x50] ss:$8 sps:$4 sm:$0xff] (!%p138_p2)  }
   0xd   : > { %740 = vmatprep.subr.bf16.mxu0 %v1099_v9  ;;  %v1120_v23 = vld [vmem:[%s1502_s1 + $0x150] ss:$8 sps:$4 sm:$0xff]   ;;  %v1121_v24 = vld [vmem:[%s1502_s1 + $0x64] ss:$8 sps:$4 sm:$0xff]   ;;  %v1125_v26 = vld [vmem:[%s1502_s1 + $0x60] ss:$8 sps:$4 sm:$0xff]  }
   0xe   : > { %v1123_v25 = vld [vmem:[%s1502_s1 + $0x164] ss:$8 sps:$4 sm:$0xff]   ;;  %v1126_v27 = vld [vmem:[%s1502_s1 + $0x160] ss:$8 sps:$4 sm:$0xff]   ;;  %v1127_v28 = vld [vmem:[%s1502_s1 + $0x74] ss:$8 sps:$4 sm:$0xff]  }
   0xf   : > { %668 = vmatpush1.bf16.msra.mxu1 %v1101_v10  ;;  %v1129_v29 = vld [vmem:[%s1502_s1 + $0x174] ss:$8 sps:$4 sm:$0xff]   ;;  %v1131_v30 = vld [vmem:[%s1502_s1 + $0x70] ss:$8 sps:$4 sm:$0xff]   ;;  %v1133_v32 = vld [vmem:[%s1502_s1 + $0x84] ss:$8 sps:$4 sm:$0xff]  }
  0x10   : > { %741 = vmatpush1.bf16.msra.mxu0 %v1102_v11  ;;  %669 = vmatprep.subr.bf16.mxu1 %v1103_v12  ;;  %v1132_v31 = vld [vmem:[%s1502_s1 + $0x170] ss:$8 sps:$4 sm:$0xff]   ;;  %v1135_v33 = vld [vmem:[%s1502_s1 + $0x184] ss:$8 sps:$4 sm:$0xff]   ;;  %v1137_v34 = vld [vmem:[%s1502_s1 + $0x80] ss:$8 sps:$4 sm:$0xff]  }
  0x11   : > { %742 = vmatprep.subr.bf16.mxu0 %v1105_v13  ;;  %v1138_v35 = vld [vmem:[%s1502_s1 + $0x180] ss:$8 sps:$4 sm:$0xff]   ;;  %v1139_v36 = vld [vmem:[%s1502_s1 + $0x94] ss:$8 sps:$4 sm:$0xff]   ;;  %s1506_s13 = smov (!%p161_p3, %s936_s13), 1 }
  0x12   : > { %v1141_v37 = vld [vmem:[%s1502_s1 + $0x194] ss:$8 sps:$4 sm:$0xff]   ;;  %v1143_v38 = vld [vmem:[%s1502_s1 + $0x90] ss:$8 sps:$4 sm:$0xff]   ;;  %v1145_v40 = vld [vmem:[%s1502_s1 + $0xa4] ss:$8 sps:$4 sm:$0xff]  }
  0x13   : > { %670 = vmatpush1.bf16.msra.mxu1 %v1107_v14  ;;  %v1144_v39 = vld [vmem:[%s1502_s1 + $0x190] ss:$8 sps:$4 sm:$0xff]   ;;  %v1147_v41 = vld [vmem:[%s1502_s1 + $0x1a4] ss:$8 sps:$4 sm:$0xff]   ;;  %s1035_s23 = sshll.u32 %s1506_s13, 7 }
  0x14   : > { %743 = vmatpush1.bf16.msra.mxu0 %v1108_v15  ;;  %671 = vmatprep.subr.bf16.mxu1 %v1109_v16  ;;  %v1149_v42 = vld [vmem:[%s1502_s1 + $0xa0] ss:$8 sps:$4 sm:$0xff]   ;;  %v1151_v44 = vld [vmem:[%s1502_s1 + $0xb4] ss:$8 sps:$4 sm:$0xff]   ;;  %s1386_s5 = scalar_lea.vmem %s1501_s0, %s1035_s23  ;;  %v1155_v46 = vld [vmem:[%s1502_s1 + $0xb0] ss:$8 sps:$4 sm:$0xff]   ;;  %v253_v16 = vlaneseq }
  0x15   : > { %744 = vmatprep.subr.bf16.mxu0 %v1111_v17  ;;  %v1150_v43 = vld [vmem:[%s1502_s1 + $0x1a0] ss:$8 sps:$4 sm:$0xff]   ;;  %v1153_v45 = vld [vmem:[%s1502_s1 + $0x1b4] ss:$8 sps:$4 sm:$0xff]   ;;  %v1156_v47 = vld [vmem:[%s1502_s1 + $0x1b0] ss:$8 sps:$4 sm:$0xff]  }
  0x16   : > { %v1157_v48 = vld [vmem:[%s1502_s1 + $0xc4] ss:$8 sps:$4 sm:$0xff]   ;;  %v1161_v52 = vld [vmem:[%s1502_s1 + $0xc0] ss:$8 sps:$4 sm:$0xff]   ;;  %v1163_v54 = vld [vmem:[%s1502_s1 + $0xd4] ss:$8 sps:$4 sm:$0xff]  }
  0x17   : > { %672 = vmatpush1.bf16.msra.mxu1 %v1113_v18  ;;  %v1183_v49 = vld [vmem:[%s1386_s5 + $0x4] ss:$16 sps:$4 sm:$0xff]   ;;  %v1186_v51 = vld [vmem:[%s1386_s5 + $0xc] ss:$16 sps:$4 sm:$0xff]   ;;  %v1162_v53 = vld [vmem:[%s1502_s1 + $0x1c0] ss:$8 sps:$4 sm:$0xff]  }
  0x18   : > { %745 = vmatpush1.bf16.msra.mxu0 %v1114_v19  ;;  %673 = vmatprep.subr.bf16.mxu1 %v1115_v20  ;;  %v1159_v50 = vld [vmem:[%s1502_s1 + $0x1c4] ss:$8 sps:$4 sm:$0xff]   ;;  %v1165_v55 = vld [vmem:[%s1502_s1 + $0x1d4] ss:$8 sps:$4 sm:$0xff]   ;;  %v1167_v56 = vld [vmem:[%s1502_s1 + $0xd0] ss:$8 sps:$4 sm:$0xff]  }
  0x19   : > { %746 = vmatprep.subr.bf16.mxu0 %v1117_v21  ;;  %695 = vmatprep.mubr.bf16.mxu1 %v1183_v49  ;;  %v1168_v57 = vld [vmem:[%s1502_s1 + $0x1d0] ss:$8 sps:$4 sm:$0xff]   ;;  %v1169_v58 = vld [vmem:[%s1502_s1 + $0xe4] ss:$8 sps:$4 sm:$0xff]   ;;  %v1173_v60 = vld [vmem:[%s1502_s1 + $0xe0] ss:$8 sps:$4 sm:$0xff]  }
  0x1a   : > { %768 = vmatprep.mubr.bf16.mxu0 %v1186_v51  ;;  %v1171_v59 = vld [vmem:[%s1502_s1 + $0x1e4] ss:$8 sps:$4 sm:$0xff]   ;;  %v1174_v61 = vld [vmem:[%s1502_s1 + $0x1e0] ss:$8 sps:$4 sm:$0xff]   ;;  %v1175_v62 = vld [vmem:[%s1502_s1 + $0xf4] ss:$8 sps:$4 sm:$0xff]  }
  0x1b   : > { %674 = vmatpush1.bf16.msra.mxu1 %v1119_v22  ;;  %v1177_v63 = vld [vmem:[%s1502_s1 + $0x1f4] ss:$8 sps:$4 sm:$0xff]   ;;  %v1179_v0 = vld [vmem:[%s1502_s1 + $0xf0] ss:$8 sps:$4 sm:$0xff]   ;;  %v254_v17 = vshrl.u32 %v253_v16, 7 }
  0x1c   : > { %747 = vmatpush1.bf16.msra.mxu0 %v1120_v23  ;;  %675 = vmatprep.subr.bf16.mxu1 %v1121_v24  ;;  %v1180_v1 = vld [vmem:[%s1502_s1 + $0x1f0] ss:$8 sps:$4 sm:$0xff]   ;;  %v1187_v4 = vld [vmem:[%s1386_s5 + $0x24] ss:$16 sps:$4 sm:$0xff]   ;;  %v1189_v5 = vld [vmem:[%s1386_s5 + $0x2c] ss:$16 sps:$4 sm:$0xff]  }
  0x1d   : > { %748 = vmatprep.subr.bf16.mxu0 %v1123_v25  ;;  %v1181_v2 = vld [vmem:[%s1386_s5] ss:$16 sps:$4 sm:$0xff]   ;;  %v1184_v3 = vld [vmem:[%s1386_s5 + $0x8] ss:$16 sps:$4 sm:$0xff]   ;;  %v1193_v8 = vld [vmem:[%s1386_s5 + $0x44] ss:$16 sps:$4 sm:$0xff]  }
  0x1e   : > { %v1191_v6 = vld [vmem:[%s1386_s5 + $0x20] ss:$16 sps:$4 sm:$0xff]   ;;  %v1192_v7 = vld [vmem:[%s1386_s5 + $0x28] ss:$16 sps:$4 sm:$0xff]   ;;  %v1195_v9 = vld [vmem:[%s1386_s5 + $0x4c] ss:$16 sps:$4 sm:$0xff]  }
  0x1f   : > { %676 = vmatpush1.bf16.msra.mxu1 %v1125_v26  ;;  %v1197_v10 = vld [vmem:[%s1386_s5 + $0x40] ss:$16 sps:$4 sm:$0xff]   ;;  %v1198_v11 = vld [vmem:[%s1386_s5 + $0x48] ss:$16 sps:$4 sm:$0xff]   ;;  %v1199_v12 = vld [vmem:[%s1386_s5 + $0x64] ss:$16 sps:$4 sm:$0xff]  }
  0x20   : > { %749 = vmatpush1.bf16.msra.mxu0 %v1126_v27  ;;  %677 = vmatprep.subr.bf16.mxu1 %v1127_v28  ;;  %v1201_v13 = vld [vmem:[%s1386_s5 + $0x6c] ss:$16 sps:$4 sm:$0xff]   ;;  %v1203_v14 = vld [vmem:[%s1386_s5 + $0x60] ss:$16 sps:$4 sm:$0xff]   ;;  %v1204_v15 = vld [vmem:[%s1386_s5 + $0x68] ss:$16 sps:$4 sm:$0xff]  }
  0x21   : > { %750 = vmatprep.subr.bf16.mxu0 %v1129_v29  ;;  %v255_v18 = vsub.s32 0, %v254_v17  ;;  %v251_v19 = vld [vmem:[%s1503_s2] sm:$0x3]  ;;  %v259_v20 = vsub.s32 1, %v254_v17  ;;  %s1036_s5 = sshll.u32 %s1506_s13, 6 }
  0x22   : > { %s1476_s26 = scalar_lea.vmem %s1504_s3, %s1036_s5 }
  0x23   : > { %678 = vmatpush1.bf16.msra.mxu1 %v1131_v30  ;;  %v1464_v21 = vrot.slane %v251_v19, %v255_v18  ;;  %v1466_v22 = vrot.slane %v251_v19, %v259_v20 }
  0x24   : > { %751 = vmatpush1.bf16.msra.mxu0 %v1132_v31  ;;  %679 = vmatprep.subr.bf16.mxu1 %v1133_v32 }
  0x25   : > { %752 = vmatprep.subr.bf16.mxu0 %v1135_v33 }
  0x27   : > { %680 = vmatpush1.bf16.msra.mxu1 %v1137_v34 }
  0x28   : > { %753 = vmatpush1.bf16.msra.mxu0 %v1138_v35  ;;  %681 = vmatprep.subr.bf16.mxu1 %v1139_v36 }
  0x29   : > { %754 = vmatprep.subr.bf16.mxu0 %v1141_v37 }
  0x2b   : > { %682 = vmatpush1.bf16.msra.mxu1 %v1143_v38 }
  0x2c   : > { %755 = vmatpush1.bf16.msra.mxu0 %v1144_v39  ;;  %683 = vmatprep.subr.bf16.mxu1 %v1145_v40 }
  0x2d   : > { %756 = vmatprep.subr.bf16.mxu0 %v1147_v41 }
  0x2f   : > { %684 = vmatpush1.bf16.msra.mxu1 %v1149_v42 }
  0x30   : > { %757 = vmatpush1.bf16.msra.mxu0 %v1150_v43  ;;  %685 = vmatprep.subr.bf16.mxu1 %v1151_v44 }
  0x31   : > { %758 = vmatprep.subr.bf16.mxu0 %v1153_v45 }
  0x33   : > { %686 = vmatpush1.bf16.msra.mxu1 %v1155_v46 }
  0x34   : > { %759 = vmatpush1.bf16.msra.mxu0 %v1156_v47  ;;  %687 = vmatprep.subr.bf16.mxu1 %v1157_v48 }
  0x35   : > { %760 = vmatprep.subr.bf16.mxu0 %v1159_v50 }
  0x37   : > { %688 = vmatpush1.bf16.msra.mxu1 %v1161_v52 }
  0x38   : > { %761 = vmatpush1.bf16.msra.mxu0 %v1162_v53  ;;  %689 = vmatprep.subr.bf16.mxu1 %v1163_v54 }
  0x39   : > { %762 = vmatprep.subr.bf16.mxu0 %v1165_v55 }
  0x3b   : > { %690 = vmatpush1.bf16.msra.mxu1 %v1167_v56 }
  0x3c   : > { %763 = vmatpush1.bf16.msra.mxu0 %v1168_v57  ;;  %691 = vmatprep.subr.bf16.mxu1 %v1169_v58 }
  0x3d   : > { %764 = vmatprep.subr.bf16.mxu0 %v1171_v59 }
  0x3f   : > { %692 = vmatpush1.bf16.msra.mxu1 %v1173_v60 }
  0x40   : > { %765 = vmatpush1.bf16.msra.mxu0 %v1174_v61  ;;  %693 = vmatprep.subr.bf16.mxu1 %v1175_v62 }
  0x41   : > { %766 = vmatprep.subr.bf16.mxu0 %v1177_v63 }
  0x43   : > { %694 = vmatpush1.bf16.msra.mxu1 %v1179_v0 }
  0x44   : > { %767 = vmatpush1.bf16.msra.mxu0 %v1180_v1 }
  0x46   : > { %696 = vmatmul.mubr.bf16.vlgmr.msra.gmra.mrb[0].mxu1 %v1181_v2 }
  0x47   : > { %769 = vmatmul.mubr.bf16.vlgmr.msra.gmra.mrb[0].mxu0 %v1184_v3  ;;  %705 = vmatprep.mubr.bf16.mxu1 %v1187_v4 }
  0x48   : > { %778 = vmatprep.mubr.bf16.mxu0 %v1189_v5 }
  0x4e   : > { %706 = vmatmul.mubr.bf16.gmra.mrb[4].mxu1 %v1191_v6 }
  0x4f   : > { %779 = vmatmul.mubr.bf16.gmra.mrb[4].mxu0 %v1192_v7  ;;  %715 = vmatprep.mubr.bf16.mxu1 %v1193_v8 }
  0x50   : > { %788 = vmatprep.mubr.bf16.mxu0 %v1195_v9 }
  0x56   : > { %716 = vmatmul.mubr.bf16.gmra.mrb[8].mxu1 %v1197_v10 }
  0x57   : > { %789 = vmatmul.mubr.bf16.gmra.mrb[8].mxu0 %v1198_v11  ;;  %725 = vmatprep.mubr.bf16.mxu1 %v1199_v12 }
  0x58   : > { %798 = vmatprep.mubr.bf16.mxu0 %v1201_v13 }
  0x5e   : > { %726 = vmatmul.mubr.bf16.gmra.mrb[12].mxu1 %v1203_v14 }
  0x5f   : > { %799 = vmatmul.mubr.bf16.gmra.mrb[12].mxu0 %v1204_v15 }
 0x119   : > { %v697_v23 = vpop.f32.mrb[0].mxu1 }
 0x11a   : > { %v770_v24 = vpop.f32.mrb[0].mxu0  ;;  %v698_v25 = vadd.f32 %v697_v23, %v1464_v21  ;;  %v699_v26 = vpop.f32.mrb[1].mxu1 }
 0x11b   : > { %v772_v27 = vpop.f32.mrb[1].mxu0  ;;  %v700_v28 = vadd.f32 %v699_v26, %v1466_v22  ;;  %v701_v29 = vpop.f32.mrb[2].mxu1 }
 0x11c   : > { %v774_v30 = vpop.f32.mrb[2].mxu0  ;;  %v771_v31 = vadd.f32 %v770_v24, %v698_v25  ;;  %v702_v32 = vadd.f32 %v701_v29, %v1464_v21  ;;  %v703_v33 = vpop.f32.mrb[3].mxu1 }
 0x11d   : > { %v776_v34 = vpop.f32.mrb[3].mxu0  ;;  %v773_v35 = vadd.f32 %v772_v27, %v700_v28  ;;  %v704_v36 = vadd.f32 %v703_v33, %v1466_v22 }
 0x11e   : > { %v809_v37 = vmax.f32 %v771_v31, 0.0  ;;  %v775_v38 = vadd.f32 %v774_v30, %v702_v32 }
 0x11f   : > { %v810_v39 = vmax.f32 %v773_v35, 0.0  ;;  %v777_v40 = vadd.f32 %v776_v34, %v704_v36 }
 0x120   : > { %v811_v41 = vmax.f32 %v775_v38, 0.0 }
 0x121   : > { %v1037_v42 = vpack.c.bf16 %v810_v39, %v809_v37  ;;  %v812_v43 = vmax.f32 %v777_v40, 0.0  ;;  %v707_v44 = vpop.f32.mrb[4].mxu1 }
 0x122   : > { %v780_v45 = vpop.f32.mrb[4].mxu0  ;;  %v708_v46 = vadd.f32 %v707_v44, %v1464_v21  ;;  %v709_v47 = vpop.f32.mrb[5].mxu1 }
 0x123   : > { %v782_v48 = vpop.f32.mrb[5].mxu0  ;;  %873 = vst [vmem:[%s1476_s26] sm:$0xff] %v1037_v42  ;;  %v1038_v49 = vpack.c.bf16 %v812_v43, %v811_v41  ;;  %v710_v50 = vadd.f32 %v709_v47, %v1466_v22  ;;  %v711_v51 = vpop.f32.mrb[6].mxu1 }
 0x124   : > { %v784_v52 = vpop.f32.mrb[6].mxu0  ;;  %v781_v53 = vadd.f32 %v780_v45, %v708_v46  ;;  %v712_v54 = vadd.f32 %v711_v51, %v1464_v21  ;;  %v713_v55 = vpop.f32.mrb[7].mxu1 }
 0x125   : > { %v786_v56 = vpop.f32.mrb[7].mxu0  ;;  %874 = vst [vmem:[%s1476_s26 + $0x8] sm:$0xff] %v1038_v49  ;;  %v783_v57 = vadd.f32 %v782_v48, %v710_v50  ;;  %v714_v58 = vadd.f32 %v713_v55, %v1466_v22 }
 0x126   : > { %v813_v59 = vmax.f32 %v781_v53, 0.0  ;;  %v785_v60 = vadd.f32 %v784_v52, %v712_v54 }
 0x127   : > { %v814_v61 = vmax.f32 %v783_v57, 0.0  ;;  %v787_v62 = vadd.f32 %v786_v56, %v714_v58 }
 0x128   : > { %v815_v63 = vmax.f32 %v785_v60, 0.0 }
 0x129   : > { %v1039_v0 = vpack.c.bf16 %v814_v61, %v813_v59  ;;  %v816_v1 = vmax.f32 %v787_v62, 0.0  ;;  %v717_v2 = vpop.f32.mrb[8].mxu1 }
 0x12a   : > { %v790_v3 = vpop.f32.mrb[8].mxu0  ;;  %v718_v4 = vadd.f32 %v717_v2, %v1464_v21  ;;  %v719_v5 = vpop.f32.mrb[9].mxu1 }
 0x12b   : > { %v792_v6 = vpop.f32.mrb[9].mxu0  ;;  %875 = vst [vmem:[%s1476_s26 + $0x10] sm:$0xff] %v1039_v0  ;;  %v1040_v7 = vpack.c.bf16 %v816_v1, %v815_v63  ;;  %v720_v8 = vadd.f32 %v719_v5, %v1466_v22  ;;  %v721_v9 = vpop.f32.mrb[10].mxu1 }
 0x12c   : > { %v794_v10 = vpop.f32.mrb[10].mxu0  ;;  %v791_v11 = vadd.f32 %v790_v3, %v718_v4  ;;  %v722_v12 = vadd.f32 %v721_v9, %v1464_v21  ;;  %v723_v13 = vpop.f32.mrb[11].mxu1 }
 0x12d   : > { %v796_v14 = vpop.f32.mrb[11].mxu0  ;;  %876 = vst [vmem:[%s1476_s26 + $0x18] sm:$0xff] %v1040_v7  ;;  %v793_v15 = vadd.f32 %v792_v6, %v720_v8  ;;  %v724_v16 = vadd.f32 %v723_v13, %v1466_v22 }
 0x12e   : > { %v817_v17 = vmax.f32 %v791_v11, 0.0  ;;  %v795_v18 = vadd.f32 %v794_v10, %v722_v12 }
 0x12f   : > { %v818_v19 = vmax.f32 %v793_v15, 0.0  ;;  %v797_v20 = vadd.f32 %v796_v14, %v724_v16 }
 0x130   : > { %v819_v23 = vmax.f32 %v795_v18, 0.0 }
 0x131   : > { %v1041_v24 = vpack.c.bf16 %v818_v19, %v817_v17  ;;  %v820_v25 = vmax.f32 %v797_v20, 0.0  ;;  %v727_v26 = vpop.f32.mrb[12].mxu1 }
 0x132   : > { %v800_v27 = vpop.f32.mrb[12].mxu0  ;;  %v728_v28 = vadd.f32 %v727_v26, %v1464_v21  ;;  %v729_v29 = vpop.f32.mrb[13].mxu1 }
 0x133   : > { %v802_v30 = vpop.f32.mrb[13].mxu0  ;;  %877 = vst [vmem:[%s1476_s26 + $0x20] sm:$0xff] %v1041_v24  ;;  %v1042_v31 = vpack.c.bf16 %v820_v25, %v819_v23  ;;  %v730_v32 = vadd.f32 %v729_v29, %v1466_v22  ;;  %v731_v33 = vpop.f32.mrb[14].mxu1 }
 0x134   : > { %v804_v34 = vpop.f32.mrb[14].mxu0  ;;  %v801_v35 = vadd.f32 %v800_v27, %v728_v28  ;;  %v732_v36 = vadd.f32 %v731_v33, %v1464_v21  ;;  %v733_v37 = vpop.f32.mrb[15].mxu1 }
 0x135   : > { %v806_v38 = vpop.f32.mrb[15].mxu0  ;;  %878 = vst [vmem:[%s1476_s26 + $0x28] sm:$0xff] %v1042_v31  ;;  %v803_v39 = vadd.f32 %v802_v30, %v730_v32  ;;  %v734_v40 = vadd.f32 %v733_v37, %v1466_v22 }
 0x136   : > { %v821_v41 = vmax.f32 %v801_v35, 0.0  ;;  %v805_v42 = vadd.f32 %v804_v34, %v732_v36 }
 0x137   : > { %v822_v43 = vmax.f32 %v803_v39, 0.0  ;;  %v807_v44 = vadd.f32 %v806_v38, %v734_v40 }
 0x138   : > { %v823_v45 = vmax.f32 %v805_v42, 0.0 }
 0x139   : > { %v1043_v46 = vpack.c.bf16 %v822_v43, %v821_v41  ;;  %v824_v47 = vmax.f32 %v807_v44, 0.0 }
 0x13b   : > { %879 = vst [vmem:[%s1476_s26 + $0x30] sm:$0xff] %v1043_v46  ;;  %v1044_v48 = vpack.c.bf16 %v824_v47, %v823_v45 }
 0x13d   : > { %880 = vst [vmem:[%s1476_s26 + $0x38] sm:$0xff] %v1044_v48 }
 0x13e PF: > { %s13_s12 = sadd.s32 1, %s1211_s12  }
 0x13f   : > { %p10_p4 = scmp.ge.s32.totalorder %s13_s12, 4  }
 0x141   :  { %12 = sbr.rel (!%p10_p4) target bundleno = 1 (0x1), region = 62 }

// kernel: cnn_forward.7
= control target key start
LH: loop header
LB: loop body
LE: loop exit
PB: predicated region body
PF: predicated region fallthrough
CT: control target
= control target key end

     0   :  { %s5838_s12 = smov 0   ;;  %s6754_s0 = inlined_call_operand.vmem [shape: bf16[2,342,128], index: 0, kind: input, shape index: {}]   ;;  %s6755_s1 = inlined_call_operand.vmem [shape: bf16[9,128,128], index: 1, kind: input, shape index: {}]   ;;  %s6756_s2 = inlined_call_operand.vmem [shape: f32[1,128], index: 2, kind: input, shape index: {}]   ;;  %s6757_s3 = inlined_call_operand.vmem [shape: bf16[2,288,128], index: 3, kind: output, shape index: {}]  }
   0x1 LB: > { %s4166_s13 = sadd.s32 4294967295, %s5816_s12   ;;  %p4170_p0 = scmp.ge.s32.totalorder %s5816_s12, 1  ;;  %s5816_s12 = sphi %s5838_s12, %s13_s12  }
   0x2   : > { %p137_p1 = scmp.lt.s32.totalorder %s5816_s12, 3 }
   0x4   : > { %p138_p2 = pnand %p4170_p0, %p137_p1 }
   0x5   : > { %v5633_v0 = vld [vmem:[%s6755_s1 + $0x40] sm:$0xff] (!%p138_p2)   ;;  %p161_p3 = scmp.lt.s32.totalorder (!%p138_p2), %s4166_s13, 1  ;;  %v5635_v2 = vld [vmem:[%s6755_s1 + $0x48] sm:$0xff] (!%p138_p2)   ;;  %v5637_v4 = vld [vmem:[%s6755_s1 + $0x50] sm:$0xff] (!%p138_p2)   ;;  %vm335_vm0 = vsmask.f32 (!%p138_p2), 7424 }
   0x6   : > { %141 = sbr.rel (%p138_p2) target bundleno = 582 (0x246), region = 32  ;;  %v5634_v1 = vld [vmem:[%s6755_s1 + $0x100] sm:$0xff] (!%p138_p2)   ;;  %4851 = vmatprep.subr.bf16.mxu1 (!%p138_p2), %v5633_v0  ;;  %v5636_v3 = vld [vmem:[%s6755_s1 + $0x108] sm:$0xff] (!%p138_p2)   ;;  %v5638_v5 = vld [vmem:[%s6755_s1 + $0x110] sm:$0xff] (!%p138_p2)   ;;  %vm1792_vm1 = vsmask.f32 (!%p138_p2), 6400 }
   0x7   : > { %5059 = vmatprep.subr.bf16.mxu0 (!%p138_p2), %v5634_v1  ;;  %4852 = vmatpush3.bf16.msra.mxu1 (!%p138_p2), %v5633_v0  ;;  %v5639_v6 = vld [vmem:[%s6755_s1 + $0x58] sm:$0xff] (!%p138_p2)   ;;  %v5641_v8 = vld [vmem:[%s6755_s1 + $0x60] sm:$0xff] (!%p138_p2)   ;;  %v5643_v10 = vld [vmem:[%s6755_s1 + $0x68] sm:$0xff] (!%p138_p2)   ;;  %vm2263_vm2 = vcmask (!%p138_p2), 1045504   ;;  %vm991_vm3 = vcmask (!%p138_p2), 1046528   ;;  %vm3535_vm5 = vcmask (!%p138_p2), 1044480  }
   0x8   : > { %5060 = vmatpush3.bf16.msra.mxu0 (!%p138_p2), %v5634_v1  ;;  %4853 = vmatprep.subr.bf16.mxu1 (!%p138_p2), %v5635_v2  ;;  %v5640_v7 = vld [vmem:[%s6755_s1 + $0x118] sm:$0xff] (!%p138_p2)   ;;  %v5642_v9 = vld [vmem:[%s6755_s1 + $0x120] sm:$0xff] (!%p138_p2)   ;;  %v5644_v11 = vld [vmem:[%s6755_s1 + $0x128] sm:$0xff] (!%p138_p2)   ;;  %vm3064_vm4 = vsmask.f32 (!%p138_p2), 5376 }
   0x9   : > { %5061 = vmatprep.subr.bf16.mxu0 (!%p138_p2), %v5636_v3  ;;  %v5645_v17 = vld [vmem:[%s6755_s1 + $0x70] sm:$0xff] (!%p138_p2)   ;;  %v5647_v32 = vld [vmem:[%s6755_s1 + $0x78] sm:$0xff] (!%p138_p2)   ;;  %v5654_v48 = vld [vmem:[%s6755_s1] sm:$0xff] (!%p138_p2)  }
   0xa   : > { %v5646_v20 = vld [vmem:[%s6755_s1 + $0x130] sm:$0xff] (!%p138_p2)   ;;  %v5648_v36 = vld [vmem:[%s6755_s1 + $0x138] sm:$0xff] (!%p138_p2)   ;;  %v5656_v54 = vld [vmem:[%s6755_s1 + $0x140] sm:$0xff] (!%p138_p2)  }
   0xb   : > { %4854 = vmatpush3.bf16.msra.mxu1 (!%p138_p2), %v5635_v2 }
   0xc   : > { %5062 = vmatpush3.bf16.msra.mxu0 (!%p138_p2), %v5636_v3  ;;  %4855 = vmatprep.subr.bf16.mxu1 (!%p138_p2), %v5637_v4 }
   0xd   : > { %s6759_s13 = smov (!%p161_p3, %s4166_s13), 1  ;;  %5063 = vmatprep.subr.bf16.mxu0 %v5638_v5 }
   0xe   : > { %s5623_s30 = smul.u32 172, %s6759_s13 }
   0xf   : > { %4856 = vmatpush3.bf16.msra.mxu1 %v5637_v4  ;;  %s5624_s7 = smul.u32 144, %s6759_s13 }
  0x10   : > { %5064 = vmatpush3.bf16.msra.mxu0 %v5638_v5  ;;  %4857 = vmatprep.subr.bf16.mxu1 %v5639_v6  ;;  %s5882_s10 = scalar_lea.vmem %s6754_s0, %s5623_s30 }
  0x11   : > { %5065 = vmatprep.subr.bf16.mxu0 %v5640_v7  ;;  %v172_v12 = vld [vmem:[%s5882_s10] sm:$0xf]  ;;  %v173_v13 = vld [vmem:[%s5882_s10 + $0x4] sm:$0xf]  ;;  %v5895_v15 = vld [vmem:[%s5882_s10 + $0x8] sm:$0xff]   ;;  %s6695_s11 = scalar_lea.vmem %s6757_s3, %s5624_s7 }
  0x12   : > { %v5892_v14 = vcombine.low %v172_v12, %v173_v13  ;;  %v5898_v16 = vld [vmem:[%s5882_s10 + $0x10] sm:$0xff]   ;;  %v1308_v18 = vld [vmem:[%s5882_s10 + $0x8] sm:$0xe]  ;;  %v5905_v19 = vld [vmem:[%s5882_s10 + $0xc] sm:$0xf]  ;;  %v344_v23 = vshll.u32 %v5895_v15, 16 }
  0x13   : > { %4858 = vmatpush3.bf16.msra.mxu1 %v5639_v6  ;;  %v5914_v24 = vcombine.low %v1308_v18, %v5905_v19  ;;  %v5917_v25 = vld [vmem:[%s5882_s10 + $0x10] sm:$0xff]   ;;  %v1802_v26 = vshrl.u32 %v5898_v16, 16  ;;  %v1805_v27 = vshll.u32 %v5898_v16, 16  ;;  %v348_v40 = vshrl.u32 %v5895_v15, 16  ;;  %v5932_v41 = vld [vmem:[%s5882_s10 + $0x18] sm:$0xff]   ;;  %v5949_v57 = vld [vmem:[%s5882_s10 + $0x20] sm:$0xff]  }
  0x14   : > { %5066 = vmatpush3.bf16.msra.mxu0 %v5640_v7  ;;  %4859 = vmatprep.subr.bf16.mxu1 %v5641_v8  ;;  %v337_v21 = vshrl.u32 %v5892_v14, 16  ;;  %v339_v22 = vshll.u32 %v5892_v14, 16  ;;  %v346_v29 = vrot.slane %v344_v23, 1  ;;  %v352_v35 = vshll.u32 %v5917_v25, 16  ;;  %v5946_v55 = vld [vmem:[%s5882_s10 + $0x18] sm:$0xff]   ;;  %v5953_v60 = vld [vmem:[%s5882_s10 + $0x20] sm:$0xff]  }
  0x15   : > { %5067 = vmatprep.subr.bf16.mxu0 %v5642_v9  ;;  %v1794_v30 = vshrl.u32 %v5914_v24, 16  ;;  %v1797_v31 = vshll.u32 %v5914_v24, 16  ;;  %v1804_v33 = vrot.slane %v1802_v26, 1  ;;  %v1807_v34 = vrot.slane %v1805_v27, 2  ;;  %v5957_v62 = vld [vmem:[%s5882_s10 + $0x28] sm:$0xff]  }
  0x16   : > { %v341_v28 = vrot.slane %v339_v22, 1  ;;  %v1811_v45 = vshrl.u32 %v5932_v41, 16  ;;  %v1814_v46 = vshll.u32 %v5932_v41, 16  ;;  %v354_v47 = vrot.slane %v352_v35, 1  ;;  %v5657_v7 = vld [vmem:[%s6755_s1 + $0x148] sm:$0xff]  }
  0x17   : > { %4860 = vmatpush3.bf16.msra.mxu1 %v5641_v8  ;;  %v1796_v38 = vrot.slane %v1794_v30, 1  ;;  %v1799_v39 = vrot.slane %v1797_v31, 2  ;;  %v1808_v42 = vor.u32 %v1807_v34, %v1804_v33  ;;  %v356_v49 = vshrl.u32 %v5917_v25, 16  ;;  %v5977_v22 = vld [vmem:[%s5882_s10 + $0x28] sm:$0xff]   ;;  %v5986_v31 = vld [vmem:[%s5882_s10 + $0x30] sm:$0xff]   ;;  %v5990_v33 = vld [vmem:[%s5882_s10 + $0x38] sm:$0xff]  }
  0x18   : > { %5068 = vmatpush3.bf16.msra.mxu0 %v5642_v9  ;;  %4861 = vmatprep.subr.bf16.mxu1 %v5643_v10  ;;  %v342_v37 = vor.u32 %v341_v28, %v337_v21  ;;  %v350_v51 = vor.u32 %v348_v40, %v346_v29  ;;  %v1813_v52 = vrot.slane %v1811_v45, 1  ;;  %v1816_v53 = vrot.slane %v1814_v46, 2  ;;  %v5662_v21 = vld [vmem:[%s6755_s1 + $0x150] sm:$0xff]  }
  0x19   : > { %5069 = vmatprep.subr.bf16.mxu0 %v5644_v11  ;;  %v1800_v44 = vor.u32 %v1799_v39, %v1796_v38  ;;  %v358_v58 = vor.u32 %v356_v49, %v354_v47  ;;  %v360_v59 = vshll.u32 %v5946_v55, 16  ;;  %v364_v61 = vshrl.u32 %v5946_v55, 16  ;;  %v5982_v28 = vld [vmem:[%s5882_s10 + $0x30] sm:$0xff]  }
  0x1a   : > { %v347_v43 = vsel %vm335_vm0, %v342_v37, %v346_v29  ;;  %v1817_v56 = vor.u32 %v1816_v53, %v1813_v52  ;;  %v355_v63 = vsel %vm335_vm0, %v350_v51, %v354_v47  ;;  %v1820_v1 = vshrl.u32 %v5949_v57, 16  ;;  %v5670_v46 = vld [vmem:[%s6755_s1 + $0x10] sm:$0xff]   ;;  %v5669_v53 = vld [vmem:[%s6755_s1 + $0x160] sm:$0xff]  }
  0x1b   : > { %4862 = vmatpush3.bf16.msra.mxu1 %v5643_v10  ;;  %4867 = vmatprep.mubr.bf16.mxu1 %v347_v43  ;;  %v1809_v50 = vsel %vm1792_vm1, %v1800_v44, %v1808_v42  ;;  %v1823_v2 = vshll.u32 %v5949_v57, 16  ;;  %v362_v3 = vrot.slane %v360_v59, 1  ;;  %v368_v4 = vshll.u32 %v5953_v60, 16  ;;  %v5663_v10 = vld [vmem:[%s6755_s1 + $0x8] sm:$0xff]   ;;  %v5664_v43 = vld [vmem:[%s6755_s1 + $0x158] sm:$0xff]  }
  0x1c   : > { %5070 = vmatpush3.bf16.msra.mxu0 %v5644_v11  ;;  %4863 = vmatprep.subr.bf16.mxu1 %v5645_v17  ;;  %v1818_v0 = vsel %vm1792_vm1, %v1808_v42, %v1817_v56  ;;  %v1829_v5 = vshrl.u32 %v5957_v62, 16  ;;  %v1832_v6 = vshll.u32 %v5957_v62, 16  ;;  %v1822_v8 = vrot.slane %v1820_v1, 1  ;;  %v6019_v1 = vld [vmem:[%s5882_s10 + $0x40] sm:$0xff]  }
  0x1d   : > { %5071 = vmatprep.subr.bf16.mxu0 %v5646_v20  ;;  %5075 = vmatprep.mubr.bf16.mxu0 %v1809_v50  ;;  %v1825_v9 = vrot.slane %v1823_v2, 2  ;;  %v363_v11 = vsel %vm335_vm0, %v358_v58, %v362_v3  ;;  %v370_v18 = vrot.slane %v368_v4, 1  ;;  %v372_v23 = vshrl.u32 %v5953_v60, 16 }
  0x1e   : > { %v1831_v12 = vrot.slane %v1829_v5, 1  ;;  %v376_v30 = vshll.u32 %v5977_v22, 16  ;;  %v1841_v37 = vshll.u32 %v5982_v28, 16  ;;  %v384_v39 = vshll.u32 %v5986_v31, 16 }
  0x1f   : > { %4864 = vmatpush3.bf16.msra.mxu1 %v5645_v17  ;;  %v1826_v13 = vor.u32 %v1825_v9, %v1822_v8  ;;  %v366_v17 = vor.u32 %v364_v61, %v362_v3  ;;  %v374_v29 = vor.u32 %v372_v23, %v370_v18  ;;  %v1847_v40 = vshrl.u32 %v5990_v33, 16  ;;  %v6015_v61 = vld [vmem:[%s5882_s10 + $0x40] sm:$0xff]   ;;  %v5671_v3 = vld [vmem:[%s6755_s1 + $0x168] sm:$0xff]  }
  0x20   : > { %5072 = vmatpush3.bf16.msra.mxu0 %v5646_v20  ;;  %4865 = vmatprep.subr.bf16.mxu1 %v5647_v32  ;;  %v1834_v20 = vrot.slane %v1832_v6, 2  ;;  %v378_v38 = vrot.slane %v376_v30, 1  ;;  %v1850_v42 = vshll.u32 %v5990_v33, 16  ;;  %v1843_v45 = vrot.slane %v1841_v37, 2  ;;  %v5677_v30 = vld [vmem:[%s6755_s1 + $0x18] sm:$0xff]  }
  0x21   : > { %5073 = vmatprep.subr.bf16.mxu0 %v5648_v36  ;;  %v1827_v26 = vsel %vm1792_vm1, %v1817_v56, %v1826_v13  ;;  %v371_v34 = vsel %vm335_vm0, %v366_v17, %v370_v18  ;;  %v386_v51 = vrot.slane %v384_v39, 1  ;;  %v388_v56 = vshrl.u32 %v5986_v31, 16  ;;  %v2242_v37 = vld [vmem:[%s5882_s10 + $0x8] sm:$0xc] }
  0x22   : > { %v1835_v27 = vor.u32 %v1834_v20, %v1831_v12  ;;  %v379_v47 = vsel %vm335_vm0, %v374_v29, %v378_v38  ;;  %v1852_v52 = vrot.slane %v1850_v42, 2  ;;  %v1856_v4 = vshrl.u32 %v6015_v61, 16  ;;  %v5676_v29 = vld [vmem:[%s6755_s1 + $0x170] sm:$0xff]  }
  0x23   : > { %4866 = vmatpush3.bf16.msra.mxu1 %v5647_v32  ;;  %v380_v32 = vshrl.u32 %v5977_v22, 16  ;;  %v1859_v5 = vshll.u32 %v6015_v61, 16  ;;  %v2265_v39 = vrot.slane %v5898_v16, 2 }
  0x24   : > { %5074 = vmatpush3.bf16.msra.mxu0 %v5648_v36  ;;  %4903 = vmatprep.subr.bf16.mxu1 %v5654_v48  ;;  %v1836_v35 = vsel %vm1792_vm1, %v1826_v13, %v1835_v27  ;;  %v1838_v36 = vshrl.u32 %v5982_v28, 16 }
  0x25   : > { %5111 = vmatprep.subr.bf16.mxu0 %v5656_v54  ;;  %v382_v50 = vor.u32 %v380_v32, %v378_v38  ;;  %v1861_v12 = vrot.slane %v1859_v5, 2  ;;  %v4333_v38 = vcombine.low %v2242_v37, %v5905_v19  ;;  %v2269_v5 = vrot.slane %v5949_v57, 2  ;;  %v5693_v37 = vld [vmem:[%s6755_s1 + $0x190] sm:$0xff]  }
  0x26   : > { %4868 = vmatmul.mubr.bf16.vlgmr.msra.gmra.mrb[0].mxu1 %v355_v63  ;;  %v1840_v44 = vrot.slane %v1838_v36, 1  ;;  %v390_v63 = vor.u32 %v388_v56, %v386_v51  ;;  %v404_v36 = vshrl.u32 %v6019_v1, 16 }
  0x27   : > { %5076 = vmatmul.mubr.bf16.vlgmr.msra.gmra.mrb[0].mxu0 %v1818_v0  ;;  %4904 = vmatpush3.bf16.msra.mxu1 %v5654_v48  ;;  %v1849_v48 = vrot.slane %v1847_v40, 1  ;;  %v387_v2 = vsel %vm335_vm0, %v382_v50, %v386_v51  ;;  %v6053_v40 = vld [vmem:[%s5882_s10 + $0x50] sm:$0xff]   ;;  %v2264_v19 = vrot.slane %v4333_v38, 2 }
  0x28   : > { %5112 = vmatpush3.bf16.msra.mxu0 %v5656_v54  ;;  %4871 = vmatprep.mubr.bf16.mxu1 %v363_v11  ;;  %v1844_v49 = vor.u32 %v1843_v45, %v1840_v44  ;;  %v6010_v54 = vld [vmem:[%s5882_s10 + $0x38] sm:$0xff]   ;;  %v1858_v11 = vrot.slane %v1856_v4, 1  ;;  %v420_v51 = vshrl.u32 %v6053_v40, 16 }
  0x29   : > { %5113 = vmatprep.subr.bf16.mxu0 %v5657_v7  ;;  %4905 = vmatprep.subr.bf16.mxu1 %v5663_v10  ;;  %v1853_v59 = vor.u32 %v1852_v52, %v1849_v48  ;;  %v392_v0 = vshll.u32 %v6010_v54, 16  ;;  %v396_v6 = vshrl.u32 %v6010_v54, 16  ;;  %v416_v48 = vshll.u32 %v6053_v40, 16 }
  0x2a   : > { %5079 = vmatprep.mubr.bf16.mxu0 %v1827_v26  ;;  %v1845_v58 = vsel %vm1792_vm1, %v1835_v27, %v1844_v49 }
  0x2b   : > { %4906 = vmatpush3.bf16.msra.mxu1 %v5663_v10  ;;  %v1854_v8 = vsel %vm1792_vm1, %v1844_v49, %v1853_v59  ;;  %v394_v9 = vrot.slane %v392_v0, 1  ;;  %v400_v10 = vshll.u32 %v6019_v1, 16  ;;  %v5678_v49 = vld [vmem:[%s6755_s1 + $0x178] sm:$0xff]   ;;  %v418_v56 = vrot.slane %v416_v48, 1 }
  0x2c   : > { %5114 = vmatpush3.bf16.msra.mxu0 %v5657_v7  ;;  %4907 = vmatprep.subr.bf16.mxu1 %v5670_v46  ;;  %v6029_v7 = vld [vmem:[%s5882_s10 + $0x48] sm:$0xff]   ;;  %v2267_v0 = vrot.slane %v5932_v41, 2  ;;  %v5699_v48 = vld [vmem:[%s6755_s1 + $0x198] sm:$0xff]  }
  0x2d   : > { %5115 = vmatprep.subr.bf16.mxu0 %v5662_v21  ;;  %v1865_v13 = vshrl.u32 %v6029_v7, 16  ;;  %v1868_v17 = vshll.u32 %v6029_v7, 16  ;;  %v395_v18 = vsel %vm335_vm0, %v390_v63, %v394_v9  ;;  %v402_v20 = vrot.slane %v400_v10, 1 }
  0x2e   : > { %4872 = vmatmul.mubr.bf16.gmra.mrb[4].mxu1 %v371_v34  ;;  %v398_v23 = vor.u32 %v396_v6, %v394_v9  ;;  %v422_v4 = vor.u32 %v420_v51, %v418_v56  ;;  %v5685_v6 = vld [vmem:[%s6755_s1 + $0x180] sm:$0xff]   ;;  %v2268_v57 = vsel %vm2263_vm2, %v2265_v39, %v2267_v0 }
  0x2f   : > { %5080 = vmatmul.mubr.bf16.gmra.mrb[4].mxu0 %v1836_v35  ;;  %4875 = vmatprep.mubr.bf16.mxu1 %v379_v47  ;;  %v1867_v26 = vrot.slane %v1865_v13, 1  ;;  %v1870_v27 = vrot.slane %v1868_v17, 2  ;;  %v6046_v35 = vld [vmem:[%s5882_s10 + $0x48] sm:$0xff]   ;;  %v6062_v47 = vld [vmem:[%s5882_s10 + $0x58] sm:$0xff]   ;;  %v5690_v17 = vld [vmem:[%s6755_s1 + $0x30] sm:$0xff]  }
  0x30   : > { %5116 = vmatpush3.bf16.msra.mxu0 %v5662_v21  ;;  %4908 = vmatpush3.bf16.msra.mxu1 %v5670_v46  ;;  %v1862_v21 = vor.u32 %v1861_v12, %v1858_v11  ;;  %v403_v42 = vsel %vm335_vm0, %v398_v23, %v402_v20  ;;  %v408_v44 = vshll.u32 %v6046_v35, 16  ;;  %v412_v45 = vshrl.u32 %v6046_v35, 16  ;;  %v5682_v46 = vld [vmem:[%s6755_s1 + $0x20] sm:$0xff]   ;;  %v6103_v23 = vld [vmem:[%s5882_s10 + $0x70] sm:$0xff]  }
  0x31   : > { %5117 = vmatprep.subr.bf16.mxu0 %v5664_v43  ;;  %5083 = vmatprep.mubr.bf16.mxu0 %v1845_v58  ;;  %v6043_v34 = vor.u32 %v1870_v27, %v1867_v26  ;;  %v424_v52 = vshll.u32 %v6062_v47, 16  ;;  %v6074_v58 = vld [vmem:[%s5882_s10 + $0x60] sm:$0xff]   ;;  %v428_v10 = vshrl.u32 %v6062_v47, 16  ;;  %v2271_v27 = vrot.slane %v5957_v62, 2 }
  0x32   : > { %v1863_v32 = vsel %vm1792_vm1, %v1853_v59, %v1862_v21  ;;  %4909 = vmatprep.subr.bf16.mxu1 %v5677_v30  ;;  %v410_v50 = vrot.slane %v408_v44, 1  ;;  %v432_v41 = vshll.u32 %v6074_v58, 16  ;;  %v436_v11 = vshrl.u32 %v6074_v58, 16 }
  0x33   : > { %v1872_v16 = vsel %vm1792_vm1, %v1862_v21, %v6043_v34  ;;  %v448_v38 = vshll.u32 %v6103_v23, 16  ;;  %v452_v44 = vshrl.u32 %v6103_v23, 16 }
  0x34   : > { %5118 = vmatpush3.bf16.msra.mxu0 %v5664_v43  ;;  %4910 = vmatpush3.bf16.msra.mxu1 %v5677_v30  ;;  %v406_v43 = vor.u32 %v404_v36, %v402_v20  ;;  %v414_v63 = vor.u32 %v412_v45, %v410_v50  ;;  %v5689_v20 = vld [vmem:[%s6755_s1 + $0x188] sm:$0xff]   ;;  %v434_v21 = vrot.slane %v432_v41, 1  ;;  %v2273_v36 = vrot.slane %v5982_v28, 2  ;;  %v5696_v41 = vld [vmem:[%s5882_s10 + $0x50] sm:$0xff]  }
  0x35   : > { %5119 = vmatprep.subr.bf16.mxu0 %v5669_v53  ;;  %4911 = vmatprep.subr.bf16.mxu1 %v5682_v46 }
  0x36   : > { %4876 = vmatmul.mubr.bf16.gmra.mrb[8].mxu1 %v387_v2  ;;  %v411_v59 = vsel %vm335_vm0, %v406_v43, %v410_v50  ;;  %v426_v2 = vrot.slane %v424_v52, 1  ;;  %v419_v9 = vsel %vm335_vm0, %v414_v63, %v418_v56  ;;  %v2272_v43 = vsel %vm2263_vm2, %v2269_v5, %v2271_v27 }
  0x37   : > { %5084 = vmatmul.mubr.bf16.gmra.mrb[8].mxu0 %v1854_v8  ;;  %4879 = vmatprep.mubr.bf16.mxu1 %v395_v18  ;;  %v6086_v8 = vld [vmem:[%s5882_s10 + $0x68] sm:$0xff]   ;;  %v2270_v18 = vsel %vm2263_vm2, %v2267_v0, %v2269_v5  ;;  %v2275_v50 = vrot.slane %v5990_v33, 2  ;;  %v2277_v56 = vrot.slane %v6015_v61, 2  ;;  %v5703_v61 = vld [vmem:[%s6755_s1 + $0x1a0] sm:$0xff]  }
  0x38   : > { %5120 = vmatpush3.bf16.msra.mxu0 %v5669_v53  ;;  %5087 = vmatprep.mubr.bf16.mxu0 %v1863_v32  ;;  %v2266_v53 = vsel %vm2263_vm2, %v2264_v19, %v2265_v39  ;;  %v427_v12 = vsel %vm335_vm0, %v422_v4, %v426_v2  ;;  %v440_v13 = vshll.u32 %v6086_v8, 16  ;;  %v430_v26 = vor.u32 %v428_v10, %v426_v2  ;;  %v6107_v32 = vld [vmem:[%s5882_s10 + $0x78] sm:$0xff]  }
  0x39   : > { %5121 = vmatprep.subr.bf16.mxu0 %v5671_v3  ;;  %4912 = vmatpush3.bf16.msra.mxu1 %v5682_v46  ;;  %v444_v62 = vshrl.u32 %v6086_v8, 16  ;;  %v456_v45 = vshll.u32 %v6107_v32, 16  ;;  %v2274_v46 = vsel %vm2263_vm2, %v2271_v27, %v2273_v36  ;;  %v450_v19 = vrot.slane %v448_v38, 1  ;;  %v5711_v27 = vld [vmem:[%s6755_s1 + $0x1b0] sm:$0xff]  }
  0x3a   : > { %v442_v30 = vrot.slane %v440_v13, 1  ;;  %v435_v39 = vsel %vm335_vm0, %v430_v26, %v434_v21  ;;  %v460_v0 = vshrl.u32 %v6107_v32, 16  ;;  %v2276_v2 = vsel %vm2263_vm2, %v2273_v36, %v2275_v50 }
  0x3b   : > { %v454_v51 = vor.u32 %v452_v44, %v450_v19  ;;  %v458_v52 = vrot.slane %v456_v45, 1  ;;  %v5702_v45 = vld [vmem:[%s5882_s10 + $0x68] sm:$0xff]  }
  0x3c   : > { %5122 = vmatpush3.bf16.msra.mxu0 %v5671_v3  ;;  %v5686_v3 = vld [vmem:[%s6755_s1 + $0x28] sm:$0xff]  }
  0x3d   : > { %5123 = vmatprep.subr.bf16.mxu0 %v5676_v29  ;;  %4913 = vmatprep.subr.bf16.mxu1 %v5686_v3 }
  0x3e   : > { %4880 = vmatmul.mubr.bf16.gmra.mrb[12].mxu1 %v403_v42  ;;  %v5695_v42 = vld [vmem:[%s6755_s1 + $0x38] sm:$0xff]  }
  0x3f   : > { %5088 = vmatmul.mubr.bf16.gmra.mrb[12].mxu0 %v1872_v16  ;;  %4883 = vmatprep.mubr.bf16.mxu1 %v411_v59  ;;  %v6125_v16 = vld [vmem:[%s5882_s10 + $0x80] sm:$0xff]  }
  0x40   : > { %5124 = vmatpush3.bf16.msra.mxu0 %v5676_v29  ;;  %5127 = vmatprep.mubr.bf16.mxu0 %v2266_v53  ;;  %v438_v29 = vor.u32 %v436_v11, %v434_v21  ;;  %v6132_v53 = vld [vmem:[%s5882_s10 + $0x88] sm:$0xff]   ;;  %v6138_v59 = vld [vmem:[%s6755_s1 + $0x80] sm:$0xff]   ;;  %v464_v63 = vshll.u32 %v6125_v16, 16  ;;  %v468_v4 = vshrl.u32 %v6125_v16, 16  ;;  %v462_v11 = vor.u32 %v460_v0, %v458_v52  ;;  %v5710_v0 = vld [vmem:[%s6755_s1 + $0x90] sm:$0xff]  }
  0x41   : > { %5125 = vmatprep.subr.bf16.mxu0 %v5678_v49  ;;  %4914 = vmatpush3.bf16.msra.mxu1 %v5686_v3  ;;  %v459_v3 = vsel %vm335_vm0, %v454_v51, %v458_v52  ;;  %v472_v5 = vshll.u32 %v6132_v53, 16  ;;  %v5705_v51 = vld [vmem:[%s5882_s10 + $0x78] sm:$0xff]  }
  0x42   : > { %4915 = vmatprep.subr.bf16.mxu1 %v5690_v17  ;;  %v443_v28 = vsel %vm335_vm0, %v438_v29, %v442_v30  ;;  %v466_v10 = vrot.slane %v464_v63, 1 }
  0x44   : > { %5126 = vmatpush3.bf16.msra.mxu0 %v5678_v49  ;;  %v446_v49 = vor.u32 %v444_v62, %v442_v30  ;;  %v470_v13 = vor.u32 %v468_v4, %v466_v10  ;;  %v467_v21 = vsel %vm335_vm0, %v462_v11, %v466_v10  ;;  %v5715_v62 = vld [vmem:[%s6755_s1 + $0x1b8] sm:$0xff]   ;;  %v5719_v10 = vld [vmem:[%s6755_s1 + $0xa0] sm:$0xff]  }
  0x45   : > { %5163 = vmatprep.subr.bf16.mxu0 %v5685_v6  ;;  %4916 = vmatpush3.bf16.msra.mxu1 %v5690_v17  ;;  %v474_v17 = vrot.slane %v472_v5, 1  ;;  %v5714_v4 = vld [vmem:[%s6755_s1 + $0x98] sm:$0xff]   ;;  %v2580_v5 = vld [vmem:[%s5882_s10 + $0x10] sm:$0xc] }
  0x46   : > { %4884 = vmatmul.mubr.bf16.gmra.mrb[16].mxu1 %v419_v9  ;;  %4917 = vmatprep.subr.bf16.mxu1 %v5695_v42  ;;  %v451_v33 = vsel %vm335_vm0, %v446_v49, %v450_v19  ;;  %v6154_v9 = vld [vmem:[%s5882_s10 + $0x90] ss:$0 sps:$4 sm:$0x11]   ;;  %v2287_v49 = vrot.slane %v5702_v45, 2  ;;  %v5734_v45 = vld [vmem:[%s6755_s1 + $0x1d8] sm:$0xff]  }
  0x47   : > { %5128 = vmatmul.mubr.bf16.vlgmr.msra.gmra.mrb[0].mxu0 %v2268_v57  ;;  %4887 = vmatprep.mubr.bf16.mxu1 %v427_v12  ;;  %v5707_v57 = vld [vmem:[%s6755_s1 + $0x1a8] sm:$0xff]   ;;  %v2279_v12 = vrot.slane %v6029_v7, 2  ;;  %v480_v26 = vshll.u32 %v6154_v9, 16  ;;  %v475_v30 = vsel %vm335_vm0, %v470_v13, %v474_v17  ;;  %v5698_v7 = vld [vmem:[%s5882_s10 + $0x58] sm:$0xff]   ;;  %v5704_v19 = vld [vmem:[%s5882_s10 + $0x70] sm:$0xff]  }
  0x48   : > { %5131 = vmatprep.mubr.bf16.mxu0 %v2270_v18  ;;  %5164 = vmatpush3.bf16.msra.mxu0 %v5685_v6  ;;  %v2278_v6 = vsel %vm2263_vm2, %v2275_v50, %v2277_v56  ;;  %v2281_v18 = vrot.slane %v5696_v41, 2  ;;  %v2289_v50 = vrot.slane %v5704_v19, 2  ;;  %v5713_v11 = vld [vmem:[%s5882_s10 + $0x98] ss:$0 sps:$4 sm:$0x33]   ;;  %v5723_v13 = vld [vmem:[%s6755_s1 + $0xa8] sm:$0xff]  }
  0x49   : > { %5165 = vmatprep.subr.bf16.mxu0 %v5689_v20  ;;  %4918 = vmatpush3.bf16.msra.mxu1 %v5695_v42  ;;  %v2280_v29 = vsel %vm2263_vm2, %v2277_v56, %v2279_v12  ;;  %v2283_v42 = vrot.slane %v5698_v7, 2  ;;  %v5706_v56 = vld [vmem:[%s6755_s1 + $0x88] sm:$0xff]  }
  0x4a   : > { %4955 = vmatprep.subr.bf16.mxu1 %v6138_v59  ;;  %v2282_v36 = vsel %vm2263_vm2, %v2279_v12, %v2281_v18  ;;  %v2290_v63 = vsel %vm2263_vm2, %v2287_v49, %v2289_v50 }
  0x4b   : > { %v2284_v44 = vsel %vm2263_vm2, %v2281_v18, %v2283_v42 }
  0x4c   : > { %5166 = vmatpush3.bf16.msra.mxu0 %v5689_v20  ;;  %v476_v20 = vshrl.u32 %v6132_v53, 16 }
  0x4d   : > { %5167 = vmatprep.subr.bf16.mxu0 %v5693_v37 }
  0x4e   : > { %4888 = vmatmul.mubr.bf16.gmra.mrb[20].mxu1 %v435_v39  ;;  %v478_v38 = vor.u32 %v476_v20, %v474_v17  ;;  %v482_v39 = vrot.slane %v480_v26, 1  ;;  %v2299_v17 = vrot.slane %v5713_v11, 2 }
  0x4f   : > { %5132 = vmatmul.mubr.bf16.gmra.mrb[4].mxu0 %v2272_v43  ;;  %4891 = vmatprep.mubr.bf16.mxu1 %v443_v28 }
  0x50   : > { %5135 = vmatprep.mubr.bf16.mxu0 %v2274_v46  ;;  %5168 = vmatpush3.bf16.msra.mxu0 %v5693_v37  ;;  %v5700_v37 = vld [vmem:[%s5882_s10 + $0x60] sm:$0xff]   ;;  %v483_v28 = vsel %vm335_vm0, %v478_v38, %v482_v39  ;;  %v6256_v38 = vld [vmem:[%s5882_s10 + $0x30] sm:$0xff]   ;;  %v5726_v39 = vld [vmem:[%s6755_s1 + $0x1c8] sm:$0xff]  }
  0x51   : > { %5169 = vmatprep.subr.bf16.mxu0 %v5699_v48  ;;  %v2285_v43 = vrot.slane %v5700_v37, 2 }
  0x53   : > { %v2286_v46 = vsel %vm2263_vm2, %v2283_v42, %v2285_v43  ;;  %v2288_v52 = vsel %vm2263_vm2, %v2285_v43, %v2287_v49  ;;  %v5730_v43 = vld [vmem:[%s6755_s1 + $0x1d0] sm:$0xff]  }
  0x54   : > { %5170 = vmatpush3.bf16.msra.mxu0 %v5699_v48  ;;  %v6182_v48 = vld [vmem:[%s6755_s1 + $0x1c0] sm:$0xff]  }
  0x55   : > { %5171 = vmatprep.subr.bf16.mxu0 %v5703_v61 }
  0x56   : > { %4892 = vmatmul.mubr.bf16.gmra.mrb[24].mxu1 %v451_v33  ;;  %v5708_v33 = vld [vmem:[%s5882_s10 + $0x80] sm:$0xff]  }
  0x57   : > { %5136 = vmatmul.mubr.bf16.gmra.mrb[8].mxu0 %v2276_v2  ;;  %4895 = vmatprep.mubr.bf16.mxu1 %v459_v3  ;;  %v5709_v2 = vld [vmem:[%s5882_s10 + $0x88] sm:$0xff]  }
  0x58   : > { %5139 = vmatprep.mubr.bf16.mxu0 %v2278_v6  ;;  %5172 = vmatpush3.bf16.msra.mxu0 %v5703_v61  ;;  %v2293_v61 = vrot.slane %v5708_v33, 2  ;;  %v6210_v6 = vld [vmem:[%s5882_s10 + $0x14] sm:$0xf] }
  0x59   : > { %5173 = vmatprep.subr.bf16.mxu0 %v5707_v57  ;;  %v5747_v33 = vld [vmem:[%s6755_s1 + $0x1f0] sm:$0xff]  }
  0x5c   : > { %5174 = vmatpush3.bf16.msra.mxu0 %v5707_v57 }
  0x5d   : > { %5175 = vmatprep.subr.bf16.mxu0 %v5711_v27 }
  0x5e   : > { %4896 = vmatmul.mubr.bf16.gmra.mrb[28].mxu1 %v467_v21  ;;  %v5727_v21 = vld [vmem:[%s6755_s1 + $0xb0] sm:$0xff]  }
  0x5f   : > { %5140 = vmatmul.mubr.bf16.gmra.mrb[12].mxu0 %v2280_v29  ;;  %4899 = vmatprep.mubr.bf16.mxu1 %v475_v30  ;;  %v5731_v29 = vld [vmem:[%s6755_s1 + $0xb8] sm:$0xff]  }
  0x60   : > { %5143 = vmatprep.mubr.bf16.mxu0 %v2282_v36  ;;  %5176 = vmatpush3.bf16.msra.mxu0 %v5711_v27  ;;  %v6236_v27 = vld [vmem:[%s5882_s10 + $0x20] sm:$0xff]  }
  0x61   : > { %5177 = vmatprep.subr.bf16.mxu0 %v5715_v62  ;;  %v2730_v30 = vrot.slane %v6236_v27, 2  ;;  %v6252_v36 = vld [vmem:[%s6755_s1 + $0xc0] sm:$0xff]  }
  0x64   : > { %5178 = vmatpush3.bf16.msra.mxu0 %v5715_v62  ;;  %v2734_v62 = vrot.slane %v6256_v38, 2 }
  0x65   : > { %5215 = vmatprep.subr.bf16.mxu0 %v6182_v48 }
  0x66   : > { %4900 = vmatmul.mubr.bf16.gmra.mrb[32].mxu1 %v483_v28 }
  0x67   : > { %5144 = vmatmul.mubr.bf16.gmra.mrb[16].mxu0 %v2284_v44  ;;  %4919 = vmatprep.mubr.bf16.mxu1 %v5892_v14  ;;  %v2291_v14 = vrot.slane %v5705_v51, 2  ;;  %v6276_v44 = vld [vmem:[%s5882_s10 + $0x40] sm:$0xff]   ;;  %v5743_v51 = vld [vmem:[%s6755_s1 + $0x1e8] sm:$0xff]  }
  0x68   : > { %5147 = vmatprep.mubr.bf16.mxu0 %v2286_v46  ;;  %v2738_v46 = vrot.slane %v6276_v44, 2 }
  0x69   : > { %v2292_v3 = vsel %vm2263_vm2, %v2289_v50, %v2291_v14  ;;  %v6294_v50 = vld [vmem:[%s5882_s10 + $0x50] sm:$0xff]  }
  0x6e   : > { %4920 = vmatmul.mubr.bf16.vlgmr.msra.gmra.mrb[0].mxu1 %v5895_v15  ;;  %v2294_v15 = vsel %vm2263_vm2, %v2291_v14, %v2293_v61 }
  0x6f   : > { %5148 = vmatmul.mubr.bf16.gmra.mrb[20].mxu0 %v2288_v52  ;;  %4956 = vmatpush3.bf16.msra.mxu1 %v6138_v59  ;;  %v2295_v59 = vrot.slane %v5709_v2, 2  ;;  %v2742_v52 = vrot.slane %v6294_v50, 2  ;;  %v6318_v2 = vld [vmem:[%s5882_s10 + $0x68] sm:$0xff]  }
  0x70   : > { %4923 = vmatprep.mubr.bf16.mxu1 %v5917_v25  ;;  %5151 = vmatprep.mubr.bf16.mxu0 %v2290_v63  ;;  %v5712_v25 = vld [vmem:[%s5882_s10 + $0x90] sm:$0xff]   ;;  %v970_v63 = vld [vmem:[%s5882_s10] sm:$0xe] }
  0x71   : > { %4957 = vmatprep.subr.bf16.mxu1 %v5706_v56  ;;  %v2297_v41 = vrot.slane %v5712_v25, 2  ;;  %v2296_v57 = vsel %vm2263_vm2, %v2293_v61, %v2295_v59  ;;  %v5768_v25 = vld [vmem:[%s5882_s10 + $0x8] sm:$0xff]  }
  0x73   : > { %4958 = vmatpush3.bf16.msra.mxu1 %v5706_v56  ;;  %v2298_v12 = vsel %vm2263_vm2, %v2295_v59, %v2297_v41  ;;  %v2300_v26 = vsel %vm2263_vm2, %v2297_v41, %v2299_v17 }
  0x74   : > { %4959 = vmatprep.subr.bf16.mxu1 %v5710_v0 }
  0x76   : > { %4924 = vmatmul.mubr.bf16.gmra.mrb[4].mxu1 %v5946_v55  ;;  %v6218_v55 = vcombine.low %v2580_v5, %v6210_v6  ;;  %v2748_v5 = vrot.slane %v6318_v2, 2 }
  0x77   : > { %5152 = vmatmul.mubr.bf16.gmra.mrb[24].mxu0 %v2292_v3  ;;  %4927 = vmatprep.mubr.bf16.mxu1 %v5953_v60  ;;  %v6221_v60 = vld [vmem:[%s5882_s10 + $0x18] sm:$0xff]  }
  0x78   : > { %5155 = vmatprep.mubr.bf16.mxu0 %v2294_v15  ;;  %4960 = vmatpush3.bf16.msra.mxu1 %v5710_v0  ;;  %v2727_v18 = vrot.slane %v6218_v55, 2  ;;  %v2728_v20 = vrot.slane %v6221_v60, 2  ;;  %v5767_v0 = vld [vmem:[%s5882_s10 + $0x4] sm:$0xf]  ;;  %v5751_v3 = vld [vmem:[%s6755_s1 + $0x1f8] sm:$0xff]  }
  0x79   : > { %4961 = vmatprep.subr.bf16.mxu1 %v5714_v4  ;;  %v4240_v61 = vcombine.low %v970_v63, %v5767_v0  ;;  %v3066_v0 = vshrl.u32 %v6218_v55, 16 }
  0x7a   : > { %v2731_v37 = vsel %vm2263_vm2, %v2728_v20, %v2730_v30 }
  0x7b   : > { %v992_v59 = vrot.slane %v4240_v61, 1 }
  0x7c   : > { %4962 = vmatpush3.bf16.msra.mxu1 %v5714_v4  ;;  %v993_v4 = vrot.slane %v5768_v25, 1 }
  0x7d   : > { %4963 = vmatprep.subr.bf16.mxu1 %v5719_v10 }
  0x7e   : > { %4928 = vmatmul.mubr.bf16.gmra.mrb[8].mxu1 %v5977_v22  ;;  %v2729_v22 = vsel %vm2263_vm2, %v2727_v18, %v2728_v20  ;;  %v994_v41 = vsel %vm991_vm3, %v992_v59, %v993_v4  ;;  %v5770_v18 = vld [vmem:[%s5882_s10 + $0x18] sm:$0xff]   ;;  %v5752_v59 = vld [vmem:[%s6755_s1 + $0xe0] sm:$0xff]  }
  0x7f   : > { %5156 = vmatmul.mubr.bf16.gmra.mrb[28].mxu0 %v2296_v57  ;;  %4931 = vmatprep.mubr.bf16.mxu1 %v5986_v31  ;;  %v6240_v31 = vld [vmem:[%s5882_s10 + $0x28] sm:$0xff]   ;;  %v6340_v57 = vld [vmem:[%s5882_s10 + $0x78] sm:$0xff]   ;;  %v997_v20 = vrot.slane %v5770_v18, 1  ;;  %v5775_v18 = vld [vmem:[%s5882_s10 + $0x40] sm:$0xff]  }
  0x80   : > { %5159 = vmatprep.mubr.bf16.mxu0 %v2298_v12  ;;  %4964 = vmatpush3.bf16.msra.mxu1 %v5719_v10  ;;  %v2732_v7 = vrot.slane %v6240_v31, 2  ;;  %v6336_v10 = vld [vmem:[%s5882_s10 + $0x70] sm:$0xff]  }
  0x81   : > { %4965 = vmatprep.subr.bf16.mxu1 %v5723_v13  ;;  %v5769_v12 = vld [vmem:[%s5882_s10 + $0x10] sm:$0xff]   ;;  %v2750_v17 = vrot.slane %v6336_v10, 2 }
  0x82   : > { %v2735_v28 = vsel %vm2263_vm2, %v2732_v7, %v2734_v62 }
  0x84   : > { %4966 = vmatpush3.bf16.msra.mxu1 %v5723_v13  ;;  %v995_v13 = vrot.slane %v5769_v12, 1 }
  0x85   : > { %4967 = vmatprep.subr.bf16.mxu1 %v5727_v21 }
  0x86   : > { %4932 = vmatmul.mubr.bf16.gmra.mrb[12].mxu1 %v6010_v54  ;;  %v2733_v54 = vsel %vm2263_vm2, %v2730_v30, %v2732_v7  ;;  %v998_v30 = vsel %vm991_vm3, %v995_v13, %v997_v20 }
  0x87   : > { %5160 = vmatmul.mubr.bf16.gmra.mrb[32].mxu0 %v2300_v26  ;;  %4935 = vmatprep.mubr.bf16.mxu1 %v6019_v1  ;;  %v6260_v1 = vld [vmem:[%s5882_s10 + $0x38] sm:$0xff]   ;;  %v996_v26 = vsel %vm991_vm3, %v993_v4, %v995_v13 }
  0x88   : > { %5179 = vmatprep.mubr.bf16.mxu0 %v2729_v22  ;;  %4968 = vmatpush3.bf16.msra.mxu1 %v5727_v21  ;;  %v2736_v42 = vrot.slane %v6260_v1, 2  ;;  %v2752_v21 = vrot.slane %v6340_v57, 2  ;;  %v2751_v22 = vsel %vm2263_vm2, %v2748_v5, %v2750_v17 }
  0x89   : > { %4969 = vmatprep.subr.bf16.mxu1 %v5731_v29 }
  0x8a   : > { %v2739_v49 = vsel %vm2263_vm2, %v2736_v42, %v2738_v46  ;;  %v2753_v7 = vsel %vm2263_vm2, %v2750_v17, %v2752_v21  ;;  %v5754_v17 = vld [vmem:[%s6755_s1 + $0xe8] sm:$0xff]  }
  0x8c   : > { %4970 = vmatpush3.bf16.msra.mxu1 %v5731_v29  ;;  %v6351_v29 = vld [vmem:[%s5882_s10 + $0x80] sm:$0xff]  }
  0x8d   : > { %5007 = vmatprep.subr.bf16.mxu1 %v6252_v36 }
  0x8e   : > { %4936 = vmatmul.mubr.bf16.gmra.mrb[16].mxu1 %v6046_v35  ;;  %v6279_v35 = vld [vmem:[%s5882_s10 + $0x48] sm:$0xff]  }
  0x8f   : > { %5180 = vmatmul.mubr.bf16.vlgmr.msra.gmra.mrb[0].mxu0 %v2731_v37  ;;  %4939 = vmatprep.mubr.bf16.mxu1 %v6053_v40  ;;  %v2737_v40 = vsel %vm2263_vm2, %v2734_v62, %v2736_v42  ;;  %v2740_v19 = vrot.slane %v6279_v35, 2  ;;  %v5742_v37 = vld [vmem:[%s6755_s1 + $0xc8] sm:$0xff]   ;;  %v2754_v42 = vrot.slane %v6351_v29, 2 }
  0x90   : > { %5183 = vmatprep.mubr.bf16.mxu0 %v2733_v54  ;;  %5216 = vmatpush3.bf16.msra.mxu0 %v6182_v48  ;;  %v5739_v48 = vld [vmem:[%s6755_s1 + $0x1e0] sm:$0xff]   ;;  %v6359_v54 = vld [vmem:[%s5882_s10 + $0x88] sm:$0xff]  }
  0x91   : > { %5217 = vmatprep.subr.bf16.mxu0 %v5726_v39  ;;  %v2743_v14 = vsel %vm2263_vm2, %v2740_v19, %v2742_v52 }
  0x94   : > { %5218 = vmatpush3.bf16.msra.mxu0 %v5726_v39  ;;  %v5771_v39 = vld [vmem:[%s5882_s10 + $0x20] sm:$0xff]  }
  0x95   : > { %5219 = vmatprep.subr.bf16.mxu0 %v5730_v43  ;;  %v999_v62 = vrot.slane %v5771_v39, 1 }
  0x96   : > { %4940 = vmatmul.mubr.bf16.gmra.mrb[20].mxu1 %v6062_v47  ;;  %v2741_v47 = vsel %vm2263_vm2, %v2738_v46, %v2740_v19 }
  0x97   : > { %5184 = vmatmul.mubr.bf16.gmra.mrb[4].mxu0 %v2735_v28  ;;  %4943 = vmatprep.mubr.bf16.mxu1 %v6074_v58  ;;  %v6298_v58 = vld [vmem:[%s5882_s10 + $0x58] sm:$0xff]   ;;  %v1000_v46 = vsel %vm991_vm3, %v997_v20, %v999_v62  ;;  %v1007_v20 = vrot.slane %v5775_v18, 1  ;;  %v5780_v18 = vld [vmem:[%s5882_s10 + $0x60] sm:$0xff]  }
  0x98   : > { %5187 = vmatprep.mubr.bf16.mxu0 %v2737_v40  ;;  %5220 = vmatpush3.bf16.msra.mxu0 %v5730_v43  ;;  %v2744_v56 = vrot.slane %v6298_v58, 2  ;;  %v5772_v43 = vld [vmem:[%s5882_s10 + $0x28] sm:$0xff]   ;;  %v5746_v40 = vld [vmem:[%s6755_s1 + $0xd0] sm:$0xff]  }
  0x99   : > { %5221 = vmatprep.subr.bf16.mxu0 %v5734_v45  ;;  %v1001_v28 = vrot.slane %v5772_v43, 1  ;;  %v5756_v43 = vld [vmem:[%s6755_s1 + $0xf0] sm:$0xff]  }
  0x9b   : > { %v1002_v19 = vsel %vm991_vm3, %v999_v62, %v1001_v28  ;;  %v3092_v62 = vshrl.u32 %v6240_v31, 16 }
  0x9c   : > { %5222 = vmatpush3.bf16.msra.mxu0 %v5734_v45  ;;  %v2756_v45 = vrot.slane %v6359_v54, 2 }
  0x9d   : > { %5223 = vmatprep.subr.bf16.mxu0 %v5739_v48 }
  0x9e   : > { %4944 = vmatmul.mubr.bf16.gmra.mrb[24].mxu1 %v6086_v8  ;;  %v6313_v8 = vld [vmem:[%s5882_s10 + $0x60] sm:$0xff]  }
  0x9f   : > { %5188 = vmatmul.mubr.bf16.gmra.mrb[8].mxu0 %v2739_v49  ;;  %4947 = vmatprep.mubr.bf16.mxu1 %v6103_v23  ;;  %v2745_v23 = vsel %vm2263_vm2, %v2742_v52, %v2744_v56  ;;  %v2746_v15 = vrot.slane %v6313_v8, 2  ;;  %v2757_v49 = vsel %vm2263_vm2, %v2754_v42, %v2756_v45  ;;  %v5773_v52 = vld [vmem:[%s5882_s10 + $0x30] sm:$0xff]  }
  0xa0   : > { %5191 = vmatprep.mubr.bf16.mxu0 %v2741_v47  ;;  %5224 = vmatpush3.bf16.msra.mxu0 %v5739_v48  ;;  %v6373_v48 = vld [vmem:[%s5882_s10 + $0x90] sm:$0xff]   ;;  %v6377_v47 = vld [vmem:[%s5882_s10 + $0x98] sm:$0xff]  }
  0xa1   : > { %5225 = vmatprep.subr.bf16.mxu0 %v5743_v51  ;;  %v2749_v11 = vsel %vm2263_vm2, %v2746_v15, %v2748_v5  ;;  %v2758_v63 = vrot.slane %v6373_v48, 2  ;;  %v2760_v61 = vrot.slane %v6377_v47, 2 }
  0xa3   : > { %v2759_v4 = vsel %vm2263_vm2, %v2756_v45, %v2758_v63 }
  0xa4   : > { %5226 = vmatpush3.bf16.msra.mxu0 %v5743_v51  ;;  %v5750_v51 = vld [vmem:[%s6755_s1 + $0xd8] sm:$0xff]  }
  0xa5   : > { %5227 = vmatprep.subr.bf16.mxu0 %v5747_v33 }
  0xa6   : > { %4948 = vmatmul.mubr.bf16.gmra.mrb[28].mxu1 %v6107_v32  ;;  %v6331_v32 = vld [vmem:[%s6755_s1 + $0x200] sm:$0xff]  }
  0xa7   : > { %5192 = vmatmul.mubr.bf16.gmra.mrb[12].mxu0 %v2743_v14  ;;  %4951 = vmatprep.mubr.bf16.mxu1 %v6125_v16  ;;  %v2747_v16 = vsel %vm2263_vm2, %v2744_v56, %v2746_v15  ;;  %v1003_v56 = vrot.slane %v5773_v52, 1  ;;  %v3077_v15 = vshll.u32 %v6221_v60, 16  ;;  %v5758_v52 = vld [vmem:[%s6755_s1 + $0xf8] sm:$0xff]  }
  0xa8   : > { %5195 = vmatprep.mubr.bf16.mxu0 %v2745_v23  ;;  %5228 = vmatpush3.bf16.msra.mxu0 %v5747_v33  ;;  %v5774_v33 = vld [vmem:[%s5882_s10 + $0x38] sm:$0xff]   ;;  %v3069_v23 = vshll.u32 %v6218_v55, 16  ;;  %v2761_v55 = vsel %vm2263_vm2, %v2758_v63, %v2760_v61 }
  0xa9   : > { %5229 = vmatprep.subr.bf16.mxu0 %v5751_v3  ;;  %v1005_v14 = vrot.slane %v5774_v33, 1  ;;  %v1004_v25 = vsel %vm991_vm3, %v1001_v28, %v1003_v56  ;;  %v3079_v13 = vrot.slane %v3077_v15, 3  ;;  %v3110_v15 = vshrl.u32 %v6260_v1, 16 }
  0xab   : > { %v1006_v5 = vsel %vm991_vm3, %v1003_v56, %v1005_v14  ;;  %v1008_v28 = vsel %vm991_vm3, %v1005_v14, %v1007_v20  ;;  %v5777_v56 = vld [vmem:[%s5882_s10 + $0x50] sm:$0xff]   ;;  %v5778_v14 = vld [vmem:[%s5882_s10 + $0x58] sm:$0xff]  }
  0xac   : > { %5230 = vmatpush3.bf16.msra.mxu0 %v5751_v3  ;;  %v3074_v3 = vshrl.u32 %v6221_v60, 16  ;;  %v1011_v63 = vrot.slane %v5777_v56, 1  ;;  %v5759_v56 = vld [vmem:[%s6755_s1 + $0x218] sm:$0xff]  }
  0xad   : > { %5267 = vmatprep.subr.bf16.mxu0 %v6331_v32 }
  0xae   : > { %4952 = vmatmul.mubr.bf16.gmra.mrb[32].mxu1 %v6132_v53  ;;  %v3076_v12 = vrot.slane %v3074_v3, 2 }
  0xaf   : > { %5196 = vmatmul.mubr.bf16.gmra.mrb[16].mxu0 %v2747_v16  ;;  %4971 = vmatprep.mubr.bf16.mxu1 %v994_v41  ;;  %v5749_v16 = vld [vmem:[%s5882_s10 + $0xa0] ss:$0 sps:$4 sm:$0x33]   ;;  %v3068_v41 = vrot.slane %v3066_v0, 2  ;;  %v1013_v0 = vrot.slane %v5778_v14, 1 }
  0xb0   : > { %5199 = vmatprep.mubr.bf16.mxu0 %v2749_v11  ;;  %v3071_v11 = vrot.slane %v3069_v23, 3  ;;  %v3080_v39 = vor.u32 %v3079_v13, %v3076_v12  ;;  %v3104_v23 = vshll.u32 %v6256_v38, 16  ;;  %v5755_v13 = vld [vmem:[%s6755_s1 + $0x208] sm:$0xff]  }
  0xb6   : > { %4972 = vmatmul.mubr.bf16.vlgmr.msra.gmra.mrb[0].mxu1 %v996_v26  ;;  %v5776_v26 = vld [vmem:[%s5882_s10 + $0x48] sm:$0xff]  }
  0xb7   : > { %5200 = vmatmul.mubr.bf16.gmra.mrb[20].mxu0 %v2751_v22  ;;  %5008 = vmatpush3.bf16.msra.mxu1 %v6252_v36  ;;  %v2755_v36 = vsel %vm2263_vm2, %v2752_v21, %v2754_v42  ;;  %v2762_v21 = vrot.slane %v5749_v16, 2  ;;  %v1009_v22 = vrot.slane %v5776_v26, 1  ;;  %v3095_v42 = vshll.u32 %v6240_v31, 16 }
  0xb8   : > { %4975 = vmatprep.mubr.bf16.mxu1 %v998_v30  ;;  %5203 = vmatprep.mubr.bf16.mxu0 %v2753_v7  ;;  %v3083_v30 = vshrl.u32 %v6236_v27, 16  ;;  %v3086_v7 = vshll.u32 %v6236_v27, 16 }
  0xb9   : > { %5009 = vmatprep.subr.bf16.mxu1 %v5742_v37  ;;  %v1010_v45 = vsel %vm991_vm3, %v1007_v20, %v1009_v22  ;;  %v1015_v20 = vrot.slane %v5780_v18, 1 }
  0xbb   : > { %5010 = vmatpush3.bf16.msra.mxu1 %v5742_v37  ;;  %v3072_v37 = vor.u32 %v3071_v11, %v3068_v41  ;;  %v3106_v41 = vrot.slane %v3104_v23, 3  ;;  %v3112_v11 = vrot.slane %v3110_v15, 2  ;;  %v3140_v15 = vshll.u32 %v6294_v50, 16 }
  0xbc   : > { %5011 = vmatprep.subr.bf16.mxu1 %v5746_v40 }
  0xbe   : > { %4976 = vmatmul.mubr.bf16.gmra.mrb[4].mxu1 %v1000_v46  ;;  %v3085_v46 = vrot.slane %v3083_v30, 2  ;;  %v3119_v30 = vshrl.u32 %v6276_v44, 16 }
  0xbf   : > { %5204 = vmatmul.mubr.bf16.gmra.mrb[24].mxu0 %v2755_v36  ;;  %4979 = vmatprep.mubr.bf16.mxu1 %v1002_v19  ;;  %v3088_v36 = vrot.slane %v3086_v7, 3  ;;  %v3081_v19 = vsel %vm3064_vm4, %v3072_v37, %v3080_v39  ;;  %v3122_v7 = vshll.u32 %v6276_v44, 16 }
  0xc0   : > { %5207 = vmatprep.mubr.bf16.mxu0 %v2757_v49  ;;  %5012 = vmatpush3.bf16.msra.mxu1 %v5746_v40  ;;  %v2763_v40 = vsel %vm2263_vm2, %v2760_v61, %v2762_v21  ;;  %v3094_v49 = vrot.slane %v3092_v62, 2  ;;  %v3101_v61 = vshrl.u32 %v6256_v38, 16  ;;  %v5781_v21 = vld [vmem:[%s5882_s10 + $0x68] sm:$0xff]   ;;  %v3131_v62 = vshll.u32 %v6279_v35, 16 }
  0xc1   : > { %5013 = vmatprep.subr.bf16.mxu1 %v5750_v51  ;;  %v3089_v33 = vor.u32 %v3088_v36, %v3085_v46  ;;  %v1017_v26 = vrot.slane %v5781_v21, 1  ;;  %v3121_v46 = vrot.slane %v3119_v30, 2  ;;  %v3124_v36 = vrot.slane %v3122_v7, 3  ;;  %v5761_v21 = vld [vmem:[%s6755_s1 + $0x228] sm:$0xff]  }
  0xc2   : > { %v3103_v16 = vrot.slane %v3101_v61, 2  ;;  %v5783_v61 = vld [vmem:[%s5882_s10 + $0x78] sm:$0xff]   ;;  %v1025_v7 = vrot.slane %v6132_v53, 1 }
  0xc3   : > { %v1021_v23 = vrot.slane %v5783_v61, 1  ;;  %v5785_v61 = vld [vmem:[%s5882_s10 + $0x10] sm:$0xff]  }
  0xc4   : > { %5014 = vmatpush3.bf16.msra.mxu1 %v5750_v51  ;;  %v3097_v51 = vrot.slane %v3095_v42, 3  ;;  %v5757_v42 = vld [vmem:[%s6755_s1 + $0x210] sm:$0xff]  }
  0xc5   : > { %5015 = vmatprep.subr.bf16.mxu1 %v5752_v59 }
  0xc6   : > { %4980 = vmatmul.mubr.bf16.gmra.mrb[8].mxu1 %v1004_v25  ;;  %v3098_v3 = vor.u32 %v3097_v51, %v3094_v49  ;;  %v1012_v25 = vsel %vm991_vm3, %v1009_v22, %v1011_v63  ;;  %v3107_v22 = vor.u32 %v3106_v41, %v3103_v16 }
  0xc7   : > { %5208 = vmatmul.mubr.bf16.gmra.mrb[28].mxu0 %v2759_v4  ;;  %4983 = vmatprep.mubr.bf16.mxu1 %v1006_v5  ;;  %v3090_v4 = vsel %vm3064_vm4, %v3080_v39, %v3089_v33  ;;  %v1014_v5 = vsel %vm991_vm3, %v1011_v63, %v1013_v0  ;;  %v3128_v39 = vshrl.u32 %v6279_v35, 16 }
  0xc8   : > { %5211 = vmatprep.mubr.bf16.mxu0 %v2761_v55  ;;  %5016 = vmatpush3.bf16.msra.mxu1 %v5752_v59  ;;  %v3113_v59 = vshll.u32 %v6260_v1, 16  ;;  %v3099_v55 = vsel %vm3064_vm4, %v3089_v33, %v3098_v3  ;;  %v5782_v33 = vld [vmem:[%s5882_s10 + $0x70] sm:$0xff]  }
  0xc9   : > { %5017 = vmatprep.subr.bf16.mxu1 %v5754_v17  ;;  %v3130_v51 = vrot.slane %v3128_v39, 2  ;;  %v1019_v14 = vrot.slane %v5782_v33, 1  ;;  %v3158_v39 = vshll.u32 %v6313_v8, 16  ;;  %v1027_v33 = vrot.slane %v6154_v9, 1 }
  0xca   : > { %v3115_v12 = vrot.slane %v3113_v59, 3 }
  0xcb   : > { %v1020_v16 = vsel %vm991_vm3, %v1017_v26, %v1019_v14  ;;  %v1028_v9 = vsel %vm991_vm3, %v1025_v7, %v1027_v33  ;;  %v3209_v33 = vshrl.u32 %v6373_v48, 16 }
  0xcc   : > { %5018 = vmatpush3.bf16.msra.mxu1 %v5754_v17  ;;  %v6433_v17 = vld [vmem:[%s6755_s1 + $0x100] sm:$0xff]   ;;  %v3116_v37 = vor.u32 %v3115_v12, %v3112_v11  ;;  %v3142_v12 = vrot.slane %v3140_v15, 3  ;;  %v3176_v15 = vshll.u32 %v6336_v10, 16 }
  0xcd   : > { %5019 = vmatprep.subr.bf16.mxu1 %v5756_v43 }
  0xce   : > { %4984 = vmatmul.mubr.bf16.gmra.mrb[12].mxu1 %v1008_v28  ;;  %v3569_v28 = vrot.slane %v6377_v47, 3  ;;  %v3117_v49 = vsel %vm3064_vm4, %v3107_v22, %v3116_v37 }
  0xcf   : > { %5212 = vmatmul.mubr.bf16.gmra.mrb[32].mxu0 %v2763_v40  ;;  %4987 = vmatprep.mubr.bf16.mxu1 %v1010_v45  ;;  %v1018_v40 = vsel %vm991_vm3, %v1015_v20, %v1017_v26  ;;  %v3108_v45 = vsel %vm3064_vm4, %v3098_v3, %v3107_v22  ;;  %v3137_v3 = vshrl.u32 %v6294_v50, 16  ;;  %v5784_v26 = vld [vmem:[%s5882_s10 + $0x80] sm:$0xff]  }
  0xd0   : > { %5231 = vmatprep.mubr.bf16.mxu0 %v3081_v19  ;;  %5020 = vmatpush3.bf16.msra.mxu1 %v5756_v43  ;;  %v6447_v43 = vld [vmem:[%s5882_s10 + $0xa0] ss:$0 sps:$4 sm:$0x77]   ;;  %v1023_v22 = vrot.slane %v5784_v26, 1  ;;  %v3194_v26 = vshll.u32 %v6351_v29, 16 }
  0xd1   : > { %5021 = vmatprep.subr.bf16.mxu1 %v5758_v52  ;;  %v3571_v19 = vrot.slane %v6447_v43, 3  ;;  %v3139_v11 = vrot.slane %v3137_v3, 2  ;;  %v3173_v3 = vshrl.u32 %v6336_v10, 16 }
  0xd2   : > { %v1026_v53 = vsel %vm991_vm3, %v1023_v22, %v1025_v7 }
  0xd3   : > { %v6461_v63 = vsel %vm3535_vm5, %v3569_v28, %v3571_v19  ;;  %v3143_v30 = vor.u32 %v3142_v12, %v3139_v11  ;;  %v3160_v19 = vrot.slane %v3158_v39, 3  ;;  %v3203_v39 = vshll.u32 %v6359_v54, 16 }
  0xd4   : > { %5022 = vmatpush3.bf16.msra.mxu1 %v5758_v52  ;;  %v3133_v52 = vrot.slane %v3131_v62, 3 }
  0xd5   : > { %5319 = vmatprep.subr.bf16.mxu1 %v6433_v17 }
  0xd6   : > { %4988 = vmatmul.mubr.bf16.gmra.mrb[16].mxu1 %v1012_v25  ;;  %v3134_v59 = vor.u32 %v3133_v52, %v3130_v51  ;;  %v3146_v25 = vshrl.u32 %v6298_v58, 16 }
  0xd7   : > { %5232 = vmatmul.mubr.bf16.vlgmr.msra.gmra.mrb[0].mxu0 %v3090_v4  ;;  %4991 = vmatprep.mubr.bf16.mxu1 %v1014_v5  ;;  %v3149_v4 = vshll.u32 %v6298_v58, 16  ;;  %v5760_v5 = vld [vmem:[%s6755_s1 + $0x220] sm:$0xff]  }
  0xd8   : > { %5235 = vmatprep.mubr.bf16.mxu0 %v3099_v55  ;;  %5268 = vmatpush3.bf16.msra.mxu0 %v6331_v32  ;;  %v1016_v32 = vsel %vm991_vm3, %v1013_v0, %v1015_v20  ;;  %v3125_v0 = vor.u32 %v3124_v36, %v3121_v46  ;;  %v1022_v55 = vsel %vm991_vm3, %v1019_v14, %v1021_v23  ;;  %v3148_v18 = vrot.slane %v3146_v25, 2 }
  0xd9   : > { %5269 = vmatprep.subr.bf16.mxu0 %v5755_v13  ;;  %v3151_v20 = vrot.slane %v3149_v4, 3  ;;  %v3144_v46 = vsel %vm3064_vm4, %v3134_v59, %v3143_v30  ;;  %v1455_v14 = vrot.slane %v5914_v24, 1  ;;  %v3182_v25 = vshrl.u32 %v6340_v57, 16 }
  0xda   : > { %v3126_v41 = vsel %vm3064_vm4, %v3116_v37, %v3125_v0  ;;  %v3155_v37 = vshrl.u32 %v6313_v8, 16  ;;  %v3185_v4 = vshll.u32 %v6340_v57, 16 }
  0xdb   : > { %v3152_v62 = vor.u32 %v3151_v20, %v3148_v18  ;;  %v3184_v11 = vrot.slane %v3182_v25, 2  ;;  %v3211_v25 = vrot.slane %v3209_v33, 2 }
  0xdc   : > { %5270 = vmatpush3.bf16.msra.mxu0 %v5755_v13  ;;  %v3135_v13 = vsel %vm3064_vm4, %v3125_v0, %v3134_v59  ;;  %v3157_v36 = vrot.slane %v3155_v37, 2  ;;  %v3187_v12 = vrot.slane %v3185_v4, 3  ;;  %v3200_v37 = vshrl.u32 %v6359_v54, 16 }
  0xdd   : > { %5271 = vmatprep.subr.bf16.mxu0 %v5757_v42 }
  0xde   : > { %4992 = vmatmul.mubr.bf16.gmra.mrb[20].mxu1 %v1016_v32  ;;  %v3167_v32 = vshll.u32 %v6318_v2, 16  ;;  %v3161_v0 = vor.u32 %v3160_v19, %v3157_v36  ;;  %v3188_v7 = vor.u32 %v3187_v12, %v3184_v11  ;;  %v3205_v36 = vrot.slane %v3203_v39, 3  ;;  %v5788_v19 = vld [vmem:[%s5882_s10 + $0x28] sm:$0xff]   ;;  %v5793_v12 = vld [vmem:[%s5882_s10 + $0x40] sm:$0xff]  }
  0xdf   : > { %5236 = vmatmul.mubr.bf16.gmra.mrb[4].mxu0 %v3108_v45  ;;  %4995 = vmatprep.mubr.bf16.mxu1 %v1018_v40  ;;  %v5762_v40 = vld [vmem:[%s6755_s1 + $0x230] sm:$0xff]   ;;  %v1024_v45 = vsel %vm991_vm3, %v1021_v23, %v1023_v22  ;;  %v1456_v23 = vrot.slane %v5785_v61, 1  ;;  %v5787_v22 = vld [vmem:[%s5882_s10 + $0x20] sm:$0xff]  }
  0xe0   : > { %5239 = vmatprep.mubr.bf16.mxu0 %v3117_v49  ;;  %5272 = vmatpush3.bf16.msra.mxu0 %v5757_v42  ;;  %v3164_v42 = vshrl.u32 %v6318_v2, 16  ;;  %v3153_v49 = vsel %vm3064_vm4, %v3143_v30, %v3152_v62  ;;  %v3169_v52 = vrot.slane %v3167_v32, 3  ;;  %v3162_v24 = vsel %vm3064_vm4, %v3152_v62, %v3161_v0 }
  0xe1   : > { %5273 = vmatprep.subr.bf16.mxu0 %v5759_v56  ;;  %v1460_v30 = vrot.slane %v5787_v22, 1  ;;  %v3514_v22 = vld [vmem:[%s5882_s10 + $0x10] sm:$0x8] }
  0xe2   : > { %v3166_v51 = vrot.slane %v3164_v42, 2 }
  0xe4   : > { %5274 = vmatpush3.bf16.msra.mxu0 %v5759_v56  ;;  %v5764_v56 = vld [vmem:[%s6755_s1 + $0x238] sm:$0xff]   ;;  %v3170_v59 = vor.u32 %v3169_v52, %v3166_v51  ;;  %v5789_v52 = vld [vmem:[%s5882_s10 + $0x30] sm:$0xff]  }
  0xe5   : > { %5275 = vmatprep.subr.bf16.mxu0 %v5760_v5 }
  0xe6   : > { %4996 = vmatmul.mubr.bf16.gmra.mrb[24].mxu1 %v1020_v16  ;;  %v3175_v16 = vrot.slane %v3173_v3, 2 }
  0xe7   : > { %5240 = vmatmul.mubr.bf16.gmra.mrb[8].mxu0 %v3126_v41  ;;  %4999 = vmatprep.mubr.bf16.mxu1 %v1022_v55  ;;  %v3178_v41 = vrot.slane %v3176_v15, 3  ;;  %v3171_v55 = vsel %vm3064_vm4, %v3161_v0, %v3170_v59  ;;  %v5790_v0 = vld [vmem:[%s6755_s1 + $0x108] sm:$0xff]  }
  0xe8   : > { %5243 = vmatprep.mubr.bf16.mxu0 %v3135_v13  ;;  %5276 = vmatpush3.bf16.msra.mxu0 %v5760_v5  ;;  %v1457_v5 = vsel %vm991_vm3, %v1455_v14, %v1456_v23  ;;  %v5786_v13 = vld [vmem:[%s5882_s10 + $0x18] sm:$0xff]   ;;  %v3212_v14 = vshll.u32 %v6373_v48, 16 }
  0xe9   : > { %5277 = vmatprep.subr.bf16.mxu0 %v5761_v21  ;;  %v1458_v18 = vrot.slane %v5786_v13, 1  ;;  %v3179_v20 = vor.u32 %v3178_v41, %v3175_v16  ;;  %v5792_v41 = vld [vmem:[%s5882_s10 + $0x38] sm:$0xff]   ;;  %v1468_v13 = vrot.slane %v5793_v12, 1 }
  0xea   : > { %v3214_v4 = vrot.slane %v3212_v14, 3  ;;  %v5799_v14 = vld [vmem:[%s6755_s1 + $0x130] sm:$0xff]  }
  0xeb   : > { %v1459_v62 = vsel %vm991_vm3, %v1456_v23, %v1458_v18  ;;  %v3180_v42 = vsel %vm3064_vm4, %v3170_v59, %v3179_v20  ;;  %v3218_v23 = vshrl.u32 %v6377_v47, 16 }
  0xec   : > { %5278 = vmatpush3.bf16.msra.mxu0 %v5761_v21  ;;  %v3191_v21 = vshrl.u32 %v6351_v29, 16  ;;  %v3215_v11 = vor.u32 %v3214_v4, %v3211_v25 }
  0xed   : > { %5279 = vmatprep.subr.bf16.mxu0 %v5762_v40 }
  0xee   : > { %5000 = vmatmul.mubr.bf16.gmra.mrb[28].mxu1 %v1024_v45  ;;  %v3193_v32 = vrot.slane %v3191_v21, 2  ;;  %v1461_v45 = vsel %vm991_vm3, %v1458_v18, %v1460_v30  ;;  %v3227_v18 = vshrl.u32 %v6447_v43, 16 }
  0xef   : > { %5244 = vmatmul.mubr.bf16.gmra.mrb[12].mxu0 %v3144_v46  ;;  %5003 = vmatprep.mubr.bf16.mxu1 %v1026_v53  ;;  %v3189_v46 = vsel %vm3064_vm4, %v3179_v20, %v3188_v7  ;;  %v3202_v53 = vrot.slane %v3200_v37, 2  ;;  %v3230_v20 = vshll.u32 %v6447_v43, 16 }
  0xf0   : > { %5247 = vmatprep.mubr.bf16.mxu0 %v3153_v49  ;;  %5280 = vmatpush3.bf16.msra.mxu0 %v5762_v40  ;;  %v3196_v40 = vrot.slane %v3194_v26, 3  ;;  %v1462_v49 = vrot.slane %v5788_v19, 1  ;;  %v5794_v26 = vld [vmem:[%s6755_s1 + $0x118] sm:$0xff]   ;;  %v3229_v39 = vrot.slane %v3227_v18, 2 }
  0xf1   : > { %5281 = vmatprep.subr.bf16.mxu0 %v5764_v56  ;;  %v3206_v61 = vor.u32 %v3205_v36, %v3202_v53  ;;  %v6551_v53 = vld [vmem:[%s5882_s10 + $0x50] sm:$0xff]   ;;  %v6597_v18 = vld [vmem:[%s5882_s10 + $0x78] sm:$0xff]  }
  0xf2   : > { %v3197_v51 = vor.u32 %v3196_v40, %v3193_v32  ;;  %v1463_v3 = vsel %vm991_vm3, %v1460_v30, %v1462_v49  ;;  %v5795_v32 = vld [vmem:[%s6755_s1 + $0x120] sm:$0xff]   ;;  %v5796_v40 = vld [vmem:[%s5882_s10 + $0x48] sm:$0xff]   ;;  %v1472_v36 = vrot.slane %v6551_v53, 1 }
  0xf4   : > { %5282 = vmatpush3.bf16.msra.mxu0 %v5764_v56  ;;  %v1464_v56 = vrot.slane %v5789_v52, 1  ;;  %v3198_v15 = vsel %vm3064_vm4, %v3188_v7, %v3197_v51  ;;  %v3216_v7 = vsel %vm3064_vm4, %v3206_v61, %v3215_v11 }
  0xf6   : > { %5004 = vmatmul.mubr.bf16.gmra.mrb[32].mxu1 %v1028_v9  ;;  %v1465_v59 = vsel %vm991_vm3, %v1462_v49, %v1464_v56  ;;  %v5791_v9 = vld [vmem:[%s6755_s1 + $0x110] sm:$0xff]   ;;  %v5798_v49 = vld [vmem:[%s6755_s1 + $0x128] sm:$0xff]  }
  0xf7   : > { %5248 = vmatmul.mubr.bf16.gmra.mrb[16].mxu0 %v3162_v24  ;;  %5023 = vmatprep.mubr.bf16.mxu1 %v1457_v5  ;;  %v3207_v24 = vsel %vm3064_vm4, %v3197_v51, %v3206_v61  ;;  %v3220_v5 = vrot.slane %v3218_v23, 2  ;;  %v3539_v61 = vrot.slane %v6236_v27, 3  ;;  %v6571_v23 = vld [vmem:[%s5882_s10 + $0x60] sm:$0xff]  }
  0xf8   : > { %5251 = vmatprep.mubr.bf16.mxu0 %v3171_v55  ;;  %v1466_v55 = vrot.slane %v5792_v41, 1  ;;  %v3545_v41 = vrot.slane %v6260_v1, 3  ;;  %v3547_v1 = vrot.slane %v6276_v44, 3 }
  0xfa   : > { %v1467_v30 = vsel %vm991_vm3, %v1464_v56, %v1466_v55  ;;  %v1469_v37 = vsel %vm991_vm3, %v1466_v55, %v1468_v13 }
  0xfe   : > { %5024 = vmatmul.mubr.bf16.vlgmr.msra.gmra.mrb[0].mxu1 %v1459_v62  ;;  %v3232_v62 = vrot.slane %v3230_v20, 3  ;;  %v6602_v20 = vld [vmem:[%s5882_s10 + $0x80] sm:$0xff]  }
  0xff   : > { %5252 = vmatmul.mubr.bf16.gmra.mrb[20].mxu0 %v3180_v42  ;;  %5327 = vmatpush3.bf16.msra.mxu1 %v6433_v17  ;;  %v3221_v17 = vshll.u32 %v6377_v47, 16  ;;  %v4426_v42 = vcombine.low %v3514_v22, %v6210_v6  ;;  %v3537_v6 = vrot.slane %v6221_v60, 3  ;;  %v6566_v60 = vld [vmem:[%s5882_s10 + $0x58] sm:$0xff]  }
 0x100   : > { %5027 = vmatprep.mubr.bf16.mxu1 %v1461_v45  ;;  %5255 = vmatprep.mubr.bf16.mxu0 %v3189_v46  ;;  %v1470_v45 = vrot.slane %v5796_v40, 1  ;;  %v3233_v46 = vor.u32 %v3232_v62, %v3229_v39  ;;  %v6611_v39 = vld [vmem:[%s5882_s10 + $0x88] sm:$0xff]   ;;  %v3551_v62 = vrot.slane %v6294_v50, 3  ;;  %v3553_v40 = vrot.slane %v6298_v58, 3 }
 0x101   : > { %5320 = vmatprep.subr.bf16.mxu1 %v5790_v0  ;;  %v3223_v16 = vrot.slane %v3221_v17, 3  ;;  %v3536_v19 = vrot.slane %v4426_v42, 3  ;;  %v1476_v17 = vrot.slane %v6571_v23, 1  ;;  %v3540_v25 = vsel %vm3535_vm5, %v3537_v6, %v3539_v61 }
 0x102   : > { %v1471_v51 = vsel %vm991_vm3, %v1468_v13, %v1470_v45  ;;  %v1473_v56 = vsel %vm991_vm3, %v1470_v45, %v1472_v36  ;;  %v1486_v44 = vrot.slane %v6611_v39, 1  ;;  %v1874_v42 = vshrl.u32 %v6551_v53, 16 }
 0x103   : > { %5328 = vmatpush3.bf16.msra.mxu1 %v5790_v0  ;;  %v3224_v21 = vor.u32 %v3223_v16, %v3220_v5  ;;  %v3538_v33 = vsel %vm3535_vm5, %v3536_v19, %v3537_v6  ;;  %v1474_v0 = vrot.slane %v6566_v60, 1  ;;  %v6588_v5 = vld [vmem:[%s5882_s10 + $0x70] sm:$0xff]   ;;  %v3554_v50 = vsel %vm3535_vm5, %v3551_v62, %v3553_v40 }
 0x104   : > { %5321 = vmatprep.subr.bf16.mxu1 %v5791_v9  ;;  %v1480_v16 = vrot.slane %v6588_v5, 1  ;;  %v1876_v6 = vrot.slane %v1874_v42, 1  ;;  %v3555_v58 = vrot.slane %v6313_v8, 3 }
 0x105   : > { %v3225_v43 = vsel %vm3064_vm4, %v3215_v11, %v3224_v21  ;;  %v3234_v52 = vsel %vm3064_vm4, %v3224_v21, %v3233_v46  ;;  %v1477_v4 = vsel %vm991_vm3, %v1474_v0, %v1476_v17  ;;  %v1484_v21 = vrot.slane %v6602_v20, 1  ;;  %v5766_v46 = vld [vmem:[%s5882_s10 + $0x98] ss:$0 sps:$4 sm:$0x11]  }
 0x106   : > { %5028 = vmatmul.mubr.bf16.gmra.mrb[4].mxu1 %v1463_v3  ;;  %v3541_v3 = vrot.slane %v6240_v31, 3 }
 0x107   : > { %5256 = vmatmul.mubr.bf16.gmra.mrb[24].mxu0 %v3198_v15  ;;  %5031 = vmatprep.mubr.bf16.mxu1 %v1465_v59  ;;  %v5802_v15 = vld [vmem:[%s6755_s1 + $0x138] sm:$0xff]   ;;  %v1475_v59 = vsel %vm991_vm3, %v1472_v36, %v1474_v0  ;;  %v1487_v45 = vsel %vm991_vm3, %v1484_v21, %v1486_v44  ;;  %v3557_v0 = vrot.slane %v6318_v2, 3 }
 0x108   : > { %5259 = vmatprep.mubr.bf16.mxu0 %v3207_v24  ;;  %5329 = vmatpush3.bf16.msra.mxu1 %v5791_v9  ;;  %v3542_v27 = vsel %vm3535_vm5, %v3539_v61, %v3541_v3  ;;  %v6583_v9 = vld [vmem:[%s5882_s10 + $0x68] sm:$0xff]   ;;  %v3543_v24 = vrot.slane %v6256_v38, 3  ;;  %v1482_v38 = vrot.slane %v6597_v18, 1 }
 0x109   : > { %5322 = vmatprep.subr.bf16.mxu1 %v5794_v26  ;;  %v1478_v31 = vrot.slane %v6583_v9, 1  ;;  %v3558_v8 = vsel %vm3535_vm5, %v3555_v58, %v3557_v0  ;;  %v1904_v2 = vshll.u32 %v6583_v9, 16 }
 0x10a   : > { %v3544_v11 = vsel %vm3535_vm5, %v3541_v3, %v3543_v24  ;;  %v3546_v13 = vsel %vm3535_vm5, %v3543_v24, %v3545_v41  ;;  %v1483_v22 = vsel %vm991_vm3, %v1480_v16, %v1482_v38  ;;  %v1910_v24 = vshrl.u32 %v6588_v5, 16 }
 0x10b   : > { %v1479_v55 = vsel %vm991_vm3, %v1476_v17, %v1478_v31  ;;  %v1481_v12 = vsel %vm991_vm3, %v1478_v31, %v1480_v16  ;;  %v3561_v16 = vrot.slane %v6340_v57, 3  ;;  %v1922_v57 = vshll.u32 %v6597_v18, 16 }
 0x10c   : > { %5330 = vmatpush3.bf16.msra.mxu1 %v5794_v26  ;;  %v3549_v26 = vrot.slane %v6279_v35, 3  ;;  %v6616_v35 = vld [vmem:[%s5882_s10 + $0x90] sm:$0xff]  }
 0x10d   : > { %5323 = vmatprep.subr.bf16.mxu1 %v5795_v32 }
 0x10e   : > { %5032 = vmatmul.mubr.bf16.gmra.mrb[8].mxu1 %v1467_v30  ;;  %v3548_v30 = vsel %vm3535_vm5, %v3545_v41, %v3547_v1  ;;  %v3552_v36 = vsel %vm3535_vm5, %v3549_v26, %v3551_v62  ;;  %v1924_v62 = vrot.slane %v1922_v57, 2 }
 0x10f   : > { %5260 = vmatmul.mubr.bf16.gmra.mrb[28].mxu0 %v3216_v7  ;;  %5035 = vmatprep.mubr.bf16.mxu1 %v1469_v37  ;;  %v1485_v7 = vsel %vm991_vm3, %v1482_v38, %v1484_v21  ;;  %v3550_v37 = vsel %vm3535_vm5, %v3547_v1, %v3549_v26  ;;  %v1912_v38 = vrot.slane %v1910_v24, 1  ;;  %v3563_v21 = vrot.slane %v6351_v29, 3 }
 0x110   : > { %5263 = vmatprep.mubr.bf16.mxu0 %v3225_v43  ;;  %5331 = vmatpush3.bf16.msra.mxu1 %v5795_v32  ;;  %v1488_v43 = vrot.slane %v6616_v35, 1  ;;  %v1877_v32 = vshll.u32 %v6551_v53, 16  ;;  %v1886_v53 = vshll.u32 %v6566_v60, 16 }
 0x111   : > { %5324 = vmatprep.subr.bf16.mxu1 %v5798_v49 }
 0x112   : > { %v1489_v19 = vsel %vm991_vm3, %v1486_v44, %v1488_v43  ;;  %v1888_v3 = vrot.slane %v1886_v53, 2 }
 0x114   : > { %5332 = vmatpush3.bf16.msra.mxu1 %v5798_v49  ;;  %v1879_v49 = vrot.slane %v1877_v32, 2 }
 0x115   : > { %5325 = vmatprep.subr.bf16.mxu1 %v5799_v14 }
 0x116   : > { %5036 = vmatmul.mubr.bf16.gmra.mrb[12].mxu1 %v1471_v51  ;;  %v1490_v51 = vrot.slane %v5766_v46, 1 }
 0x117   : > { %5264 = vmatmul.mubr.bf16.gmra.mrb[32].mxu0 %v3234_v52  ;;  %5039 = vmatprep.mubr.bf16.mxu1 %v1473_v56  ;;  %v1883_v52 = vshrl.u32 %v6566_v60, 16  ;;  %v1880_v56 = vor.u32 %v1879_v49, %v1876_v6 }
 0x118   : > { %5283 = vmatprep.mubr.bf16.mxu0 %v3538_v33  ;;  %5333 = vmatpush3.bf16.msra.mxu1 %v5799_v14  ;;  %v1892_v33 = vshrl.u32 %v6571_v23, 16  ;;  %v1895_v14 = vshll.u32 %v6571_v23, 16  ;;  %v1491_v61 = vsel %vm991_vm3, %v1488_v43, %v1490_v51  ;;  %v1901_v23 = vshrl.u32 %v6583_v9, 16 }
 0x119   : > { %5326 = vmatprep.subr.bf16.mxu1 %v5802_v15  ;;  %v1885_v17 = vrot.slane %v1883_v52, 1  ;;  %v3564_v43 = vsel %vm3535_vm5, %v3561_v16, %v3563_v21 }
 0x11a   : > { %v1894_v60 = vrot.slane %v1892_v33, 1 }
 0x11c   : > { %5334 = vmatpush3.bf16.msra.mxu1 %v5802_v15  ;;  %v3556_v15 = vsel %vm3535_vm5, %v3553_v40, %v3555_v58 }
 0x11e   : > { %5040 = vmatmul.mubr.bf16.gmra.mrb[16].mxu1 %v1475_v59  ;;  %v1881_v59 = vsel %vm1792_vm1, %v6043_v34, %v1880_v56  ;;  %v1913_v34 = vshll.u32 %v6588_v5, 16  ;;  %v1919_v5 = vshrl.u32 %v6597_v18, 16 }
 0x11f   : > { %5284 = vmatmul.mubr.bf16.vlgmr.msra.gmra.mrb[0].mxu0 %v3540_v25  ;;  %5043 = vmatprep.mubr.bf16.mxu1 %v1477_v4  ;;  %v1897_v25 = vrot.slane %v1895_v14, 2  ;;  %v1889_v4 = vor.u32 %v1888_v3, %v1885_v17 }
 0x120   : > { %5287 = vmatprep.mubr.bf16.mxu0 %v3542_v27  ;;  %v3559_v27 = vrot.slane %v6336_v10, 3  ;;  %v1915_v9 = vrot.slane %v1913_v34, 2  ;;  %v1921_v44 = vrot.slane %v1919_v5, 1 }
 0x121   : > { %v1898_v31 = vor.u32 %v1897_v25, %v1894_v60  ;;  %v1890_v41 = vsel %vm1792_vm1, %v1880_v56, %v1889_v4  ;;  %v5809_v56 = vld [vmem:[%s5882_s10 + $0x98] ss:$0 sps:$4 sm:$0x33]  }
 0x122   : > { %v3562_v1 = vsel %vm3535_vm5, %v3559_v27, %v3561_v16  ;;  %v1916_v26 = vor.u32 %v1915_v9, %v1912_v38  ;;  %v1925_v29 = vor.u32 %v1924_v62, %v1921_v44  ;;  %v1958_v33 = vshll.u32 %v5809_v56, 16 }
 0x124   : > { %v1926_v6 = vsel %vm1792_vm1, %v1916_v26, %v1925_v29  ;;  %v1960_v17 = vrot.slane %v1958_v33, 2 }
 0x126   : > { %5044 = vmatmul.mubr.bf16.gmra.mrb[20].mxu1 %v1479_v55  ;;  %v1903_v55 = vrot.slane %v1901_v23, 1 }
 0x127   : > { %5288 = vmatmul.mubr.bf16.gmra.mrb[4].mxu0 %v3544_v11  ;;  %5047 = vmatprep.mubr.bf16.mxu1 %v1481_v12  ;;  %v1906_v11 = vrot.slane %v1904_v2, 2  ;;  %v3560_v12 = vsel %vm3535_vm5, %v3557_v0, %v3559_v27 }
 0x128   : > { %5291 = vmatprep.mubr.bf16.mxu0 %v3546_v13  ;;  %v1899_v13 = vsel %vm1792_vm1, %v1889_v4, %v1898_v31 }
 0x129   : > { %v1907_v10 = vor.u32 %v1906_v11, %v1903_v55 }
 0x12b   : > { %v1917_v42 = vsel %vm1792_vm1, %v1907_v10, %v1916_v26 }
 0x12e   : > { %5048 = vmatmul.mubr.bf16.gmra.mrb[24].mxu1 %v1483_v22  ;;  %v1928_v22 = vshrl.u32 %v6602_v20, 16 }
 0x12f   : > { %5292 = vmatmul.mubr.bf16.gmra.mrb[8].mxu0 %v3548_v30  ;;  %5051 = vmatprep.mubr.bf16.mxu1 %v1485_v7  ;;  %v1931_v30 = vshll.u32 %v6602_v20, 16  ;;  %v3565_v7 = vrot.slane %v6359_v54, 3  ;;  %v1937_v20 = vshrl.u32 %v6611_v39, 16  ;;  %v1940_v54 = vshll.u32 %v6611_v39, 16 }
 0x130   : > { %5295 = vmatprep.mubr.bf16.mxu0 %v3550_v37  ;;  %v1908_v37 = vsel %vm1792_vm1, %v1898_v31, %v1907_v10  ;;  %v1930_v32 = vrot.slane %v1928_v22, 1 }
 0x131   : > { %v1933_v18 = vrot.slane %v1931_v30, 2  ;;  %v3566_v40 = vsel %vm3535_vm5, %v3563_v21, %v3565_v7  ;;  %v1939_v49 = vrot.slane %v1937_v20, 1 }
 0x133   : > { %v1934_v46 = vor.u32 %v1933_v18, %v1930_v32 }
 0x135   : > { %v1935_v52 = vsel %vm1792_vm1, %v1925_v29, %v1934_v46 }
 0x136   : > { %5052 = vmatmul.mubr.bf16.gmra.mrb[28].mxu1 %v1487_v45  ;;  %v3567_v45 = vrot.slane %v6373_v48, 3 }
 0x137   : > { %5296 = vmatmul.mubr.bf16.gmra.mrb[12].mxu0 %v3552_v36  ;;  %5055 = vmatprep.mubr.bf16.mxu1 %v1489_v19  ;;  %v1946_v36 = vshrl.u32 %v6616_v35, 16  ;;  %v1949_v19 = vshll.u32 %v6616_v35, 16  ;;  %v1955_v35 = vshrl.u32 %v5809_v56, 16 }
 0x138   : > { %5299 = vmatprep.mubr.bf16.mxu0 %v3554_v50  ;;  %v1942_v50 = vrot.slane %v1940_v54, 2  ;;  %v3568_v51 = vsel %vm3535_vm5, %v3565_v7, %v3567_v45  ;;  %v3570_v48 = vsel %vm3535_vm5, %v3567_v45, %v3569_v28 }
 0x139   : > { %v1948_v53 = vrot.slane %v1946_v36, 1  ;;  %v1951_v58 = vrot.slane %v1949_v19, 2 }
 0x13a   : > { %v1943_v39 = vor.u32 %v1942_v50, %v1939_v49 }
 0x13b   : > { %v1952_v14 = vor.u32 %v1951_v58, %v1948_v53 }
 0x13c   : > { %v1944_v0 = vsel %vm1792_vm1, %v1934_v46, %v1943_v39 }
 0x13d   : > { %v1953_v3 = vsel %vm1792_vm1, %v1943_v39, %v1952_v14 }
 0x13e   : > { %5056 = vmatmul.mubr.bf16.gmra.mrb[32].mxu1 %v1491_v61  ;;  %v1957_v61 = vrot.slane %v1955_v35, 1 }
 0x13f   : > { %5300 = vmatmul.mubr.bf16.gmra.mrb[16].mxu0 %v3556_v15  ;;  %5091 = vmatprep.mubr.bf16.mxu1 %v1881_v59 }
 0x140   : > { %5303 = vmatprep.mubr.bf16.mxu0 %v3558_v8  ;;  %v1961_v47 = vor.u32 %v1960_v17, %v1957_v61 }
 0x142   : > { %v1962_v28 = vsel %vm1792_vm1, %v1952_v14, %v1961_v47 }
 0x146   : > { %5092 = vmatmul.mubr.bf16.vlgmr.msra.gmra.mrb[16].mxu1 %v1890_v41 }
 0x147   : > { %5304 = vmatmul.mubr.bf16.gmra.mrb[20].mxu0 %v3560_v12  ;;  %5095 = vmatprep.mubr.bf16.mxu1 %v1899_v13  ;;  %v6685_v12 = vld [vmem:[%s6756_s2] ss:$0 sm:$0xff] }
 0x148   : > { %5307 = vmatprep.mubr.bf16.mxu0 %v3562_v1 }
 0x14e   : > { %5096 = vmatmul.mubr.bf16.gmra.mrb[20].mxu1 %v1908_v37 }
 0x14f   : > { %5308 = vmatmul.mubr.bf16.gmra.mrb[24].mxu0 %v3564_v43  ;;  %5099 = vmatprep.mubr.bf16.mxu1 %v1917_v42 }
 0x150   : > { %5311 = vmatprep.mubr.bf16.mxu0 %v3566_v40 }
 0x156   : > { %5100 = vmatmul.mubr.bf16.gmra.mrb[24].mxu1 %v1926_v6 }
 0x157   : > { %5312 = vmatmul.mubr.bf16.gmra.mrb[28].mxu0 %v3568_v51  ;;  %5103 = vmatprep.mubr.bf16.mxu1 %v1935_v52 }
 0x158   : > { %5315 = vmatprep.mubr.bf16.mxu0 %v3570_v48 }
 0x15e   : > { %5104 = vmatmul.mubr.bf16.gmra.mrb[28].mxu1 %v1944_v0 }
 0x15f   : > { %5316 = vmatmul.mubr.bf16.gmra.mrb[32].mxu0 %v6461_v63  ;;  %5107 = vmatprep.mubr.bf16.mxu1 %v1953_v3 }
 0x166   : > { %5108 = vmatmul.mubr.bf16.gmra.mrb[32].mxu1 %v1962_v28 }
 0x1d1   : > { %v5025_v15 = vpop.f32.mrb[0].mxu1 }
 0x1d2   : > { %v1592_v59 = vpop.f32.mrb[1].mxu1 }
 0x1d3   : > { %v5026_v60 = vpop.f32.mrb[2].mxu1 }
 0x1d4   : > { %v1595_v25 = vpop.f32.mrb[3].mxu1 }
 0x1d9   : > { %v5029_v8 = vpop.f32.mrb[4].mxu1 }
 0x1da   : > { %v1608_v4 = vpop.f32.mrb[5].mxu1 }
 0x1db   : > { %v5030_v23 = vpop.f32.mrb[6].mxu1 }
 0x1dc   : > { %v1611_v2 = vpop.f32.mrb[7].mxu1 }
 0x1e1   : > { %v5033_v27 = vpop.f32.mrb[8].mxu1 }
 0x1e2   : > { %v1624_v31 = vpop.f32.mrb[9].mxu1 }
 0x1e3   : > { %v5034_v24 = vpop.f32.mrb[10].mxu1 }
 0x1e4   : > { %v1627_v34 = vpop.f32.mrb[11].mxu1 }
 0x1e9   : > { %v6674_v16 = vpop.f32.mrb[12].mxu1 }
 0x1ea   : > { %v6676_v63 = vpop.f32.mrb[13].mxu1 }
 0x1eb   : > { %v6678_v41 = vpop.f32.mrb[14].mxu1 }
 0x1ec   : > { %v6680_v55 = vpop.f32.mrb[15].mxu1 }
 0x1f2   : > { %v5285_v11 = vpop.f32.mrb[0].mxu0 }
 0x1f3   : > { %v5335_v13 = vadd.f32 %v5285_v11, %v5025_v15  ;;  %v3673_v38 = vpop.f32.mrb[1].mxu0 }
 0x1f4   : > { %v5336_v9 = vadd.f32 %v3673_v38, %v1592_v59  ;;  %v5286_v1 = vpop.f32.mrb[2].mxu0 }
 0x1f5   : > { %v3861_v10 = vadd.f32 %v5335_v13, %v6685_v12  ;;  %v5337_v5 = vadd.f32 %v5286_v1, %v5026_v60  ;;  %v3676_v57 = vpop.f32.mrb[3].mxu0 }
 0x1f6   : > { %v3859_v21 = vadd.f32 %v5336_v9, %v6685_v12  ;;  %v5338_v26 = vadd.f32 %v3676_v57, %v1595_v25 }
 0x1f7   : > { %v3862_v22 = vadd.f32 %v5337_v5, %v6685_v12  ;;  %v3897_v7 = vmax.f32 %v3861_v10, 0.0 }
 0x1f8   : > { %v3860_v30 = vadd.f32 %v5338_v26, %v6685_v12  ;;  %v3895_v44 = vmax.f32 %v3859_v21, 0.0 }
 0x1f9   : > { %v3898_v37 = vmax.f32 %v3862_v22, 0.0 }
 0x1fa   : > { %v3896_v62 = vmax.f32 %v3860_v30, 0.0  ;;  %v5289_v43 = vpop.f32.mrb[4].mxu0 }
 0x1fb   : > { %v4518_v42 = vpack.c.bf16 %v3898_v37, %v3897_v7  ;;  %v5339_v32 = vadd.f32 %v5289_v43, %v5029_v8  ;;  %v3689_v18 = vpop.f32.mrb[5].mxu0 }
 0x1fc   : > { %v4513_v40 = vpack.c.bf16 %v3896_v62, %v3895_v44  ;;  %v5340_v29 = vadd.f32 %v3689_v18, %v1608_v4  ;;  %v5290_v20 = vpop.f32.mrb[6].mxu0 }
 0x1fd   : > { %4600 = vst [vmem:[%s6695_s11 + $0x8] sm:$0xff] %v4518_v42   ;;  %v3865_v54 = vadd.f32 %v5339_v32, %v6685_v12  ;;  %v5341_v45 = vadd.f32 %v5290_v20, %v5030_v23  ;;  %v3692_v46 = vpop.f32.mrb[7].mxu0 }
 0x1fe   : > { %4514 = vst [vmem:[%s6695_s11] sm:$0xff] %v4513_v40   ;;  %v3863_v36 = vadd.f32 %v5340_v29, %v6685_v12  ;;  %v5342_v19 = vadd.f32 %v3692_v46, %v1611_v2 }
 0x1ff   : > { %v3866_v6 = vadd.f32 %v5341_v45, %v6685_v12  ;;  %v3901_v50 = vmax.f32 %v3865_v54, 0.0 }
 0x200   : > { %v3864_v49 = vadd.f32 %v5342_v19, %v6685_v12  ;;  %v3899_v52 = vmax.f32 %v3863_v36, 0.0 }
 0x201   : > { %v3902_v51 = vmax.f32 %v3866_v6, 0.0 }
 0x202   : > { %v3900_v53 = vmax.f32 %v3864_v49, 0.0  ;;  %v5293_v58 = vpop.f32.mrb[8].mxu0 }
 0x203   : > { %v4528_v48 = vpack.c.bf16 %v3902_v51, %v3901_v50  ;;  %v5343_v39 = vadd.f32 %v5293_v58, %v5033_v27  ;;  %v3705_v56 = vpop.f32.mrb[9].mxu0 }
 0x204   : > { %v4523_v35 = vpack.c.bf16 %v3900_v53, %v3899_v52  ;;  %v5344_v33 = vadd.f32 %v3705_v56, %v1624_v31  ;;  %v5294_v14 = vpop.f32.mrb[10].mxu0 }
 0x205   : > { %4602 = vst [vmem:[%s6695_s11 + $0x18] sm:$0xff] %v4528_v48   ;;  %v3869_v0 = vadd.f32 %v5343_v39, %v6685_v12  ;;  %v5345_v61 = vadd.f32 %v5294_v14, %v5034_v24  ;;  %v3708_v17 = vpop.f32.mrb[11].mxu0 }
 0x206   : > { %4601 = vst [vmem:[%s6695_s11 + $0x10] sm:$0xff] %v4523_v35   ;;  %v3867_v3 = vadd.f32 %v5344_v33, %v6685_v12  ;;  %v5346_v47 = vadd.f32 %v3708_v17, %v1627_v34 }
 0x207   : > { %v3870_v28 = vadd.f32 %v5345_v61, %v6685_v12  ;;  %v3905_v59 = vmax.f32 %v3869_v0, 0.0 }
 0x208   : > { %v3868_v15 = vadd.f32 %v5346_v47, %v6685_v12  ;;  %v3903_v25 = vmax.f32 %v3867_v3, 0.0 }
 0x209   : > { %v3906_v60 = vmax.f32 %v3870_v28, 0.0 }
 0x20a   : > { %v3904_v8 = vmax.f32 %v3868_v15, 0.0  ;;  %v5297_v4 = vpop.f32.mrb[12].mxu0 }
 0x20b   : > { %v4538_v23 = vpack.c.bf16 %v3906_v60, %v3905_v59  ;;  %v5347_v2 = vadd.f32 %v5297_v4, %v6674_v16  ;;  %v3721_v27 = vpop.f32.mrb[13].mxu0 }
 0x20c   : > { %v4533_v31 = vpack.c.bf16 %v3904_v8, %v3903_v25  ;;  %v5348_v24 = vadd.f32 %v3721_v27, %v6676_v63  ;;  %v5298_v11 = vpop.f32.mrb[14].mxu0 }
 0x20d   : > { %4604 = vst [vmem:[%s6695_s11 + $0x28] sm:$0xff] %v4538_v23   ;;  %v3873_v34 = vadd.f32 %v5347_v2, %v6685_v12  ;;  %v5349_v13 = vadd.f32 %v5298_v11, %v6678_v41  ;;  %v3724_v38 = vpop.f32.mrb[15].mxu0 }
 0x20e   : > { %4603 = vst [vmem:[%s6695_s11 + $0x20] sm:$0xff] %v4533_v31   ;;  %v3871_v9 = vadd.f32 %v5348_v24, %v6685_v12  ;;  %v5350_v1 = vadd.f32 %v3724_v38, %v6680_v55 }
 0x20f   : > { %v3874_v16 = vadd.f32 %v5349_v13, %v6685_v12  ;;  %v3909_v5 = vmax.f32 %v3873_v34, 0.0 }
 0x210   : > { %v3872_v10 = vadd.f32 %v5350_v1, %v6685_v12  ;;  %v3907_v57 = vmax.f32 %v3871_v9, 0.0 }
 0x211   : > { %v3910_v63 = vmax.f32 %v3874_v16, 0.0 }
 0x212   : > { %v3908_v21 = vmax.f32 %v3872_v10, 0.0  ;;  %v5301_v26 = vpop.f32.mrb[16].mxu0 }
 0x213   : > { %v4548_v22 = vpack.c.bf16 %v3910_v63, %v3909_v5  ;;  %v3737_v30 = vpop.f32.mrb[17].mxu0 }
 0x214   : > { %v4543_v41 = vpack.c.bf16 %v3908_v21, %v3907_v57  ;;  %v5302_v7 = vpop.f32.mrb[18].mxu0 }
 0x215   : > { %4606 = vst [vmem:[%s6695_s11 + $0x38] sm:$0xff] %v4548_v22   ;;  %v3740_v37 = vpop.f32.mrb[19].mxu0 }
 0x216   : > { %4605 = vst [vmem:[%s6695_s11 + $0x30] sm:$0xff] %v4543_v41  }
 0x219   : > { %v5093_v44 = vpop.f32.mrb[16].mxu1 }
 0x21a   : > { %v5351_v62 = vadd.f32 %v5301_v26, %v5093_v44  ;;  %v5305_v43 = vpop.f32.mrb[20].mxu0  ;;  %v2127_v55 = vpop.f32.mrb[17].mxu1 }
 0x21b   : > { %v5352_v42 = vadd.f32 %v3737_v30, %v2127_v55  ;;  %v3753_v32 = vpop.f32.mrb[21].mxu0  ;;  %v5094_v18 = vpop.f32.mrb[18].mxu1 }
 0x21c   : > { %v3877_v40 = vadd.f32 %v5351_v62, %v6685_v12  ;;  %v5353_v29 = vadd.f32 %v5302_v7, %v5094_v18  ;;  %v5306_v20 = vpop.f32.mrb[22].mxu0  ;;  %v2130_v54 = vpop.f32.mrb[19].mxu1 }
 0x21d   : > { %v3875_v45 = vadd.f32 %v5352_v42, %v6685_v12  ;;  %v5354_v46 = vadd.f32 %v3740_v37, %v2130_v54  ;;  %v3756_v36 = vpop.f32.mrb[23].mxu0 }
 0x21e   : > { %v3878_v19 = vadd.f32 %v5353_v29, %v6685_v12  ;;  %v3913_v49 = vmax.f32 %v3877_v40, 0.0 }
 0x21f   : > { %v3876_v6 = vadd.f32 %v5354_v46, %v6685_v12  ;;  %v3911_v51 = vmax.f32 %v3875_v45, 0.0 }
 0x220   : > { %v3914_v50 = vmax.f32 %v3878_v19, 0.0 }
 0x221   : > { %v3912_v52 = vmax.f32 %v3876_v6, 0.0  ;;  %v5097_v53 = vpop.f32.mrb[20].mxu1 }
 0x222   : > { %v4558_v58 = vpack.c.bf16 %v3914_v50, %v3913_v49  ;;  %v5355_v48 = vadd.f32 %v5305_v43, %v5097_v53  ;;  %v5309_v39 = vpop.f32.mrb[24].mxu0  ;;  %v2143_v56 = vpop.f32.mrb[21].mxu1 }
 0x223   : > { %v4553_v35 = vpack.c.bf16 %v3912_v52, %v3911_v51  ;;  %v5356_v33 = vadd.f32 %v3753_v32, %v2143_v56  ;;  %v3769_v14 = vpop.f32.mrb[25].mxu0  ;;  %v5098_v0 = vpop.f32.mrb[22].mxu1 }
 0x224   : > { %4608 = vst [vmem:[%s6695_s11 + $0x48] sm:$0xff] %v4558_v58   ;;  %v3881_v61 = vadd.f32 %v5355_v48, %v6685_v12  ;;  %v5357_v17 = vadd.f32 %v5306_v20, %v5098_v0  ;;  %v5310_v3 = vpop.f32.mrb[26].mxu0  ;;  %v2146_v47 = vpop.f32.mrb[23].mxu1 }
 0x225   : > { %4607 = vst [vmem:[%s6695_s11 + $0x40] sm:$0xff] %v4553_v35   ;;  %v3879_v28 = vadd.f32 %v5356_v33, %v6685_v12  ;;  %v5358_v15 = vadd.f32 %v3756_v36, %v2146_v47  ;;  %v3772_v59 = vpop.f32.mrb[27].mxu0 }
 0x226   : > { %v3882_v60 = vadd.f32 %v5357_v17, %v6685_v12  ;;  %v3917_v8 = vmax.f32 %v3881_v61, 0.0 }
 0x227   : > { %v3880_v25 = vadd.f32 %v5358_v15, %v6685_v12  ;;  %v3915_v23 = vmax.f32 %v3879_v28, 0.0 }
 0x228   : > { %v3918_v4 = vmax.f32 %v3882_v60, 0.0 }
 0x229   : > { %v3916_v2 = vmax.f32 %v3880_v25, 0.0  ;;  %v5101_v27 = vpop.f32.mrb[24].mxu1 }
 0x22a   : > { %v4568_v31 = vpack.c.bf16 %v3918_v4, %v3917_v8  ;;  %v5359_v24 = vadd.f32 %v5309_v39, %v5101_v27  ;;  %v5313_v11 = vpop.f32.mrb[28].mxu0  ;;  %v2159_v34 = vpop.f32.mrb[25].mxu1 }
 0x22b   : > { %v4563_v13 = vpack.c.bf16 %v3916_v2, %v3915_v23  ;;  %v5360_v38 = vadd.f32 %v3769_v14, %v2159_v34  ;;  %v3785_v9 = vpop.f32.mrb[29].mxu0  ;;  %v5102_v1 = vpop.f32.mrb[26].mxu1 }
 0x22c   : > { %4610 = vst [vmem:[%s6695_s11 + $0x58] sm:$0xff] %v4568_v31   ;;  %v3885_v16 = vadd.f32 %v5359_v24, %v6685_v12  ;;  %v5361_v10 = vadd.f32 %v5310_v3, %v5102_v1  ;;  %v5314_v5 = vpop.f32.mrb[30].mxu0  ;;  %v2162_v63 = vpop.f32.mrb[27].mxu1 }
 0x22d   : > { %4609 = vst [vmem:[%s6695_s11 + $0x50] sm:$0xff] %v4563_v13   ;;  %v3883_v57 = vadd.f32 %v5360_v38, %v6685_v12  ;;  %v5362_v21 = vadd.f32 %v3772_v59, %v2162_v63  ;;  %v3788_v26 = vpop.f32.mrb[31].mxu0 }
 0x22e   : > { %v3886_v22 = vadd.f32 %v5361_v10, %v6685_v12  ;;  %v3921_v41 = vmax.f32 %v3885_v16, 0.0 }
 0x22f   : > { %v3884_v30 = vadd.f32 %v5362_v21, %v6685_v12  ;;  %v3919_v37 = vmax.f32 %v3883_v57, 0.0 }
 0x230   : > { %v3922_v7 = vmax.f32 %v3886_v22, 0.0 }
 0x231   : > { %v3920_v44 = vmax.f32 %v3884_v30, 0.0  ;;  %v5105_v62 = vpop.f32.mrb[28].mxu1 }
 0x232   : > { %v4578_v43 = vpack.c.bf16 %v3922_v7, %v3921_v41  ;;  %v5363_v55 = vadd.f32 %v5313_v11, %v5105_v62  ;;  %v5317_v42 = vpop.f32.mrb[32].mxu0  ;;  %v2175_v32 = vpop.f32.mrb[29].mxu1 }
 0x233   : > { %v4573_v18 = vpack.c.bf16 %v3920_v44, %v3919_v37  ;;  %v5364_v40 = vadd.f32 %v3785_v9, %v2175_v32  ;;  %v3801_v29 = vpop.f32.mrb[33].mxu0  ;;  %v5106_v20 = vpop.f32.mrb[30].mxu1 }
 0x234   : > { %4612 = vst [vmem:[%s6695_s11 + $0x68] sm:$0xff] %v4578_v43   ;;  %v3889_v54 = vadd.f32 %v5363_v55, %v6685_v12  ;;  %v5365_v45 = vadd.f32 %v5314_v5, %v5106_v20  ;;  %v5318_v46 = vpop.f32.mrb[34].mxu0  ;;  %v2178_v36 = vpop.f32.mrb[31].mxu1 }
 0x235   : > { %4611 = vst [vmem:[%s6695_s11 + $0x60] sm:$0xff] %v4573_v18   ;;  %v3887_v19 = vadd.f32 %v5364_v40, %v6685_v12  ;;  %v5366_v6 = vadd.f32 %v3788_v26, %v2178_v36  ;;  %v3804_v49 = vpop.f32.mrb[35].mxu0 }
 0x236   : > { %v3890_v50 = vadd.f32 %v5365_v45, %v6685_v12  ;;  %v3925_v52 = vmax.f32 %v3889_v54, 0.0 }
 0x237   : > { %v3888_v51 = vadd.f32 %v5366_v6, %v6685_v12  ;;  %v3923_v58 = vmax.f32 %v3887_v19, 0.0 }
 0x238   : > { %v3926_v53 = vmax.f32 %v3890_v50, 0.0 }
 0x239   : > { %v3924_v48 = vmax.f32 %v3888_v51, 0.0  ;;  %v5109_v39 = vpop.f32.mrb[32].mxu1 }
 0x23a   : > { %v4588_v56 = vpack.c.bf16 %v3926_v53, %v3925_v52  ;;  %v5367_v35 = vadd.f32 %v5317_v42, %v5109_v39  ;;  %v2191_v33 = vpop.f32.mrb[33].mxu1 }
 0x23b   : > { %v4583_v14 = vpack.c.bf16 %v3924_v48, %v3923_v58  ;;  %v5368_v0 = vadd.f32 %v3801_v29, %v2191_v33  ;;  %v5110_v61 = vpop.f32.mrb[34].mxu1 }
 0x23c   : > { %4614 = vst [vmem:[%s6695_s11 + $0x78] sm:$0xff] %v4588_v56   ;;  %v3893_v17 = vadd.f32 %v5367_v35, %v6685_v12  ;;  %v5369_v3 = vadd.f32 %v5318_v46, %v5110_v61  ;;  %v2194_v47 = vpop.f32.mrb[35].mxu1 }
 0x23d   : > { %4613 = vst [vmem:[%s6695_s11 + $0x70] sm:$0xff] %v4583_v14   ;;  %v3891_v28 = vadd.f32 %v5368_v0, %v6685_v12  ;;  %v5370_v15 = vadd.f32 %v3804_v49, %v2194_v47 }
 0x23e   : > { %v3894_v59 = vadd.f32 %v5369_v3, %v6685_v12  ;;  %v3929_v25 = vmax.f32 %v3893_v17, 0.0 }
 0x23f   : > { %v3892_v60 = vadd.f32 %v5370_v15, %v6685_v12  ;;  %v3927_v4 = vmax.f32 %v3891_v28, 0.0 }
 0x240   : > { %v3930_v8 = vmax.f32 %v3894_v59, 0.0 }
 0x241   : > { %v3928_v23 = vmax.f32 %v3892_v60, 0.0 }
 0x242   : > { %v4598_v2 = vpack.c.bf16 %v3930_v8, %v3929_v25 }
 0x243   : > { %v4593_v27 = vpack.c.bf16 %v3928_v23, %v3927_v4 }
 0x244   : > { %4616 = vst [vmem:[%s6695_s11 + $0x88] sm:$0xff] %v4598_v2  }
 0x245   : > { %4615 = vst [vmem:[%s6695_s11 + $0x80] sm:$0xff] %v4593_v27  }
 0x246 PF: > { %s13_s12 = sadd.s32 1, %s5816_s12  }
 0x247   : > { %p10_p4 = scmp.ge.s32.totalorder %s13_s12, 4  }
 0x249   :  { %12 = sbr.rel (!%p10_p4) target bundleno = 1 (0x1), region = 70 }

// kernel: cnn_forward.9
= control target key start
LH: loop header
LB: loop body
LE: loop exit
PB: predicated region body
PF: predicated region fallthrough
CT: control target
= control target key end

     0   :  { %s5008_s12 = smov 0   ;;  %s6428_s0 = inlined_call_operand.vmem [shape: bf16[2,110,256], index: 0, kind: input, shape index: {}]   ;;  %s6429_s1 = inlined_call_operand.vmem [shape: bf16[9,256,256], index: 1, kind: input, shape index: {}]   ;;  %s6430_s2 = inlined_call_operand.vmem [shape: f32[1,256], index: 2, kind: input, shape index: {}]   ;;  %s6431_s3 = inlined_call_operand.vmem [shape: bf16[2,80,256], index: 3, kind: output, shape index: {}]  }
   0x1 LB: > { %s3675_s13 = sadd.s32 4294967295, %s4986_s12   ;;  %p3679_p0 = scmp.ge.s32.totalorder %s4986_s12, 1  ;;  %s4986_s12 = sphi %s5008_s12, %s13_s12  }
   0x2   : > { %p137_p1 = scmp.lt.s32.totalorder %s4986_s12, 3 }
   0x4   : > { %p138_p2 = pnand %p3679_p0, %p137_p1 }
   0x5   : > { %v4496_v0 = vld [vmem:[%s6429_s1 + $0x104] ss:$8 sps:$4 sm:$0xff] (!%p138_p2)   ;;  %v4500_v2 = vld [vmem:[%s6429_s1 + $0x100] ss:$8 sps:$4 sm:$0xff] (!%p138_p2)   ;;  %v4502_v4 = vld [vmem:[%s6429_s1 + $0x114] ss:$8 sps:$4 sm:$0xff] (!%p138_p2)  }
   0x6   : > { %141 = sbr.rel (%p138_p2) target bundleno = 567 (0x237), region = 32  ;;  %v4498_v1 = vld [vmem:[%s6429_s1 + $0x404] ss:$8 sps:$4 sm:$0xff] (!%p138_p2)   ;;  %551 = vmatprep.subr.bf16.mxu1 (!%p138_p2), %v4496_v0  ;;  %v4501_v3 = vld [vmem:[%s6429_s1 + $0x400] ss:$8 sps:$4 sm:$0xff] (!%p138_p2)   ;;  %p161_p3 = scmp.lt.s32.totalorder (!%p138_p2), %s3675_s13, 1 }
   0x7   : > { %1922 = vmatprep.subr.bf16.mxu0 (!%p138_p2), %v4498_v1  ;;  %552 = vmatpush1.bf16.msra.mxu1 (!%p138_p2), %v4500_v2  ;;  %v4504_v5 = vld [vmem:[%s6429_s1 + $0x414] ss:$8 sps:$4 sm:$0xff] (!%p138_p2)   ;;  %v4506_v6 = vld [vmem:[%s6429_s1 + $0x110] ss:$8 sps:$4 sm:$0xff] (!%p138_p2)   ;;  %v4508_v8 = vld [vmem:[%s6429_s1 + $0x124] ss:$8 sps:$4 sm:$0xff] (!%p138_p2)  }
   0x8   : > { %1923 = vmatpush1.bf16.msra.mxu0 (!%p138_p2), %v4501_v3  ;;  %553 = vmatprep.subr.bf16.mxu1 (!%p138_p2), %v4502_v4  ;;  %v4507_v7 = vld [vmem:[%s6429_s1 + $0x410] ss:$8 sps:$4 sm:$0xff] (!%p138_p2)   ;;  %v4510_v9 = vld [vmem:[%s6429_s1 + $0x424] ss:$8 sps:$4 sm:$0xff] (!%p138_p2)   ;;  %v4512_v10 = vld [vmem:[%s6429_s1 + $0x120] ss:$8 sps:$4 sm:$0xff] (!%p138_p2)  }
   0x9   : > { %1924 = vmatprep.subr.bf16.mxu0 (!%p138_p2), %v4504_v5  ;;  %v4513_v11 = vld [vmem:[%s6429_s1 + $0x420] ss:$8 sps:$4 sm:$0xff] (!%p138_p2)   ;;  %v4514_v12 = vld [vmem:[%s6429_s1 + $0x134] ss:$8 sps:$4 sm:$0xff] (!%p138_p2)   ;;  %v4518_v14 = vld [vmem:[%s6429_s1 + $0x130] ss:$8 sps:$4 sm:$0xff] (!%p138_p2)  }
   0xa   : > { %v4516_v13 = vld [vmem:[%s6429_s1 + $0x434] ss:$8 sps:$4 sm:$0xff] (!%p138_p2)   ;;  %v4519_v15 = vld [vmem:[%s6429_s1 + $0x430] ss:$8 sps:$4 sm:$0xff] (!%p138_p2)   ;;  %v4520_v16 = vld [vmem:[%s6429_s1 + $0x144] ss:$8 sps:$4 sm:$0xff] (!%p138_p2)  }
   0xb   : > { %554 = vmatpush1.bf16.msra.mxu1 (!%p138_p2), %v4506_v6  ;;  %v4522_v17 = vld [vmem:[%s6429_s1 + $0x444] ss:$8 sps:$4 sm:$0xff] (!%p138_p2)   ;;  %v4524_v18 = vld [vmem:[%s6429_s1 + $0x140] ss:$8 sps:$4 sm:$0xff] (!%p138_p2)   ;;  %v4526_v20 = vld [vmem:[%s6429_s1 + $0x154] ss:$8 sps:$4 sm:$0xff] (!%p138_p2)  }
   0xc   : > { %1925 = vmatpush1.bf16.msra.mxu0 (!%p138_p2), %v4507_v7  ;;  %555 = vmatprep.subr.bf16.mxu1 (!%p138_p2), %v4508_v8  ;;  %v4525_v19 = vld [vmem:[%s6429_s1 + $0x440] ss:$8 sps:$4 sm:$0xff] (!%p138_p2)   ;;  %v4528_v21 = vld [vmem:[%s6429_s1 + $0x454] ss:$8 sps:$4 sm:$0xff] (!%p138_p2)   ;;  %v4530_v22 = vld [vmem:[%s6429_s1 + $0x150] ss:$8 sps:$4 sm:$0xff] (!%p138_p2)  }
   0xd   : > { %1926 = vmatprep.subr.bf16.mxu0 %v4510_v9  ;;  %v4531_v23 = vld [vmem:[%s6429_s1 + $0x450] ss:$8 sps:$4 sm:$0xff]   ;;  %v4532_v24 = vld [vmem:[%s6429_s1 + $0x164] ss:$8 sps:$4 sm:$0xff]   ;;  %v4536_v26 = vld [vmem:[%s6429_s1 + $0x160] ss:$8 sps:$4 sm:$0xff]  }
   0xe   : > { %v4534_v25 = vld [vmem:[%s6429_s1 + $0x464] ss:$8 sps:$4 sm:$0xff]   ;;  %v4537_v27 = vld [vmem:[%s6429_s1 + $0x460] ss:$8 sps:$4 sm:$0xff]   ;;  %v4538_v28 = vld [vmem:[%s6429_s1 + $0x174] ss:$8 sps:$4 sm:$0xff]  }
   0xf   : > { %556 = vmatpush1.bf16.msra.mxu1 %v4512_v10  ;;  %v4540_v29 = vld [vmem:[%s6429_s1 + $0x474] ss:$8 sps:$4 sm:$0xff]   ;;  %v4542_v30 = vld [vmem:[%s6429_s1 + $0x170] ss:$8 sps:$4 sm:$0xff]   ;;  %v4544_v32 = vld [vmem:[%s6429_s1 + $0x184] ss:$8 sps:$4 sm:$0xff]  }
  0x10   : > { %1927 = vmatpush1.bf16.msra.mxu0 %v4513_v11  ;;  %557 = vmatprep.subr.bf16.mxu1 %v4514_v12  ;;  %v4543_v31 = vld [vmem:[%s6429_s1 + $0x470] ss:$8 sps:$4 sm:$0xff]   ;;  %v4546_v33 = vld [vmem:[%s6429_s1 + $0x484] ss:$8 sps:$4 sm:$0xff]   ;;  %v4548_v34 = vld [vmem:[%s6429_s1 + $0x180] ss:$8 sps:$4 sm:$0xff]  }
  0x11   : > { %1928 = vmatprep.subr.bf16.mxu0 %v4516_v13  ;;  %v4549_v35 = vld [vmem:[%s6429_s1 + $0x480] ss:$8 sps:$4 sm:$0xff]   ;;  %s6433_s13 = smov (!%p161_p3, %s3675_s13), 1  ;;  %v4550_v36 = vld [vmem:[%s6429_s1 + $0x194] ss:$8 sps:$4 sm:$0xff]   ;;  %vm2064_vm2 = vcmask 1045504  }
  0x12   : > { %v4552_v37 = vld [vmem:[%s6429_s1 + $0x494] ss:$8 sps:$4 sm:$0xff]   ;;  %v4554_v38 = vld [vmem:[%s6429_s1 + $0x190] ss:$8 sps:$4 sm:$0xff]   ;;  %s4486_s17 = smul.u32 112, %s6433_s13  ;;  %vm926_vm3 = vcmask 1046528  }
  0x13   : > { %558 = vmatpush1.bf16.msra.mxu1 %v4518_v14  ;;  %v4555_v39 = vld [vmem:[%s6429_s1 + $0x490] ss:$8 sps:$4 sm:$0xff]   ;;  %v4556_v40 = vld [vmem:[%s6429_s1 + $0x1a4] ss:$8 sps:$4 sm:$0xff]   ;;  %v4560_v42 = vld [vmem:[%s6429_s1 + $0x1a0] ss:$8 sps:$4 sm:$0xff]  }
  0x14   : > { %1929 = vmatpush1.bf16.msra.mxu0 %v4519_v15  ;;  %559 = vmatprep.subr.bf16.mxu1 %v4520_v16  ;;  %v4558_v41 = vld [vmem:[%s6429_s1 + $0x4a4] ss:$8 sps:$4 sm:$0xff]   ;;  %v4561_v43 = vld [vmem:[%s6429_s1 + $0x4a0] ss:$8 sps:$4 sm:$0xff]   ;;  %s5158_s30 = scalar_lea.vmem %s6428_s0, %s4486_s17  ;;  %v4562_v44 = vld [vmem:[%s6429_s1 + $0x1b4] ss:$8 sps:$4 sm:$0xff]  }
  0x15   : > { %1930 = vmatprep.subr.bf16.mxu0 %v4522_v17  ;;  %v4564_v45 = vld [vmem:[%s6429_s1 + $0x4b4] ss:$8 sps:$4 sm:$0xff]   ;;  %v4566_v46 = vld [vmem:[%s6429_s1 + $0x1b0] ss:$8 sps:$4 sm:$0xff]   ;;  %v171_v48 = vld [vmem:[%s5158_s30] sm:$0xff]  ;;  %vm3202_vm4 = vcmask 1044480  }
  0x16   : > { %v4567_v47 = vld [vmem:[%s6429_s1 + $0x4b0] ss:$8 sps:$4 sm:$0xff]   ;;  %v172_v49 = vld [vmem:[%s5158_s30 + $0x8] sm:$0xff]  ;;  %vm292_vm0 = vsmask.f32 7424  ;;  %v5191_v57 = vld [vmem:[%s5158_s30 + $0x20] sm:$0xff] }
  0x17   : > { %560 = vmatpush1.bf16.msra.mxu1 %v4524_v18  ;;  %v5175_v50 = vld [vmem:[%s5158_s30 + $0x10] sm:$0xff]  ;;  %v174_v51 = vld [vmem:[%s5158_s30 + $0x18] sm:$0xff]  ;;  %v4568_v52 = vld [vmem:[%s6429_s1 + $0x1c4] ss:$8 sps:$4 sm:$0xff]   ;;  %v5181_v53 = vcombine.high %v171_v48, %v172_v49  ;;  %vm1645_vm1 = vsmask.f32 6400  ;;  %v5208_v1 = vcombine.low %v171_v48, %v172_v49 }
  0x18   : > { %1931 = vmatpush1.bf16.msra.mxu0 %v4525_v19  ;;  %561 = vmatprep.subr.bf16.mxu1 %v4526_v20  ;;  %v5184_v54 = vcombine.high %v5175_v50, %v174_v51  ;;  %v4570_v55 = vld [vmem:[%s6429_s1 + $0x4c4] ss:$8 sps:$4 sm:$0xff]   ;;  %v4572_v62 = vld [vmem:[%s6429_s1 + $0x1c0] ss:$8 sps:$4 sm:$0xff]   ;;  %v5206_v0 = vcombine.high %v174_v51, %v5191_v57  ;;  %v4574_v7 = vld [vmem:[%s6429_s1 + $0x1d4] ss:$8 sps:$4 sm:$0xff]   ;;  %v5226_v14 = vcombine.low %v174_v51, %v5191_v57 }
  0x19   : > { %1932 = vmatprep.subr.bf16.mxu0 %v4528_v21  ;;  %v1222_v56 = vld [vmem:[%s5158_s30 + $0x8] sm:$0xee]  ;;  %v306_v58 = vshrl.u32 %v5181_v53, 16  ;;  %v308_v59 = vshll.u32 %v5181_v53, 16  ;;  %v4576_v8 = vld [vmem:[%s6429_s1 + $0x4d4] ss:$8 sps:$4 sm:$0xff]   ;;  %v5232_v18 = vcombine.low %v5175_v50, %v174_v51 }
  0x1a   : > { %v313_v60 = vshll.u32 %v5184_v54, 16  ;;  %v5197_v61 = vcombine.high %v1222_v56, %v5175_v50  ;;  %v4573_v63 = vld [vmem:[%s6429_s1 + $0x4c0] ss:$8 sps:$4 sm:$0xff]   ;;  %v5211_v2 = vcombine.low %v1222_v56, %v5175_v50  ;;  %v1672_v9 = vshrl.u32 %v5206_v0, 16  ;;  %v4578_v15 = vld [vmem:[%s6429_s1 + $0x1d0] ss:$8 sps:$4 sm:$0xff]  }
  0x1b   : > { %562 = vmatpush1.bf16.msra.mxu1 %v4530_v22  ;;  %v310_v3 = vrot.slane %v308_v59, 1  ;;  %v1675_v10 = vshll.u32 %v5206_v0, 16  ;;  %v296_v19 = vshll.u32 %v5208_v1, 16  ;;  %v4579_v20 = vld [vmem:[%s6429_s1 + $0x4d0] ss:$8 sps:$4 sm:$0xff]   ;;  %s4487_s14 = smul.u32 80, %s6433_s13 }
  0x1c   : > { %1933 = vmatpush1.bf16.msra.mxu0 %v4531_v23  ;;  %563 = vmatprep.subr.bf16.mxu1 %v4532_v24  ;;  %v5213_v4 = vrot.slane %v313_v60, 1  ;;  %v1664_v5 = vshrl.u32 %v5197_v61, 16  ;;  %v1667_v6 = vshll.u32 %v5197_v61, 16  ;;  %v1674_v16 = vrot.slane %v1672_v9, 1  ;;  %v4580_v21 = vld [vmem:[%s6429_s1 + $0x1e4] ss:$8 sps:$4 sm:$0xff]  }
  0x1d   : > { %1934 = vmatprep.subr.bf16.mxu0 %v4534_v25  ;;  %v311_v11 = vor.u32 %v310_v3, %v306_v58  ;;  %v1677_v17 = vrot.slane %v1675_v10, 2  ;;  %v1647_v24 = vshrl.u32 %v5211_v2, 16  ;;  %v1650_v25 = vshll.u32 %v5211_v2, 16  ;;  %v4596_v48 = vld [vmem:[%s6429_s1 + $0x4] ss:$8 sps:$4 sm:$0xff]   ;;  %s6391_s16 = scalar_lea.vmem %s6431_s3, %s4487_s14 }
  0x1e   : > { %v1666_v12 = vrot.slane %v1664_v5, 1  ;;  %v1669_v13 = vrot.slane %v1667_v6, 2  ;;  %v4601_v49 = vld [vmem:[%s6429_s1 + $0x504] ss:$8 sps:$4 sm:$0xff]   ;;  %v4594_v51 = vld [vmem:[%s6429_s1] ss:$8 sps:$4 sm:$0xff]  }
  0x1f   : > { %564 = vmatpush1.bf16.msra.mxu1 %v4536_v26  ;;  %v316_v22 = vsel %vm292_vm0, %v311_v11, %v5213_v4  ;;  %v4582_v26 = vld [vmem:[%s6429_s1 + $0x4e4] ss:$8 sps:$4 sm:$0xff]   ;;  %v4608_v58 = vld [vmem:[%s6429_s1 + $0x14] ss:$8 sps:$4 sm:$0xff]   ;;  %v325_v60 = vshrl.u32 %v5184_v54, 16 }
  0x20   : > { %1935 = vmatpush1.bf16.msra.mxu0 %v4537_v27  ;;  %565 = vmatprep.subr.bf16.mxu1 %v4538_v28  ;;  %v1670_v23 = vor.u32 %v1669_v13, %v1666_v12  ;;  %v5248_v27 = vor.u32 %v1677_v17, %v1674_v16  ;;  %v1655_v28 = vshrl.u32 %v5226_v14, 16  ;;  %v4611_v59 = vld [vmem:[%s6429_s1 + $0x514] ss:$8 sps:$4 sm:$0xff]   ;;  %v4609_v3 = vld [vmem:[%s6429_s1 + $0x510] ss:$8 sps:$4 sm:$0xff]   ;;  %v5306_v5 = vld [vmem:[%s5158_s30 + $0x28] sm:$0xff] }
  0x21   : > { %1936 = vmatprep.subr.bf16.mxu0 %v4540_v29  ;;  %v1658_v29 = vshll.u32 %v5226_v14, 16  ;;  %583 = vmatprep.mubr.bf16.mxu1 %v316_v22  ;;  %v4614_v6 = vld [vmem:[%s6429_s1 + $0x24] ss:$8 sps:$4 sm:$0xff]   ;;  %v5320_v9 = vcombine.low %v5191_v57, %v5306_v5  ;;  %v327_v10 = vor.u32 %v325_v60, %v5213_v4  ;;  %v1227_v11 = vld [vmem:[%s5158_s30 + $0x30] sm:$0xff]  ;;  %v4612_v13 = vld [vmem:[%s6429_s1 + $0x20] ss:$8 sps:$4 sm:$0xff]  }
  0x22   : > { %v5332_v17 = vcombine.high %v5306_v5, %v1227_v11  ;;  %v4620_v4 = vld [vmem:[%s6429_s1 + $0x34] ss:$8 sps:$4 sm:$0xff]   ;;  %vm2783_vm5 = vsmask.f32 5376 }
  0x23   : > { %566 = vmatpush1.bf16.msra.mxu1 %v4542_v30  ;;  %v4584_v30 = vld [vmem:[%s6429_s1 + $0x1e0] ss:$8 sps:$4 sm:$0xff]  }
  0x24   : > { %1937 = vmatpush1.bf16.msra.mxu0 %v4543_v31  ;;  %567 = vmatprep.subr.bf16.mxu1 %v4544_v32  ;;  %v4585_v31 = vld [vmem:[%s6429_s1 + $0x4e0] ss:$8 sps:$4 sm:$0xff]   ;;  %v1679_v32 = vsel %vm1645_vm1, %v1670_v23, %v5248_v27  ;;  %v1690_v23 = vshrl.u32 %v5332_v17, 16 }
  0x25   : > { %1938 = vmatprep.subr.bf16.mxu0 %v4546_v33  ;;  %v294_v33 = vshrl.u32 %v5208_v1, 16  ;;  %1954 = vmatprep.mubr.bf16.mxu0 %v1679_v32 }
  0x27   : > { %568 = vmatpush1.bf16.msra.mxu1 %v4548_v34  ;;  %v298_v34 = vrot.slane %v296_v19, 1  ;;  %v5336_v19 = vcombine.low %v5306_v5, %v1227_v11 }
  0x28   : > { %1939 = vmatpush1.bf16.msra.mxu0 %v4549_v35  ;;  %569 = vmatprep.subr.bf16.mxu1 %v4550_v36  ;;  %v301_v35 = vshll.u32 %v5232_v18, 16  ;;  %v1649_v36 = vrot.slane %v1647_v24, 1  ;;  %v1693_v24 = vshll.u32 %v5332_v17, 16 }
  0x29   : > { %1940 = vmatprep.subr.bf16.mxu0 %v4552_v37  ;;  %v1652_v37 = vrot.slane %v1650_v25, 2 }
  0x2b   : > { %570 = vmatpush1.bf16.msra.mxu1 %v4554_v38  ;;  %v1657_v38 = vrot.slane %v1655_v28, 1  ;;  %v1681_v28 = vshrl.u32 %v5336_v19, 16 }
  0x2c   : > { %1941 = vmatpush1.bf16.msra.mxu0 %v4555_v39  ;;  %571 = vmatprep.subr.bf16.mxu1 %v4556_v40  ;;  %v1660_v39 = vrot.slane %v1658_v29, 2  ;;  %v4586_v40 = vld [vmem:[%s6429_s1 + $0x1f4] ss:$8 sps:$4 sm:$0xff]   ;;  %v1684_v29 = vshll.u32 %v5336_v19, 16 }
  0x2d   : > { %1942 = vmatprep.subr.bf16.mxu0 %v4558_v41  ;;  %v4588_v41 = vld [vmem:[%s6429_s1 + $0x4f4] ss:$8 sps:$4 sm:$0xff]  }
  0x2f   : > { %572 = vmatpush1.bf16.msra.mxu1 %v4560_v42  ;;  %v4590_v42 = vld [vmem:[%s6429_s1 + $0x1f0] ss:$8 sps:$4 sm:$0xff]  }
  0x30   : > { %1943 = vmatpush1.bf16.msra.mxu0 %v4561_v43  ;;  %573 = vmatprep.subr.bf16.mxu1 %v4562_v44  ;;  %v4591_v43 = vld [vmem:[%s6429_s1 + $0x4f0] ss:$8 sps:$4 sm:$0xff]   ;;  %v299_v44 = vor.u32 %v298_v34, %v294_v33  ;;  %v1692_v33 = vrot.slane %v1690_v23, 1  ;;  %v1695_v34 = vrot.slane %v1693_v24, 2 }
  0x31   : > { %1944 = vmatprep.subr.bf16.mxu0 %v4564_v45  ;;  %v303_v45 = vrot.slane %v301_v35, 1  ;;  %v4633_v24 = vld [vmem:[%s6429_s1 + $0x550] ss:$8 sps:$4 sm:$0xff]  }
  0x33   : > { %574 = vmatpush1.bf16.msra.mxu1 %v4566_v46  ;;  %v1653_v46 = vor.u32 %v1652_v37, %v1649_v36  ;;  %v178_v36 = vld [vmem:[%s5158_s30 + $0x38] sm:$0xff]  ;;  %v4626_v37 = vld [vmem:[%s6429_s1 + $0x44] ss:$8 sps:$4 sm:$0xff]  }
  0x34   : > { %1945 = vmatpush1.bf16.msra.mxu0 %v4567_v47  ;;  %575 = vmatprep.subr.bf16.mxu1 %v4568_v52  ;;  %v5274_v47 = vor.u32 %v1660_v39, %v1657_v38  ;;  %v4599_v52 = vld [vmem:[%s6429_s1 + $0x500] ss:$8 sps:$4 sm:$0xff]   ;;  %v1683_v38 = vrot.slane %v1681_v28, 1  ;;  %v1686_v39 = vrot.slane %v1684_v29, 2  ;;  %v1231_v28 = vld [vmem:[%s5158_s30 + $0x50] sm:$0xff] }
  0x35   : > { %1946 = vmatprep.subr.bf16.mxu0 %v4570_v55  ;;  %v304_v55 = vsel %vm292_vm0, %v299_v44, %v303_v45  ;;  %v1696_v44 = vor.u32 %v1695_v34, %v1692_v33 }
  0x36   : > { %v1662_v56 = vsel %vm1645_vm1, %v1653_v46, %v5274_v47  ;;  %v5370_v46 = vcombine.low %v1227_v11, %v178_v36 }
  0x37   : > { %576 = vmatpush1.bf16.msra.mxu1 %v4572_v62  ;;  %v317_v62 = vshrl.u32 %v5232_v18, 16 }
  0x38   : > { %1947 = vmatpush1.bf16.msra.mxu0 %v4573_v63  ;;  %577 = vmatprep.subr.bf16.mxu1 %v4574_v7  ;;  %v4606_v63 = vld [vmem:[%s6429_s1 + $0x10] ss:$8 sps:$4 sm:$0xff]   ;;  %v4617_v7 = vld [vmem:[%s6429_s1 + $0x524] ss:$8 sps:$4 sm:$0xff]   ;;  %v349_v23 = vshrl.u32 %v5370_v46, 16 }
  0x39   : > { %1948 = vmatprep.subr.bf16.mxu0 %v4576_v8  ;;  %v5316_v8 = vcombine.high %v5191_v57, %v5306_v5  ;;  %v319_v12 = vor.u32 %v317_v62, %v303_v45  ;;  %v321_v57 = vshll.u32 %v5320_v9, 16  ;;  %v337_v62 = vshll.u32 %v5370_v46, 16 }
  0x3b   : > { %578 = vmatpush1.bf16.msra.mxu1 %v4578_v15  ;;  %v4615_v15 = vld [vmem:[%s6429_s1 + $0x520] ss:$8 sps:$4 sm:$0xff]   ;;  %v329_v16 = vshll.u32 %v5316_v8, 16  ;;  %v323_v25 = vrot.slane %v321_v57, 1 }
  0x3c   : > { %1949 = vmatpush1.bf16.msra.mxu0 %v4579_v20  ;;  %579 = vmatprep.subr.bf16.mxu1 %v4580_v21  ;;  %v341_v20 = vshrl.u32 %v5316_v8, 16  ;;  %v4623_v21 = vld [vmem:[%s6429_s1 + $0x534] ss:$8 sps:$4 sm:$0xff]   ;;  %v180_v57 = vld [vmem:[%s5158_s30 + $0x48] sm:$0xff] }
  0x3d   : > { %1950 = vmatprep.subr.bf16.mxu0 %v4582_v26  ;;  %v331_v22 = vrot.slane %v329_v16, 1  ;;  %v4618_v26 = vld [vmem:[%s6429_s1 + $0x30] ss:$8 sps:$4 sm:$0xff]   ;;  %v324_v35 = vsel %vm292_vm0, %v319_v12, %v323_v25 }
  0x3f   : > { %580 = vmatpush1.bf16.msra.mxu1 %v4584_v30  ;;  %v333_v30 = vshrl.u32 %v5320_v9, 16  ;;  %v332_v32 = vsel %vm292_vm0, %v327_v10, %v331_v22  ;;  %v4635_v10 = vld [vmem:[%s6429_s1 + $0x554] ss:$8 sps:$4 sm:$0xff]  }
  0x40   : > { %1951 = vmatpush1.bf16.msra.mxu0 %v4585_v31  ;;  %581 = vmatprep.subr.bf16.mxu1 %v4586_v40  ;;  %v4621_v31 = vld [vmem:[%s6429_s1 + $0x530] ss:$8 sps:$4 sm:$0xff]   ;;  %v5362_v40 = vcombine.high %v1227_v11, %v178_v36 }
  0x41   : > { %1952 = vmatprep.subr.bf16.mxu0 %v4588_v41  ;;  %v343_v41 = vor.u32 %v341_v20, %v331_v22  ;;  %v4630_v20 = vld [vmem:[%s6429_s1 + $0x50] ss:$8 sps:$4 sm:$0xff]  }
  0x43   : > { %582 = vmatpush1.bf16.msra.mxu1 %v4590_v42  ;;  %v1229_v42 = vld [vmem:[%s5158_s30 + $0x40] sm:$0xff] }
  0x44   : > { %1953 = vmatpush1.bf16.msra.mxu0 %v4591_v43  ;;  %804 = vmatprep.subr.bf16.mxu1 %v4596_v48  ;;  %v4629_v43 = vld [vmem:[%s6429_s1 + $0x544] ss:$8 sps:$4 sm:$0xff]   ;;  %v5368_v45 = vcombine.high %v178_v36, %v1229_v42  ;;  %v4624_v48 = vld [vmem:[%s6429_s1 + $0x40] ss:$8 sps:$4 sm:$0xff]   ;;  %v5407_v22 = vcombine.high %v1229_v42, %v180_v57  ;;  %v5417_v29 = vcombine.low %v1229_v42, %v180_v57 }
  0x45   : > { %2257 = vmatprep.subr.bf16.mxu0 %v4601_v49  ;;  %v5375_v49 = vor.u32 %v1686_v39, %v1683_v38  ;;  %v5434_v38 = vcombine.low %v180_v57, %v1231_v28 }
  0x46   : > { %584 = vmatmul.mubr.bf16.vlgmr.msra.gmra.mrb[0].mxu1 %v304_v55  ;;  %v5378_v55 = vcombine.low %v178_v36, %v1229_v42  ;;  %v1711_v60 = vshll.u32 %v5368_v45, 16  ;;  %v361_v34 = vshll.u32 %v5407_v22, 16  ;;  %v4636_v36 = vld [vmem:[%s6429_s1 + $0x60] ss:$8 sps:$4 sm:$0xff]   ;;  %v373_v39 = vshrl.u32 %v5407_v22, 16 }
  0x47   : > { %1955 = vmatmul.mubr.bf16.vlgmr.msra.gmra.mrb[0].mxu0 %v1662_v56  ;;  %805 = vmatpush1.bf16.msra.mxu1 %v4594_v51  ;;  %v345_v51 = vshll.u32 %v5362_v40, 16  ;;  %v4627_v56 = vld [vmem:[%s6429_s1 + $0x540] ss:$8 sps:$4 sm:$0xff]  }
  0x48   : > { %2258 = vmatpush1.bf16.msra.mxu0 %v4599_v52  ;;  %806 = vmatprep.subr.bf16.mxu1 %v4608_v58  ;;  %v335_v52 = vor.u32 %v333_v30, %v323_v25  ;;  %v1697_v58 = vsel %vm1645_vm1, %v5248_v27, %v1696_v44  ;;  %v1699_v27 = vshrl.u32 %v5378_v55, 16  ;;  %v1713_v12 = vrot.slane %v1711_v60, 2  ;;  %v4638_v30 = vld [vmem:[%s6429_s1 + $0x64] ss:$8 sps:$4 sm:$0xff]   ;;  %v4647_v60 = vld [vmem:[%s6429_s1 + $0x574] ss:$8 sps:$4 sm:$0xff]  }
  0x49   : > { %2259 = vmatprep.subr.bf16.mxu0 %v4611_v59  ;;  %593 = vmatprep.mubr.bf16.mxu1 %v332_v32  ;;  %v1708_v59 = vshrl.u32 %v5368_v45, 16  ;;  %v363_v42 = vrot.slane %v361_v34, 1 }
  0x4a   : > { %1964 = vmatprep.mubr.bf16.mxu0 %v1697_v58  ;;  %v1701_v16 = vrot.slane %v1699_v27, 1  ;;  %v1717_v58 = vshrl.u32 %v5434_v38, 16 }
  0x4b   : > { %807 = vmatpush1.bf16.msra.mxu1 %v4606_v63  ;;  %v4632_v63 = vld [vmem:[%s6429_s1 + $0x54] ss:$8 sps:$4 sm:$0xff]   ;;  %v1710_v11 = vrot.slane %v1708_v59, 1  ;;  %v1720_v59 = vshll.u32 %v5434_v38, 16 }
  0x4c   : > { %2260 = vmatpush1.bf16.msra.mxu0 %v4609_v3  ;;  %808 = vmatprep.subr.bf16.mxu1 %v4614_v6  ;;  %v1688_v3 = vsel %vm1645_vm1, %v5274_v47, %v5375_v49  ;;  %v347_v6 = vrot.slane %v345_v51, 1  ;;  %v4644_v51 = vld [vmem:[%s6429_s1 + $0x74] ss:$8 sps:$4 sm:$0xff]   ;;  %v1719_v27 = vrot.slane %v1717_v58, 1 }
  0x4d   : > { %2261 = vmatprep.subr.bf16.mxu0 %v4617_v7  ;;  %v1702_v7 = vshll.u32 %v5378_v55, 16 }
  0x4e   : > { %594 = vmatmul.mubr.bf16.gmra.mrb[4].mxu1 %v324_v35  ;;  %v5428_v35 = vcombine.high %v180_v57, %v1231_v28  ;;  %v4645_v57 = vld [vmem:[%s6429_s1 + $0x570] ss:$8 sps:$4 sm:$0xff]   ;;  %v4655_v28 = vld [vmem:[%s6429_s1 + $0x584] ss:$8 sps:$4 sm:$0xff]  }
  0x4f   : > { %809 = vmatpush1.bf16.msra.mxu1 %v4612_v13  ;;  %v339_v13 = vrot.slane %v337_v62, 1  ;;  %v1704_v47 = vrot.slane %v1702_v7, 2  ;;  %1965 = vmatmul.mubr.bf16.gmra.mrb[4].mxu0 %v1688_v3 }
  0x50   : > { %2262 = vmatpush1.bf16.msra.mxu0 %v4615_v15  ;;  %810 = vmatprep.subr.bf16.mxu1 %v4620_v4  ;;  %v348_v15 = vsel %vm292_vm0, %v343_v41, %v347_v6  ;;  %v357_v4 = vshrl.u32 %v5362_v40, 16  ;;  %v4639_v41 = vld [vmem:[%s6429_s1 + $0x560] ss:$8 sps:$4 sm:$0xff]  }
  0x51   : > { %2263 = vmatprep.subr.bf16.mxu0 %v4623_v21  ;;  %603 = vmatprep.mubr.bf16.mxu1 %v348_v15  ;;  %v5405_v21 = vor.u32 %v1713_v12, %v1710_v11  ;;  %v340_v25 = vsel %vm292_vm0, %v335_v52, %v339_v13  ;;  %v4642_v11 = vld [vmem:[%s6429_s1 + $0x70] ss:$8 sps:$4 sm:$0xff]  }
  0x52   : > { %v359_v33 = vor.u32 %v357_v4, %v347_v6  ;;  %v213_v6 = vld [vmem:[%s5158_s30 + $0x50] sm:$0x11]  ;;  %v1606_v15 = vld [vmem:[%s5158_s30 + $0x58] sm:$0x33]  ;;  %v4651_v4 = vld [vmem:[%s6429_s1 + $0x84] ss:$8 sps:$4 sm:$0xff]  }
  0x53   : > { %811 = vmatpush1.bf16.msra.mxu1 %v4618_v26  ;;  %v5414_v26 = vor.u32 %v1704_v47, %v1701_v16  ;;  %v1715_v32 = vsel %vm1645_vm1, %v1696_v44, %v5405_v21  ;;  %v1729_v44 = vshll.u32 %v5428_v35, 16  ;;  %v5455_v7 = vcombine.high %v213_v6, %v213_v6 }
  0x54   : > { %2264 = vmatpush1.bf16.msra.mxu0 %v4621_v31  ;;  %812 = vmatprep.subr.bf16.mxu1 %v4626_v37  ;;  %v4641_v31 = vld [vmem:[%s6429_s1 + $0x564] ss:$8 sps:$4 sm:$0xff]   ;;  %v353_v37 = vshll.u32 %v5417_v29, 16  ;;  %v364_v62 = vsel %vm292_vm0, %v359_v33, %v363_v42  ;;  %v5462_v16 = vcombine.low %v213_v6, %v213_v6  ;;  %v365_v47 = vshrl.u32 %v5417_v29, 16 }
  0x55   : > { %2265 = vmatprep.subr.bf16.mxu0 %v4629_v43  ;;  %1974 = vmatprep.mubr.bf16.mxu0 %v1715_v32  ;;  %v1726_v43 = vshrl.u32 %v5428_v35, 16  ;;  %v1706_v52 = vsel %vm1645_vm1, %v5375_v49, %v5414_v26  ;;  %v1731_v3 = vrot.slane %v1729_v44, 2  ;;  %v1722_v49 = vrot.slane %v1720_v59, 2  ;;  %v4649_v32 = vld [vmem:[%s6429_s1 + $0x80] ss:$8 sps:$4 sm:$0xff]  }
  0x56   : > { %604 = vmatmul.mubr.bf16.gmra.mrb[8].mxu1 %v340_v25  ;;  %v5474_v25 = vcombine.low %v1606_v15, %v1606_v15  ;;  %v4667_v6 = vld [vmem:[%s6429_s1 + $0xa4] ss:$8 sps:$4 sm:$0xff]  }
  0x57   : > { %813 = vmatpush1.bf16.msra.mxu1 %v4624_v48  ;;  %v351_v48 = vor.u32 %v349_v23, %v339_v13  ;;  %613 = vmatprep.mubr.bf16.mxu1 %v364_v62  ;;  %v377_v23 = vshll.u32 %v5455_v7, 16  ;;  %v4658_v62 = vld [vmem:[%s6429_s1 + $0x90] ss:$8 sps:$4 sm:$0xff]  }
  0x58   : > { %2266 = vmatpush1.bf16.msra.mxu0 %v4627_v56  ;;  %814 = vmatprep.subr.bf16.mxu1 %v4632_v63  ;;  %v355_v56 = vrot.slane %v353_v37, 1  ;;  %v1728_v63 = vrot.slane %v1726_v43, 1  ;;  %v4653_v37 = vld [vmem:[%s6429_s1 + $0x580] ss:$8 sps:$4 sm:$0xff]  }
  0x59   : > { %2267 = vmatprep.subr.bf16.mxu0 %v4635_v10  ;;  %v375_v10 = vor.u32 %v373_v39, %v363_v42  ;;  %1975 = vmatmul.mubr.bf16.gmra.mrb[8].mxu0 %v1706_v52  ;;  %v379_v33 = vrot.slane %v377_v23, 1  ;;  %v1738_v42 = vshll.u32 %v5474_v25, 16  ;;  %v4660_v52 = vld [vmem:[%s6429_s1 + $0x94] ss:$8 sps:$4 sm:$0xff]  }
  0x5a   : > { %v1732_v12 = vor.u32 %v1731_v3, %v1728_v63  ;;  %v356_v13 = vsel %vm292_vm0, %v351_v48, %v355_v56  ;;  %v367_v39 = vor.u32 %v365_v47, %v355_v56  ;;  %v4661_v3 = vld [vmem:[%s6429_s1 + $0x590] ss:$8 sps:$4 sm:$0xff]   ;;  %v2069_v47 = vrot.slane %v5206_v0, 2  ;;  %v4679_v23 = vld [vmem:[%s6429_s1 + $0x5b4] ss:$8 sps:$4 sm:$0xff]  }
  0x5b   : > { %815 = vmatpush1.bf16.msra.mxu1 %v4630_v20  ;;  %v1723_v20 = vor.u32 %v1722_v49, %v1719_v27  ;;  %v380_v43 = vsel %vm292_vm0, %v375_v10, %v379_v33  ;;  %v1740_v58 = vrot.slane %v1738_v42, 2  ;;  %v4685_v33 = vld [vmem:[%s6429_s1 + $0x5c0] ss:$8 sps:$4 sm:$0xff]  }
  0x5c   : > { %2268 = vmatpush1.bf16.msra.mxu0 %v4633_v24  ;;  %816 = vmatprep.subr.bf16.mxu1 %v4638_v30  ;;  %v5472_v24 = vcombine.high %v1606_v15, %v1606_v15  ;;  %v1733_v30 = vsel %vm1645_vm1, %v5405_v21, %v1732_v12  ;;  %v4697_v42 = vld [vmem:[%s6429_s1 + $0xe0] ss:$8 sps:$4 sm:$0xff]  }
  0x5d   : > { %2269 = vmatprep.subr.bf16.mxu0 %v4641_v31  ;;  %v369_v31 = vshll.u32 %v5462_v16, 16  ;;  %1984 = vmatprep.mubr.bf16.mxu0 %v1733_v30  ;;  %v1724_v21 = vsel %vm1645_vm1, %v5414_v26, %v1723_v20  ;;  %v4663_v26 = vld [vmem:[%s6429_s1 + $0x594] ss:$8 sps:$4 sm:$0xff]  }
  0x5e   : > { %v1744_v34 = vshrl.u32 %v5472_v24, 16  ;;  %614 = vmatmul.mubr.bf16.gmra.mrb[12].mxu1 %v356_v13  ;;  %v4665_v13 = vld [vmem:[%s6429_s1 + $0xa0] ss:$8 sps:$4 sm:$0xff]  }
  0x5f   : > { %817 = vmatpush1.bf16.msra.mxu1 %v4636_v36  ;;  %v1747_v36 = vshll.u32 %v5472_v24, 16  ;;  %623 = vmatprep.mubr.bf16.mxu1 %v380_v43  ;;  %v4701_v43 = vld [vmem:[%s6429_s1 + $0x5e0] ss:$8 sps:$4 sm:$0xff]  }
  0x60   : > { %2270 = vmatpush1.bf16.msra.mxu0 %v4639_v41  ;;  %818 = vmatprep.subr.bf16.mxu1 %v4644_v51  ;;  %v1735_v41 = vshrl.u32 %v5474_v25, 16  ;;  %v1746_v44 = vrot.slane %v1744_v34, 1  ;;  %v371_v51 = vrot.slane %v369_v31, 1  ;;  %v4683_v31 = vld [vmem:[%s6429_s1 + $0xc4] ss:$8 sps:$4 sm:$0xff]  }
  0x61   : > { %2271 = vmatprep.subr.bf16.mxu0 %v4647_v60  ;;  %v1749_v48 = vrot.slane %v1747_v36, 2  ;;  %v5502_v60 = vld [vmem:[%s5158_s30 + $0x8] sm:$0xcc]  ;;  %1985 = vmatmul.mubr.bf16.gmra.mrb[12].mxu0 %v1724_v21  ;;  %v4692_v34 = vld [vmem:[%s6429_s1 + $0xd4] ss:$8 sps:$4 sm:$0xff]  }
  0x62   : > { %v1737_v56 = vrot.slane %v1735_v41, 1  ;;  %v4031_v63 = vcombine.high %v5502_v60, %v5175_v50  ;;  %v372_v49 = vsel %vm292_vm0, %v367_v39, %v371_v51  ;;  %v4695_v36 = vld [vmem:[%s6429_s1 + $0x5d4] ss:$8 sps:$4 sm:$0xff]   ;;  %v4693_v21 = vld [vmem:[%s6429_s1 + $0x5d0] ss:$8 sps:$4 sm:$0xff]  }
  0x63   : > { %819 = vmatpush1.bf16.msra.mxu1 %v4642_v11  ;;  %v1750_v59 = vor.u32 %v1749_v48, %v1746_v44  ;;  %v4671_v11 = vld [vmem:[%s6429_s1 + $0x5a4] ss:$8 sps:$4 sm:$0xff]   ;;  %v4708_v44 = vld [vmem:[%s6429_s1 + $0xf4] ss:$8 sps:$4 sm:$0xff]   ;;  %v4030_v48 = vcombine.low %v5502_v60, %v5175_v50  ;;  %v4712_v60 = vld [vmem:[%s6429_s1 + $0x200] ss:$8 sps:$4 sm:$0xff]  }
  0x64   : > { %2272 = vmatpush1.bf16.msra.mxu0 %v4645_v57  ;;  %820 = vmatprep.subr.bf16.mxu1 %v4651_v4  ;;  %v1741_v10 = vor.u32 %v1740_v58, %v1737_v56  ;;  %v2068_v15 = vrot.slane %v4031_v63, 2  ;;  %v4676_v57 = vld [vmem:[%s6429_s1 + $0xb4] ss:$8 sps:$4 sm:$0xff]   ;;  %v4699_v39 = vld [vmem:[%s6429_s1 + $0xe4] ss:$8 sps:$4 sm:$0xff]  }
  0x65   : > { %2273 = vmatprep.subr.bf16.mxu0 %v4655_v28  ;;  %v1751_v27 = vsel %vm1645_vm1, %v1732_v12, %v1750_v59  ;;  %v4669_v12 = vld [vmem:[%s6429_s1 + $0x5a0] ss:$8 sps:$4 sm:$0xff]   ;;  %v4674_v28 = vld [vmem:[%s6429_s1 + $0xb0] ss:$8 sps:$4 sm:$0xff]   ;;  %v4703_v41 = vld [vmem:[%s6429_s1 + $0x5e4] ss:$8 sps:$4 sm:$0xff]  }
  0x66   : > { %1994 = vmatprep.mubr.bf16.mxu0 %v1751_v27  ;;  %624 = vmatmul.mubr.bf16.gmra.mrb[16].mxu1 %v372_v49  ;;  %v1742_v4 = vsel %vm1645_vm1, %v1723_v20, %v1741_v10  ;;  %v2070_v30 = vsel %vm2064_vm2, %v2068_v15, %v2069_v47  ;;  %v4677_v20 = vld [vmem:[%s6429_s1 + $0x5b0] ss:$8 sps:$4 sm:$0xff]   ;;  %v4711_v51 = vld [vmem:[%s6429_s1 + $0x5f4] ss:$8 sps:$4 sm:$0xff]   ;;  %v4714_v50 = vld [vmem:[%s6429_s1 + $0x204] ss:$8 sps:$4 sm:$0xff]  }
  0x67   : > { %821 = vmatpush1.bf16.msra.mxu1 %v4649_v32  ;;  %836 = vmatprep.mubr.bf16.mxu1 %v5181_v53  ;;  %v4687_v53 = vld [vmem:[%s6429_s1 + $0x5c4] ss:$8 sps:$4 sm:$0xff]   ;;  %v4681_v32 = vld [vmem:[%s6429_s1 + $0xc0] ss:$8 sps:$4 sm:$0xff]   ;;  %v4709_v56 = vld [vmem:[%s6429_s1 + $0x5f0] ss:$8 sps:$4 sm:$0xff]  }
  0x68   : > { %2274 = vmatpush1.bf16.msra.mxu0 %v4653_v37  ;;  %822 = vmatprep.subr.bf16.mxu1 %v4660_v52  ;;  %v4690_v37 = vld [vmem:[%s6429_s1 + $0xd0] ss:$8 sps:$4 sm:$0xff]   ;;  %v2065_v58 = vrot.slane %v4030_v48, 2  ;;  %v4719_v59 = vld [vmem:[%s6429_s1 + $0x604] ss:$8 sps:$4 sm:$0xff]  }
  0x69   : > { %2275 = vmatprep.subr.bf16.mxu0 %v4663_v26  ;;  %1995 = vmatmul.mubr.bf16.gmra.mrb[16].mxu0 %v1742_v4  ;;  %v4706_v52 = vld [vmem:[%s6429_s1 + $0xf0] ss:$8 sps:$4 sm:$0xff]   ;;  %v2066_v26 = vrot.slane %v5226_v14, 2  ;;  %v4717_v63 = vld [vmem:[%s6429_s1 + $0x600] ss:$8 sps:$4 sm:$0xff]  }
  0x6a   : > { %2289 = vmatprep.mubr.bf16.mxu0 %v2070_v30  ;;  %v4725_v27 = vld [vmem:[%s6429_s1 + $0x614] ss:$8 sps:$4 sm:$0xff]   ;;  %v4720_v49 = vld [vmem:[%s6429_s1 + $0x210] ss:$8 sps:$4 sm:$0xff]   ;;  %v4731_v15 = vld [vmem:[%s6429_s1 + $0x624] ss:$8 sps:$4 sm:$0xff]  }
  0x6b   : > { %823 = vmatpush1.bf16.msra.mxu1 %v4658_v62  ;;  %v2073_v62 = vrot.slane %v5332_v17, 2  ;;  %v4734_v4 = vld [vmem:[%s6429_s1 + $0x234] ss:$8 sps:$4 sm:$0xff]   ;;  %v4732_v30 = vld [vmem:[%s6429_s1 + $0x230] ss:$8 sps:$4 sm:$0xff]  }
  0x6c   : > { %2276 = vmatpush1.bf16.msra.mxu0 %v4661_v3  ;;  %824 = vmatprep.subr.bf16.mxu1 %v4667_v6  ;;  %v2067_v3 = vsel %vm2064_vm2, %v2065_v58, %v2066_v26  ;;  %v4722_v6 = vld [vmem:[%s6429_s1 + $0x214] ss:$8 sps:$4 sm:$0xff]   ;;  %v4744_v48 = vld [vmem:[%s6429_s1 + $0x250] ss:$8 sps:$4 sm:$0xff]   ;;  %v4750_v58 = vld [vmem:[%s6429_s1 + $0x260] ss:$8 sps:$4 sm:$0xff]  }
  0x6d   : > { %2277 = vmatprep.subr.bf16.mxu0 %v4671_v11  ;;  %v2074_v10 = vsel %vm2064_vm2, %v2069_v47, %v2073_v62  ;;  %v4723_v11 = vld [vmem:[%s6429_s1 + $0x610] ss:$8 sps:$4 sm:$0xff]   ;;  %v4726_v47 = vld [vmem:[%s6429_s1 + $0x220] ss:$8 sps:$4 sm:$0xff]  }
  0x6f   : > { %825 = vmatpush1.bf16.msra.mxu1 %v4665_v13  ;;  %v4728_v13 = vld [vmem:[%s6429_s1 + $0x224] ss:$8 sps:$4 sm:$0xff]  }
  0x70   : > { %2278 = vmatpush1.bf16.msra.mxu0 %v4669_v12  ;;  %826 = vmatprep.subr.bf16.mxu1 %v4676_v57  ;;  %v2077_v12 = vrot.slane %v5368_v45, 2  ;;  %v4729_v57 = vld [vmem:[%s6429_s1 + $0x620] ss:$8 sps:$4 sm:$0xff]  }
  0x71   : > { %2279 = vmatprep.subr.bf16.mxu0 %v4679_v23 }
  0x73   : > { %827 = vmatpush1.bf16.msra.mxu1 %v4674_v28  ;;  %v4737_v28 = vld [vmem:[%s6429_s1 + $0x634] ss:$8 sps:$4 sm:$0xff]  }
  0x74   : > { %2280 = vmatpush1.bf16.msra.mxu0 %v4677_v20  ;;  %828 = vmatprep.subr.bf16.mxu1 %v4683_v31  ;;  %v2078_v20 = vsel %vm2064_vm2, %v2073_v62, %v2077_v12  ;;  %v4735_v31 = vld [vmem:[%s6429_s1 + $0x630] ss:$8 sps:$4 sm:$0xff]   ;;  %v4758_v62 = vld [vmem:[%s6429_s1 + $0x274] ss:$8 sps:$4 sm:$0xff]  }
  0x75   : > { %2281 = vmatprep.subr.bf16.mxu0 %v4687_v53  ;;  %v2075_v53 = vrot.slane %v5378_v55, 2 }
  0x77   : > { %829 = vmatpush1.bf16.msra.mxu1 %v4681_v32  ;;  %v4740_v32 = vld [vmem:[%s6429_s1 + $0x244] ss:$8 sps:$4 sm:$0xff]  }
  0x78   : > { %2282 = vmatpush1.bf16.msra.mxu0 %v4685_v33  ;;  %830 = vmatprep.subr.bf16.mxu1 %v4692_v34  ;;  %v4743_v33 = vld [vmem:[%s6429_s1 + $0x644] ss:$8 sps:$4 sm:$0xff]   ;;  %v4738_v34 = vld [vmem:[%s6429_s1 + $0x240] ss:$8 sps:$4 sm:$0xff]  }
  0x79   : > { %2283 = vmatprep.subr.bf16.mxu0 %v4695_v36  ;;  %v4741_v36 = vld [vmem:[%s6429_s1 + $0x640] ss:$8 sps:$4 sm:$0xff]  }
  0x7b   : > { %831 = vmatpush1.bf16.msra.mxu1 %v4690_v37  ;;  %v2081_v37 = vrot.slane %v5428_v35, 2 }
  0x7c   : > { %2284 = vmatpush1.bf16.msra.mxu0 %v4693_v21  ;;  %832 = vmatprep.subr.bf16.mxu1 %v4699_v39  ;;  %v1319_v21 = vrot.slane %v5332_v17, 1  ;;  %v1323_v39 = vrot.slane %v5368_v45, 1 }
  0x7d   : > { %2285 = vmatprep.subr.bf16.mxu0 %v4703_v41  ;;  %v4746_v41 = vld [vmem:[%s6429_s1 + $0x254] ss:$8 sps:$4 sm:$0xff]  }
  0x7f   : > { %833 = vmatpush1.bf16.msra.mxu1 %v4697_v42 }
  0x80   : > { %2286 = vmatpush1.bf16.msra.mxu0 %v4701_v43  ;;  %834 = vmatprep.subr.bf16.mxu1 %v4708_v44  ;;  %v4749_v43 = vld [vmem:[%s6429_s1 + $0x654] ss:$8 sps:$4 sm:$0xff]   ;;  %v5684_v44 = vsel %vm926_vm3, %v1319_v21, %v1323_v39 }
  0x81   : > { %2287 = vmatprep.subr.bf16.mxu0 %v4711_v51  ;;  %v2082_v51 = vsel %vm2064_vm2, %v2077_v12, %v2081_v37  ;;  %v4759_v12 = vld [vmem:[%s6429_s1 + $0x670] ss:$8 sps:$4 sm:$0xff]  }
  0x83   : > { %835 = vmatpush1.bf16.msra.mxu1 %v4706_v52  ;;  %v4747_v52 = vld [vmem:[%s6429_s1 + $0x650] ss:$8 sps:$4 sm:$0xff]  }
  0x84   : > { %2288 = vmatpush1.bf16.msra.mxu0 %v4709_v56  ;;  %1119 = vmatprep.subr.bf16.mxu1 %v4714_v50  ;;  %v2079_v56 = vrot.slane %v5434_v38, 2  ;;  %v4755_v50 = vld [vmem:[%s6429_s1 + $0x664] ss:$8 sps:$4 sm:$0xff]  }
  0x85   : > { %2641 = vmatprep.subr.bf16.mxu0 %v4719_v59  ;;  %v4753_v59 = vld [vmem:[%s6429_s1 + $0x660] ss:$8 sps:$4 sm:$0xff]  }
  0x86   : > { %837 = vmatmul.mubr.bf16.vlgmr.msra.gmra.mrb[0].mxu1 %v5208_v1  ;;  %v2071_v1 = vrot.slane %v5336_v19, 2 }
  0x87   : > { %2290 = vmatmul.mubr.bf16.vlgmr.msra.gmra.mrb[0].mxu0 %v2067_v3  ;;  %1120 = vmatpush1.bf16.msra.mxu1 %v4712_v60  ;;  %v2085_v60 = vrot.slane %v5472_v24, 2  ;;  %v5716_v3 = vld [vmem:[%s5158_s30 + $0x10] sm:$0xcc] }
  0x88   : > { %2642 = vmatpush1.bf16.msra.mxu0 %v4717_v63  ;;  %1121 = vmatprep.subr.bf16.mxu1 %v4722_v6  ;;  %v2072_v23 = vsel %vm2064_vm2, %v2066_v26, %v2071_v1  ;;  %v2076_v42 = vsel %vm2064_vm2, %v2071_v1, %v2075_v53  ;;  %v4752_v26 = vld [vmem:[%s6429_s1 + $0x264] ss:$8 sps:$4 sm:$0xff]   ;;  %v2080_v6 = vsel %vm2064_vm2, %v2075_v53, %v2079_v56  ;;  %v4761_v24 = vld [vmem:[%s6429_s1 + $0x674] ss:$8 sps:$4 sm:$0xff]  }
  0x89   : > { %2643 = vmatprep.subr.bf16.mxu0 %v4725_v27  ;;  %846 = vmatprep.mubr.bf16.mxu1 %v5184_v54  ;;  %v5713_v63 = vld [vmem:[%s5158_s30] sm:$0xee]  ;;  %v5720_v27 = vld [vmem:[%s5158_s30 + $0x18] sm:$0xff] }
  0x8a   : > { %2299 = vmatprep.mubr.bf16.mxu0 %v2074_v10  ;;  %v2086_v10 = vsel %vm2064_vm2, %v2081_v37, %v2085_v60  ;;  %v4770_v53 = vld [vmem:[%s6429_s1 + $0x294] ss:$8 sps:$4 sm:$0xff]   ;;  %v4768_v37 = vld [vmem:[%s6429_s1 + $0x290] ss:$8 sps:$4 sm:$0xff]   ;;  %v4786_v60 = vld [vmem:[%s6429_s1 + $0x2c0] ss:$8 sps:$4 sm:$0xff]  }
  0x8b   : > { %1122 = vmatpush1.bf16.msra.mxu1 %v4720_v49  ;;  %v5723_v49 = vld [vmem:[%s5158_s30 + $0x20] sm:$0xff] }
  0x8c   : > { %2644 = vmatpush1.bf16.msra.mxu0 %v4723_v11  ;;  %1123 = vmatprep.subr.bf16.mxu1 %v4728_v13  ;;  %v4756_v11 = vld [vmem:[%s6429_s1 + $0x270] ss:$8 sps:$4 sm:$0xff]   ;;  %v5734_v13 = vld [vmem:[%s5158_s30 + $0x8] sm:$0xff] }
  0x8d   : > { %2645 = vmatprep.subr.bf16.mxu0 %v4731_v15  ;;  %v3823_v1 = vcombine.high %v5713_v63, %v5734_v13  ;;  %v5740_v15 = vcombine.high %v5716_v3, %v5720_v27 }
  0x8e   : > { %847 = vmatmul.mubr.bf16.gmra.mrb[4].mxu1 %v5232_v18 }
  0x8f   : > { %2300 = vmatmul.mubr.bf16.gmra.mrb[4].mxu0 %v2072_v23  ;;  %1124 = vmatpush1.bf16.msra.mxu1 %v4726_v47  ;;  %v5744_v47 = vcombine.high %v5723_v49, %v5306_v5  ;;  %v4767_v23 = vld [vmem:[%s6429_s1 + $0x684] ss:$8 sps:$4 sm:$0xff]   ;;  %v931_v5 = vrot.slane %v5184_v54, 1 }
  0x90   : > { %2646 = vmatpush1.bf16.msra.mxu0 %v4729_v57  ;;  %1125 = vmatprep.subr.bf16.mxu1 %v4734_v4  ;;  %v4764_v57 = vld [vmem:[%s6429_s1 + $0x284] ss:$8 sps:$4 sm:$0xff]   ;;  %v2083_v4 = vrot.slane %v5474_v25, 2 }
  0x91   : > { %2647 = vmatprep.subr.bf16.mxu0 %v4737_v28  ;;  %856 = vmatprep.mubr.bf16.mxu1 %v5316_v8  ;;  %v4762_v28 = vld [vmem:[%s6429_s1 + $0x280] ss:$8 sps:$4 sm:$0xff]   ;;  %v2453_v25 = vrot.slane %v5744_v47, 2 }
  0x92   : > { %2309 = vmatprep.mubr.bf16.mxu0 %v2078_v20  ;;  %v2452_v20 = vrot.slane %v5740_v15, 2 }
  0x93   : > { %1126 = vmatpush1.bf16.msra.mxu1 %v4732_v30  ;;  %v930_v30 = vrot.slane %v3823_v1, 1  ;;  %v4800_v1 = vld [vmem:[%s6429_s1 + $0x2e4] ss:$8 sps:$4 sm:$0xff]  }
  0x94   : > { %2648 = vmatpush1.bf16.msra.mxu0 %v4735_v31  ;;  %1127 = vmatprep.subr.bf16.mxu1 %v4740_v32  ;;  %v4765_v31 = vld [vmem:[%s6429_s1 + $0x680] ss:$8 sps:$4 sm:$0xff]   ;;  %v2084_v32 = vsel %vm2064_vm2, %v2079_v56, %v2083_v4  ;;  %v4780_v56 = vld [vmem:[%s6429_s1 + $0x2b0] ss:$8 sps:$4 sm:$0xff]  }
  0x95   : > { %2649 = vmatprep.subr.bf16.mxu0 %v4743_v33  ;;  %v4773_v33 = vld [vmem:[%s6429_s1 + $0x694] ss:$8 sps:$4 sm:$0xff]   ;;  %v4801_v4 = vld [vmem:[%s6429_s1 + $0x6e0] ss:$8 sps:$4 sm:$0xff]  }
  0x96   : > { %857 = vmatmul.mubr.bf16.gmra.mrb[8].mxu1 %v5320_v9 }
  0x97   : > { %2310 = vmatmul.mubr.bf16.gmra.mrb[8].mxu0 %v2076_v42  ;;  %1128 = vmatpush1.bf16.msra.mxu1 %v4738_v34  ;;  %v932_v34 = vsel %vm926_vm3, %v930_v30, %v931_v5  ;;  %v4776_v42 = vld [vmem:[%s6429_s1 + $0x2a4] ss:$8 sps:$4 sm:$0xff]   ;;  %v5853_v30 = vcombine.low %v5716_v3, %v5720_v27  ;;  %v5872_v27 = vld [vmem:[%s5158_s30 + $0x34] ss:$8 sps:$4 sm:$0xff]  }
  0x98   : > { %2650 = vmatpush1.bf16.msra.mxu0 %v4741_v36  ;;  %1129 = vmatprep.subr.bf16.mxu1 %v4746_v41  ;;  %v2454_v36 = vsel %vm2064_vm2, %v2452_v20, %v2453_v25  ;;  %v4771_v41 = vld [vmem:[%s6429_s1 + $0x690] ss:$8 sps:$4 sm:$0xff]   ;;  %v4978_v20 = vld [vmem:[%s5158_s30 + $0x28] sm:$0xff] }
  0x99   : > { %2651 = vmatprep.subr.bf16.mxu0 %v4749_v43  ;;  %866 = vmatprep.mubr.bf16.mxu1 %v5362_v40  ;;  %v4779_v43 = vld [vmem:[%s6429_s1 + $0x6a4] ss:$8 sps:$4 sm:$0xff]  }
  0x9a   : > { %2319 = vmatprep.mubr.bf16.mxu0 %v2082_v51  ;;  %v4777_v51 = vld [vmem:[%s6429_s1 + $0x6a0] ss:$8 sps:$4 sm:$0xff]   ;;  %v4814_v3 = vld [vmem:[%s6429_s1 + $0x304] ss:$8 sps:$4 sm:$0xff]  }
  0x9b   : > { %1130 = vmatpush1.bf16.msra.mxu1 %v4744_v48  ;;  %v4774_v48 = vld [vmem:[%s6429_s1 + $0x2a0] ss:$8 sps:$4 sm:$0xff]  }
  0x9c   : > { %2652 = vmatpush1.bf16.msra.mxu0 %v4747_v52  ;;  %1131 = vmatprep.subr.bf16.mxu1 %v4752_v26  ;;  %v4782_v52 = vld [vmem:[%s6429_s1 + $0x2b4] ss:$8 sps:$4 sm:$0xff]  }
  0x9d   : > { %2653 = vmatprep.subr.bf16.mxu0 %v4755_v50  ;;  %v4785_v26 = vld [vmem:[%s6429_s1 + $0x6b4] ss:$8 sps:$4 sm:$0xff]   ;;  %v4783_v50 = vld [vmem:[%s6429_s1 + $0x6b0] ss:$8 sps:$4 sm:$0xff]  }
  0x9e   : > { %867 = vmatmul.mubr.bf16.gmra.mrb[12].mxu1 %v5370_v46 }
  0x9f   : > { %2320 = vmatmul.mubr.bf16.gmra.mrb[12].mxu0 %v2080_v6  ;;  %1132 = vmatpush1.bf16.msra.mxu1 %v4750_v58  ;;  %v4788_v58 = vld [vmem:[%s6429_s1 + $0x2c4] ss:$8 sps:$4 sm:$0xff]   ;;  %v4794_v6 = vld [vmem:[%s6429_s1 + $0x2d4] ss:$8 sps:$4 sm:$0xff]  }
  0xa0   : > { %2654 = vmatpush1.bf16.msra.mxu0 %v4753_v59  ;;  %1133 = vmatprep.subr.bf16.mxu1 %v4758_v62  ;;  %v4791_v59 = vld [vmem:[%s6429_s1 + $0x6c4] ss:$8 sps:$4 sm:$0xff]   ;;  %v4789_v62 = vld [vmem:[%s6429_s1 + $0x6c0] ss:$8 sps:$4 sm:$0xff]  }
  0xa1   : > { %2655 = vmatprep.subr.bf16.mxu0 %v4761_v24  ;;  %876 = vmatprep.mubr.bf16.mxu1 %v5407_v22  ;;  %v4797_v24 = vld [vmem:[%s6429_s1 + $0x6d4] ss:$8 sps:$4 sm:$0xff]  }
  0xa2   : > { %2329 = vmatprep.mubr.bf16.mxu0 %v2086_v10  ;;  %v4792_v10 = vld [vmem:[%s6429_s1 + $0x2d0] ss:$8 sps:$4 sm:$0xff]  }
  0xa3   : > { %1134 = vmatpush1.bf16.msra.mxu1 %v4756_v11  ;;  %v4795_v11 = vld [vmem:[%s6429_s1 + $0x6d0] ss:$8 sps:$4 sm:$0xff]  }
  0xa4   : > { %2656 = vmatpush1.bf16.msra.mxu0 %v4759_v12  ;;  %1135 = vmatprep.subr.bf16.mxu1 %v4764_v57  ;;  %v4803_v12 = vld [vmem:[%s6429_s1 + $0x6e4] ss:$8 sps:$4 sm:$0xff]   ;;  %v4798_v57 = vld [vmem:[%s6429_s1 + $0x2e0] ss:$8 sps:$4 sm:$0xff]  }
  0xa5   : > { %2657 = vmatprep.subr.bf16.mxu0 %v4767_v23  ;;  %v4806_v23 = vld [vmem:[%s6429_s1 + $0x2f4] ss:$8 sps:$4 sm:$0xff]  }
  0xa6   : > { %877 = vmatmul.mubr.bf16.gmra.mrb[16].mxu1 %v5417_v29 }
  0xa7   : > { %2330 = vmatmul.mubr.bf16.gmra.mrb[16].mxu0 %v2084_v32  ;;  %1136 = vmatpush1.bf16.msra.mxu1 %v4762_v28  ;;  %v3822_v28 = vcombine.low %v5713_v63, %v5734_v13  ;;  %v4804_v32 = vld [vmem:[%s6429_s1 + $0x2f0] ss:$8 sps:$4 sm:$0xff]   ;;  %v928_v13 = vrot.slane %v5232_v18, 1  ;;  %v935_v18 = vrot.slane %v5316_v8, 1 }
  0xa8   : > { %2658 = vmatpush1.bf16.msra.mxu0 %v4765_v31  ;;  %1137 = vmatprep.subr.bf16.mxu1 %v4770_v53  ;;  %v5857_v31 = vcombine.low %v5723_v49, %v4978_v20  ;;  %v4809_v53 = vld [vmem:[%s6429_s1 + $0x6f4] ss:$8 sps:$4 sm:$0xff]   ;;  %v4807_v63 = vld [vmem:[%s6429_s1 + $0x6f0] ss:$8 sps:$4 sm:$0xff]  }
  0xa9   : > { %2659 = vmatprep.subr.bf16.mxu0 %v4773_v33  ;;  %1151 = vmatprep.mubr.bf16.mxu1 %v932_v34  ;;  %v927_v49 = vrot.slane %v3822_v28, 1  ;;  %v2449_v33 = vrot.slane %v5853_v30, 2  ;;  %v3211_v28 = vrot.slane %v5872_v27, 3 }
  0xaa   : > { %2673 = vmatprep.mubr.bf16.mxu0 %v2454_v36  ;;  %v2450_v34 = vrot.slane %v5857_v31, 2  ;;  %v4821_v36 = vld [vmem:[%s6429_s1 + $0x704] ss:$8 sps:$4 sm:$0xff]  }
  0xab   : > { %1138 = vmatpush1.bf16.msra.mxu1 %v4768_v37  ;;  %v4812_v37 = vld [vmem:[%s6429_s1 + $0x300] ss:$8 sps:$4 sm:$0xff]   ;;  %v929_v8 = vsel %vm926_vm3, %v927_v49, %v928_v13  ;;  %v939_v49 = vrot.slane %v5362_v40, 1  ;;  %v4839_v40 = vld [vmem:[%s6429_s1 + $0x734] ss:$8 sps:$4 sm:$0xff]  }
  0xac   : > { %2660 = vmatpush1.bf16.msra.mxu0 %v4771_v41  ;;  %1139 = vmatprep.subr.bf16.mxu1 %v4776_v42  ;;  %v4819_v41 = vld [vmem:[%s6429_s1 + $0x700] ss:$8 sps:$4 sm:$0xff]   ;;  %v5888_v42 = vld [vmem:[%s5158_s30 + $0x44] ss:$8 sps:$4 sm:$0xff]  }
  0xad   : > { %2661 = vmatprep.subr.bf16.mxu0 %v4779_v43  ;;  %v4824_v43 = vld [vmem:[%s6429_s1 + $0x314] ss:$8 sps:$4 sm:$0xff]  }
  0xaf   : > { %1140 = vmatpush1.bf16.msra.mxu1 %v4774_v48  ;;  %v4827_v48 = vld [vmem:[%s6429_s1 + $0x714] ss:$8 sps:$4 sm:$0xff]  }
  0xb0   : > { %2662 = vmatpush1.bf16.msra.mxu0 %v4777_v51  ;;  %1141 = vmatprep.subr.bf16.mxu1 %v4782_v52  ;;  %v2457_v51 = vrot.slane %v5872_v27, 2  ;;  %v5898_v52 = vld [vmem:[%s5158_s30 + $0x30] ss:$8 sps:$4 sm:$0xff]  }
  0xb1   : > { %2663 = vmatprep.subr.bf16.mxu0 %v4785_v26  ;;  %v5901_v26 = vld [vmem:[%s5158_s30 + $0x54] ss:$8 sps:$4 sm:$0xff]   ;;  %v3209_v20 = vrot.slane %v5898_v52, 3 }
  0xb3   : > { %1142 = vmatpush1.bf16.msra.mxu1 %v4780_v56  ;;  %v2451_v56 = vsel %vm2064_vm2, %v2449_v33, %v2450_v34  ;;  %v2461_v33 = vrot.slane %v5888_v42, 2 }
  0xb4   : > { %2664 = vmatpush1.bf16.msra.mxu0 %v4783_v50  ;;  %1143 = vmatprep.subr.bf16.mxu1 %v4788_v58  ;;  %v5906_v50 = vld [vmem:[%s5158_s30 + $0x40] ss:$8 sps:$4 sm:$0xff]   ;;  %v3215_v58 = vrot.slane %v5888_v42, 3 }
  0xb5   : > { %2665 = vmatprep.subr.bf16.mxu0 %v4791_v59  ;;  %v933_v59 = vrot.slane %v5320_v9, 1  ;;  %v2837_v17 = vshrl.u32 %v5906_v50, 16 }
  0xb7   : > { %1144 = vmatpush1.bf16.msra.mxu1 %v4786_v60  ;;  %v5911_v60 = vld [vmem:[%s5158_s30 + $0x50] ss:$8 sps:$4 sm:$0xff]  }
  0xb8   : > { %2666 = vmatpush1.bf16.msra.mxu0 %v4789_v62  ;;  %1145 = vmatprep.subr.bf16.mxu1 %v4794_v6  ;;  %v3219_v62 = vrot.slane %v5901_v26, 3  ;;  %v4822_v6 = vld [vmem:[%s6429_s1 + $0x310] ss:$8 sps:$4 sm:$0xff]  }
  0xb9   : > { %2667 = vmatprep.subr.bf16.mxu0 %v4797_v24  ;;  %v4825_v24 = vld [vmem:[%s6429_s1 + $0x710] ss:$8 sps:$4 sm:$0xff]  }
  0xba   : > { %v5934_v54 = vsel %vm3202_vm4, %v3215_v58, %v3219_v62 }
  0xbb   : > { %1146 = vmatpush1.bf16.msra.mxu1 %v4792_v10  ;;  %v936_v10 = vsel %vm926_vm3, %v931_v5, %v935_v18  ;;  %v3217_v5 = vrot.slane %v5911_v60, 3 }
  0xbc   : > { %2668 = vmatpush1.bf16.msra.mxu0 %v4795_v11  ;;  %1147 = vmatprep.subr.bf16.mxu1 %v4800_v1  ;;  %v3213_v11 = vrot.slane %v5906_v50, 3  ;;  %v4830_v1 = vld [vmem:[%s6429_s1 + $0x324] ss:$8 sps:$4 sm:$0xff]  }
  0xbd   : > { %2669 = vmatprep.subr.bf16.mxu0 %v4803_v12  ;;  %v2458_v12 = vsel %vm2064_vm2, %v2453_v25, %v2457_v51  ;;  %v4833_v25 = vld [vmem:[%s6429_s1 + $0x724] ss:$8 sps:$4 sm:$0xff]  }
  0xbf   : > { %1148 = vmatpush1.bf16.msra.mxu1 %v4798_v57  ;;  %v2455_v57 = vrot.slane %v5898_v52, 2 }
  0xc0   : > { %2670 = vmatpush1.bf16.msra.mxu0 %v4801_v4  ;;  %1149 = vmatprep.subr.bf16.mxu1 %v4806_v23  ;;  %v3207_v4 = vrot.slane %v5744_v47, 3  ;;  %v3204_v23 = vrot.slane %v5857_v31, 3 }
  0xc1   : > { %2671 = vmatprep.subr.bf16.mxu0 %v4809_v53  ;;  %v5947_v53 = vsel %vm3202_vm4, %v3213_v11, %v3217_v5 }
  0xc3   : > { %1150 = vmatpush1.bf16.msra.mxu1 %v4804_v32  ;;  %v5952_v32 = vsel %vm3202_vm4, %v3207_v4, %v3211_v28 }
  0xc4   : > { %2672 = vmatpush1.bf16.msra.mxu0 %v4807_v63  ;;  %1503 = vmatprep.subr.bf16.mxu1 %v4814_v3  ;;  %v5957_v63 = vsel %vm3202_vm4, %v3204_v23, %v3209_v20  ;;  %v4828_v3 = vld [vmem:[%s6429_s1 + $0x320] ss:$8 sps:$4 sm:$0xff]  }
  0xc5   : > { %3060 = vmatprep.subr.bf16.mxu0 %v4821_v36  ;;  %v4831_v36 = vld [vmem:[%s6429_s1 + $0x720] ss:$8 sps:$4 sm:$0xff]  }
  0xc6   : > { %1152 = vmatmul.mubr.bf16.vlgmr.msra.gmra.mrb[0].mxu1 %v929_v8  ;;  %v940_v8 = vsel %vm926_vm3, %v935_v18, %v939_v49  ;;  %v4842_v18 = vld [vmem:[%s6429_s1 + $0x344] ss:$8 sps:$4 sm:$0xff]  }
  0xc7   : > { %2674 = vmatmul.mubr.bf16.vlgmr.msra.gmra.mrb[0].mxu0 %v2451_v56  ;;  %1504 = vmatpush1.bf16.msra.mxu1 %v4812_v37  ;;  %v4836_v37 = vld [vmem:[%s6429_s1 + $0x334] ss:$8 sps:$4 sm:$0xff]   ;;  %v2462_v56 = vsel %vm2064_vm2, %v2457_v51, %v2461_v33  ;;  %v4845_v51 = vld [vmem:[%s6429_s1 + $0x744] ss:$8 sps:$4 sm:$0xff]  }
  0xc8   : > { %3061 = vmatpush1.bf16.msra.mxu0 %v4819_v41  ;;  %1505 = vmatprep.subr.bf16.mxu1 %v4824_v43  ;;  %v934_v41 = vsel %vm926_vm3, %v928_v13, %v933_v59  ;;  %v2456_v43 = vsel %vm2064_vm2, %v2450_v34, %v2455_v57  ;;  %v5983_v13 = vsel %vm3202_vm4, %v3211_v28, %v3215_v58  ;;  %v4837_v34 = vld [vmem:[%s6429_s1 + $0x730] ss:$8 sps:$4 sm:$0xff]  }
  0xc9   : > { %3062 = vmatprep.subr.bf16.mxu0 %v4827_v48  ;;  %1161 = vmatprep.mubr.bf16.mxu1 %v936_v10  ;;  %v4834_v48 = vld [vmem:[%s6429_s1 + $0x330] ss:$8 sps:$4 sm:$0xff]   ;;  %v5997_v58 = vsel %vm3202_vm4, %v3209_v20, %v3213_v11  ;;  %v4843_v10 = vld [vmem:[%s6429_s1 + $0x740] ss:$8 sps:$4 sm:$0xff]  }
  0xca   : > { %2683 = vmatprep.mubr.bf16.mxu0 %v2458_v12  ;;  %v2465_v12 = vrot.slane %v5901_v26, 2  ;;  %v2370_v20 = vld [vmem:[%s5158_s30 + $0x60] sm:$0x33] }
  0xcb   : > { %1506 = vmatpush1.bf16.msra.mxu1 %v4822_v6  ;;  %v937_v6 = vrot.slane %v5370_v46, 1  ;;  %v4840_v46 = vld [vmem:[%s6429_s1 + $0x340] ss:$8 sps:$4 sm:$0xff]  }
  0xcc   : > { %3063 = vmatpush1.bf16.msra.mxu0 %v4825_v24  ;;  %1507 = vmatprep.subr.bf16.mxu1 %v4830_v1  ;;  %v2459_v24 = vrot.slane %v5906_v50, 2  ;;  %v943_v1 = vrot.slane %v5407_v22, 1  ;;  %v4851_v22 = vld [vmem:[%s6429_s1 + $0x754] ss:$8 sps:$4 sm:$0xff]   ;;  %v2466_v9 = vsel %vm2064_vm2, %v2461_v33, %v2465_v12  ;;  %v4857_v33 = vld [vmem:[%s6429_s1 + $0x764] ss:$8 sps:$4 sm:$0xff]  }
  0xcd   : > { %3064 = vmatprep.subr.bf16.mxu0 %v4833_v25  ;;  %v938_v11 = vsel %vm926_vm3, %v933_v59, %v937_v6  ;;  %v4848_v25 = vld [vmem:[%s6429_s1 + $0x354] ss:$8 sps:$4 sm:$0xff]   ;;  %v4107_v59 = vcombine.high %v2370_v20, %v2370_v20 }
  0xce   : > { %1162 = vmatmul.mubr.bf16.gmra.mrb[4].mxu1 %v934_v41  ;;  %v2460_v28 = vsel %vm2064_vm2, %v2455_v57, %v2459_v24  ;;  %v4846_v57 = vld [vmem:[%s6429_s1 + $0x350] ss:$8 sps:$4 sm:$0xff]   ;;  %v2463_v41 = vrot.slane %v5911_v60, 2 }
  0xcf   : > { %2684 = vmatmul.mubr.bf16.gmra.mrb[4].mxu0 %v2456_v43  ;;  %1508 = vmatpush1.bf16.msra.mxu1 %v4828_v3  ;;  %v944_v3 = vsel %vm926_vm3, %v939_v49, %v943_v1  ;;  %v4854_v49 = vld [vmem:[%s6429_s1 + $0x364] ss:$8 sps:$4 sm:$0xff]   ;;  %v947_v43 = vrot.slane %v5455_v7, 1 }
  0xd0   : > { %3065 = vmatpush1.bf16.msra.mxu0 %v4831_v36  ;;  %1509 = vmatprep.subr.bf16.mxu1 %v4836_v37  ;;  %v4849_v36 = vld [vmem:[%s6429_s1 + $0x750] ss:$8 sps:$4 sm:$0xff]   ;;  %v941_v37 = vrot.slane %v5417_v29, 1  ;;  %v2805_v29 = vshll.u32 %v5740_v15, 16 }
  0xd1   : > { %3066 = vmatprep.subr.bf16.mxu0 %v4839_v40  ;;  %1171 = vmatprep.mubr.bf16.mxu1 %v940_v8  ;;  %v2802_v40 = vshrl.u32 %v5740_v15, 16  ;;  %v2810_v8 = vshrl.u32 %v5744_v47, 16  ;;  %v4860_v15 = vld [vmem:[%s6429_s1 + $0x374] ss:$8 sps:$4 sm:$0xff]  }
  0xd2   : > { %2693 = vmatprep.mubr.bf16.mxu0 %v2462_v56  ;;  %v2813_v56 = vshll.u32 %v5744_v47, 16  ;;  %v942_v7 = vsel %vm926_vm3, %v937_v6, %v941_v37  ;;  %v4957_v47 = vld [vmem:[%s6429_s1 + $0x8a0] ss:$8 sps:$4 sm:$0xff]  }
  0xd3   : > { %1510 = vmatpush1.bf16.msra.mxu1 %v4834_v48  ;;  %v2469_v48 = vrot.slane %v4107_v59, 2  ;;  %v4872_v59 = vld [vmem:[%s6429_s1 + $0x784] ss:$8 sps:$4 sm:$0xff]  }
  0xd4   : > { %3067 = vmatpush1.bf16.msra.mxu0 %v4837_v34  ;;  %1511 = vmatprep.subr.bf16.mxu1 %v4842_v18  ;;  %v4852_v34 = vld [vmem:[%s6429_s1 + $0x360] ss:$8 sps:$4 sm:$0xff]  }
  0xd5   : > { %3068 = vmatprep.subr.bf16.mxu0 %v4845_v51  ;;  %v4855_v18 = vld [vmem:[%s6429_s1 + $0x760] ss:$8 sps:$4 sm:$0xff]   ;;  %v2464_v51 = vsel %vm2064_vm2, %v2459_v24, %v2463_v41  ;;  %v2470_v6 = vsel %vm2064_vm2, %v2465_v12, %v2469_v48  ;;  %v2812_v24 = vrot.slane %v2810_v8, 2  ;;  %v4868_v12 = vld [vmem:[%s6429_s1 + $0x384] ss:$8 sps:$4 sm:$0xff]  }
  0xd6   : > { %1172 = vmatmul.mubr.bf16.gmra.mrb[8].mxu1 %v938_v11  ;;  %v948_v11 = vsel %vm926_vm3, %v943_v1, %v947_v43  ;;  %v945_v1 = vrot.slane %v5462_v16, 1  ;;  %v4866_v16 = vld [vmem:[%s6429_s1 + $0x380] ss:$8 sps:$4 sm:$0xff]  }
  0xd7   : > { %2694 = vmatmul.mubr.bf16.gmra.mrb[8].mxu0 %v2460_v28  ;;  %1512 = vmatpush1.bf16.msra.mxu1 %v4840_v46  ;;  %v4106_v46 = vcombine.low %v2370_v20, %v2370_v20  ;;  %v2804_v28 = vrot.slane %v2802_v40, 2  ;;  %v2815_v20 = vrot.slane %v2813_v56, 3  ;;  %v4870_v43 = vld [vmem:[%s6429_s1 + $0x780] ss:$8 sps:$4 sm:$0xff]   ;;  %v4876_v56 = vld [vmem:[%s6429_s1 + $0x790] ss:$8 sps:$4 sm:$0xff]  }
  0xd8   : > { %3069 = vmatpush1.bf16.msra.mxu0 %v4843_v10  ;;  %1513 = vmatprep.subr.bf16.mxu1 %v4848_v25  ;;  %v4863_v10 = vld [vmem:[%s6429_s1 + $0x774] ss:$8 sps:$4 sm:$0xff]   ;;  %v2807_v25 = vrot.slane %v2805_v29, 3  ;;  %v946_v40 = vsel %vm926_vm3, %v941_v37, %v945_v1  ;;  %v2788_v1 = vshll.u32 %v5853_v30, 16 }
  0xd9   : > { %3070 = vmatprep.subr.bf16.mxu0 %v4851_v22  ;;  %1181 = vmatprep.mubr.bf16.mxu1 %v944_v3  ;;  %v4858_v22 = vld [vmem:[%s6429_s1 + $0x370] ss:$8 sps:$4 sm:$0xff]   ;;  %v4878_v29 = vld [vmem:[%s6429_s1 + $0x794] ss:$8 sps:$4 sm:$0xff]  }
  0xda   : > { %2703 = vmatprep.mubr.bf16.mxu0 %v2466_v9  ;;  %v4861_v3 = vld [vmem:[%s6429_s1 + $0x770] ss:$8 sps:$4 sm:$0xff]   ;;  %v2467_v9 = vrot.slane %v4106_v46, 2  ;;  %v4890_v46 = vld [vmem:[%s6429_s1 + $0x3b4] ss:$8 sps:$4 sm:$0xff]  }
  0xdb   : > { %1514 = vmatpush1.bf16.msra.mxu1 %v4846_v57  ;;  %v1314_v57 = vrot.slane %v5197_v61, 1  ;;  %v4875_v61 = vld [vmem:[%s6429_s1 + $0x394] ss:$8 sps:$4 sm:$0xff]  }
  0xdc   : > { %3071 = vmatpush1.bf16.msra.mxu0 %v4849_v36  ;;  %1515 = vmatprep.subr.bf16.mxu1 %v4854_v49  ;;  %v1315_v36 = vrot.slane %v5206_v0, 1  ;;  %v2808_v49 = vor.u32 %v2807_v25, %v2804_v28  ;;  %v2468_v48 = vsel %vm2064_vm2, %v2463_v41, %v2467_v9  ;;  %v4873_v41 = vld [vmem:[%s6429_s1 + $0x390] ss:$8 sps:$4 sm:$0xff]   ;;  %v4898_v28 = vld [vmem:[%s6429_s1 + $0x3c4] ss:$8 sps:$4 sm:$0xff]   ;;  %v2840_v0 = vshll.u32 %v5906_v50, 16 }
  0xdd   : > { %3072 = vmatprep.subr.bf16.mxu0 %v4857_v33  ;;  %v6070_v33 = vor.u32 %v2815_v20, %v2812_v24  ;;  %v4896_v25 = vld [vmem:[%s6429_s1 + $0x3c0] ss:$8 sps:$4 sm:$0xff]   ;;  %v4905_v20 = vld [vmem:[%s6429_s1 + $0x3d4] ss:$8 sps:$4 sm:$0xff]   ;;  %v4903_v9 = vld [vmem:[%s6429_s1 + $0x3d0] ss:$8 sps:$4 sm:$0xff]  }
  0xde   : > { %1182 = vmatmul.mubr.bf16.gmra.mrb[12].mxu1 %v942_v7  ;;  %v1316_v8 = vsel %vm926_vm3, %v1314_v57, %v1315_v36  ;;  %v4881_v7 = vld [vmem:[%s6429_s1 + $0x3a0] ss:$8 sps:$4 sm:$0xff]   ;;  %v2796_v57 = vshll.u32 %v5857_v31, 16 }
  0xdf   : > { %2704 = vmatmul.mubr.bf16.gmra.mrb[12].mxu0 %v2464_v51  ;;  %1516 = vmatpush1.bf16.msra.mxu1 %v4852_v34  ;;  %v2817_v37 = vsel %vm2783_vm5, %v2808_v49, %v6070_v33  ;;  %v4883_v34 = vld [vmem:[%s6429_s1 + $0x3a4] ss:$8 sps:$4 sm:$0xff]   ;;  %v4885_v51 = vld [vmem:[%s6429_s1 + $0x7a0] ss:$8 sps:$4 sm:$0xff]  }
  0xe0   : > { %3073 = vmatpush1.bf16.msra.mxu0 %v4855_v18  ;;  %1517 = vmatprep.subr.bf16.mxu1 %v4860_v15  ;;  %v4887_v18 = vld [vmem:[%s6429_s1 + $0x7a4] ss:$8 sps:$4 sm:$0xff]   ;;  %v4893_v15 = vld [vmem:[%s6429_s1 + $0x7b4] ss:$8 sps:$4 sm:$0xff]   ;;  %v4900_v24 = vld [vmem:[%s6429_s1 + $0x7c0] ss:$8 sps:$4 sm:$0xff]  }
  0xe1   : > { %3074 = vmatprep.subr.bf16.mxu0 %v4863_v10  ;;  %1191 = vmatprep.mubr.bf16.mxu1 %v948_v11  ;;  %v4888_v10 = vld [vmem:[%s6429_s1 + $0x3b0] ss:$8 sps:$4 sm:$0xff]   ;;  %v4916_v49 = vld [vmem:[%s6429_s1 + $0x7e4] ss:$8 sps:$4 sm:$0xff]  }
  0xe2   : > { %2713 = vmatprep.mubr.bf16.mxu0 %v2470_v6  ;;  %v4891_v11 = vld [vmem:[%s6429_s1 + $0x7b0] ss:$8 sps:$4 sm:$0xff]   ;;  %v4902_v6 = vld [vmem:[%s6429_s1 + $0x7c4] ss:$8 sps:$4 sm:$0xff]  }
  0xe3   : > { %1518 = vmatpush1.bf16.msra.mxu1 %v4858_v22  ;;  %v4908_v22 = vld [vmem:[%s6429_s1 + $0x7d4] ss:$8 sps:$4 sm:$0xff]  }
  0xe4   : > { %3075 = vmatpush1.bf16.msra.mxu0 %v4861_v3  ;;  %1519 = vmatprep.subr.bf16.mxu1 %v4868_v12  ;;  %v2785_v3 = vshrl.u32 %v5853_v30, 16  ;;  %v4906_v12 = vld [vmem:[%s6429_s1 + $0x7d0] ss:$8 sps:$4 sm:$0xff]   ;;  %v4912_v30 = vld [vmem:[%s6429_s1 + $0x3e4] ss:$8 sps:$4 sm:$0xff]  }
  0xe5   : > { %3076 = vmatprep.subr.bf16.mxu0 %v4872_v59  ;;  %v2793_v59 = vshrl.u32 %v5857_v31, 16 }
  0xe6   : > { %1192 = vmatmul.mubr.bf16.gmra.mrb[16].mxu1 %v946_v40  ;;  %v2828_v40 = vshrl.u32 %v5872_v27, 16 }
  0xe7   : > { %2714 = vmatmul.mubr.bf16.gmra.mrb[16].mxu0 %v2468_v48  ;;  %1520 = vmatpush1.bf16.msra.mxu1 %v4866_v16  ;;  %v2787_v16 = vrot.slane %v2785_v3, 2  ;;  %v2831_v48 = vshll.u32 %v5872_v27, 16  ;;  %v4922_v27 = vld [vmem:[%s6429_s1 + $0x7f4] ss:$8 sps:$4 sm:$0xff]  }
  0xe8   : > { %3077 = vmatpush1.bf16.msra.mxu0 %v4870_v43  ;;  %1521 = vmatprep.subr.bf16.mxu1 %v4875_v61  ;;  %v2790_v43 = vrot.slane %v2788_v1, 3  ;;  %v4910_v61 = vld [vmem:[%s6429_s1 + $0x3e0] ss:$8 sps:$4 sm:$0xff]   ;;  %v4928_v1 = vld [vmem:[%s6429_s1 + $0x814] ss:$8 sps:$4 sm:$0xff]  }
  0xe9   : > { %3078 = vmatprep.subr.bf16.mxu0 %v4878_v29  ;;  %1535 = vmatprep.mubr.bf16.mxu1 %v1316_v8  ;;  %v4914_v29 = vld [vmem:[%s6429_s1 + $0x7e0] ss:$8 sps:$4 sm:$0xff]   ;;  %v2795_v8 = vrot.slane %v2793_v59, 2 }
  0xea   : > { %3092 = vmatprep.mubr.bf16.mxu0 %v2817_v37  ;;  %v2798_v37 = vrot.slane %v2796_v57, 3  ;;  %v4926_v57 = vld [vmem:[%s6429_s1 + $0x810] ss:$8 sps:$4 sm:$0xff]  }
  0xeb   : > { %1522 = vmatpush1.bf16.msra.mxu1 %v4873_v41  ;;  %v4919_v41 = vld [vmem:[%s6429_s1 + $0x3f4] ss:$8 sps:$4 sm:$0xff]  }
  0xec   : > { %3079 = vmatpush1.bf16.msra.mxu0 %v4876_v56  ;;  %1523 = vmatprep.subr.bf16.mxu1 %v4883_v34  ;;  %v1311_v56 = vrot.slane %v5211_v2, 1  ;;  %v1312_v34 = vrot.slane %v5226_v14, 1  ;;  %v2822_v2 = vshll.u32 %v5898_v52, 16  ;;  %v4925_v14 = vld [vmem:[%s6429_s1 + $0x804] ss:$8 sps:$4 sm:$0xff]  }
  0xed   : > { %3080 = vmatprep.subr.bf16.mxu0 %v4887_v18  ;;  %v2830_v18 = vrot.slane %v2828_v40, 2  ;;  %v2839_v40 = vrot.slane %v2837_v17, 2  ;;  %v4941_v17 = vld [vmem:[%s6429_s1 + $0x860] ss:$8 sps:$4 sm:$0xff]  }
  0xee   : > { %v2824_v3 = vrot.slane %v2822_v2, 3 }
  0xef   : > { %1524 = vmatpush1.bf16.msra.mxu1 %v4881_v7  ;;  %v2833_v7 = vrot.slane %v2831_v48, 3  ;;  %v2842_v48 = vrot.slane %v2840_v0, 3 }
  0xf0   : > { %3081 = vmatpush1.bf16.msra.mxu0 %v4885_v51  ;;  %1525 = vmatprep.subr.bf16.mxu1 %v4890_v46  ;;  %v4917_v51 = vld [vmem:[%s6429_s1 + $0x3f0] ss:$8 sps:$4 sm:$0xff]  }
  0xf1   : > { %3082 = vmatprep.subr.bf16.mxu0 %v4893_v15  ;;  %v4920_v46 = vld [vmem:[%s6429_s1 + $0x7f0] ss:$8 sps:$4 sm:$0xff]   ;;  %v2791_v15 = vor.u32 %v2790_v43, %v2787_v16  ;;  %v2867_v16 = vshll.u32 %v5901_v26, 16  ;;  %v4929_v43 = vld [vmem:[%s6429_s1 + $0x820] ss:$8 sps:$4 sm:$0xff]  }
  0xf3   : > { %1526 = vmatpush1.bf16.msra.mxu1 %v4888_v10  ;;  %v2799_v10 = vor.u32 %v2798_v37, %v2795_v8  ;;  %v1321_v8 = vrot.slane %v5378_v55, 1  ;;  %v4937_v55 = vld [vmem:[%s6429_s1 + $0x844] ss:$8 sps:$4 sm:$0xff]  }
  0xf4   : > { %3083 = vmatpush1.bf16.msra.mxu0 %v4891_v11  ;;  %1527 = vmatprep.subr.bf16.mxu1 %v4898_v28  ;;  %v2819_v11 = vshrl.u32 %v5898_v52, 16  ;;  %v2834_v28 = vor.u32 %v2833_v7, %v2830_v18  ;;  %v4923_v52 = vld [vmem:[%s6429_s1 + $0x800] ss:$8 sps:$4 sm:$0xff]   ;;  %v2843_v18 = vor.u32 %v2842_v48, %v2839_v40  ;;  %v2855_v7 = vshrl.u32 %v5911_v60, 16  ;;  %v4944_v48 = vld [vmem:[%s6429_s1 + $0x870] ss:$8 sps:$4 sm:$0xff]  }
  0xf5   : > { %3084 = vmatprep.subr.bf16.mxu0 %v4902_v6  ;;  %v2846_v6 = vshrl.u32 %v5888_v42, 16 }
  0xf7   : > { %1528 = vmatpush1.bf16.msra.mxu1 %v4896_v25  ;;  %v2849_v25 = vshll.u32 %v5888_v42, 16  ;;  %v1320_v42 = vsel %vm926_vm3, %v1315_v36, %v1319_v21  ;;  %v4931_v21 = vld [vmem:[%s6429_s1 + $0x824] ss:$8 sps:$4 sm:$0xff]  }
  0xf8   : > { %3085 = vmatpush1.bf16.msra.mxu0 %v4900_v24  ;;  %1529 = vmatprep.subr.bf16.mxu1 %v4905_v20  ;;  %v1313_v24 = vsel %vm926_vm3, %v1311_v56, %v1312_v34  ;;  %v2800_v20 = vsel %vm2783_vm5, %v2791_v15, %v2799_v10 }
  0xf9   : > { %3086 = vmatprep.subr.bf16.mxu0 %v4908_v22  ;;  %v2821_v22 = vrot.slane %v2819_v11, 2  ;;  %v2851_v59 = vrot.slane %v2849_v25, 3  ;;  %v1232_v25 = vld [vmem:[%s5158_s30 + $0x58] sm:$0x11] }
  0xfa   : > { %v3898_v0 = vcombine.low %v1232_v25, %v1232_v25 }
  0xfb   : > { %1530 = vmatpush1.bf16.msra.mxu1 %v4903_v9  ;;  %v2835_v9 = vsel %vm2783_vm5, %v6070_v33, %v2834_v28  ;;  %v2864_v33 = vshrl.u32 %v5901_v26, 16 }
  0xfc   : > { %3087 = vmatpush1.bf16.msra.mxu0 %v4906_v12  ;;  %1531 = vmatprep.subr.bf16.mxu1 %v4912_v30  ;;  %v2848_v12 = vrot.slane %v2846_v6, 2  ;;  %v1317_v30 = vrot.slane %v5336_v19, 1  ;;  %v2857_v6 = vrot.slane %v2855_v7, 2 }
  0xfd   : > { %3088 = vmatprep.subr.bf16.mxu0 %v4916_v49  ;;  %v2825_v49 = vor.u32 %v2824_v3, %v2821_v22  ;;  %v3899_v3 = vcombine.high %v1232_v25, %v1232_v25 }
  0xfe   : > { %v2852_v36 = vor.u32 %v2851_v59, %v2848_v12  ;;  %v1318_v19 = vsel %vm926_vm3, %v1312_v34, %v1317_v30  ;;  %v4932_v34 = vld [vmem:[%s6429_s1 + $0x830] ss:$8 sps:$4 sm:$0xff]   ;;  %v1322_v15 = vsel %vm926_vm3, %v1317_v30, %v1321_v8 }
  0xff   : > { %1532 = vmatpush1.bf16.msra.mxu1 %v4910_v61  ;;  %v2826_v50 = vsel %vm2783_vm5, %v2799_v10, %v2825_v49  ;;  %v2744_v61 = vld [vmem:[%s5158_s30 + $0x60] sm:$0x77] }
 0x100   : > { %3089 = vmatpush1.bf16.msra.mxu0 %v4914_v29  ;;  %1533 = vmatprep.subr.bf16.mxu1 %v4919_v41  ;;  %v4934_v29 = vld [vmem:[%s6429_s1 + $0x834] ss:$8 sps:$4 sm:$0xff]   ;;  %v2853_v37 = vsel %vm2783_vm5, %v2834_v28, %v2852_v36  ;;  %v2866_v41 = vrot.slane %v2864_v33, 2  ;;  %v6221_v56 = vcombine.high %v2744_v61, %v2744_v61  ;;  %v4935_v28 = vld [vmem:[%s6429_s1 + $0x840] ss:$8 sps:$4 sm:$0xff]  }
 0x101   : > { %3090 = vmatprep.subr.bf16.mxu0 %v4922_v27  ;;  %v2869_v27 = vrot.slane %v2867_v16, 3  ;;  %v6265_v33 = vld [vmem:[%s5158_s30 + $0x10] sm:$0x88] }
 0x102   : > { %v2882_v11 = vshrl.u32 %v6221_v56, 16  ;;  %v2885_v2 = vshll.u32 %v6221_v56, 16  ;;  %v4946_v16 = vld [vmem:[%s6429_s1 + $0x874] ss:$8 sps:$4 sm:$0xff]  }
 0x103   : > { %1534 = vmatpush1.bf16.msra.mxu1 %v4917_v51  ;;  %v2858_v51 = vshll.u32 %v5911_v60, 16  ;;  %v2870_v10 = vor.u32 %v2869_v27, %v2866_v41 }
 0x104   : > { %3091 = vmatpush1.bf16.msra.mxu0 %v4920_v46  ;;  %4294 = vmatprep.subr.bf16.mxu1 %v4925_v14  ;;  %v1327_v46 = vrot.slane %v5428_v35, 1  ;;  %v4940_v35 = vld [vmem:[%s6429_s1 + $0x854] ss:$8 sps:$4 sm:$0xff]  }
 0x105   : > { %3395 = vmatprep.subr.bf16.mxu0 %v4925_v14  ;;  %v2844_v14 = vsel %vm2783_vm5, %v2825_v49, %v2843_v18  ;;  %v2871_v22 = vsel %vm2783_vm5, %v2852_v36, %v2870_v10 }
 0x106   : > { %1536 = vmatmul.mubr.bf16.vlgmr.msra.gmra.mrb[0].mxu1 %v1313_v24  ;;  %v6241_v24 = vcombine.low %v2744_v61, %v2744_v61  ;;  %v1329_v61 = vrot.slane %v3898_v0, 1 }
 0x107   : > { %3093 = vmatmul.mubr.bf16.vlgmr.msra.gmra.mrb[0].mxu0 %v2800_v20  ;;  %4310 = vmatpush1.bf16.msra.mxu1 %v4923_v52  ;;  %v1328_v20 = vsel %vm926_vm3, %v1323_v39, %v1327_v46 }
 0x108   : > { %3396 = vmatpush1.bf16.msra.mxu0 %v4923_v52  ;;  %4295 = vmatprep.subr.bf16.mxu1 %v4928_v1  ;;  %v1325_v52 = vrot.slane %v5434_v38, 1  ;;  %v2873_v45 = vshrl.u32 %v6241_v24, 16  ;;  %v2876_v39 = vshll.u32 %v6241_v24, 16  ;;  %v4943_v38 = vld [vmem:[%s6429_s1 + $0x864] ss:$8 sps:$4 sm:$0xff]  }
 0x109   : > { %3397 = vmatprep.subr.bf16.mxu0 %v4928_v1  ;;  %1545 = vmatprep.mubr.bf16.mxu1 %v1320_v42  ;;  %v2884_v1 = vrot.slane %v2882_v11, 2  ;;  %v2887_v42 = vrot.slane %v2885_v2, 3  ;;  %v4966_v11 = vld [vmem:[%s6429_s1 + $0x8d0] ss:$8 sps:$4 sm:$0xff]   ;;  %v4971_v2 = vld [vmem:[%s6429_s1 + $0x8e4] ss:$8 sps:$4 sm:$0xff]  }
 0x10a   : > { %3102 = vmatprep.mubr.bf16.mxu0 %v2835_v9  ;;  %v4938_v9 = vld [vmem:[%s6429_s1 + $0x850] ss:$8 sps:$4 sm:$0xff]   ;;  %v1326_v59 = vsel %vm926_vm3, %v1321_v8, %v1325_v52  ;;  %v2878_v36 = vrot.slane %v2876_v39, 3  ;;  %v4953_v8 = vld [vmem:[%s6429_s1 + $0x884] ss:$8 sps:$4 sm:$0xff]   ;;  %v1330_v41 = vsel %vm926_vm3, %v1325_v52, %v1329_v61 }
 0x10b   : > { %4311 = vmatpush1.bf16.msra.mxu1 %v4926_v57  ;;  %v2888_v30 = vor.u32 %v2887_v42, %v2884_v1 }
 0x10c   : > { %3398 = vmatpush1.bf16.msra.mxu0 %v4926_v57  ;;  %4296 = vmatprep.subr.bf16.mxu1 %v4931_v21  ;;  %v1331_v57 = vrot.slane %v3899_v3, 1 }
 0x10d   : > { %3399 = vmatprep.subr.bf16.mxu0 %v4931_v21  ;;  %v2875_v21 = vrot.slane %v2873_v45, 2 }
 0x10e   : > { %1546 = vmatmul.mubr.bf16.gmra.mrb[4].mxu1 %v1318_v19  ;;  %v1332_v19 = vsel %vm926_vm3, %v1327_v46, %v1331_v57  ;;  %v4960_v46 = vld [vmem:[%s6429_s1 + $0x8b0] ss:$8 sps:$4 sm:$0xff]  }
 0x10f   : > { %3103 = vmatmul.mubr.bf16.gmra.mrb[4].mxu0 %v2826_v50  ;;  %4312 = vmatpush1.bf16.msra.mxu1 %v4929_v43  ;;  %v2889_v50 = vsel %vm2783_vm5, %v2870_v10, %v2888_v30  ;;  %v4968_v10 = vld [vmem:[%s6429_s1 + $0x8d4] ss:$8 sps:$4 sm:$0xff]  }
 0x110   : > { %3400 = vmatpush1.bf16.msra.mxu0 %v4929_v43  ;;  %4297 = vmatprep.subr.bf16.mxu1 %v4934_v29  ;;  %v6273_v43 = vld [vmem:[%s5158_s30 + $0x18] sm:$0xff] }
 0x111   : > { %3401 = vmatprep.subr.bf16.mxu0 %v4934_v29  ;;  %1555 = vmatprep.mubr.bf16.mxu1 %v5684_v44  ;;  %v2860_v44 = vrot.slane %v2858_v51, 3  ;;  %v4239_v40 = vcombine.high %v6265_v33, %v6273_v43  ;;  %v2879_v29 = vor.u32 %v2878_v36, %v2875_v21  ;;  %v4954_v51 = vld [vmem:[%s6429_s1 + $0x890] ss:$8 sps:$4 sm:$0xff]  }
 0x112   : > { %3112 = vmatprep.mubr.bf16.mxu0 %v2853_v37 }
 0x113   : > { %4313 = vmatpush1.bf16.msra.mxu1 %v4932_v34  ;;  %v2861_v12 = vor.u32 %v2860_v44, %v2857_v6  ;;  %v3206_v37 = vrot.slane %v4239_v40, 3  ;;  %v4974_v6 = vld [vmem:[%s6429_s1 + $0x8f4] ss:$8 sps:$4 sm:$0xff]   ;;  %v4972_v44 = vld [vmem:[%s6429_s1 + $0x8f0] ss:$8 sps:$4 sm:$0xff]  }
 0x114   : > { %3402 = vmatpush1.bf16.msra.mxu0 %v4932_v34  ;;  %4298 = vmatprep.subr.bf16.mxu1 %v4937_v55  ;;  %v4951_v34 = vld [vmem:[%s6429_s1 + $0x880] ss:$8 sps:$4 sm:$0xff]  }
 0x115   : > { %3403 = vmatprep.subr.bf16.mxu0 %v4937_v55  ;;  %v2862_v49 = vsel %vm2783_vm5, %v2843_v18, %v2861_v12  ;;  %v2880_v27 = vsel %vm2783_vm5, %v2861_v12, %v2879_v29  ;;  %v4956_v18 = vld [vmem:[%s6429_s1 + $0x894] ss:$8 sps:$4 sm:$0xff]   ;;  %v3208_v7 = vsel %vm3202_vm4, %v3206_v37, %v3207_v4  ;;  %v4959_v55 = vld [vmem:[%s6429_s1 + $0x8a4] ss:$8 sps:$4 sm:$0xff]   ;;  %v3500_v29 = vlaneseq }
 0x116   : > { %1556 = vmatmul.mubr.bf16.gmra.mrb[8].mxu1 %v1322_v15  ;;  %v4962_v4 = vld [vmem:[%s6429_s1 + $0x8b4] ss:$8 sps:$4 sm:$0xff]   ;;  %v4963_v15 = vld [vmem:[%s6429_s1 + $0x8c0] ss:$8 sps:$4 sm:$0xff]  }
 0x117   : > { %3113 = vmatmul.mubr.bf16.gmra.mrb[8].mxu0 %v2844_v14  ;;  %4314 = vmatpush1.bf16.msra.mxu1 %v4935_v28  ;;  %v4969_v14 = vld [vmem:[%s6429_s1 + $0x8e0] ss:$8 sps:$4 sm:$0xff]  }
 0x118   : > { %3404 = vmatpush1.bf16.msra.mxu0 %v4935_v28  ;;  %4299 = vmatprep.subr.bf16.mxu1 %v4940_v35  ;;  %v4238_v28 = vcombine.low %v6265_v33, %v6273_v43 }
 0x119   : > { %3405 = vmatprep.subr.bf16.mxu0 %v4940_v35  ;;  %1565 = vmatprep.mubr.bf16.mxu1 %v1328_v20  ;;  %v3223_v35 = vrot.slane %v6221_v56, 3 }
 0x11a   : > { %3122 = vmatprep.mubr.bf16.mxu0 %v2871_v22  ;;  %v3203_v25 = vrot.slane %v4238_v28, 3  ;;  %v3221_v22 = vrot.slane %v6241_v24, 3 }
 0x11b   : > { %4315 = vmatpush1.bf16.msra.mxu1 %v4938_v9  ;;  %v3224_v52 = vsel %vm3202_vm4, %v3219_v62, %v3223_v35 }
 0x11c   : > { %3406 = vmatpush1.bf16.msra.mxu0 %v4938_v9  ;;  %4300 = vmatprep.subr.bf16.mxu1 %v4943_v38  ;;  %v3205_v20 = vsel %vm3202_vm4, %v3203_v25, %v3204_v23  ;;  %v3222_v56 = vsel %vm3202_vm4, %v3217_v5, %v3221_v22 }
 0x11d   : > { %3407 = vmatprep.subr.bf16.mxu0 %v4943_v38 }
 0x11e   : > { %1566 = vmatmul.mubr.bf16.gmra.mrb[12].mxu1 %v1326_v59 }
 0x11f   : > { %3123 = vmatmul.mubr.bf16.gmra.mrb[12].mxu0 %v2862_v49  ;;  %4316 = vmatpush1.bf16.msra.mxu1 %v4941_v17 }
 0x120   : > { %3408 = vmatpush1.bf16.msra.mxu0 %v4941_v17  ;;  %4301 = vmatprep.subr.bf16.mxu1 %v4946_v16 }
 0x121   : > { %3409 = vmatprep.subr.bf16.mxu0 %v4946_v16  ;;  %1575 = vmatprep.mubr.bf16.mxu1 %v1332_v19 }
 0x122   : > { %3132 = vmatprep.mubr.bf16.mxu0 %v2889_v50 }
 0x123   : > { %4317 = vmatpush1.bf16.msra.mxu1 %v4944_v48 }
 0x124   : > { %3410 = vmatpush1.bf16.msra.mxu0 %v4944_v48  ;;  %4302 = vmatprep.subr.bf16.mxu1 %v4953_v8 }
 0x125   : > { %3411 = vmatprep.subr.bf16.mxu0 %v4953_v8  ;;  %v3501_v8 = vshrl.u32 %v3500_v29, 7 }
 0x126   : > { %1576 = vmatmul.mubr.bf16.gmra.mrb[16].mxu1 %v1330_v41  ;;  %v3498_v41 = vld [vmem:[%s6430_s2] sm:$0x3] }
 0x127   : > { %3133 = vmatmul.mubr.bf16.gmra.mrb[16].mxu0 %v2880_v27  ;;  %4318 = vmatpush1.bf16.msra.mxu1 %v4951_v34  ;;  %v3502_v37 = vsub.s32 0, %v3501_v8  ;;  %v3506_v27 = vsub.s32 1, %v3501_v8 }
 0x128   : > { %3412 = vmatpush1.bf16.msra.mxu0 %v4951_v34  ;;  %4303 = vmatprep.subr.bf16.mxu1 %v4956_v18 }
 0x129   : > { %3413 = vmatprep.subr.bf16.mxu0 %v4956_v18  ;;  %3427 = vmatprep.mubr.bf16.mxu0 %v3208_v7  ;;  %v6375_v34 = vrot.slane %v3498_v41, %v3502_v37 }
 0x12a   : > { %3457 = vmatprep.mubr.bf16.mxu1 %v5934_v54  ;;  %v4965_v54 = vld [vmem:[%s6429_s1 + $0x8c4] ss:$8 sps:$4 sm:$0xff]  }
 0x12b   : > { %4319 = vmatpush1.bf16.msra.mxu1 %v4954_v51 }
 0x12c   : > { %3414 = vmatpush1.bf16.msra.mxu0 %v4954_v51  ;;  %4304 = vmatprep.subr.bf16.mxu1 %v4959_v55  ;;  %v6377_v51 = vrot.slane %v3498_v41, %v3506_v27 }
 0x12d   : > { %3415 = vmatprep.subr.bf16.mxu0 %v4959_v55 }
 0x12f   : > { %4320 = vmatpush1.bf16.msra.mxu1 %v4957_v47 }
 0x130   : > { %3416 = vmatpush1.bf16.msra.mxu0 %v4957_v47  ;;  %4305 = vmatprep.subr.bf16.mxu1 %v4962_v4 }
 0x131   : > { %3417 = vmatprep.subr.bf16.mxu0 %v4962_v4 }
 0x133   : > { %4321 = vmatpush1.bf16.msra.mxu1 %v4960_v46 }
 0x134   : > { %3418 = vmatpush1.bf16.msra.mxu0 %v4960_v46  ;;  %4306 = vmatprep.subr.bf16.mxu1 %v4965_v54 }
 0x135   : > { %3419 = vmatprep.subr.bf16.mxu0 %v4965_v54 }
 0x137   : > { %4322 = vmatpush1.bf16.msra.mxu1 %v4963_v15 }
 0x138   : > { %3420 = vmatpush1.bf16.msra.mxu0 %v4963_v15  ;;  %4307 = vmatprep.subr.bf16.mxu1 %v4968_v10 }
 0x139   : > { %3421 = vmatprep.subr.bf16.mxu0 %v4968_v10 }
 0x13b   : > { %4323 = vmatpush1.bf16.msra.mxu1 %v4966_v11 }
 0x13c   : > { %3422 = vmatpush1.bf16.msra.mxu0 %v4966_v11  ;;  %4308 = vmatprep.subr.bf16.mxu1 %v4971_v2 }
 0x13d   : > { %3423 = vmatprep.subr.bf16.mxu0 %v4971_v2 }
 0x13f   : > { %4324 = vmatpush1.bf16.msra.mxu1 %v4969_v14 }
 0x140   : > { %3424 = vmatpush1.bf16.msra.mxu0 %v4969_v14  ;;  %4309 = vmatprep.subr.bf16.mxu1 %v4974_v6 }
 0x141   : > { %3425 = vmatprep.subr.bf16.mxu0 %v4974_v6 }
 0x143   : > { %4325 = vmatpush1.bf16.msra.mxu1 %v4972_v44 }
 0x144   : > { %3426 = vmatpush1.bf16.msra.mxu0 %v4972_v44 }
 0x146   : > { %3458 = vmatmul.mubr.bf16.vlgmr.msra.gmra.mrb[20].mxu1 %v5947_v53 }
 0x147   : > { %3428 = vmatmul.mubr.bf16.vlgmr.msra.gmra.mrb[0].mxu0 %v3205_v20  ;;  %3467 = vmatprep.mubr.bf16.mxu1 %v3224_v52 }
 0x148   : > { %3437 = vmatprep.mubr.bf16.mxu0 %v5952_v32 }
 0x14e   : > { %3468 = vmatmul.mubr.bf16.gmra.mrb[24].mxu1 %v3222_v56 }
 0x14f   : > { %3438 = vmatmul.mubr.bf16.gmra.mrb[4].mxu0 %v5957_v63 }
 0x150   : > { %3447 = vmatprep.mubr.bf16.mxu0 %v5983_v13 }
 0x157   : > { %3448 = vmatmul.mubr.bf16.gmra.mrb[8].mxu0 %v5997_v58 }
 0x1d9   : > { %v1537_v31 = vpop.f32.mrb[0].mxu1 }
 0x1da   : > { %v1539_v26 = vpop.f32.mrb[1].mxu1 }
 0x1db   : > { %v1541_v62 = vpop.f32.mrb[2].mxu1 }
 0x1dc   : > { %v1543_v23 = vpop.f32.mrb[3].mxu1 }
 0x1e1   : > { %v6352_v53 = vpop.f32.mrb[4].mxu1 }
 0x1e2   : > { %v6354_v32 = vpop.f32.mrb[5].mxu1 }
 0x1e3   : > { %v6356_v24 = vpop.f32.mrb[6].mxu1 }
 0x1e4   : > { %v6358_v60 = vpop.f32.mrb[7].mxu1 }
 0x1e9   : > { %v6360_v5 = vpop.f32.mrb[8].mxu1 }
 0x1ea   : > { %v6362_v63 = vpop.f32.mrb[9].mxu1 }
 0x1eb   : > { %v6364_v3 = vpop.f32.mrb[10].mxu1 }
 0x1ec   : > { %v6366_v13 = vpop.f32.mrb[11].mxu1 }
 0x1f1   : > { %v1567_v58 = vpop.f32.mrb[12].mxu1 }
 0x1f2   : > { %v3124_v1 = vpop.f32.mrb[12].mxu0  ;;  %v1569_v9 = vpop.f32.mrb[13].mxu1 }
 0x1f3   : > { %v4338_v42 = vadd.f32 %v3124_v1, %v1567_v58  ;;  %v3126_v12 = vpop.f32.mrb[13].mxu0  ;;  %v1571_v39 = vpop.f32.mrb[14].mxu1 }
 0x1f4   : > { %v4340_v45 = vadd.f32 %v3126_v12, %v1569_v9  ;;  %v3128_v38 = vpop.f32.mrb[14].mxu0  ;;  %v1573_v57 = vpop.f32.mrb[15].mxu1 }
 0x1f5   : > { %v4342_v59 = vadd.f32 %v3128_v38, %v1571_v39  ;;  %v3130_v30 = vpop.f32.mrb[15].mxu0 }
 0x1f6   : > { %v4344_v49 = vadd.f32 %v3130_v30, %v1573_v57 }
 0x1f9   : > { %v1577_v17 = vpop.f32.mrb[16].mxu1 }
 0x1fa   : > { %v3134_v0 = vpop.f32.mrb[16].mxu0  ;;  %v1579_v36 = vpop.f32.mrb[17].mxu1 }
 0x1fb   : > { %v4346_v21 = vadd.f32 %v3134_v0, %v1577_v17  ;;  %v3136_v33 = vpop.f32.mrb[17].mxu0  ;;  %v1581_v19 = vpop.f32.mrb[18].mxu1 }
 0x1fc   : > { %v4348_v16 = vadd.f32 %v3136_v33, %v1579_v36  ;;  %v3138_v50 = vpop.f32.mrb[18].mxu0  ;;  %v1583_v40 = vpop.f32.mrb[19].mxu1 }
 0x1fd   : > { %v6368_v43 = vadd.f32 %v3138_v50, %v1581_v19  ;;  %v3140_v48 = vpop.f32.mrb[19].mxu0 }
 0x1fe   : > { %v6370_v61 = vadd.f32 %v3140_v48, %v1583_v40 }
 0x219   : > { %v3459_v7 = vpop.f32.mrb[20].mxu1 }
 0x21a   : > { %v3429_v18 = vpop.f32.mrb[0].mxu0  ;;  %v4339_v47 = vadd.f32 %v4338_v42, %v3459_v7  ;;  %v3461_v46 = vpop.f32.mrb[21].mxu1 }
 0x21b   : > { %v4326_v55 = vadd.f32 %v3429_v18, %v1537_v31  ;;  %v3431_v4 = vpop.f32.mrb[1].mxu0  ;;  %v4341_v15 = vadd.f32 %v4340_v45, %v3461_v46  ;;  %v3463_v11 = vpop.f32.mrb[22].mxu1 }
 0x21c   : > { %v4327_v54 = vadd.f32 %v3431_v4, %v1539_v26  ;;  %v3433_v10 = vpop.f32.mrb[2].mxu0  ;;  %v3522_v14 = vadd.f32 %v4339_v47, %v6375_v34  ;;  %v4343_v6 = vadd.f32 %v4342_v59, %v3463_v11  ;;  %v3465_v25 = vpop.f32.mrb[23].mxu1 }
 0x21d   : > { %v3510_v2 = vadd.f32 %v4326_v55, %v6375_v34  ;;  %v4328_v28 = vadd.f32 %v3433_v10, %v1541_v62  ;;  %v3435_v44 = vpop.f32.mrb[3].mxu0  ;;  %v3523_v20 = vadd.f32 %v4341_v15, %v6377_v51  ;;  %v4345_v22 = vadd.f32 %v4344_v49, %v3465_v25 }
 0x21e   : > { %v3511_v35 = vadd.f32 %v4327_v54, %v6377_v51  ;;  %v4329_v52 = vadd.f32 %v3435_v44, %v1543_v23  ;;  %v3542_v31 = vmax.f32 %v3522_v14, 0.0  ;;  %v3524_v58 = vadd.f32 %v4343_v6, %v6375_v34 }
 0x21f   : > { %v3530_v56 = vmax.f32 %v3510_v2, 0.0  ;;  %v3512_v26 = vadd.f32 %v4328_v28, %v6375_v34  ;;  %v3543_v42 = vmax.f32 %v3523_v20, 0.0  ;;  %v3525_v62 = vadd.f32 %v4345_v22, %v6377_v51 }
 0x220   : > { %v3531_v1 = vmax.f32 %v3511_v35, 0.0  ;;  %v3513_v9 = vadd.f32 %v4329_v52, %v6377_v51  ;;  %v3544_v12 = vmax.f32 %v3524_v58, 0.0 }
 0x221   : > { %v3532_v23 = vmax.f32 %v3512_v26, 0.0  ;;  %v4290_v39 = vpack.c.bf16 %v3543_v42, %v3542_v31  ;;  %v3545_v59 = vmax.f32 %v3525_v62, 0.0  ;;  %v3469_v30 = vpop.f32.mrb[24].mxu1 }
 0x222   : > { %v4284_v45 = vpack.c.bf16 %v3531_v1, %v3530_v56  ;;  %v3533_v38 = vmax.f32 %v3513_v9, 0.0  ;;  %v3439_v57 = vpop.f32.mrb[4].mxu0  ;;  %v4347_v17 = vadd.f32 %v4346_v21, %v3469_v30  ;;  %v3471_v36 = vpop.f32.mrb[25].mxu1 }
 0x223   : > { %v4330_v49 = vadd.f32 %v3439_v57, %v6352_v53  ;;  %v3441_v0 = vpop.f32.mrb[5].mxu0  ;;  %3616 = vst [vmem:[%s6391_s16 + $0x30] sm:$0xff] %v4290_v39  ;;  %v4291_v19 = vpack.c.bf16 %v3545_v59, %v3544_v12  ;;  %v4349_v40 = vadd.f32 %v4348_v16, %v3471_v36  ;;  %v3473_v29 = vpop.f32.mrb[26].mxu1 }
 0x224   : > { %3610 = vst [vmem:[%s6391_s16] sm:$0xff] %v4284_v45  ;;  %v4285_v33 = vpack.c.bf16 %v3533_v38, %v3532_v23  ;;  %v4331_v50 = vadd.f32 %v3441_v0, %v6354_v32  ;;  %v3443_v48 = vpop.f32.mrb[6].mxu0  ;;  %v3526_v37 = vadd.f32 %v4347_v17, %v6375_v34  ;;  %v4351_v21 = vadd.f32 %v6368_v43, %v3473_v29  ;;  %v3475_v27 = vpop.f32.mrb[27].mxu1 }
 0x225   : > { %v3514_v8 = vadd.f32 %v4330_v49, %v6375_v34  ;;  %v4332_v53 = vadd.f32 %v3443_v48, %v6356_v24  ;;  %v3445_v41 = vpop.f32.mrb[7].mxu0  ;;  %3617 = vst [vmem:[%s6391_s16 + $0x38] sm:$0xff] %v4291_v19  ;;  %v3527_v7 = vadd.f32 %v4349_v40, %v6377_v51  ;;  %v4353_v16 = vadd.f32 %v6370_v61, %v3475_v27 }
 0x226   : > { %3611 = vst [vmem:[%s6391_s16 + $0x8] sm:$0xff] %v4285_v33  ;;  %v3515_v18 = vadd.f32 %v4331_v50, %v6377_v51  ;;  %v4333_v32 = vadd.f32 %v3445_v41, %v6358_v60  ;;  %v3546_v47 = vmax.f32 %v3526_v37, 0.0  ;;  %v3528_v24 = vadd.f32 %v4351_v21, %v6375_v34 }
 0x227   : > { %v3534_v55 = vmax.f32 %v3514_v8, 0.0  ;;  %v3516_v4 = vadd.f32 %v4332_v53, %v6375_v34  ;;  %v3547_v46 = vmax.f32 %v3527_v7, 0.0  ;;  %v3529_v15 = vadd.f32 %v4353_v16, %v6377_v51 }
 0x228   : > { %v3535_v43 = vmax.f32 %v3515_v18, 0.0  ;;  %v3517_v54 = vadd.f32 %v4333_v32, %v6377_v51  ;;  %v3548_v11 = vmax.f32 %v3528_v24, 0.0 }
 0x229   : > { %v3536_v10 = vmax.f32 %v3516_v4, 0.0  ;;  %v4292_v60 = vpack.c.bf16 %v3547_v46, %v3546_v47  ;;  %v3549_v14 = vmax.f32 %v3529_v15, 0.0 }
 0x22a   : > { %v4286_v2 = vpack.c.bf16 %v3535_v43, %v3534_v55  ;;  %v3537_v61 = vmax.f32 %v3517_v54, 0.0  ;;  %v3449_v28 = vpop.f32.mrb[8].mxu0 }
 0x22b   : > { %v4334_v6 = vadd.f32 %v3449_v28, %v6360_v5  ;;  %v3451_v44 = vpop.f32.mrb[9].mxu0  ;;  %3618 = vst [vmem:[%s6391_s16 + $0x40] sm:$0xff] %v4292_v60  ;;  %v4293_v35 = vpack.c.bf16 %v3549_v14, %v3548_v11 }
 0x22c   : > { %3612 = vst [vmem:[%s6391_s16 + $0x10] sm:$0xff] %v4286_v2  ;;  %v4287_v25 = vpack.c.bf16 %v3537_v61, %v3536_v10  ;;  %v4335_v20 = vadd.f32 %v3451_v44, %v6362_v63  ;;  %v3453_v52 = vpop.f32.mrb[10].mxu0 }
 0x22d   : > { %v3518_v22 = vadd.f32 %v4334_v6, %v6375_v34  ;;  %v4336_v56 = vadd.f32 %v3453_v52, %v6364_v3  ;;  %v3455_v31 = vpop.f32.mrb[11].mxu0  ;;  %3619 = vst [vmem:[%s6391_s16 + $0x48] sm:$0xff] %v4293_v35 }
 0x22e   : > { %3613 = vst [vmem:[%s6391_s16 + $0x18] sm:$0xff] %v4287_v25  ;;  %v3519_v26 = vadd.f32 %v4335_v20, %v6377_v51  ;;  %v4337_v5 = vadd.f32 %v3455_v31, %v6366_v13 }
 0x22f   : > { %v3538_v58 = vmax.f32 %v3518_v22, 0.0  ;;  %v3520_v1 = vadd.f32 %v4336_v56, %v6375_v34 }
 0x230   : > { %v3539_v42 = vmax.f32 %v3519_v26, 0.0  ;;  %v3521_v63 = vadd.f32 %v4337_v5, %v6377_v51 }
 0x231   : > { %v3540_v9 = vmax.f32 %v3520_v1, 0.0 }
 0x232   : > { %v4288_v62 = vpack.c.bf16 %v3539_v42, %v3538_v58  ;;  %v3541_v23 = vmax.f32 %v3521_v63, 0.0 }
 0x234   : > { %3614 = vst [vmem:[%s6391_s16 + $0x20] sm:$0xff] %v4288_v62  ;;  %v4289_v12 = vpack.c.bf16 %v3541_v23, %v3540_v9 }
 0x236   : > { %3615 = vst [vmem:[%s6391_s16 + $0x28] sm:$0xff] %v4289_v12 }
 0x237 PF: > { %s13_s12 = sadd.s32 1, %s4986_s12  }
 0x238   : > { %p10_p4 = scmp.ge.s32.totalorder %s13_s12, 4  }
 0x23a   :  { %12 = sbr.rel (!%p10_p4) target bundleno = 1 (0x1), region = 70 }

// kernel: cnn_forward.11
= control target key start
LH: loop header
LB: loop body
LE: loop exit
PB: predicated region body
PF: predicated region fallthrough
CT: control target
= control target key end

     0   :  { %s1641_s12 = smov 0   ;;  %s2079_s0 = inlined_call_operand.vmem [shape: bf16[2,16,1024], index: 0, kind: input, shape index: {}]   ;;  %s2080_s1 = inlined_call_operand.vmem [shape: bf16[1,1024,256], index: 1, kind: input, shape index: {}]   ;;  %s2081_s2 = inlined_call_operand.vmem [shape: f32[1,256], index: 2, kind: input, shape index: {}]   ;;  %s2082_s3 = inlined_call_operand.vmem [shape: bf16[2,16,256], index: 3, kind: output, shape index: {}]  }
   0x1 LB: > { %s1244_s13 = sadd.s32 4294967295, %s1619_s12   ;;  %p1248_p0 = scmp.ge.s32.totalorder %s1619_s12, 1  ;;  %s1619_s12 = sphi %s1641_s12, %s13_s12  }
   0x2   : > { %p137_p1 = scmp.lt.s32.totalorder %s1619_s12, 3 }
   0x4   : > { %p138_p2 = pnand %p1248_p0, %p137_p1 }
   0x5   : > { %v1421_v0 = vld [vmem:[%s2080_s1 + $0x4] ss:$8 sps:$4 sm:$0xff] (!%p138_p2)   ;;  %v1425_v2 = vld [vmem:[%s2080_s1] ss:$8 sps:$4 sm:$0xff] (!%p138_p2)   ;;  %v1427_v4 = vld [vmem:[%s2080_s1 + $0x14] ss:$8 sps:$4 sm:$0xff] (!%p138_p2)  }
   0x6   : > { %141 = sbr.rel (%p138_p2) target bundleno = 358 (0x166), region = 32  ;;  %v1423_v1 = vld [vmem:[%s2080_s1 + $0x204] ss:$8 sps:$4 sm:$0xff] (!%p138_p2)   ;;  %999 = vmatprep.subr.bf16.mxu1 (!%p138_p2), %v1421_v0  ;;  %v1426_v3 = vld [vmem:[%s2080_s1 + $0x200] ss:$8 sps:$4 sm:$0xff] (!%p138_p2)   ;;  %p161_p3 = scmp.lt.s32.totalorder (!%p138_p2), %s1244_s13, 1 }
   0x7   : > { %1085 = vmatprep.subr.bf16.mxu0 (!%p138_p2), %v1423_v1  ;;  %1000 = vmatpush1.bf16.msra.mxu1 (!%p138_p2), %v1425_v2  ;;  %v1429_v5 = vld [vmem:[%s2080_s1 + $0x214] ss:$8 sps:$4 sm:$0xff] (!%p138_p2)   ;;  %v1431_v6 = vld [vmem:[%s2080_s1 + $0x10] ss:$8 sps:$4 sm:$0xff] (!%p138_p2)   ;;  %v1433_v8 = vld [vmem:[%s2080_s1 + $0x24] ss:$8 sps:$4 sm:$0xff] (!%p138_p2)  }
   0x8   : > { %1086 = vmatpush1.bf16.msra.mxu0 (!%p138_p2), %v1426_v3  ;;  %1001 = vmatprep.subr.bf16.mxu1 (!%p138_p2), %v1427_v4  ;;  %v1432_v7 = vld [vmem:[%s2080_s1 + $0x210] ss:$8 sps:$4 sm:$0xff] (!%p138_p2)   ;;  %v1435_v9 = vld [vmem:[%s2080_s1 + $0x224] ss:$8 sps:$4 sm:$0xff] (!%p138_p2)   ;;  %v1437_v10 = vld [vmem:[%s2080_s1 + $0x20] ss:$8 sps:$4 sm:$0xff] (!%p138_p2)  }
   0x9   : > { %1087 = vmatprep.subr.bf16.mxu0 (!%p138_p2), %v1429_v5  ;;  %v1438_v11 = vld [vmem:[%s2080_s1 + $0x220] ss:$8 sps:$4 sm:$0xff] (!%p138_p2)   ;;  %v1439_v12 = vld [vmem:[%s2080_s1 + $0x34] ss:$8 sps:$4 sm:$0xff] (!%p138_p2)   ;;  %v1443_v14 = vld [vmem:[%s2080_s1 + $0x30] ss:$8 sps:$4 sm:$0xff] (!%p138_p2)  }
   0xa   : > { %v1441_v13 = vld [vmem:[%s2080_s1 + $0x234] ss:$8 sps:$4 sm:$0xff] (!%p138_p2)   ;;  %v1444_v15 = vld [vmem:[%s2080_s1 + $0x230] ss:$8 sps:$4 sm:$0xff] (!%p138_p2)   ;;  %v1445_v16 = vld [vmem:[%s2080_s1 + $0x44] ss:$8 sps:$4 sm:$0xff] (!%p138_p2)  }
   0xb   : > { %1002 = vmatpush1.bf16.msra.mxu1 (!%p138_p2), %v1431_v6  ;;  %v1447_v17 = vld [vmem:[%s2080_s1 + $0x244] ss:$8 sps:$4 sm:$0xff] (!%p138_p2)   ;;  %v1449_v18 = vld [vmem:[%s2080_s1 + $0x40] ss:$8 sps:$4 sm:$0xff] (!%p138_p2)   ;;  %v1451_v20 = vld [vmem:[%s2080_s1 + $0x54] ss:$8 sps:$4 sm:$0xff] (!%p138_p2)  }
   0xc   : > { %1088 = vmatpush1.bf16.msra.mxu0 (!%p138_p2), %v1432_v7  ;;  %1003 = vmatprep.subr.bf16.mxu1 (!%p138_p2), %v1433_v8  ;;  %v1450_v19 = vld [vmem:[%s2080_s1 + $0x240] ss:$8 sps:$4 sm:$0xff] (!%p138_p2)   ;;  %v1453_v21 = vld [vmem:[%s2080_s1 + $0x254] ss:$8 sps:$4 sm:$0xff] (!%p138_p2)   ;;  %v1455_v22 = vld [vmem:[%s2080_s1 + $0x50] ss:$8 sps:$4 sm:$0xff] (!%p138_p2)  }
   0xd   : > { %1089 = vmatprep.subr.bf16.mxu0 %v1435_v9  ;;  %v1456_v23 = vld [vmem:[%s2080_s1 + $0x250] ss:$8 sps:$4 sm:$0xff]   ;;  %v1457_v24 = vld [vmem:[%s2080_s1 + $0x64] ss:$8 sps:$4 sm:$0xff]   ;;  %v1461_v26 = vld [vmem:[%s2080_s1 + $0x60] ss:$8 sps:$4 sm:$0xff]  }
   0xe   : > { %v1459_v25 = vld [vmem:[%s2080_s1 + $0x264] ss:$8 sps:$4 sm:$0xff]   ;;  %v1462_v27 = vld [vmem:[%s2080_s1 + $0x260] ss:$8 sps:$4 sm:$0xff]   ;;  %v1463_v28 = vld [vmem:[%s2080_s1 + $0x74] ss:$8 sps:$4 sm:$0xff]  }
   0xf   : > { %1004 = vmatpush1.bf16.msra.mxu1 %v1437_v10  ;;  %v1465_v29 = vld [vmem:[%s2080_s1 + $0x274] ss:$8 sps:$4 sm:$0xff]   ;;  %v1467_v30 = vld [vmem:[%s2080_s1 + $0x70] ss:$8 sps:$4 sm:$0xff]   ;;  %v1469_v32 = vld [vmem:[%s2080_s1 + $0x84] ss:$8 sps:$4 sm:$0xff]  }
  0x10   : > { %1090 = vmatpush1.bf16.msra.mxu0 %v1438_v11  ;;  %1005 = vmatprep.subr.bf16.mxu1 %v1439_v12  ;;  %v1468_v31 = vld [vmem:[%s2080_s1 + $0x270] ss:$8 sps:$4 sm:$0xff]   ;;  %v1471_v33 = vld [vmem:[%s2080_s1 + $0x284] ss:$8 sps:$4 sm:$0xff]   ;;  %v1473_v34 = vld [vmem:[%s2080_s1 + $0x80] ss:$8 sps:$4 sm:$0xff]  }
  0x11   : > { %1091 = vmatprep.subr.bf16.mxu0 %v1441_v13  ;;  %v1474_v35 = vld [vmem:[%s2080_s1 + $0x280] ss:$8 sps:$4 sm:$0xff]   ;;  %v1475_v36 = vld [vmem:[%s2080_s1 + $0x94] ss:$8 sps:$4 sm:$0xff]   ;;  %s2084_s13 = smov (!%p161_p3, %s1244_s13), 1 }
  0x12   : > { %v1477_v37 = vld [vmem:[%s2080_s1 + $0x294] ss:$8 sps:$4 sm:$0xff]   ;;  %v1479_v38 = vld [vmem:[%s2080_s1 + $0x90] ss:$8 sps:$4 sm:$0xff]   ;;  %v1481_v40 = vld [vmem:[%s2080_s1 + $0xa4] ss:$8 sps:$4 sm:$0xff]  }
  0x13   : > { %1006 = vmatpush1.bf16.msra.mxu1 %v1443_v14  ;;  %v1480_v39 = vld [vmem:[%s2080_s1 + $0x290] ss:$8 sps:$4 sm:$0xff]   ;;  %s1393_s21 = sshll.u32 %s2084_s13, 6  ;;  %v1483_v41 = vld [vmem:[%s2080_s1 + $0x2a4] ss:$8 sps:$4 sm:$0xff]   ;;  %s1394_s29 = sshll.u32 %s2084_s13, 4 }
  0x14   : > { %1092 = vmatpush1.bf16.msra.mxu0 %v1444_v15  ;;  %1007 = vmatprep.subr.bf16.mxu1 %v1445_v16  ;;  %v1485_v42 = vld [vmem:[%s2080_s1 + $0xa0] ss:$8 sps:$4 sm:$0xff]   ;;  %s1791_s30 = scalar_lea.vmem %s2079_s0, %s1393_s21  ;;  %v1487_v44 = vld [vmem:[%s2080_s1 + $0xb4] ss:$8 sps:$4 sm:$0xff]   ;;  %v1491_v46 = vld [vmem:[%s2080_s1 + $0xb0] ss:$8 sps:$4 sm:$0xff]  }
  0x15   : > { %1093 = vmatprep.subr.bf16.mxu0 %v1447_v17  ;;  %v1486_v43 = vld [vmem:[%s2080_s1 + $0x2a0] ss:$8 sps:$4 sm:$0xff]   ;;  %v1489_v45 = vld [vmem:[%s2080_s1 + $0x2b4] ss:$8 sps:$4 sm:$0xff]   ;;  %v1492_v47 = vld [vmem:[%s2080_s1 + $0x2b0] ss:$8 sps:$4 sm:$0xff]  }
  0x16   : > { %v171_v48 = vld [vmem:[%s1791_s30] sm:$0xff]  ;;  %v173_v53 = vld [vmem:[%s1791_s30 + $0x10] sm:$0xff] }
  0x17   : > { %1008 = vmatpush1.bf16.msra.mxu1 %v1449_v18  ;;  %v175_v49 = vld [vmem:[%s1791_s30 + $0x20] sm:$0xff]  ;;  %v177_v54 = vld [vmem:[%s1791_s30 + $0x30] sm:$0xff] }
  0x18   : > { %1094 = vmatpush1.bf16.msra.mxu0 %v1450_v19  ;;  %1009 = vmatprep.subr.bf16.mxu1 %v1451_v20  ;;  %v1493_v50 = vld [vmem:[%s2080_s1 + $0xc4] ss:$8 sps:$4 sm:$0xff]   ;;  %v1254_v52 = vcombine.high %v171_v48, %v175_v49  ;;  %v1258_v55 = vcombine.high %v173_v53, %v177_v54  ;;  %v1497_v56 = vld [vmem:[%s2080_s1 + $0xc0] ss:$8 sps:$4 sm:$0xff]   ;;  %v1499_v58 = vld [vmem:[%s2080_s1 + $0xd4] ss:$8 sps:$4 sm:$0xff]   ;;  %v1253_v8 = vcombine.low %v171_v48, %v175_v49 }
  0x19   : > { %1095 = vmatprep.subr.bf16.mxu0 %v1453_v21  ;;  %v1495_v51 = vld [vmem:[%s2080_s1 + $0x2c4] ss:$8 sps:$4 sm:$0xff]   ;;  %v1498_v57 = vld [vmem:[%s2080_s1 + $0x2c0] ss:$8 sps:$4 sm:$0xff]   ;;  %v1501_v59 = vld [vmem:[%s2080_s1 + $0x2d4] ss:$8 sps:$4 sm:$0xff]   ;;  %v1257_v10 = vcombine.low %v173_v53, %v177_v54 }
  0x1a   : > { %1031 = vmatprep.mubr.bf16.mxu1 %v1254_v52  ;;  %1117 = vmatprep.mubr.bf16.mxu0 %v1258_v55  ;;  %v1503_v60 = vld [vmem:[%s2080_s1 + $0xd0] ss:$8 sps:$4 sm:$0xff]   ;;  %v1505_v62 = vld [vmem:[%s2080_s1 + $0xe4] ss:$8 sps:$4 sm:$0xff]   ;;  %v1509_v0 = vld [vmem:[%s2080_s1 + $0xe0] ss:$8 sps:$4 sm:$0xff]  }
  0x1b   : > { %1010 = vmatpush1.bf16.msra.mxu1 %v1455_v22  ;;  %v1504_v61 = vld [vmem:[%s2080_s1 + $0x2d0] ss:$8 sps:$4 sm:$0xff]   ;;  %v1507_v63 = vld [vmem:[%s2080_s1 + $0x2e4] ss:$8 sps:$4 sm:$0xff]   ;;  %v1510_v1 = vld [vmem:[%s2080_s1 + $0x2e0] ss:$8 sps:$4 sm:$0xff]  }
  0x1c   : > { %1096 = vmatpush1.bf16.msra.mxu0 %v1456_v23  ;;  %1011 = vmatprep.subr.bf16.mxu1 %v1457_v24  ;;  %v1511_v2 = vld [vmem:[%s2080_s1 + $0xf4] ss:$8 sps:$4 sm:$0xff]   ;;  %v1515_v4 = vld [vmem:[%s2080_s1 + $0xf0] ss:$8 sps:$4 sm:$0xff]   ;;  %v1519_v6 = vld [vmem:[%s2080_s1 + $0x104] ss:$8 sps:$4 sm:$0xff]  }
  0x1d   : > { %1097 = vmatprep.subr.bf16.mxu0 %v1459_v25  ;;  %v1513_v3 = vld [vmem:[%s2080_s1 + $0x2f4] ss:$8 sps:$4 sm:$0xff]   ;;  %v1516_v5 = vld [vmem:[%s2080_s1 + $0x2f0] ss:$8 sps:$4 sm:$0xff]   ;;  %v1522_v7 = vld [vmem:[%s2080_s1 + $0x304] ss:$8 sps:$4 sm:$0xff]  }
  0x1e   : > { %v1517_v9 = vld [vmem:[%s2080_s1 + $0x100] ss:$8 sps:$4 sm:$0xff]   ;;  %v1525_v12 = vld [vmem:[%s2080_s1 + $0x114] ss:$8 sps:$4 sm:$0xff]   ;;  %v1523_v14 = vld [vmem:[%s2080_s1 + $0x110] ss:$8 sps:$4 sm:$0xff]  }
  0x1f   : > { %1012 = vmatpush1.bf16.msra.mxu1 %v1461_v26  ;;  %v1520_v11 = vld [vmem:[%s2080_s1 + $0x300] ss:$8 sps:$4 sm:$0xff]   ;;  %v1528_v13 = vld [vmem:[%s2080_s1 + $0x314] ss:$8 sps:$4 sm:$0xff]   ;;  %v1526_v15 = vld [vmem:[%s2080_s1 + $0x310] ss:$8 sps:$4 sm:$0xff]  }
  0x20   : > { %1098 = vmatpush1.bf16.msra.mxu0 %v1462_v27  ;;  %1013 = vmatprep.subr.bf16.mxu1 %v1463_v28  ;;  %v1531_v16 = vld [vmem:[%s2080_s1 + $0x124] ss:$8 sps:$4 sm:$0xff]   ;;  %v1529_v18 = vld [vmem:[%s2080_s1 + $0x120] ss:$8 sps:$4 sm:$0xff]   ;;  %v1537_v20 = vld [vmem:[%s2080_s1 + $0x134] ss:$8 sps:$4 sm:$0xff]  }
  0x21   : > { %1099 = vmatprep.subr.bf16.mxu0 %v1465_v29  ;;  %v1534_v17 = vld [vmem:[%s2080_s1 + $0x324] ss:$8 sps:$4 sm:$0xff]   ;;  %v1532_v19 = vld [vmem:[%s2080_s1 + $0x320] ss:$8 sps:$4 sm:$0xff]   ;;  %v1540_v21 = vld [vmem:[%s2080_s1 + $0x334] ss:$8 sps:$4 sm:$0xff]  }
  0x22   : > { %v1535_v22 = vld [vmem:[%s2080_s1 + $0x130] ss:$8 sps:$4 sm:$0xff]   ;;  %v1543_v24 = vld [vmem:[%s2080_s1 + $0x144] ss:$8 sps:$4 sm:$0xff]   ;;  %v1541_v26 = vld [vmem:[%s2080_s1 + $0x140] ss:$8 sps:$4 sm:$0xff]  }
  0x23   : > { %1014 = vmatpush1.bf16.msra.mxu1 %v1467_v30  ;;  %v1538_v23 = vld [vmem:[%s2080_s1 + $0x330] ss:$8 sps:$4 sm:$0xff]   ;;  %v1546_v25 = vld [vmem:[%s2080_s1 + $0x344] ss:$8 sps:$4 sm:$0xff]   ;;  %v1544_v27 = vld [vmem:[%s2080_s1 + $0x340] ss:$8 sps:$4 sm:$0xff]  }
  0x24   : > { %1100 = vmatpush1.bf16.msra.mxu0 %v1468_v31  ;;  %1015 = vmatprep.subr.bf16.mxu1 %v1469_v32  ;;  %v1549_v28 = vld [vmem:[%s2080_s1 + $0x154] ss:$8 sps:$4 sm:$0xff]   ;;  %v1547_v30 = vld [vmem:[%s2080_s1 + $0x150] ss:$8 sps:$4 sm:$0xff]   ;;  %v1555_v32 = vld [vmem:[%s2080_s1 + $0x164] ss:$8 sps:$4 sm:$0xff]  }
  0x25   : > { %1101 = vmatprep.subr.bf16.mxu0 %v1471_v33  ;;  %v1552_v29 = vld [vmem:[%s2080_s1 + $0x354] ss:$8 sps:$4 sm:$0xff]   ;;  %v1550_v31 = vld [vmem:[%s2080_s1 + $0x350] ss:$8 sps:$4 sm:$0xff]   ;;  %v1558_v33 = vld [vmem:[%s2080_s1 + $0x364] ss:$8 sps:$4 sm:$0xff]  }
  0x26   : > { %v1565_v48 = vld [vmem:[%s2080_s1 + $0x180] ss:$8 sps:$4 sm:$0xff]   ;;  %v1571_v52 = vld [vmem:[%s2080_s1 + $0x190] ss:$8 sps:$4 sm:$0xff]   ;;  %v1579_v54 = vld [vmem:[%s2080_s1 + $0x1a4] ss:$8 sps:$4 sm:$0xff]  }
  0x27   : > { %1016 = vmatpush1.bf16.msra.mxu1 %v1473_v34  ;;  %v1936_v34 = vld [vmem:[%s1791_s30 + $0x8] sm:$0xff]  ;;  %v1574_v53 = vld [vmem:[%s2080_s1 + $0x390] ss:$8 sps:$4 sm:$0xff]  }
  0x28   : > { %1102 = vmatpush1.bf16.msra.mxu0 %v1474_v35  ;;  %1017 = vmatprep.subr.bf16.mxu1 %v1475_v36  ;;  %v1939_v35 = vld [vmem:[%s1791_s30 + $0x28] sm:$0xff]  ;;  %v1942_v36 = vld [vmem:[%s1791_s30 + $0x18] sm:$0xff] }
  0x29   : > { %1103 = vmatprep.subr.bf16.mxu0 %v1477_v37  ;;  %v1945_v37 = vld [vmem:[%s1791_s30 + $0x38] sm:$0xff]  ;;  %v1568_v49 = vld [vmem:[%s2080_s1 + $0x380] ss:$8 sps:$4 sm:$0xff]   ;;  %v1582_v55 = vld [vmem:[%s2080_s1 + $0x3a4] ss:$8 sps:$4 sm:$0xff]   ;;  %s170_s30 = scalar_lea.vmem %s2082_s3, %s1394_s29 }
  0x2b   : > { %1018 = vmatpush1.bf16.msra.mxu1 %v1479_v38  ;;  %v1553_v38 = vld [vmem:[%s2080_s1 + $0x160] ss:$8 sps:$4 sm:$0xff]  }
  0x2c   : > { %1104 = vmatpush1.bf16.msra.mxu0 %v1480_v39  ;;  %1019 = vmatprep.subr.bf16.mxu1 %v1481_v40  ;;  %v1556_v39 = vld [vmem:[%s2080_s1 + $0x360] ss:$8 sps:$4 sm:$0xff]   ;;  %v1256_v40 = vcombine.high %v1936_v34, %v1939_v35 }
  0x2d   : > { %1105 = vmatprep.subr.bf16.mxu0 %v1483_v41  ;;  %v1561_v41 = vld [vmem:[%s2080_s1 + $0x174] ss:$8 sps:$4 sm:$0xff]  }
  0x2f   : > { %1020 = vmatpush1.bf16.msra.mxu1 %v1485_v42  ;;  %v1564_v42 = vld [vmem:[%s2080_s1 + $0x374] ss:$8 sps:$4 sm:$0xff]  }
  0x30   : > { %1106 = vmatpush1.bf16.msra.mxu0 %v1486_v43  ;;  %1021 = vmatprep.subr.bf16.mxu1 %v1487_v44  ;;  %v1260_v43 = vcombine.high %v1942_v36, %v1945_v37  ;;  %v1559_v44 = vld [vmem:[%s2080_s1 + $0x170] ss:$8 sps:$4 sm:$0xff]  }
  0x31   : > { %1107 = vmatprep.subr.bf16.mxu0 %v1489_v45  ;;  %v1562_v45 = vld [vmem:[%s2080_s1 + $0x370] ss:$8 sps:$4 sm:$0xff]  }
  0x33   : > { %1022 = vmatpush1.bf16.msra.mxu1 %v1491_v46  ;;  %v1567_v46 = vld [vmem:[%s2080_s1 + $0x184] ss:$8 sps:$4 sm:$0xff]  }
  0x34   : > { %1108 = vmatpush1.bf16.msra.mxu0 %v1492_v47  ;;  %1023 = vmatprep.subr.bf16.mxu1 %v1493_v50  ;;  %v1570_v47 = vld [vmem:[%s2080_s1 + $0x384] ss:$8 sps:$4 sm:$0xff]   ;;  %v1573_v50 = vld [vmem:[%s2080_s1 + $0x194] ss:$8 sps:$4 sm:$0xff]  }
  0x35   : > { %1109 = vmatprep.subr.bf16.mxu0 %v1495_v51  ;;  %v1576_v51 = vld [vmem:[%s2080_s1 + $0x394] ss:$8 sps:$4 sm:$0xff]  }
  0x37   : > { %1024 = vmatpush1.bf16.msra.mxu1 %v1497_v56  ;;  %v1577_v56 = vld [vmem:[%s2080_s1 + $0x1a0] ss:$8 sps:$4 sm:$0xff]  }
  0x38   : > { %1110 = vmatpush1.bf16.msra.mxu0 %v1498_v57  ;;  %1025 = vmatprep.subr.bf16.mxu1 %v1499_v58  ;;  %v1580_v57 = vld [vmem:[%s2080_s1 + $0x3a0] ss:$8 sps:$4 sm:$0xff]   ;;  %v1585_v58 = vld [vmem:[%s2080_s1 + $0x1b4] ss:$8 sps:$4 sm:$0xff]  }
  0x39   : > { %1111 = vmatprep.subr.bf16.mxu0 %v1501_v59  ;;  %v1588_v59 = vld [vmem:[%s2080_s1 + $0x3b4] ss:$8 sps:$4 sm:$0xff]  }
  0x3b   : > { %1026 = vmatpush1.bf16.msra.mxu1 %v1503_v60  ;;  %v1583_v60 = vld [vmem:[%s2080_s1 + $0x1b0] ss:$8 sps:$4 sm:$0xff]  }
  0x3c   : > { %1112 = vmatpush1.bf16.msra.mxu0 %v1504_v61  ;;  %1027 = vmatprep.subr.bf16.mxu1 %v1505_v62  ;;  %v1586_v61 = vld [vmem:[%s2080_s1 + $0x3b0] ss:$8 sps:$4 sm:$0xff]   ;;  %v1591_v62 = vld [vmem:[%s2080_s1 + $0x1c4] ss:$8 sps:$4 sm:$0xff]  }
  0x3d   : > { %1113 = vmatprep.subr.bf16.mxu0 %v1507_v63  ;;  %v1594_v63 = vld [vmem:[%s2080_s1 + $0x3c4] ss:$8 sps:$4 sm:$0xff]  }
  0x3f   : > { %1028 = vmatpush1.bf16.msra.mxu1 %v1509_v0  ;;  %v1589_v0 = vld [vmem:[%s2080_s1 + $0x1c0] ss:$8 sps:$4 sm:$0xff]  }
  0x40   : > { %1114 = vmatpush1.bf16.msra.mxu0 %v1510_v1  ;;  %1029 = vmatprep.subr.bf16.mxu1 %v1511_v2  ;;  %v1592_v1 = vld [vmem:[%s2080_s1 + $0x3c0] ss:$8 sps:$4 sm:$0xff]   ;;  %v1597_v2 = vld [vmem:[%s2080_s1 + $0x1d4] ss:$8 sps:$4 sm:$0xff]  }
  0x41   : > { %1115 = vmatprep.subr.bf16.mxu0 %v1513_v3  ;;  %v1600_v3 = vld [vmem:[%s2080_s1 + $0x3d4] ss:$8 sps:$4 sm:$0xff]  }
  0x43   : > { %1030 = vmatpush1.bf16.msra.mxu1 %v1515_v4  ;;  %v1595_v4 = vld [vmem:[%s2080_s1 + $0x1d0] ss:$8 sps:$4 sm:$0xff]  }
  0x44   : > { %1116 = vmatpush1.bf16.msra.mxu0 %v1516_v5  ;;  %1042 = vmatprep.subr.bf16.mxu1 %v1519_v6  ;;  %v1598_v5 = vld [vmem:[%s2080_s1 + $0x3d0] ss:$8 sps:$4 sm:$0xff]   ;;  %v1603_v6 = vld [vmem:[%s2080_s1 + $0x1e4] ss:$8 sps:$4 sm:$0xff]  }
  0x45   : > { %1128 = vmatprep.subr.bf16.mxu0 %v1522_v7  ;;  %v1606_v7 = vld [vmem:[%s2080_s1 + $0x3e4] ss:$8 sps:$4 sm:$0xff]  }
  0x46   : > { %1032 = vmatmul.mubr.bf16.vlgmr.msra.gmra.mrb[0].mxu1 %v1253_v8  ;;  %v1601_v8 = vld [vmem:[%s2080_s1 + $0x1e0] ss:$8 sps:$4 sm:$0xff]  }
  0x47   : > { %1118 = vmatmul.mubr.bf16.vlgmr.msra.gmra.mrb[0].mxu0 %v1257_v10  ;;  %1043 = vmatpush1.bf16.msra.mxu1 %v1517_v9  ;;  %v1604_v9 = vld [vmem:[%s2080_s1 + $0x3e0] ss:$8 sps:$4 sm:$0xff]   ;;  %v1609_v10 = vld [vmem:[%s2080_s1 + $0x1f4] ss:$8 sps:$4 sm:$0xff]  }
  0x48   : > { %1129 = vmatpush1.bf16.msra.mxu0 %v1520_v11  ;;  %1044 = vmatprep.subr.bf16.mxu1 %v1525_v12  ;;  %v1612_v11 = vld [vmem:[%s2080_s1 + $0x3f4] ss:$8 sps:$4 sm:$0xff]   ;;  %v1607_v12 = vld [vmem:[%s2080_s1 + $0x1f0] ss:$8 sps:$4 sm:$0xff]  }
  0x49   : > { %1130 = vmatprep.subr.bf16.mxu0 %v1528_v13  ;;  %1074 = vmatprep.mubr.bf16.mxu1 %v1256_v40  ;;  %v1610_v13 = vld [vmem:[%s2080_s1 + $0x3f0] ss:$8 sps:$4 sm:$0xff]  }
  0x4a   : > { %1160 = vmatprep.mubr.bf16.mxu0 %v1260_v43 }
  0x4b   : > { %1045 = vmatpush1.bf16.msra.mxu1 %v1523_v14  ;;  %v1255_v14 = vcombine.low %v1936_v34, %v1939_v35 }
  0x4c   : > { %1131 = vmatpush1.bf16.msra.mxu0 %v1526_v15  ;;  %1046 = vmatprep.subr.bf16.mxu1 %v1531_v16  ;;  %v1259_v15 = vcombine.low %v1942_v36, %v1945_v37  ;;  %v309_v16 = vlaneseq }
  0x4d   : > { %1132 = vmatprep.subr.bf16.mxu0 %v1534_v17 }
  0x4e   : > { %v310_v17 = vshrl.u32 %v309_v16, 7 }
  0x4f   : > { %1047 = vmatpush1.bf16.msra.mxu1 %v1529_v18 }
  0x50   : > { %1133 = vmatpush1.bf16.msra.mxu0 %v1532_v19  ;;  %1048 = vmatprep.subr.bf16.mxu1 %v1537_v20  ;;  %v311_v18 = vsub.s32 0, %v310_v17  ;;  %v307_v19 = vld [vmem:[%s2081_s2] sm:$0x3]  ;;  %v315_v20 = vsub.s32 1, %v310_v17 }
  0x51   : > { %1134 = vmatprep.subr.bf16.mxu0 %v1540_v21 }
  0x52   : > { %v312_v21 = vrot.slane %v307_v19, %v311_v18 }
  0x53   : > { %1049 = vmatpush1.bf16.msra.mxu1 %v1535_v22  ;;  %v316_v22 = vrot.slane %v307_v19, %v315_v20 }
  0x54   : > { %1135 = vmatpush1.bf16.msra.mxu0 %v1538_v23  ;;  %1050 = vmatprep.subr.bf16.mxu1 %v1543_v24 }
  0x55   : > { %1136 = vmatprep.subr.bf16.mxu0 %v1546_v25 }
  0x57   : > { %1051 = vmatpush1.bf16.msra.mxu1 %v1541_v26 }
  0x58   : > { %1137 = vmatpush1.bf16.msra.mxu0 %v1544_v27  ;;  %1052 = vmatprep.subr.bf16.mxu1 %v1549_v28 }
  0x59   : > { %1138 = vmatprep.subr.bf16.mxu0 %v1552_v29 }
  0x5b   : > { %1053 = vmatpush1.bf16.msra.mxu1 %v1547_v30 }
  0x5c   : > { %1139 = vmatpush1.bf16.msra.mxu0 %v1550_v31  ;;  %1054 = vmatprep.subr.bf16.mxu1 %v1555_v32 }
  0x5d   : > { %1140 = vmatprep.subr.bf16.mxu0 %v1558_v33 }
  0x5f   : > { %1055 = vmatpush1.bf16.msra.mxu1 %v1553_v38 }
  0x60   : > { %1141 = vmatpush1.bf16.msra.mxu0 %v1556_v39  ;;  %1056 = vmatprep.subr.bf16.mxu1 %v1561_v41 }
  0x61   : > { %1142 = vmatprep.subr.bf16.mxu0 %v1564_v42 }
  0x63   : > { %1057 = vmatpush1.bf16.msra.mxu1 %v1559_v44 }
  0x64   : > { %1143 = vmatpush1.bf16.msra.mxu0 %v1562_v45  ;;  %1058 = vmatprep.subr.bf16.mxu1 %v1567_v46 }
  0x65   : > { %1144 = vmatprep.subr.bf16.mxu0 %v1570_v47 }
  0x67   : > { %1059 = vmatpush1.bf16.msra.mxu1 %v1565_v48 }
  0x68   : > { %1145 = vmatpush1.bf16.msra.mxu0 %v1568_v49  ;;  %1060 = vmatprep.subr.bf16.mxu1 %v1573_v50 }
  0x69   : > { %1146 = vmatprep.subr.bf16.mxu0 %v1576_v51 }
  0x6b   : > { %1061 = vmatpush1.bf16.msra.mxu1 %v1571_v52 }
  0x6c   : > { %1147 = vmatpush1.bf16.msra.mxu0 %v1574_v53  ;;  %1062 = vmatprep.subr.bf16.mxu1 %v1579_v54 }
  0x6d   : > { %1148 = vmatprep.subr.bf16.mxu0 %v1582_v55 }
  0x6f   : > { %1063 = vmatpush1.bf16.msra.mxu1 %v1577_v56 }
  0x70   : > { %1149 = vmatpush1.bf16.msra.mxu0 %v1580_v57  ;;  %1064 = vmatprep.subr.bf16.mxu1 %v1585_v58 }
  0x71   : > { %1150 = vmatprep.subr.bf16.mxu0 %v1588_v59 }
  0x73   : > { %1065 = vmatpush1.bf16.msra.mxu1 %v1583_v60 }
  0x74   : > { %1151 = vmatpush1.bf16.msra.mxu0 %v1586_v61  ;;  %1066 = vmatprep.subr.bf16.mxu1 %v1591_v62 }
  0x75   : > { %1152 = vmatprep.subr.bf16.mxu0 %v1594_v63 }
  0x77   : > { %1067 = vmatpush1.bf16.msra.mxu1 %v1589_v0 }
  0x78   : > { %1153 = vmatpush1.bf16.msra.mxu0 %v1592_v1  ;;  %1068 = vmatprep.subr.bf16.mxu1 %v1597_v2 }
  0x79   : > { %1154 = vmatprep.subr.bf16.mxu0 %v1600_v3 }
  0x7b   : > { %1069 = vmatpush1.bf16.msra.mxu1 %v1595_v4 }
  0x7c   : > { %1155 = vmatpush1.bf16.msra.mxu0 %v1598_v5  ;;  %1070 = vmatprep.subr.bf16.mxu1 %v1603_v6 }
  0x7d   : > { %1156 = vmatprep.subr.bf16.mxu0 %v1606_v7 }
  0x7f   : > { %1071 = vmatpush1.bf16.msra.mxu1 %v1601_v8 }
  0x80   : > { %1157 = vmatpush1.bf16.msra.mxu0 %v1604_v9  ;;  %1072 = vmatprep.subr.bf16.mxu1 %v1609_v10 }
  0x81   : > { %1158 = vmatprep.subr.bf16.mxu0 %v1612_v11 }
  0x83   : > { %1073 = vmatpush1.bf16.msra.mxu1 %v1607_v12 }
  0x84   : > { %1159 = vmatpush1.bf16.msra.mxu0 %v1610_v13 }
  0x86   : > { %1075 = vmatmul.mubr.bf16.vlgmr.msra.gmra.mrb[0].mxu1 %v1255_v14 }
  0x87   : > { %1161 = vmatmul.mubr.bf16.vlgmr.msra.gmra.mrb[0].mxu0 %v1259_v15 }
 0x159   : > { %v1076_v23 = vpop.f32.mrb[0].mxu1 }
 0x15a   : > { %v1162_v24 = vpop.f32.mrb[0].mxu0  ;;  %v1397_v25 = vadd.f32 %v1076_v23, %v312_v21  ;;  %v1078_v26 = vpop.f32.mrb[1].mxu1 }
 0x15b   : > { %v1164_v27 = vpop.f32.mrb[1].mxu0  ;;  %v1399_v28 = vadd.f32 %v1078_v26, %v316_v22  ;;  %v1080_v29 = vpop.f32.mrb[2].mxu1 }
 0x15c   : > { %v1166_v30 = vpop.f32.mrb[2].mxu0  ;;  %v1398_v31 = vadd.f32 %v1397_v25, %v1162_v24  ;;  %v1401_v32 = vadd.f32 %v1080_v29, %v312_v21  ;;  %v1082_v33 = vpop.f32.mrb[3].mxu1 }
 0x15d   : > { %v1168_v34 = vpop.f32.mrb[3].mxu0  ;;  %v1400_v35 = vadd.f32 %v1399_v28, %v1164_v27  ;;  %v1403_v36 = vadd.f32 %v1082_v33, %v316_v22 }
 0x15e   : > { %v1171_v37 = vmax.f32 %v1398_v31, 0.0  ;;  %v1402_v38 = vadd.f32 %v1401_v32, %v1166_v30 }
 0x15f   : > { %v1172_v39 = vmax.f32 %v1400_v35, 0.0  ;;  %v1404_v40 = vadd.f32 %v1403_v36, %v1168_v34 }
 0x160   : > { %v1173_v41 = vmax.f32 %v1402_v38, 0.0 }
 0x161   : > { %v1395_v42 = vpack.c.bf16 %v1172_v39, %v1171_v37  ;;  %v1174_v43 = vmax.f32 %v1404_v40, 0.0 }
 0x163   : > { %1187 = vst [vmem:[%s170_s30] sm:$0xff] %v1395_v42  ;;  %v1396_v44 = vpack.c.bf16 %v1174_v43, %v1173_v41 }
 0x165   : > { %1188 = vst [vmem:[%s170_s30 + $0x8] sm:$0xff] %v1396_v44 }
 0x166 PF: > { %s13_s12 = sadd.s32 1, %s1619_s12  }
 0x167   : > { %p10_p4 = scmp.ge.s32.totalorder %s13_s12, 4  }
 0x169   :  { %12 = sbr.rel (!%p10_p4) target bundleno = 1 (0x1), region = 62 }

// kernel: cnn_forward.13
= control target key start
LH: loop header
LB: loop body
LE: loop exit
PB: predicated region body
PF: predicated region fallthrough
CT: control target
= control target key end

     0   :  { %v658_v3 = vmov 0   ;;  %vm32_vm0 = vcmask 1043456   ;;  %s869_s0 = inlined_call_operand.vmem [shape: bf16[2,4,256], index: 0, kind: input, shape index: {}]   ;;  %s870_s1 = inlined_call_operand.vmem [shape: bf16[256,200], index: 1, kind: input, shape index: {}]   ;;  %s871_s2 = inlined_call_operand.vmem [shape: f32[1,200], index: 2, kind: input, shape index: {}]   ;;  %s872_s3 = inlined_call_operand.vmem [shape: bf16[200,10], index: 3, kind: input, shape index: {}]   ;;  %s873_s4 = inlined_call_operand.vmem [shape: f32[1,10], index: 4, kind: input, shape index: {}]   ;;  %s874_s5 = inlined_call_operand.hbm [shape: f32[2,10], index: 5, kind: output, shape index: {}]  }
   0x1   :  { %v569_v0 = vld [vmem:[%s870_s1 + $0x4] ss:$8 sps:$4 sm:$0xff]   ;;  %v571_v1 = vld [vmem:[%s870_s1] ss:$8 sps:$4 sm:$0xff]   ;;  %v572_v2 = vld [vmem:[%s870_s1 + $0x14] ss:$8 sps:$4 sm:$0xff]   ;;  %448 = vmatprep.subr.bf16.mxu1 %v658_v3 }
   0x2   :  { %289 = vmatprep.subr.bf16.mxu0 %v569_v0  ;;  %v574_v4 = vld [vmem:[%s870_s1 + $0x10] ss:$8 sps:$4 sm:$0xff]   ;;  %v575_v5 = vld [vmem:[%s870_s1 + $0x24] ss:$8 sps:$4 sm:$0xff]   ;;  %v577_v6 = vld [vmem:[%s870_s1 + $0x20] ss:$8 sps:$4 sm:$0xff]  }
   0x3   :  { %290 = vmatpush1.bf16.msra.mxu0 %v571_v1  ;;  %v578_v7 = vld [vmem:[%s870_s1 + $0x34] ss:$8 sps:$4 sm:$0xff]   ;;  %v580_v8 = vld [vmem:[%s870_s1 + $0x30] ss:$8 sps:$4 sm:$0xff]   ;;  %v581_v9 = vld [vmem:[%s870_s1 + $0x44] ss:$8 sps:$4 sm:$0xff]  }
   0x4   :  { %291 = vmatprep.subr.bf16.mxu0 %v572_v2  ;;  %v583_v10 = vld [vmem:[%s870_s1 + $0x40] ss:$8 sps:$4 sm:$0xff]   ;;  %v584_v11 = vld [vmem:[%s870_s1 + $0x54] ss:$8 sps:$4 sm:$0xff]   ;;  %v586_v12 = vld [vmem:[%s870_s1 + $0x50] ss:$8 sps:$4 sm:$0xff]  }
   0x5   :  { %v587_v13 = vld [vmem:[%s870_s1 + $0x64] ss:$8 sps:$4 sm:$0xff]   ;;  %v589_v14 = vld [vmem:[%s870_s1 + $0x60] ss:$8 sps:$4 sm:$0xff]   ;;  %v590_v19 = vld [vmem:[%s870_s1 + $0x74] ss:$8 sps:$4 sm:$0xff]  }
   0x6   :  { %v564_v15 = vld [vmem:[%s869_s0] sm:$0xff]   ;;  %v618_v24 = vld [vmem:[%s872_s3 + $0x8] sm:$0xff]   ;;  %v592_v25 = vld [vmem:[%s870_s1 + $0x70] ss:$8 sps:$4 sm:$0xff]  }
   0x7   :  { %292 = vmatpush1.bf16.msra.mxu0 %v574_v4  ;;  %v565_v16 = vunpack.c.l.bf16 %v564_v15  ;;  %v566_v17 = vunpack.c.h.bf16 %v564_v15  ;;  %v617_v18 = vld [vmem:[%s872_s3] sm:$0xff]   ;;  %v619_v35 = vld [vmem:[%s872_s3 + $0x10] sm:$0xff]   ;;  %v620_v40 = vld [vmem:[%s872_s3 + $0x18] sm:$0xff]  }
   0x8   :  { %293 = vmatprep.subr.bf16.mxu0 %v575_v5  ;;  %449 = vmatpush1.bf16.msra.mxu1 %v617_v18  ;;  %v593_v28 = vld [vmem:[%s870_s1 + $0x84] ss:$8 sps:$4 sm:$0xff]   ;;  %v595_v36 = vld [vmem:[%s870_s1 + $0x80] ss:$8 sps:$4 sm:$0xff]   ;;  %v596_v39 = vld [vmem:[%s870_s1 + $0x94] ss:$8 sps:$4 sm:$0xff]  }
   0x9   :  { %v28_v20 = vcombine.high %v565_v16, %v565_v16  ;;  %v29_v21 = vcombine.high %v566_v17, %v566_v17  ;;  %v33_v22 = vsel %vm32_vm0, %v565_v16, 0.0  ;;  %v47_v23 = vsel %vm32_vm0, %v566_v17, 0.0  ;;  %450 = vmatprep.subr.bf16.mxu1 %v658_v3  ;;  %v598_v47 = vld [vmem:[%s870_s1 + $0x90] ss:$8 sps:$4 sm:$0xff]  }
   0xa   :  { %v34_v26 = vrot.slane %v33_v22, 4  ;;  %v48_v27 = vrot.slane %v47_v23, 4 }
   0xb   :  { %294 = vmatpush1.bf16.msra.mxu0 %v577_v6  ;;  %v40_v29 = vsel %vm32_vm0, %v28_v20, 0.0  ;;  %v54_v30 = vsel %vm32_vm0, %v29_v21, 0.0 }
   0xc   :  { %295 = vmatprep.subr.bf16.mxu0 %v578_v7  ;;  %v41_v31 = vrot.slane %v40_v29, 4  ;;  %v55_v32 = vrot.slane %v54_v30, 4  ;;  %v35_v33 = vadd.f32 %v34_v26, %v33_v22  ;;  %v49_v34 = vadd.f32 %v48_v27, %v47_v23  ;;  %451 = vmatpush1.bf16.msra.mxu1 %v618_v24 }
   0xd   :  { %452 = vmatprep.subr.bf16.mxu1 %v658_v3 }
   0xe   :  { %v42_v37 = vadd.f32 %v41_v31, %v40_v29  ;;  %v56_v38 = vadd.f32 %v55_v32, %v54_v30  ;;  %v36_v43 = vrot.slane %v35_v33, 2  ;;  %v50_v44 = vrot.slane %v49_v34, 2 }
   0xf   :  { %296 = vmatpush1.bf16.msra.mxu0 %v580_v8 }
  0x10   :  { %297 = vmatprep.subr.bf16.mxu0 %v581_v9  ;;  %v43_v41 = vrot.slane %v42_v37, 2  ;;  %v57_v42 = vrot.slane %v56_v38, 2  ;;  %453 = vmatpush1.bf16.msra.mxu1 %v619_v35  ;;  %v37_v50 = vadd.f32 %v36_v43, %v35_v33  ;;  %v51_v51 = vadd.f32 %v50_v44, %v49_v34 }
  0x11   :  { %454 = vmatprep.subr.bf16.mxu1 %v658_v3 }
  0x12   :  { %v44_v45 = vadd.f32 %v43_v41, %v42_v37  ;;  %v58_v46 = vadd.f32 %v57_v42, %v56_v38 }
  0x13   :  { %298 = vmatpush1.bf16.msra.mxu0 %v583_v10 }
  0x14   :  { %299 = vmatprep.subr.bf16.mxu0 %v584_v11  ;;  %v45_v48 = vrot.slane %v44_v45, 1  ;;  %v59_v49 = vrot.slane %v58_v46, 1 }
  0x17   :  { %300 = vmatpush1.bf16.msra.mxu0 %v586_v12 }
  0x18   :  { %301 = vmatprep.subr.bf16.mxu0 %v587_v13 }
  0x1b   :  { %302 = vmatpush1.bf16.msra.mxu0 %v589_v14 }
  0x1c   :  { %303 = vmatprep.subr.bf16.mxu0 %v590_v19 }
  0x1f   :  { %304 = vmatpush1.bf16.msra.mxu0 %v592_v25 }
  0x20   :  { %305 = vmatprep.subr.bf16.mxu0 %v593_v28 }
  0x23   :  { %306 = vmatpush1.bf16.msra.mxu0 %v595_v36 }
  0x24   :  { %10 = vsyncpa [#allocation3], 0  ;;  %307 = vmatprep.subr.bf16.mxu0 %v596_v39  ;;  %v599_v52 = vld [vmem:[%s870_s1 + $0xa4] ss:$8 sps:$4 sm:$0xff]   ;;  %455 = vmatpush1.bf16.msra.mxu1 %v620_v40  ;;  %v46_v54 = vadd.f32 %v45_v48, %v44_v45  ;;  %v60_v55 = vadd.f32 %v59_v49, %v58_v46  ;;  %v601_v56 = vld [vmem:[%s870_s1 + $0xa0] ss:$8 sps:$4 sm:$0xff]   ;;  %v104_v33 = vlaneseq }
  0x25   :  { %v621_v53 = vld [vmem:[%s872_s3 + $0x20] sm:$0xff]   ;;  %456 = vmatprep.subr.bf16.mxu1 %v658_v3  ;;  %v38_v59 = vrot.slane %v37_v50, 1  ;;  %v52_v60 = vrot.slane %v51_v51, 1  ;;  %v602_v61 = vld [vmem:[%s870_s1 + $0xb4] ss:$8 sps:$4 sm:$0xff]   ;;  %v622_v62 = vld [vmem:[%s872_s3 + $0x28] sm:$0xff]  }
  0x26   :  { %v63_v57 = vmul.f32 0.25, %v46_v54  ;;  %v65_v58 = vmul.f32 0.25, %v60_v55  ;;  %vm122_vm1 = vcmask 1041409   ;;  %v604_v1 = vld [vmem:[%s870_s1 + $0xb0] ss:$8 sps:$4 sm:$0xff]   ;;  %v625_v20 = vld [vmem:[%s872_s3 + $0x40] sm:$0xff]  }
  0x27   :  { %308 = vmatpush1.bf16.msra.mxu0 %v598_v47  ;;  %v39_v5 = vadd.f32 %v38_v59, %v37_v50  ;;  %v53_v6 = vadd.f32 %v52_v60, %v51_v51  ;;  %v605_v7 = vld [vmem:[%s870_s1 + $0xc4] ss:$8 sps:$4 sm:$0xff]   ;;  %v623_v9 = vld [vmem:[%s872_s3 + $0x30] sm:$0xff]   ;;  %v607_v11 = vld [vmem:[%s870_s1 + $0xc0] ss:$8 sps:$4 sm:$0xff]   ;;  %v105_v34 = vshrl.u32 %v104_v33, 7 }
  0x28   :  { %309 = vmatprep.subr.bf16.mxu0 %v599_v52  ;;  %457 = vmatpush1.bf16.msra.mxu1 %v621_v53  ;;  %v67_v63 = vpack.c.bf16 %v63_v57, %v63_v57  ;;  %v69_v0 = vpack.c.bf16 %v65_v58, %v65_v58  ;;  %v608_v14 = vld [vmem:[%s870_s1 + $0xd4] ss:$8 sps:$4 sm:$0xff]   ;;  %v610_v16 = vld [vmem:[%s870_s1 + $0xd0] ss:$8 sps:$4 sm:$0xff]   ;;  %v611_v19 = vld [vmem:[%s870_s1 + $0xe4] ss:$8 sps:$4 sm:$0xff]  }
  0x29   :  { %458 = vmatprep.subr.bf16.mxu1 %v658_v3  ;;  %v62_v12 = vmul.f32 0.25, %v39_v5  ;;  %v64_v13 = vmul.f32 0.25, %v53_v6  ;;  %v624_v15 = vld [vmem:[%s872_s3 + $0x38] sm:$0xff]   ;;  %v613_v21 = vld [vmem:[%s870_s1 + $0xe0] ss:$8 sps:$4 sm:$0xff]   ;;  %v627_v28 = vld [vmem:[%s872_s3 + $0x50] sm:$0xff]  }
  0x2a   :  { %v119_v2 = vunpack.c.l.b16 %v67_v63  ;;  %v121_v4 = vunpack.c.l.b16 %v69_v0  ;;  %v614_v24 = vld [vmem:[%s870_s1 + $0xf4] ss:$8 sps:$4 sm:$0xff]   ;;  %v626_v25 = vld [vmem:[%s872_s3 + $0x48] sm:$0xff]   ;;  %v616_v26 = vld [vmem:[%s870_s1 + $0xf0] ss:$8 sps:$4 sm:$0xff]   ;;  %v106_v35 = vsub.s32 0, %v105_v34 }
  0x2b   :  { %310 = vmatpush1.bf16.msra.mxu0 %v601_v56  ;;  %v66_v17 = vpack.c.bf16 %v62_v12, %v62_v12  ;;  %v68_v18 = vpack.c.bf16 %v64_v13, %v64_v13  ;;  %v628_v30 = vld [vmem:[%s872_s3 + $0x58] sm:$0xff]   ;;  %v629_v31 = vld [vmem:[%s872_s3 + $0x60] ss:$0 sps:$4 sm:$0xff]   ;;  %v110_v37 = vsub.s32 1, %v105_v34  ;;  %vm441_vm2 = vcmask 588800  }
  0x2c   :  { %311 = vmatprep.subr.bf16.mxu0 %v602_v61  ;;  %459 = vmatpush1.bf16.msra.mxu1 %v622_v62  ;;  %v124_v8 = vsel %vm122_vm1, %v121_v4, %v119_v2  ;;  %v446_v32 = vsel %vm32_vm0, %v629_v31, 0  ;;  %v102_v36 = vld [vmem:[%s871_s2] sm:$0x3]  ;;  %vm488_vm3 = vcmask 74752   ;;  %s659_s2 = smov [#allocation2]  }
  0x2d   :  { %460 = vmatprep.subr.bf16.mxu1 %v658_v3  ;;  %v126_v10 = vpack.c.b16 %v124_v8, %v124_v8  ;;  %v118_v22 = vunpack.c.l.b16 %v66_v17  ;;  %v120_v23 = vunpack.c.l.b16 %v68_v18  ;;  %v107_v38 = vrot.slane %v102_v36, %v106_v35  ;;  %v548_v49 = vld [vmem:[%s873_s4] ss:$0 sm:$0xff]  ;;  %s508_s4 = sshll.u32 %s659_s2, 4  ;;  %s509_s4 = int_to_ptr.vmem [resolvable:$true] %s508_s4 }
  0x2e   :  { %v111_v39 = vrot.slane %v102_v36, %v110_v37  ;;  %s634_s9 = scalar_lea.vmem %s509_s4, 32  ;;  %p639_p1 = scmp.lt.s32.totalorder %s509_s4, %s509_s4 }
  0x2f   :  { %312 = vmatpush1.bf16.msra.mxu0 %v604_v1  ;;  %321 = vmatprep.mubr.bf16.mxu0 %v126_v10  ;;  %v123_v27 = vsel %vm122_vm1, %v120_v23, %v118_v22  ;;  %p635_p0 = scmp.ne.s32.totalorder %s509_s4, %s634_s9  ;;  %p640_p2 = scmp.lt.s32.totalorder %s634_s9, %s634_s9 }
  0x30   :  { %313 = vmatprep.subr.bf16.mxu0 %v605_v7  ;;  %461 = vmatpush1.bf16.msra.mxu1 %v623_v9  ;;  %v125_v29 = vpack.c.b16 %v123_v27, %v123_v27 }
  0x31   :  { %462 = vmatprep.subr.bf16.mxu1 %v658_v3  ;;  %p641_p3 = por %p640_p2, %p639_p1 }
  0x33   :  { %314 = vmatpush1.bf16.msra.mxu0 %v607_v11  ;;  %p642_p4 = pnand %p641_p3, %p635_p0 }
  0x34   :  { %315 = vmatprep.subr.bf16.mxu0 %v608_v14  ;;  %463 = vmatpush1.bf16.msra.mxu1 %v624_v15 }
  0x35   :  { %464 = vmatprep.subr.bf16.mxu1 %v658_v3 }
  0x37   :  { %316 = vmatpush1.bf16.msra.mxu0 %v610_v16 }
  0x38   :  { %317 = vmatprep.subr.bf16.mxu0 %v611_v19  ;;  %465 = vmatpush1.bf16.msra.mxu1 %v625_v20 }
  0x39   :  { %466 = vmatprep.subr.bf16.mxu1 %v658_v3 }
  0x3b   :  { %318 = vmatpush1.bf16.msra.mxu0 %v613_v21 }
  0x3c   :  { %319 = vmatprep.subr.bf16.mxu0 %v614_v24  ;;  %467 = vmatpush1.bf16.msra.mxu1 %v626_v25 }
  0x3d   :  { %468 = vmatprep.subr.bf16.mxu1 %v658_v3 }
  0x3f   :  { %320 = vmatpush1.bf16.msra.mxu0 %v616_v26 }
  0x40   :  { %469 = vmatpush1.bf16.msra.mxu1 %v627_v28 }
  0x41   :  { %470 = vmatprep.subr.bf16.mxu1 %v658_v3 }
  0x42   :  { %322 = vmatmul.mubr.bf16.vlgmr.msra.gmra.mrb[0].mxu0 %v125_v29 }
  0x44   :  { %471 = vmatpush1.bf16.msra.mxu1 %v628_v30 }
  0x45   :  { %472 = vmatprep.subr.bf16.mxu1 %v658_v3 }
  0x48   :  { %473 = vmatpush1.bf16.msra.mxu1 %v446_v32 }
 0x115   :  { %v323_v40 = vpop.f32.mrb[0].mxu0 }
 0x116   :  { %v324_v41 = vadd.f32 %v323_v40, %v107_v38  ;;  %v325_v3 = vpop.f32.mrb[1].mxu0 }
 0x117   :  { %v326_v42 = vadd.f32 %v325_v3, %v111_v39  ;;  %v327_v43 = vpop.f32.mrb[2].mxu0 }
 0x118   :  { %v330_v44 = vmax.f32 %v324_v41, 0.0  ;;  %v328_v45 = vpop.f32.mrb[3].mxu0 }
 0x119   :  { %v331_v46 = vmax.f32 %v326_v42, 0.0 }
 0x11a   :  { %v332_v48 = vpack.c.bf16 %v330_v44, %v330_v44 }
 0x11b   :  { %v333_v47 = vpack.c.bf16 %v331_v46, %v331_v46 }
 0x11d   :  { %562 = vmatprep.mubr.msk.bf16.mxu1 %vm441_vm2, %v333_v47 }
 0x11e   :  { %481 = vmatmul.mubr.bf16.vlgmr.msra.gmra.mrb[0].mxu1 %v332_v48 }
 0x1f1   :  { %v482_v50 = vpop.f32.mrb[0].mxu1 }
 0x1f2   :  { %v483_v51 = vadd.f32 %v548_v49, %v482_v50  ;;  %v484_v52 = vpop.f32.mrb[1].mxu1 }
 0x1f3   :  { %v485_v53 = vpop.f32.mrb[2].mxu1 }
 0x1f4   :  { %v486_v54 = vpop.f32.mrb[3].mxu1  ;;  %v489_v55 = vsel %vm488_vm3, %v483_v51, -inf }
 0x1f5   :  { %490 = vmax.xlane.f32.xlu0 %v489_v55 }
 0x282   :  { %v491_v56 = vpop.xlane.xlu0 %490 }
 0x283   :  { %v492_v57 = vsub.f32 %v483_v51, %v491_v56 }
 0x285   :  { %v493_v58 = vmul.f32 1.442695, %v492_v57 }
 0x287   :  { %630 = vpow2.f32 %v493_v58 }
 0x291   :  { %v631_v59 = vpop.eup %630 }
 0x292   :  { %v495_v60 = vsel %vm488_vm3, %v631_v59, 0.0 }
 0x293   :  { %496 = vadd.xlane.f32.xlu0 %v495_v60 }
 0x320   :  { %v497_v61 = vpop.xlane.xlu0 %496 }
 0x321   :  { %632 = vlog2.f32 %v497_v61 }
 0x32b   :  { %v633_v62 = vpop.eup %632 }
 0x32c   :  { %v499_v63 = vmul.f32 0.6931472, %v633_v62 }
 0x32e   :  { %v500_v0 = vsub.f32 %v492_v57, %v499_v63 }
 0x330   :  { %501 = vst.msk [vmem:[#allocation2] sm:$0x3] %vm488_vm3, %v500_v0 }
 0x331   :  { %645 = shalt.err (!%p642_p4)
}
 0x332   :  { %s646_s12 = scalar_lea.hbm %s874_s5, 32 }
 0x333   :  { %p647_p5 = scmp.ne.s32.totalorder %s874_s5, %s646_s12  ;;  %p650_p6 = scmp.lt.u32.totalorder %s646_s12, %s874_s5 }
 0x335   :  { %p652_p7 = pnand %p650_p6, %p647_p5 }
 0x337   :  { %655 = shalt.err (!%p652_p7)
}
 0x338   :  { %511 = dma.vmem_to_hbm [thread:$0]  %s509_s4, 32, %s874_s5, [#allocation3]  }
 0x339   :  { %656 = dma.done.wait [#allocation3], 32  }
 0x33a   :  { %657 = vsyncadd [#allocation3], 4294967264 }
 0x33b   :  { %515 = vsyncpa [#allocation3], 1 }

// kernel: cnn_forward.12
= control target key start
LH: loop header
LB: loop body
LE: loop exit
PB: predicated region body
PF: predicated region fallthrough
CT: control target
= control target key end

     0   :  { %s3564_s12 = smov 0   ;;  %s4524_s0 = inlined_call_operand.vmem [shape: bf16[2,20,256], index: 0, kind: input, shape index: {}]   ;;  %s4525_s1 = inlined_call_operand.vmem [shape: bf16[9,256,256], index: 1, kind: input, shape index: {}]   ;;  %s4526_s2 = inlined_call_operand.vmem [shape: f32[1,256], index: 2, kind: input, shape index: {}]   ;;  %s4527_s3 = inlined_call_operand.vmem [shape: bf16[2,8,256], index: 3, kind: output, shape index: {}]  }
   0x1 LB: > { %s2502_s13 = sadd.s32 4294967295, %s3542_s12   ;;  %p2506_p0 = scmp.ge.s32.totalorder %s3542_s12, 1  ;;  %s3542_s12 = sphi %s3564_s12, %s13_s12  }
   0x2   : > { %p137_p1 = scmp.lt.s32.totalorder %s3542_s12, 3 }
   0x4   : > { %p138_p2 = pnand %p2506_p0, %p137_p1 }
   0x5   : > { %v3086_v0 = vld [vmem:[%s4525_s1 + $0x104] ss:$8 sps:$4 sm:$0xff] (!%p138_p2)   ;;  %v3090_v2 = vld [vmem:[%s4525_s1 + $0x100] ss:$8 sps:$4 sm:$0xff] (!%p138_p2)   ;;  %v3092_v4 = vld [vmem:[%s4525_s1 + $0x114] ss:$8 sps:$4 sm:$0xff] (!%p138_p2)  }
   0x6   : > { %141 = sbr.rel (%p138_p2) target bundleno = 548 (0x224), region = 32  ;;  %v3088_v1 = vld [vmem:[%s4525_s1 + $0x4] ss:$8 sps:$4 sm:$0xff] (!%p138_p2)   ;;  %422 = vmatprep.subr.bf16.mxu0 (!%p138_p2), %v3086_v0  ;;  %v3091_v3 = vld [vmem:[%s4525_s1] ss:$8 sps:$4 sm:$0xff] (!%p138_p2)   ;;  %p161_p3 = scmp.lt.s32.totalorder (!%p138_p2), %s2502_s13, 1 }
   0x7   : > { %627 = vmatprep.subr.bf16.mxu1 (!%p138_p2), %v3088_v1  ;;  %423 = vmatpush1.bf16.msra.mxu0 (!%p138_p2), %v3090_v2  ;;  %v3094_v5 = vld [vmem:[%s4525_s1 + $0x14] ss:$8 sps:$4 sm:$0xff] (!%p138_p2)   ;;  %v3096_v6 = vld [vmem:[%s4525_s1 + $0x110] ss:$8 sps:$4 sm:$0xff] (!%p138_p2)   ;;  %v3098_v8 = vld [vmem:[%s4525_s1 + $0x124] ss:$8 sps:$4 sm:$0xff] (!%p138_p2)  }
   0x8   : > { %628 = vmatpush1.bf16.msra.mxu1 (!%p138_p2), %v3091_v3  ;;  %424 = vmatprep.subr.bf16.mxu0 (!%p138_p2), %v3092_v4  ;;  %v3097_v7 = vld [vmem:[%s4525_s1 + $0x10] ss:$8 sps:$4 sm:$0xff] (!%p138_p2)   ;;  %v3100_v9 = vld [vmem:[%s4525_s1 + $0x24] ss:$8 sps:$4 sm:$0xff] (!%p138_p2)   ;;  %v3102_v10 = vld [vmem:[%s4525_s1 + $0x120] ss:$8 sps:$4 sm:$0xff] (!%p138_p2)  }
   0x9   : > { %629 = vmatprep.subr.bf16.mxu1 (!%p138_p2), %v3094_v5  ;;  %v3103_v11 = vld [vmem:[%s4525_s1 + $0x20] ss:$8 sps:$4 sm:$0xff] (!%p138_p2)   ;;  %v3104_v12 = vld [vmem:[%s4525_s1 + $0x134] ss:$8 sps:$4 sm:$0xff] (!%p138_p2)   ;;  %v3108_v14 = vld [vmem:[%s4525_s1 + $0x130] ss:$8 sps:$4 sm:$0xff] (!%p138_p2)  }
   0xa   : > { %v3106_v13 = vld [vmem:[%s4525_s1 + $0x34] ss:$8 sps:$4 sm:$0xff] (!%p138_p2)   ;;  %v3109_v15 = vld [vmem:[%s4525_s1 + $0x30] ss:$8 sps:$4 sm:$0xff] (!%p138_p2)   ;;  %v3110_v16 = vld [vmem:[%s4525_s1 + $0x144] ss:$8 sps:$4 sm:$0xff] (!%p138_p2)  }
   0xb   : > { %425 = vmatpush1.bf16.msra.mxu0 (!%p138_p2), %v3096_v6  ;;  %v3112_v17 = vld [vmem:[%s4525_s1 + $0x44] ss:$8 sps:$4 sm:$0xff] (!%p138_p2)   ;;  %v3114_v18 = vld [vmem:[%s4525_s1 + $0x140] ss:$8 sps:$4 sm:$0xff] (!%p138_p2)   ;;  %v3116_v20 = vld [vmem:[%s4525_s1 + $0x154] ss:$8 sps:$4 sm:$0xff] (!%p138_p2)  }
   0xc   : > { %630 = vmatpush1.bf16.msra.mxu1 (!%p138_p2), %v3097_v7  ;;  %426 = vmatprep.subr.bf16.mxu0 (!%p138_p2), %v3098_v8  ;;  %v3115_v19 = vld [vmem:[%s4525_s1 + $0x40] ss:$8 sps:$4 sm:$0xff] (!%p138_p2)   ;;  %v3118_v21 = vld [vmem:[%s4525_s1 + $0x54] ss:$8 sps:$4 sm:$0xff] (!%p138_p2)   ;;  %v3120_v22 = vld [vmem:[%s4525_s1 + $0x150] ss:$8 sps:$4 sm:$0xff] (!%p138_p2)  }
   0xd   : > { %631 = vmatprep.subr.bf16.mxu1 %v3100_v9  ;;  %v3121_v23 = vld [vmem:[%s4525_s1 + $0x50] ss:$8 sps:$4 sm:$0xff]   ;;  %v3122_v24 = vld [vmem:[%s4525_s1 + $0x164] ss:$8 sps:$4 sm:$0xff]   ;;  %v3126_v26 = vld [vmem:[%s4525_s1 + $0x160] ss:$8 sps:$4 sm:$0xff]  }
   0xe   : > { %v3124_v25 = vld [vmem:[%s4525_s1 + $0x64] ss:$8 sps:$4 sm:$0xff]   ;;  %v3127_v27 = vld [vmem:[%s4525_s1 + $0x60] ss:$8 sps:$4 sm:$0xff]   ;;  %v3128_v28 = vld [vmem:[%s4525_s1 + $0x174] ss:$8 sps:$4 sm:$0xff]  }
   0xf   : > { %427 = vmatpush1.bf16.msra.mxu0 %v3102_v10  ;;  %v3130_v29 = vld [vmem:[%s4525_s1 + $0x74] ss:$8 sps:$4 sm:$0xff]   ;;  %v3132_v30 = vld [vmem:[%s4525_s1 + $0x170] ss:$8 sps:$4 sm:$0xff]   ;;  %v3134_v32 = vld [vmem:[%s4525_s1 + $0x184] ss:$8 sps:$4 sm:$0xff]  }
  0x10   : > { %632 = vmatpush1.bf16.msra.mxu1 %v3103_v11  ;;  %428 = vmatprep.subr.bf16.mxu0 %v3104_v12  ;;  %v3133_v31 = vld [vmem:[%s4525_s1 + $0x70] ss:$8 sps:$4 sm:$0xff]   ;;  %v3136_v33 = vld [vmem:[%s4525_s1 + $0x84] ss:$8 sps:$4 sm:$0xff]   ;;  %v3138_v34 = vld [vmem:[%s4525_s1 + $0x180] ss:$8 sps:$4 sm:$0xff]  }
  0x11   : > { %633 = vmatprep.subr.bf16.mxu1 %v3106_v13  ;;  %v3139_v35 = vld [vmem:[%s4525_s1 + $0x80] ss:$8 sps:$4 sm:$0xff]   ;;  %s4529_s13 = smov (!%p161_p3, %s2502_s13), 1  ;;  %v3140_v36 = vld [vmem:[%s4525_s1 + $0x194] ss:$8 sps:$4 sm:$0xff]  }
  0x12   : > { %v3142_v37 = vld [vmem:[%s4525_s1 + $0x94] ss:$8 sps:$4 sm:$0xff]   ;;  %v3144_v38 = vld [vmem:[%s4525_s1 + $0x190] ss:$8 sps:$4 sm:$0xff]   ;;  %s3077_s17 = smul.u32 24, %s4529_s13  ;;  %s3075_s11 = sshll.u32 %s4529_s13, 3 }
  0x13   : > { %429 = vmatpush1.bf16.msra.mxu0 %v3108_v14  ;;  %v3145_v39 = vld [vmem:[%s4525_s1 + $0x90] ss:$8 sps:$4 sm:$0xff]   ;;  %v3146_v40 = vld [vmem:[%s4525_s1 + $0x1a4] ss:$8 sps:$4 sm:$0xff]   ;;  %v3150_v42 = vld [vmem:[%s4525_s1 + $0x1a0] ss:$8 sps:$4 sm:$0xff]   ;;  %s170_s16 = scalar_lea.vmem %s4527_s3, %s3075_s11 }
  0x14   : > { %634 = vmatpush1.bf16.msra.mxu1 %v3109_v15  ;;  %430 = vmatprep.subr.bf16.mxu0 %v3110_v16  ;;  %v3148_v41 = vld [vmem:[%s4525_s1 + $0xa4] ss:$8 sps:$4 sm:$0xff]   ;;  %v3151_v43 = vld [vmem:[%s4525_s1 + $0xa0] ss:$8 sps:$4 sm:$0xff]   ;;  %s3714_s30 = scalar_lea.vmem %s4524_s0, %s3077_s17  ;;  %v3152_v44 = vld [vmem:[%s4525_s1 + $0x1b4] ss:$8 sps:$4 sm:$0xff]  }
  0x15   : > { %635 = vmatprep.subr.bf16.mxu1 %v3112_v17  ;;  %v3154_v45 = vld [vmem:[%s4525_s1 + $0xb4] ss:$8 sps:$4 sm:$0xff]   ;;  %v3723_v46 = vld [vmem:[%s3714_s30] sm:$0xff]  ;;  %v3726_v47 = vld [vmem:[%s3714_s30 + $0x8] sm:$0x11] }
  0x16   : > { %v2577_v48 = vcombine.high %v3723_v46, %v3723_v46  ;;  %v3156_v49 = vld [vmem:[%s4525_s1 + $0x1b0] ss:$8 sps:$4 sm:$0xff]   ;;  %v2543_v51 = vcombine.high %v3723_v46, %v3726_v47  ;;  %v3158_v52 = vld [vmem:[%s4525_s1 + $0x1c4] ss:$8 sps:$4 sm:$0xff]   ;;  %v3162_v56 = vld [vmem:[%s4525_s1 + $0x1c0] ss:$8 sps:$4 sm:$0xff]   ;;  %v2542_v63 = vcombine.low %v3723_v46, %v3726_v47  ;;  %v2576_v15 = vcombine.low %v3723_v46, %v3723_v46 }
  0x17   : > { %431 = vmatpush1.bf16.msra.mxu0 %v3114_v18  ;;  %v3157_v50 = vld [vmem:[%s4525_s1 + $0xb0] ss:$8 sps:$4 sm:$0xff]   ;;  %v3160_v53 = vld [vmem:[%s4525_s1 + $0xc4] ss:$8 sps:$4 sm:$0xff]   ;;  %v3163_v57 = vld [vmem:[%s4525_s1 + $0xc0] ss:$8 sps:$4 sm:$0xff]  }
  0x18   : > { %636 = vmatpush1.bf16.msra.mxu1 %v3115_v19  ;;  %432 = vmatprep.subr.bf16.mxu0 %v3116_v20  ;;  %v254_v54 = vshrl.u32 %v2543_v51, 16  ;;  %v256_v55 = vshll.u32 %v2543_v51, 16  ;;  %v3164_v59 = vld [vmem:[%s4525_s1 + $0x1d4] ss:$8 sps:$4 sm:$0xff]   ;;  %v3168_v62 = vld [vmem:[%s4525_s1 + $0x1d0] ss:$8 sps:$4 sm:$0xff]  }
  0x19   : > { %637 = vmatprep.subr.bf16.mxu1 %v3118_v21  ;;  %659 = vmatprep.mubr.bf16.mxu1 %v2577_v48  ;;  %v3166_v60 = vld [vmem:[%s4525_s1 + $0xd4] ss:$8 sps:$4 sm:$0xff]   ;;  %v3169_v0 = vld [vmem:[%s4525_s1 + $0xd0] ss:$8 sps:$4 sm:$0xff]   ;;  %v3170_v1 = vld [vmem:[%s4525_s1 + $0x1e4] ss:$8 sps:$4 sm:$0xff]  }
  0x1a   : > { %v258_v58 = vrot.slane %v256_v55, 1  ;;  %v3172_v2 = vld [vmem:[%s4525_s1 + $0xe4] ss:$8 sps:$4 sm:$0xff]   ;;  %v3174_v3 = vld [vmem:[%s4525_s1 + $0x1e0] ss:$8 sps:$4 sm:$0xff]   ;;  %v249_v4 = vshll.u32 %v2542_v63, 16 }
  0x1b   : > { %433 = vmatpush1.bf16.msra.mxu0 %v3120_v22  ;;  %v3175_v5 = vld [vmem:[%s4525_s1 + $0xe0] ss:$8 sps:$4 sm:$0xff]   ;;  %v3176_v6 = vld [vmem:[%s4525_s1 + $0x1f4] ss:$8 sps:$4 sm:$0xff]   ;;  %v3180_v8 = vld [vmem:[%s4525_s1 + $0x1f0] ss:$8 sps:$4 sm:$0xff]  }
  0x1c   : > { %638 = vmatpush1.bf16.msra.mxu1 %v3121_v23  ;;  %434 = vmatprep.subr.bf16.mxu0 %v3122_v24  ;;  %v259_v61 = vor.u32 %v258_v58, %v254_v54  ;;  %v3178_v7 = vld [vmem:[%s4525_s1 + $0xf4] ss:$8 sps:$4 sm:$0xff]   ;;  %v247_v9 = vshrl.u32 %v2542_v63, 16  ;;  %v251_v10 = vrot.slane %v249_v4, 1  ;;  %v3181_v11 = vld [vmem:[%s4525_s1 + $0xf0] ss:$8 sps:$4 sm:$0xff]  }
  0x1d   : > { %639 = vmatprep.subr.bf16.mxu1 %v3124_v25  ;;  %v3188_v12 = vld [vmem:[%s4525_s1 + $0x204] ss:$8 sps:$4 sm:$0xff]   ;;  %v3186_v16 = vld [vmem:[%s4525_s1 + $0x200] ss:$8 sps:$4 sm:$0xff]   ;;  %v3194_v18 = vld [vmem:[%s4525_s1 + $0x214] ss:$8 sps:$4 sm:$0xff]  }
  0x1e   : > { %454 = vmatprep.mubr.bf16.mxu0 %v259_v61  ;;  %v3191_v13 = vld [vmem:[%s4525_s1 + $0x304] ss:$8 sps:$4 sm:$0xff]   ;;  %v252_v14 = vor.u32 %v251_v10, %v247_v9  ;;  %v3189_v17 = vld [vmem:[%s4525_s1 + $0x300] ss:$8 sps:$4 sm:$0xff]   ;;  %v3197_v19 = vld [vmem:[%s4525_s1 + $0x314] ss:$8 sps:$4 sm:$0xff]  }
  0x1f   : > { %435 = vmatpush1.bf16.msra.mxu0 %v3126_v26  ;;  %v3192_v20 = vld [vmem:[%s4525_s1 + $0x210] ss:$8 sps:$4 sm:$0xff]   ;;  %v3200_v22 = vld [vmem:[%s4525_s1 + $0x224] ss:$8 sps:$4 sm:$0xff]   ;;  %v3198_v24 = vld [vmem:[%s4525_s1 + $0x220] ss:$8 sps:$4 sm:$0xff]  }
  0x20   : > { %640 = vmatpush1.bf16.msra.mxu1 %v3127_v27  ;;  %436 = vmatprep.subr.bf16.mxu0 %v3128_v28  ;;  %v3195_v21 = vld [vmem:[%s4525_s1 + $0x310] ss:$8 sps:$4 sm:$0xff]   ;;  %v3203_v23 = vld [vmem:[%s4525_s1 + $0x324] ss:$8 sps:$4 sm:$0xff]   ;;  %v3201_v25 = vld [vmem:[%s4525_s1 + $0x320] ss:$8 sps:$4 sm:$0xff]  }
  0x21   : > { %641 = vmatprep.subr.bf16.mxu1 %v3130_v29  ;;  %v3206_v26 = vld [vmem:[%s4525_s1 + $0x234] ss:$8 sps:$4 sm:$0xff]   ;;  %v3204_v28 = vld [vmem:[%s4525_s1 + $0x230] ss:$8 sps:$4 sm:$0xff]   ;;  %v3886_v46 = vld [vmem:[%s3714_s30 + $0x8] sm:$0x33] }
  0x22   : > { %v3209_v27 = vld [vmem:[%s4525_s1 + $0x334] ss:$8 sps:$4 sm:$0xff]   ;;  %v3207_v29 = vld [vmem:[%s4525_s1 + $0x330] ss:$8 sps:$4 sm:$0xff]   ;;  %v3236_v54 = vld [vmem:[%s4525_s1 + $0x284] ss:$8 sps:$4 sm:$0xff]  }
  0x23   : > { %437 = vmatpush1.bf16.msra.mxu0 %v3132_v30  ;;  %v3212_v30 = vld [vmem:[%s4525_s1 + $0x244] ss:$8 sps:$4 sm:$0xff]   ;;  %v3233_v48 = vld [vmem:[%s4525_s1 + $0x374] ss:$8 sps:$4 sm:$0xff]   ;;  %v3243_v61 = vld [vmem:[%s4525_s1 + $0x390] ss:$8 sps:$4 sm:$0xff]  }
  0x24   : > { %642 = vmatpush1.bf16.msra.mxu1 %v3133_v31  ;;  %438 = vmatprep.subr.bf16.mxu0 %v3134_v32  ;;  %v3215_v31 = vld [vmem:[%s4525_s1 + $0x344] ss:$8 sps:$4 sm:$0xff]   ;;  %v3210_v32 = vld [vmem:[%s4525_s1 + $0x240] ss:$8 sps:$4 sm:$0xff]   ;;  %v3242_v58 = vld [vmem:[%s4525_s1 + $0x294] ss:$8 sps:$4 sm:$0xff]  }
  0x25   : > { %643 = vmatprep.subr.bf16.mxu1 %v3136_v33  ;;  %v3213_v33 = vld [vmem:[%s4525_s1 + $0x340] ss:$8 sps:$4 sm:$0xff]   ;;  %v3239_v55 = vld [vmem:[%s4525_s1 + $0x384] ss:$8 sps:$4 sm:$0xff]   ;;  %v3252_v4 = vld [vmem:[%s4525_s1 + $0x2b0] ss:$8 sps:$4 sm:$0xff]  }
  0x26   : > { %v3251_v63 = vld [vmem:[%s4525_s1 + $0x3a4] ss:$8 sps:$4 sm:$0xff]   ;;  %v3261_v9 = vld [vmem:[%s4525_s1 + $0x3c0] ss:$8 sps:$4 sm:$0xff]   ;;  %v3266_v10 = vld [vmem:[%s4525_s1 + $0x2d4] ss:$8 sps:$4 sm:$0xff]  }
  0x27   : > { %439 = vmatpush1.bf16.msra.mxu0 %v3138_v34  ;;  %v3218_v34 = vld [vmem:[%s4525_s1 + $0x254] ss:$8 sps:$4 sm:$0xff]  }
  0x28   : > { %644 = vmatpush1.bf16.msra.mxu1 %v3139_v35  ;;  %440 = vmatprep.subr.bf16.mxu0 %v3140_v36  ;;  %v3221_v35 = vld [vmem:[%s4525_s1 + $0x354] ss:$8 sps:$4 sm:$0xff]   ;;  %v3216_v36 = vld [vmem:[%s4525_s1 + $0x250] ss:$8 sps:$4 sm:$0xff]  }
  0x29   : > { %645 = vmatprep.subr.bf16.mxu1 %v3142_v37  ;;  %v3219_v37 = vld [vmem:[%s4525_s1 + $0x350] ss:$8 sps:$4 sm:$0xff]  }
  0x2b   : > { %441 = vmatpush1.bf16.msra.mxu0 %v3144_v38  ;;  %v3224_v38 = vld [vmem:[%s4525_s1 + $0x264] ss:$8 sps:$4 sm:$0xff]  }
  0x2c   : > { %646 = vmatpush1.bf16.msra.mxu1 %v3145_v39  ;;  %442 = vmatprep.subr.bf16.mxu0 %v3146_v40  ;;  %v3227_v39 = vld [vmem:[%s4525_s1 + $0x364] ss:$8 sps:$4 sm:$0xff]   ;;  %v3222_v40 = vld [vmem:[%s4525_s1 + $0x260] ss:$8 sps:$4 sm:$0xff]  }
  0x2d   : > { %647 = vmatprep.subr.bf16.mxu1 %v3148_v41  ;;  %v3872_v41 = vld [vmem:[%s3714_s30] sm:$0xee] }
  0x2f   : > { %443 = vmatpush1.bf16.msra.mxu0 %v3150_v42  ;;  %v3225_v42 = vld [vmem:[%s4525_s1 + $0x360] ss:$8 sps:$4 sm:$0xff]  }
  0x30   : > { %648 = vmatpush1.bf16.msra.mxu1 %v3151_v43  ;;  %444 = vmatprep.subr.bf16.mxu0 %v3152_v44  ;;  %v3230_v43 = vld [vmem:[%s4525_s1 + $0x274] ss:$8 sps:$4 sm:$0xff]   ;;  %v2643_v44 = vcombine.high %v3872_v41, %v3726_v47 }
  0x31   : > { %649 = vmatprep.subr.bf16.mxu1 %v3154_v45  ;;  %v3883_v45 = vld [vmem:[%s3714_s30] sm:$0xcc] }
  0x33   : > { %445 = vmatpush1.bf16.msra.mxu0 %v3156_v49  ;;  %v708_v49 = vrot.slane %v2643_v44, 1 }
  0x34   : > { %650 = vmatpush1.bf16.msra.mxu1 %v3157_v50  ;;  %446 = vmatprep.subr.bf16.mxu0 %v3158_v52  ;;  %v2709_v50 = vcombine.high %v3883_v45, %v3886_v46  ;;  %v3228_v52 = vld [vmem:[%s4525_s1 + $0x270] ss:$8 sps:$4 sm:$0xff]  }
  0x35   : > { %651 = vmatprep.subr.bf16.mxu1 %v3160_v53  ;;  %v3231_v53 = vld [vmem:[%s4525_s1 + $0x370] ss:$8 sps:$4 sm:$0xff]  }
  0x36   : > { %v958_v51 = vrot.slane %v2709_v50, 2 }
  0x37   : > { %447 = vmatpush1.bf16.msra.mxu0 %v3162_v56  ;;  %v3234_v56 = vld [vmem:[%s4525_s1 + $0x280] ss:$8 sps:$4 sm:$0xff]  }
  0x38   : > { %652 = vmatpush1.bf16.msra.mxu1 %v3163_v57  ;;  %448 = vmatprep.subr.bf16.mxu0 %v3164_v59  ;;  %v3237_v57 = vld [vmem:[%s4525_s1 + $0x380] ss:$8 sps:$4 sm:$0xff]   ;;  %v3245_v59 = vld [vmem:[%s4525_s1 + $0x394] ss:$8 sps:$4 sm:$0xff]  }
  0x39   : > { %653 = vmatprep.subr.bf16.mxu1 %v3166_v60  ;;  %v3240_v60 = vld [vmem:[%s4525_s1 + $0x290] ss:$8 sps:$4 sm:$0xff]  }
  0x3b   : > { %449 = vmatpush1.bf16.msra.mxu0 %v3168_v62  ;;  %v3248_v62 = vld [vmem:[%s4525_s1 + $0x2a4] ss:$8 sps:$4 sm:$0xff]  }
  0x3c   : > { %654 = vmatpush1.bf16.msra.mxu1 %v3169_v0  ;;  %450 = vmatprep.subr.bf16.mxu0 %v3170_v1  ;;  %v3246_v0 = vld [vmem:[%s4525_s1 + $0x2a0] ss:$8 sps:$4 sm:$0xff]  }
  0x3d   : > { %655 = vmatprep.subr.bf16.mxu1 %v3172_v2  ;;  %v3249_v1 = vld [vmem:[%s4525_s1 + $0x3a0] ss:$8 sps:$4 sm:$0xff]   ;;  %v3254_v2 = vld [vmem:[%s4525_s1 + $0x2b4] ss:$8 sps:$4 sm:$0xff]  }
  0x3f   : > { %451 = vmatpush1.bf16.msra.mxu0 %v3174_v3  ;;  %v3257_v3 = vld [vmem:[%s4525_s1 + $0x3b4] ss:$8 sps:$4 sm:$0xff]  }
  0x40   : > { %656 = vmatpush1.bf16.msra.mxu1 %v3175_v5  ;;  %452 = vmatprep.subr.bf16.mxu0 %v3176_v6  ;;  %v3255_v5 = vld [vmem:[%s4525_s1 + $0x3b0] ss:$8 sps:$4 sm:$0xff]   ;;  %v3260_v6 = vld [vmem:[%s4525_s1 + $0x2c4] ss:$8 sps:$4 sm:$0xff]  }
  0x41   : > { %657 = vmatprep.subr.bf16.mxu1 %v3178_v7  ;;  %v3263_v7 = vld [vmem:[%s4525_s1 + $0x3c4] ss:$8 sps:$4 sm:$0xff]  }
  0x43   : > { %453 = vmatpush1.bf16.msra.mxu0 %v3180_v8  ;;  %v3258_v8 = vld [vmem:[%s4525_s1 + $0x2c0] ss:$8 sps:$4 sm:$0xff]  }
  0x44   : > { %658 = vmatpush1.bf16.msra.mxu1 %v3181_v11  ;;  %871 = vmatprep.subr.bf16.mxu0 %v3188_v12  ;;  %v3269_v11 = vld [vmem:[%s4525_s1 + $0x3d4] ss:$8 sps:$4 sm:$0xff]   ;;  %v3264_v12 = vld [vmem:[%s4525_s1 + $0x2d0] ss:$8 sps:$4 sm:$0xff]  }
  0x45   : > { %1121 = vmatprep.subr.bf16.mxu1 %v3191_v13  ;;  %v3267_v13 = vld [vmem:[%s4525_s1 + $0x3d0] ss:$8 sps:$4 sm:$0xff]  }
  0x46   : > { %455 = vmatmul.mubr.bf16.vlgmr.msra.gmra.mrb[0].mxu0 %v252_v14  ;;  %v3272_v14 = vld [vmem:[%s4525_s1 + $0x2e4] ss:$8 sps:$4 sm:$0xff]  }
  0x47   : > { %660 = vmatmul.mubr.bf16.vlgmr.msra.gmra.mrb[0].mxu1 %v2576_v15  ;;  %872 = vmatpush1.bf16.msra.mxu0 %v3186_v16  ;;  %v3275_v15 = vld [vmem:[%s4525_s1 + $0x3e4] ss:$8 sps:$4 sm:$0xff]   ;;  %v3270_v16 = vld [vmem:[%s4525_s1 + $0x2e0] ss:$8 sps:$4 sm:$0xff]  }
  0x48   : > { %1122 = vmatpush1.bf16.msra.mxu1 %v3189_v17  ;;  %873 = vmatprep.subr.bf16.mxu0 %v3194_v18  ;;  %v3273_v17 = vld [vmem:[%s4525_s1 + $0x3e0] ss:$8 sps:$4 sm:$0xff]   ;;  %v3278_v18 = vld [vmem:[%s4525_s1 + $0x2f4] ss:$8 sps:$4 sm:$0xff]  }
  0x49   : > { %1123 = vmatprep.subr.bf16.mxu1 %v3197_v19  ;;  %903 = vmatprep.mubr.bf16.mxu0 %v708_v49  ;;  %v3281_v19 = vld [vmem:[%s4525_s1 + $0x3f4] ss:$8 sps:$4 sm:$0xff]  }
  0x4a   : > { %1153 = vmatprep.mubr.bf16.mxu1 %v958_v51  ;;  %v3309_v49 = vld [vmem:[%s4525_s1 + $0x534] ss:$8 sps:$4 sm:$0xff]   ;;  %v3304_v51 = vld [vmem:[%s4525_s1 + $0x430] ss:$8 sps:$4 sm:$0xff]  }
  0x4b   : > { %874 = vmatpush1.bf16.msra.mxu0 %v3192_v20  ;;  %v2642_v20 = vcombine.low %v3872_v41, %v3726_v47  ;;  %v3286_v47 = vld [vmem:[%s4525_s1 + $0x404] ss:$8 sps:$4 sm:$0xff]  }
  0x4c   : > { %1124 = vmatpush1.bf16.msra.mxu1 %v3195_v21  ;;  %875 = vmatprep.subr.bf16.mxu0 %v3200_v22  ;;  %v2708_v21 = vcombine.low %v3883_v45, %v3886_v46  ;;  %v3276_v22 = vld [vmem:[%s4525_s1 + $0x2f0] ss:$8 sps:$4 sm:$0xff]  }
  0x4d   : > { %1125 = vmatprep.subr.bf16.mxu1 %v3203_v23  ;;  %v3279_v23 = vld [vmem:[%s4525_s1 + $0x3f0] ss:$8 sps:$4 sm:$0xff]  }
  0x4f   : > { %876 = vmatpush1.bf16.msra.mxu0 %v3198_v24  ;;  %v3291_v24 = vld [vmem:[%s4525_s1 + $0x504] ss:$8 sps:$4 sm:$0xff]  }
  0x50   : > { %1126 = vmatpush1.bf16.msra.mxu1 %v3201_v25  ;;  %877 = vmatprep.subr.bf16.mxu0 %v3206_v26  ;;  %v707_v25 = vrot.slane %v2642_v20, 1  ;;  %v957_v26 = vrot.slane %v2708_v21, 2  ;;  %v3355_v20 = vld [vmem:[%s4525_s1 + $0x5b0] ss:$8 sps:$4 sm:$0xff]   ;;  %v3360_v21 = vld [vmem:[%s4525_s1 + $0x4c4] ss:$8 sps:$4 sm:$0xff]  }
  0x51   : > { %1127 = vmatprep.subr.bf16.mxu1 %v3209_v27  ;;  %v3284_v27 = vld [vmem:[%s4525_s1 + $0x400] ss:$8 sps:$4 sm:$0xff]  }
  0x53   : > { %878 = vmatpush1.bf16.msra.mxu0 %v3204_v28  ;;  %v3289_v28 = vld [vmem:[%s4525_s1 + $0x500] ss:$8 sps:$4 sm:$0xff]  }
  0x54   : > { %1128 = vmatpush1.bf16.msra.mxu1 %v3207_v29  ;;  %879 = vmatprep.subr.bf16.mxu0 %v3212_v30  ;;  %v3294_v29 = vld [vmem:[%s4525_s1 + $0x414] ss:$8 sps:$4 sm:$0xff]  }
  0x55   : > { %1129 = vmatprep.subr.bf16.mxu1 %v3215_v31  ;;  %v3297_v30 = vld [vmem:[%s4525_s1 + $0x514] ss:$8 sps:$4 sm:$0xff]   ;;  %v4018_v31 = vld [vmem:[%s3714_s30 + $0x8] sm:$0x77] }
  0x57   : > { %880 = vmatpush1.bf16.msra.mxu0 %v3210_v32  ;;  %v3292_v32 = vld [vmem:[%s4525_s1 + $0x410] ss:$8 sps:$4 sm:$0xff]  }
  0x58   : > { %1130 = vmatpush1.bf16.msra.mxu1 %v3213_v33  ;;  %881 = vmatprep.subr.bf16.mxu0 %v3218_v34  ;;  %v2775_v33 = vcombine.high %v3883_v45, %v4018_v31  ;;  %v4026_v34 = vld [vmem:[%s3714_s30] sm:$0x88] }
  0x59   : > { %1131 = vmatprep.subr.bf16.mxu1 %v3221_v35  ;;  %v3295_v35 = vld [vmem:[%s4525_s1 + $0x510] ss:$8 sps:$4 sm:$0xff]  }
  0x5b   : > { %882 = vmatpush1.bf16.msra.mxu0 %v3216_v36  ;;  %v2841_v36 = vcombine.high %v4026_v34, %v4018_v31 }
  0x5c   : > { %1132 = vmatpush1.bf16.msra.mxu1 %v3219_v37  ;;  %883 = vmatprep.subr.bf16.mxu0 %v3224_v38  ;;  %v3300_v37 = vld [vmem:[%s4525_s1 + $0x424] ss:$8 sps:$4 sm:$0xff]  }
  0x5d   : > { %1133 = vmatprep.subr.bf16.mxu1 %v3227_v39  ;;  %v3303_v38 = vld [vmem:[%s4525_s1 + $0x524] ss:$8 sps:$4 sm:$0xff]   ;;  %v1212_v39 = vshrl.u32 %v2775_v33, 16  ;;  %v1464_v41 = vrot.slane %v2841_v36, 3  ;;  %v3373_v36 = vld [vmem:[%s4525_s1 + $0x5e0] ss:$8 sps:$4 sm:$0xff]  }
  0x5f   : > { %884 = vmatpush1.bf16.msra.mxu0 %v3222_v40  ;;  %v1215_v40 = vshll.u32 %v2775_v33, 16  ;;  %v1214_v44 = vrot.slane %v1212_v39, 2  ;;  %v3375_v33 = vld [vmem:[%s4525_s1 + $0x5e4] ss:$8 sps:$4 sm:$0xff]   ;;  %v3378_v39 = vld [vmem:[%s4525_s1 + $0x4f4] ss:$8 sps:$4 sm:$0xff]  }
  0x60   : > { %1134 = vmatpush1.bf16.msra.mxu1 %v3225_v42  ;;  %885 = vmatprep.subr.bf16.mxu0 %v3230_v43  ;;  %v3298_v42 = vld [vmem:[%s4525_s1 + $0x420] ss:$8 sps:$4 sm:$0xff]  }
  0x61   : > { %1135 = vmatprep.subr.bf16.mxu1 %v3233_v48  ;;  %v3301_v43 = vld [vmem:[%s4525_s1 + $0x520] ss:$8 sps:$4 sm:$0xff]   ;;  %v1217_v46 = vrot.slane %v1215_v40, 3  ;;  %v3306_v48 = vld [vmem:[%s4525_s1 + $0x434] ss:$8 sps:$4 sm:$0xff]  }
  0x62   : > { %v3381_v40 = vld [vmem:[%s4525_s1 + $0x5f4] ss:$8 sps:$4 sm:$0xff]  }
  0x63   : > { %886 = vmatpush1.bf16.msra.mxu0 %v3228_v52  ;;  %v1218_v50 = vor.u32 %v1217_v46, %v1214_v44  ;;  %v3307_v52 = vld [vmem:[%s4525_s1 + $0x530] ss:$8 sps:$4 sm:$0xff]  }
  0x64   : > { %1136 = vmatpush1.bf16.msra.mxu1 %v3231_v53  ;;  %887 = vmatprep.subr.bf16.mxu0 %v3236_v54  ;;  %v3312_v53 = vld [vmem:[%s4525_s1 + $0x444] ss:$8 sps:$4 sm:$0xff]  }
  0x65   : > { %1137 = vmatprep.subr.bf16.mxu1 %v3239_v55  ;;  %v3315_v54 = vld [vmem:[%s4525_s1 + $0x544] ss:$8 sps:$4 sm:$0xff]   ;;  %v3310_v55 = vld [vmem:[%s4525_s1 + $0x440] ss:$8 sps:$4 sm:$0xff]  }
  0x67   : > { %888 = vmatpush1.bf16.msra.mxu0 %v3234_v56  ;;  %v3313_v56 = vld [vmem:[%s4525_s1 + $0x540] ss:$8 sps:$4 sm:$0xff]  }
  0x68   : > { %1138 = vmatpush1.bf16.msra.mxu1 %v3237_v57  ;;  %889 = vmatprep.subr.bf16.mxu0 %v3242_v58  ;;  %v3318_v57 = vld [vmem:[%s4525_s1 + $0x454] ss:$8 sps:$4 sm:$0xff]  }
  0x69   : > { %1139 = vmatprep.subr.bf16.mxu1 %v3245_v59  ;;  %v3321_v58 = vld [vmem:[%s4525_s1 + $0x554] ss:$8 sps:$4 sm:$0xff]   ;;  %v3316_v59 = vld [vmem:[%s4525_s1 + $0x450] ss:$8 sps:$4 sm:$0xff]  }
  0x6b   : > { %890 = vmatpush1.bf16.msra.mxu0 %v3240_v60  ;;  %v3319_v60 = vld [vmem:[%s4525_s1 + $0x550] ss:$8 sps:$4 sm:$0xff]  }
  0x6c   : > { %1140 = vmatpush1.bf16.msra.mxu1 %v3243_v61  ;;  %891 = vmatprep.subr.bf16.mxu0 %v3248_v62  ;;  %v3324_v61 = vld [vmem:[%s4525_s1 + $0x464] ss:$8 sps:$4 sm:$0xff]  }
  0x6d   : > { %1141 = vmatprep.subr.bf16.mxu1 %v3251_v63  ;;  %v3327_v62 = vld [vmem:[%s4525_s1 + $0x564] ss:$8 sps:$4 sm:$0xff]   ;;  %v3322_v63 = vld [vmem:[%s4525_s1 + $0x460] ss:$8 sps:$4 sm:$0xff]  }
  0x6f   : > { %892 = vmatpush1.bf16.msra.mxu0 %v3246_v0  ;;  %v3325_v0 = vld [vmem:[%s4525_s1 + $0x560] ss:$8 sps:$4 sm:$0xff]  }
  0x70   : > { %1142 = vmatpush1.bf16.msra.mxu1 %v3249_v1  ;;  %893 = vmatprep.subr.bf16.mxu0 %v3254_v2  ;;  %v3330_v1 = vld [vmem:[%s4525_s1 + $0x474] ss:$8 sps:$4 sm:$0xff]  }
  0x71   : > { %1143 = vmatprep.subr.bf16.mxu1 %v3257_v3  ;;  %v3333_v2 = vld [vmem:[%s4525_s1 + $0x574] ss:$8 sps:$4 sm:$0xff]   ;;  %v3328_v3 = vld [vmem:[%s4525_s1 + $0x470] ss:$8 sps:$4 sm:$0xff]  }
  0x73   : > { %894 = vmatpush1.bf16.msra.mxu0 %v3252_v4  ;;  %v3331_v4 = vld [vmem:[%s4525_s1 + $0x570] ss:$8 sps:$4 sm:$0xff]  }
  0x74   : > { %1144 = vmatpush1.bf16.msra.mxu1 %v3255_v5  ;;  %895 = vmatprep.subr.bf16.mxu0 %v3260_v6  ;;  %v3336_v5 = vld [vmem:[%s4525_s1 + $0x484] ss:$8 sps:$4 sm:$0xff]  }
  0x75   : > { %1145 = vmatprep.subr.bf16.mxu1 %v3263_v7  ;;  %v3339_v6 = vld [vmem:[%s4525_s1 + $0x584] ss:$8 sps:$4 sm:$0xff]   ;;  %v3334_v7 = vld [vmem:[%s4525_s1 + $0x480] ss:$8 sps:$4 sm:$0xff]  }
  0x77   : > { %896 = vmatpush1.bf16.msra.mxu0 %v3258_v8  ;;  %v3337_v8 = vld [vmem:[%s4525_s1 + $0x580] ss:$8 sps:$4 sm:$0xff]  }
  0x78   : > { %1146 = vmatpush1.bf16.msra.mxu1 %v3261_v9  ;;  %897 = vmatprep.subr.bf16.mxu0 %v3266_v10  ;;  %v3342_v9 = vld [vmem:[%s4525_s1 + $0x494] ss:$8 sps:$4 sm:$0xff]  }
  0x79   : > { %1147 = vmatprep.subr.bf16.mxu1 %v3269_v11  ;;  %v3345_v10 = vld [vmem:[%s4525_s1 + $0x594] ss:$8 sps:$4 sm:$0xff]   ;;  %v3340_v11 = vld [vmem:[%s4525_s1 + $0x490] ss:$8 sps:$4 sm:$0xff]  }
  0x7b   : > { %898 = vmatpush1.bf16.msra.mxu0 %v3264_v12  ;;  %v3343_v12 = vld [vmem:[%s4525_s1 + $0x590] ss:$8 sps:$4 sm:$0xff]  }
  0x7c   : > { %1148 = vmatpush1.bf16.msra.mxu1 %v3267_v13  ;;  %899 = vmatprep.subr.bf16.mxu0 %v3272_v14  ;;  %v3348_v13 = vld [vmem:[%s4525_s1 + $0x4a4] ss:$8 sps:$4 sm:$0xff]  }
  0x7d   : > { %1149 = vmatprep.subr.bf16.mxu1 %v3275_v15  ;;  %v3351_v14 = vld [vmem:[%s4525_s1 + $0x5a4] ss:$8 sps:$4 sm:$0xff]   ;;  %v3346_v15 = vld [vmem:[%s4525_s1 + $0x4a0] ss:$8 sps:$4 sm:$0xff]  }
  0x7f   : > { %900 = vmatpush1.bf16.msra.mxu0 %v3270_v16  ;;  %v3349_v16 = vld [vmem:[%s4525_s1 + $0x5a0] ss:$8 sps:$4 sm:$0xff]  }
  0x80   : > { %1150 = vmatpush1.bf16.msra.mxu1 %v3273_v17  ;;  %901 = vmatprep.subr.bf16.mxu0 %v3278_v18  ;;  %v3354_v17 = vld [vmem:[%s4525_s1 + $0x4b4] ss:$8 sps:$4 sm:$0xff]  }
  0x81   : > { %1151 = vmatprep.subr.bf16.mxu1 %v3281_v19  ;;  %v3357_v18 = vld [vmem:[%s4525_s1 + $0x5b4] ss:$8 sps:$4 sm:$0xff]   ;;  %v3352_v19 = vld [vmem:[%s4525_s1 + $0x4b0] ss:$8 sps:$4 sm:$0xff]  }
  0x83   : > { %902 = vmatpush1.bf16.msra.mxu0 %v3276_v22  ;;  %v3363_v22 = vld [vmem:[%s4525_s1 + $0x5c4] ss:$8 sps:$4 sm:$0xff]  }
  0x84   : > { %1152 = vmatpush1.bf16.msra.mxu1 %v3279_v23  ;;  %1381 = vmatprep.subr.bf16.mxu0 %v3286_v47  ;;  %v3358_v23 = vld [vmem:[%s4525_s1 + $0x4c0] ss:$8 sps:$4 sm:$0xff]  }
  0x85   : > { %1627 = vmatprep.subr.bf16.mxu1 %v3291_v24  ;;  %v3361_v47 = vld [vmem:[%s4525_s1 + $0x5c0] ss:$8 sps:$4 sm:$0xff]   ;;  %v3366_v24 = vld [vmem:[%s4525_s1 + $0x4d4] ss:$8 sps:$4 sm:$0xff]  }
  0x86   : > { %904 = vmatmul.mubr.bf16.vlgmr.msra.gmra.mrb[4].mxu0 %v707_v25  ;;  %v3369_v25 = vld [vmem:[%s4525_s1 + $0x5d4] ss:$8 sps:$4 sm:$0xff]  }
  0x87   : > { %1154 = vmatmul.mubr.bf16.vlgmr.msra.gmra.mrb[4].mxu1 %v957_v26  ;;  %1382 = vmatpush1.bf16.msra.mxu0 %v3284_v27  ;;  %v3364_v26 = vld [vmem:[%s4525_s1 + $0x4d0] ss:$8 sps:$4 sm:$0xff]  }
  0x88   : > { %1628 = vmatpush1.bf16.msra.mxu1 %v3289_v28  ;;  %1383 = vmatprep.subr.bf16.mxu0 %v3294_v29  ;;  %v3367_v27 = vld [vmem:[%s4525_s1 + $0x5d0] ss:$8 sps:$4 sm:$0xff]   ;;  %v2774_v28 = vcombine.low %v3883_v45, %v4018_v31  ;;  %v4180_v29 = vld [vmem:[%s3714_s30 + $0x8] sm:$0xff] }
  0x89   : > { %1629 = vmatprep.subr.bf16.mxu1 %v3297_v30  ;;  %1659 = vmatprep.mubr.bf16.mxu1 %v1464_v41  ;;  %v4183_v30 = vld [vmem:[%s3714_s30 + $0x10] sm:$0x11]  ;;  %v3370_v45 = vld [vmem:[%s4525_s1 + $0x4e0] ss:$8 sps:$4 sm:$0xff]  }
  0x8a   : > { %1413 = vmatprep.mubr.bf16.mxu0 %v1218_v50  ;;  %v3376_v41 = vld [vmem:[%s4525_s1 + $0x4f0] ss:$8 sps:$4 sm:$0xff]   ;;  %v3391_v50 = vld [vmem:[%s4525_s1 + $0x704] ss:$8 sps:$4 sm:$0xff]  }
  0x8b   : > { %1384 = vmatpush1.bf16.msra.mxu0 %v3292_v32  ;;  %v3372_v32 = vld [vmem:[%s4525_s1 + $0x4e4] ss:$8 sps:$4 sm:$0xff]  }
  0x8c   : > { %1630 = vmatpush1.bf16.msra.mxu1 %v3295_v35  ;;  %1385 = vmatprep.subr.bf16.mxu0 %v3300_v37  ;;  %v2973_v35 = vcombine.high %v4180_v29, %v4183_v30  ;;  %v1204_v37 = vshrl.u32 %v2774_v28, 16 }
  0x8d   : > { %1631 = vmatprep.subr.bf16.mxu1 %v3303_v38  ;;  %v1207_v38 = vshll.u32 %v2774_v28, 16  ;;  %v3448_v28 = vld [vmem:[%s4525_s1 + $0x6a4] ss:$8 sps:$4 sm:$0xff]  }
  0x8e   : > { %v1206_v44 = vrot.slane %v1204_v37, 2  ;;  %v3452_v37 = vld [vmem:[%s4525_s1 + $0x6b0] ss:$8 sps:$4 sm:$0xff]  }
  0x8f   : > { %1386 = vmatpush1.bf16.msra.mxu0 %v3298_v42  ;;  %v1967_v42 = vshll.u32 %v2973_v35, 16  ;;  %v1209_v46 = vrot.slane %v1207_v38, 3  ;;  %v3455_v38 = vld [vmem:[%s4525_s1 + $0x7b0] ss:$8 sps:$4 sm:$0xff]  }
  0x90   : > { %1632 = vmatpush1.bf16.msra.mxu1 %v3301_v43  ;;  %1387 = vmatprep.subr.bf16.mxu0 %v3306_v48  ;;  %v3379_v43 = vld [vmem:[%s4525_s1 + $0x5f0] ss:$8 sps:$4 sm:$0xff]   ;;  %v2840_v48 = vcombine.low %v4026_v34, %v4018_v31  ;;  %v3389_v34 = vld [vmem:[%s4525_s1 + $0x700] ss:$8 sps:$4 sm:$0xff]  }
  0x91   : > { %1633 = vmatprep.subr.bf16.mxu1 %v3309_v49  ;;  %v3386_v49 = vld [vmem:[%s4525_s1 + $0x604] ss:$8 sps:$4 sm:$0xff]  }
  0x92   : > { %v1463_v31 = vrot.slane %v2840_v48, 3  ;;  %v3464_v48 = vld [vmem:[%s4525_s1 + $0x6d0] ss:$8 sps:$4 sm:$0xff]  }
  0x93   : > { %1388 = vmatpush1.bf16.msra.mxu0 %v3304_v51  ;;  %v1965_v51 = vshrl.u32 %v2973_v35, 16  ;;  %v3454_v35 = vld [vmem:[%s4525_s1 + $0x6b4] ss:$8 sps:$4 sm:$0xff]  }
  0x94   : > { %1634 = vmatpush1.bf16.msra.mxu1 %v3307_v52  ;;  %1389 = vmatprep.subr.bf16.mxu0 %v3312_v53  ;;  %v1969_v52 = vrot.slane %v1967_v42, 1  ;;  %v1210_v53 = vor.u32 %v1209_v46, %v1206_v44  ;;  %v3461_v42 = vld [vmem:[%s4525_s1 + $0x7c0] ss:$8 sps:$4 sm:$0xff]   ;;  %v3469_v44 = vld [vmem:[%s4525_s1 + $0x7d4] ss:$8 sps:$4 sm:$0xff]   ;;  %v2972_v46 = vcombine.low %v4180_v29, %v4183_v30 }
  0x95   : > { %1635 = vmatprep.subr.bf16.mxu1 %v3315_v54  ;;  %v3384_v54 = vld [vmem:[%s4525_s1 + $0x600] ss:$8 sps:$4 sm:$0xff]  }
  0x97   : > { %1390 = vmatpush1.bf16.msra.mxu0 %v3310_v55  ;;  %v3394_v55 = vld [vmem:[%s4525_s1 + $0x614] ss:$8 sps:$4 sm:$0xff]  }
  0x98   : > { %1636 = vmatpush1.bf16.msra.mxu1 %v3313_v56  ;;  %1391 = vmatprep.subr.bf16.mxu0 %v3318_v57  ;;  %v3397_v56 = vld [vmem:[%s4525_s1 + $0x714] ss:$8 sps:$4 sm:$0xff]   ;;  %v2907_v57 = vcombine.high %v4180_v29, %v4180_v29 }
  0x99   : > { %1637 = vmatprep.subr.bf16.mxu1 %v3321_v58  ;;  %v1970_v58 = vor.u32 %v1969_v52, %v1965_v51  ;;  %v3475_v51 = vld [vmem:[%s4525_s1 + $0x7e4] ss:$8 sps:$4 sm:$0xff]   ;;  %v1960_v52 = vshll.u32 %v2972_v46, 16 }
  0x9b   : > { %1392 = vmatpush1.bf16.msra.mxu0 %v3316_v59  ;;  %v3392_v59 = vld [vmem:[%s4525_s1 + $0x610] ss:$8 sps:$4 sm:$0xff]  }
  0x9c   : > { %1638 = vmatpush1.bf16.msra.mxu1 %v3319_v60  ;;  %1393 = vmatprep.subr.bf16.mxu0 %v3324_v61  ;;  %v3395_v60 = vld [vmem:[%s4525_s1 + $0x710] ss:$8 sps:$4 sm:$0xff]   ;;  %v3400_v61 = vld [vmem:[%s4525_s1 + $0x624] ss:$8 sps:$4 sm:$0xff]  }
  0x9d   : > { %1639 = vmatprep.subr.bf16.mxu1 %v3327_v62  ;;  %v3403_v62 = vld [vmem:[%s4525_s1 + $0x724] ss:$8 sps:$4 sm:$0xff]  }
  0x9f   : > { %1394 = vmatpush1.bf16.msra.mxu0 %v3322_v63  ;;  %v3398_v63 = vld [vmem:[%s4525_s1 + $0x620] ss:$8 sps:$4 sm:$0xff]  }
  0xa0   : > { %1640 = vmatpush1.bf16.msra.mxu1 %v3325_v0  ;;  %1395 = vmatprep.subr.bf16.mxu0 %v3330_v1  ;;  %v3401_v0 = vld [vmem:[%s4525_s1 + $0x720] ss:$8 sps:$4 sm:$0xff]   ;;  %v3406_v1 = vld [vmem:[%s4525_s1 + $0x634] ss:$8 sps:$4 sm:$0xff]  }
  0xa1   : > { %1641 = vmatprep.subr.bf16.mxu1 %v3333_v2  ;;  %v3409_v2 = vld [vmem:[%s4525_s1 + $0x734] ss:$8 sps:$4 sm:$0xff]  }
  0xa3   : > { %1396 = vmatpush1.bf16.msra.mxu0 %v3328_v3  ;;  %v3404_v3 = vld [vmem:[%s4525_s1 + $0x630] ss:$8 sps:$4 sm:$0xff]  }
  0xa4   : > { %1642 = vmatpush1.bf16.msra.mxu1 %v3331_v4  ;;  %1397 = vmatprep.subr.bf16.mxu0 %v3336_v5  ;;  %v3407_v4 = vld [vmem:[%s4525_s1 + $0x730] ss:$8 sps:$4 sm:$0xff]   ;;  %v3412_v5 = vld [vmem:[%s4525_s1 + $0x644] ss:$8 sps:$4 sm:$0xff]  }
  0xa5   : > { %1643 = vmatprep.subr.bf16.mxu1 %v3339_v6  ;;  %v3415_v6 = vld [vmem:[%s4525_s1 + $0x744] ss:$8 sps:$4 sm:$0xff]  }
  0xa7   : > { %1398 = vmatpush1.bf16.msra.mxu0 %v3334_v7  ;;  %v3410_v7 = vld [vmem:[%s4525_s1 + $0x640] ss:$8 sps:$4 sm:$0xff]  }
  0xa8   : > { %1644 = vmatpush1.bf16.msra.mxu1 %v3337_v8  ;;  %1399 = vmatprep.subr.bf16.mxu0 %v3342_v9  ;;  %v3413_v8 = vld [vmem:[%s4525_s1 + $0x740] ss:$8 sps:$4 sm:$0xff]   ;;  %v3418_v9 = vld [vmem:[%s4525_s1 + $0x654] ss:$8 sps:$4 sm:$0xff]  }
  0xa9   : > { %1645 = vmatprep.subr.bf16.mxu1 %v3345_v10  ;;  %v3421_v10 = vld [vmem:[%s4525_s1 + $0x754] ss:$8 sps:$4 sm:$0xff]  }
  0xab   : > { %1400 = vmatpush1.bf16.msra.mxu0 %v3340_v11  ;;  %v3416_v11 = vld [vmem:[%s4525_s1 + $0x650] ss:$8 sps:$4 sm:$0xff]  }
  0xac   : > { %1646 = vmatpush1.bf16.msra.mxu1 %v3343_v12  ;;  %1401 = vmatprep.subr.bf16.mxu0 %v3348_v13  ;;  %v3419_v12 = vld [vmem:[%s4525_s1 + $0x750] ss:$8 sps:$4 sm:$0xff]   ;;  %v3424_v13 = vld [vmem:[%s4525_s1 + $0x664] ss:$8 sps:$4 sm:$0xff]  }
  0xad   : > { %1647 = vmatprep.subr.bf16.mxu1 %v3351_v14  ;;  %v3427_v14 = vld [vmem:[%s4525_s1 + $0x764] ss:$8 sps:$4 sm:$0xff]  }
  0xaf   : > { %1402 = vmatpush1.bf16.msra.mxu0 %v3346_v15  ;;  %v3422_v15 = vld [vmem:[%s4525_s1 + $0x660] ss:$8 sps:$4 sm:$0xff]  }
  0xb0   : > { %1648 = vmatpush1.bf16.msra.mxu1 %v3349_v16  ;;  %1403 = vmatprep.subr.bf16.mxu0 %v3354_v17  ;;  %v3425_v16 = vld [vmem:[%s4525_s1 + $0x760] ss:$8 sps:$4 sm:$0xff]   ;;  %v3430_v17 = vld [vmem:[%s4525_s1 + $0x674] ss:$8 sps:$4 sm:$0xff]  }
  0xb1   : > { %1649 = vmatprep.subr.bf16.mxu1 %v3357_v18  ;;  %v3433_v18 = vld [vmem:[%s4525_s1 + $0x774] ss:$8 sps:$4 sm:$0xff]  }
  0xb3   : > { %1404 = vmatpush1.bf16.msra.mxu0 %v3352_v19  ;;  %v3428_v19 = vld [vmem:[%s4525_s1 + $0x670] ss:$8 sps:$4 sm:$0xff]  }
  0xb4   : > { %1650 = vmatpush1.bf16.msra.mxu1 %v3355_v20  ;;  %1405 = vmatprep.subr.bf16.mxu0 %v3360_v21  ;;  %v3431_v20 = vld [vmem:[%s4525_s1 + $0x770] ss:$8 sps:$4 sm:$0xff]   ;;  %v3436_v21 = vld [vmem:[%s4525_s1 + $0x684] ss:$8 sps:$4 sm:$0xff]  }
  0xb5   : > { %1651 = vmatprep.subr.bf16.mxu1 %v3363_v22  ;;  %v3439_v22 = vld [vmem:[%s4525_s1 + $0x784] ss:$8 sps:$4 sm:$0xff]  }
  0xb7   : > { %1406 = vmatpush1.bf16.msra.mxu0 %v3358_v23  ;;  %v3434_v23 = vld [vmem:[%s4525_s1 + $0x680] ss:$8 sps:$4 sm:$0xff]  }
  0xb8   : > { %1652 = vmatpush1.bf16.msra.mxu1 %v3361_v47  ;;  %1407 = vmatprep.subr.bf16.mxu0 %v3366_v24  ;;  %v3437_v47 = vld [vmem:[%s4525_s1 + $0x780] ss:$8 sps:$4 sm:$0xff]   ;;  %v3442_v24 = vld [vmem:[%s4525_s1 + $0x694] ss:$8 sps:$4 sm:$0xff]  }
  0xb9   : > { %1653 = vmatprep.subr.bf16.mxu1 %v3369_v25  ;;  %v3445_v25 = vld [vmem:[%s4525_s1 + $0x794] ss:$8 sps:$4 sm:$0xff]  }
  0xbb   : > { %1408 = vmatpush1.bf16.msra.mxu0 %v3364_v26  ;;  %v3440_v26 = vld [vmem:[%s4525_s1 + $0x690] ss:$8 sps:$4 sm:$0xff]  }
  0xbc   : > { %1654 = vmatpush1.bf16.msra.mxu1 %v3367_v27  ;;  %1409 = vmatprep.subr.bf16.mxu0 %v3372_v32  ;;  %v3443_v27 = vld [vmem:[%s4525_s1 + $0x790] ss:$8 sps:$4 sm:$0xff]   ;;  %v3451_v32 = vld [vmem:[%s4525_s1 + $0x7a4] ss:$8 sps:$4 sm:$0xff]  }
  0xbd   : > { %1655 = vmatprep.subr.bf16.mxu1 %v3375_v33  ;;  %v3446_v33 = vld [vmem:[%s4525_s1 + $0x6a0] ss:$8 sps:$4 sm:$0xff]  }
  0xbf   : > { %1410 = vmatpush1.bf16.msra.mxu0 %v3370_v45  ;;  %v3449_v45 = vld [vmem:[%s4525_s1 + $0x7a0] ss:$8 sps:$4 sm:$0xff]  }
  0xc0   : > { %1656 = vmatpush1.bf16.msra.mxu1 %v3373_v36  ;;  %1411 = vmatprep.subr.bf16.mxu0 %v3378_v39  ;;  %v3457_v36 = vld [vmem:[%s4525_s1 + $0x7b4] ss:$8 sps:$4 sm:$0xff]   ;;  %v3460_v39 = vld [vmem:[%s4525_s1 + $0x6c4] ss:$8 sps:$4 sm:$0xff]  }
  0xc1   : > { %1657 = vmatprep.subr.bf16.mxu1 %v3381_v40  ;;  %v3463_v40 = vld [vmem:[%s4525_s1 + $0x7c4] ss:$8 sps:$4 sm:$0xff]  }
  0xc3   : > { %1412 = vmatpush1.bf16.msra.mxu0 %v3376_v41  ;;  %v3458_v41 = vld [vmem:[%s4525_s1 + $0x6c0] ss:$8 sps:$4 sm:$0xff]  }
  0xc4   : > { %1658 = vmatpush1.bf16.msra.mxu1 %v3379_v43  ;;  %1871 = vmatprep.subr.bf16.mxu0 %v3386_v49  ;;  %v3466_v43 = vld [vmem:[%s4525_s1 + $0x6d4] ss:$8 sps:$4 sm:$0xff]   ;;  %v3467_v49 = vld [vmem:[%s4525_s1 + $0x7d0] ss:$8 sps:$4 sm:$0xff]  }
  0xc5   : > { %2133 = vmatprep.subr.bf16.mxu1 %v3391_v50  ;;  %v3472_v50 = vld [vmem:[%s4525_s1 + $0x6e4] ss:$8 sps:$4 sm:$0xff]  }
  0xc6   : > { %1414 = vmatmul.mubr.bf16.vlgmr.msra.gmra.mrb[8].mxu0 %v1210_v53  ;;  %v3470_v53 = vld [vmem:[%s4525_s1 + $0x6e0] ss:$8 sps:$4 sm:$0xff]  }
  0xc7   : > { %1660 = vmatmul.mubr.bf16.vlgmr.msra.gmra.mrb[8].mxu1 %v1463_v31  ;;  %1872 = vmatpush1.bf16.msra.mxu0 %v3384_v54  ;;  %v3473_v54 = vld [vmem:[%s4525_s1 + $0x7e0] ss:$8 sps:$4 sm:$0xff]   ;;  %v3478_v31 = vld [vmem:[%s4525_s1 + $0x6f4] ss:$8 sps:$4 sm:$0xff]  }
  0xc8   : > { %2134 = vmatpush1.bf16.msra.mxu1 %v3389_v34  ;;  %1873 = vmatprep.subr.bf16.mxu0 %v3394_v55  ;;  %v3481_v34 = vld [vmem:[%s4525_s1 + $0x7f4] ss:$8 sps:$4 sm:$0xff]   ;;  %v4404_v55 = vld [vmem:[%s3714_s30 + $0x8] sm:$0xee] }
  0xc9   : > { %2135 = vmatprep.subr.bf16.mxu1 %v3397_v56  ;;  %1903 = vmatprep.mubr.bf16.mxu0 %v2907_v57  ;;  %v1958_v56 = vshrl.u32 %v2972_v46, 16  ;;  %v1962_v57 = vrot.slane %v1960_v52, 1 }
  0xca   : > { %2165 = vmatprep.mubr.bf16.mxu1 %v1970_v58  ;;  %v3476_v58 = vld [vmem:[%s4525_s1 + $0x6f0] ss:$8 sps:$4 sm:$0xff]  }
  0xcb   : > { %1874 = vmatpush1.bf16.msra.mxu0 %v3392_v59  ;;  %v3479_v59 = vld [vmem:[%s4525_s1 + $0x7f0] ss:$8 sps:$4 sm:$0xff]  }
  0xcc   : > { %2136 = vmatpush1.bf16.msra.mxu1 %v3395_v60  ;;  %1875 = vmatprep.subr.bf16.mxu0 %v3400_v61  ;;  %v3039_v60 = vcombine.high %v4404_v55, %v4183_v30  ;;  %v3486_v61 = vld [vmem:[%s4525_s1 + $0x804] ss:$8 sps:$4 sm:$0xff]  }
  0xcd   : > { %2137 = vmatprep.subr.bf16.mxu1 %v3403_v62  ;;  %v2906_v62 = vcombine.low %v4180_v29, %v4180_v29  ;;  %v3489_v29 = vld [vmem:[%s4525_s1 + $0x810] ss:$8 sps:$4 sm:$0xff]  }
  0xcf   : > { %1876 = vmatpush1.bf16.msra.mxu0 %v3398_v63  ;;  %v1963_v63 = vor.u32 %v1962_v57, %v1958_v56 }
  0xd0   : > { %2138 = vmatpush1.bf16.msra.mxu1 %v3401_v0  ;;  %1877 = vmatprep.subr.bf16.mxu0 %v3406_v1  ;;  %v3484_v0 = vld [vmem:[%s4525_s1 + $0x800] ss:$8 sps:$4 sm:$0xff]   ;;  %v2216_v1 = vrot.slane %v3039_v60, 1 }
  0xd1   : > { %2139 = vmatprep.subr.bf16.mxu1 %v3409_v2  ;;  %v3491_v2 = vld [vmem:[%s4525_s1 + $0x814] ss:$8 sps:$4 sm:$0xff]  }
  0xd3   : > { %1878 = vmatpush1.bf16.msra.mxu0 %v3404_v3  ;;  %v3494_v3 = vld [vmem:[%s4525_s1 + $0x824] ss:$8 sps:$4 sm:$0xff]  }
  0xd4   : > { %2140 = vmatpush1.bf16.msra.mxu1 %v3407_v4  ;;  %1879 = vmatprep.subr.bf16.mxu0 %v3412_v5  ;;  %v3492_v4 = vld [vmem:[%s4525_s1 + $0x820] ss:$8 sps:$4 sm:$0xff]   ;;  %v3497_v5 = vld [vmem:[%s4525_s1 + $0x834] ss:$8 sps:$4 sm:$0xff]  }
  0xd5   : > { %2141 = vmatprep.subr.bf16.mxu1 %v3415_v6  ;;  %v3495_v6 = vld [vmem:[%s4525_s1 + $0x830] ss:$8 sps:$4 sm:$0xff]  }
  0xd7   : > { %1880 = vmatpush1.bf16.msra.mxu0 %v3410_v7  ;;  %v3500_v7 = vld [vmem:[%s4525_s1 + $0x844] ss:$8 sps:$4 sm:$0xff]  }
  0xd8   : > { %2142 = vmatpush1.bf16.msra.mxu1 %v3413_v8  ;;  %1881 = vmatprep.subr.bf16.mxu0 %v3418_v9  ;;  %v3498_v8 = vld [vmem:[%s4525_s1 + $0x840] ss:$8 sps:$4 sm:$0xff]   ;;  %v3503_v9 = vld [vmem:[%s4525_s1 + $0x854] ss:$8 sps:$4 sm:$0xff]  }
  0xd9   : > { %2143 = vmatprep.subr.bf16.mxu1 %v3421_v10  ;;  %v3501_v10 = vld [vmem:[%s4525_s1 + $0x850] ss:$8 sps:$4 sm:$0xff]  }
  0xdb   : > { %1882 = vmatpush1.bf16.msra.mxu0 %v3416_v11  ;;  %v3506_v11 = vld [vmem:[%s4525_s1 + $0x864] ss:$8 sps:$4 sm:$0xff]  }
  0xdc   : > { %2144 = vmatpush1.bf16.msra.mxu1 %v3419_v12  ;;  %1883 = vmatprep.subr.bf16.mxu0 %v3424_v13 }
  0xdd   : > { %2145 = vmatprep.subr.bf16.mxu1 %v3427_v14 }
  0xdf   : > { %1884 = vmatpush1.bf16.msra.mxu0 %v3422_v15 }
  0xe0   : > { %2146 = vmatpush1.bf16.msra.mxu1 %v3425_v16  ;;  %1885 = vmatprep.subr.bf16.mxu0 %v3430_v17 }
  0xe1   : > { %2147 = vmatprep.subr.bf16.mxu1 %v3433_v18 }
  0xe3   : > { %1886 = vmatpush1.bf16.msra.mxu0 %v3428_v19  ;;  %v3504_v19 = vld [vmem:[%s4525_s1 + $0x860] ss:$8 sps:$4 sm:$0xff]  }
  0xe4   : > { %2148 = vmatpush1.bf16.msra.mxu1 %v3431_v20  ;;  %1887 = vmatprep.subr.bf16.mxu0 %v3436_v21 }
  0xe5   : > { %2149 = vmatprep.subr.bf16.mxu1 %v3439_v22  ;;  %v3509_v22 = vld [vmem:[%s4525_s1 + $0x874] ss:$8 sps:$4 sm:$0xff]  }
  0xe7   : > { %1888 = vmatpush1.bf16.msra.mxu0 %v3434_v23 }
  0xe8   : > { %2150 = vmatpush1.bf16.msra.mxu1 %v3437_v47  ;;  %1889 = vmatprep.subr.bf16.mxu0 %v3442_v24  ;;  %v3507_v47 = vld [vmem:[%s4525_s1 + $0x870] ss:$8 sps:$4 sm:$0xff]   ;;  %v3512_v24 = vld [vmem:[%s4525_s1 + $0x884] ss:$8 sps:$4 sm:$0xff]  }
  0xe9   : > { %2151 = vmatprep.subr.bf16.mxu1 %v3445_v25  ;;  %v3510_v25 = vld [vmem:[%s4525_s1 + $0x880] ss:$8 sps:$4 sm:$0xff]  }
  0xeb   : > { %1890 = vmatpush1.bf16.msra.mxu0 %v3440_v26  ;;  %v3515_v26 = vld [vmem:[%s4525_s1 + $0x894] ss:$8 sps:$4 sm:$0xff]  }
  0xec   : > { %2152 = vmatpush1.bf16.msra.mxu1 %v3443_v27  ;;  %1891 = vmatprep.subr.bf16.mxu0 %v3448_v28  ;;  %v3513_v27 = vld [vmem:[%s4525_s1 + $0x890] ss:$8 sps:$4 sm:$0xff]   ;;  %v3518_v28 = vld [vmem:[%s4525_s1 + $0x8a4] ss:$8 sps:$4 sm:$0xff]  }
  0xed   : > { %2153 = vmatprep.subr.bf16.mxu1 %v3451_v32  ;;  %v3516_v32 = vld [vmem:[%s4525_s1 + $0x8a0] ss:$8 sps:$4 sm:$0xff]  }
  0xef   : > { %1892 = vmatpush1.bf16.msra.mxu0 %v3446_v33  ;;  %v3521_v33 = vld [vmem:[%s4525_s1 + $0x8b4] ss:$8 sps:$4 sm:$0xff]  }
  0xf0   : > { %2154 = vmatpush1.bf16.msra.mxu1 %v3449_v45  ;;  %1893 = vmatprep.subr.bf16.mxu0 %v3454_v35  ;;  %v3519_v45 = vld [vmem:[%s4525_s1 + $0x8b0] ss:$8 sps:$4 sm:$0xff]   ;;  %v3524_v35 = vld [vmem:[%s4525_s1 + $0x8c4] ss:$8 sps:$4 sm:$0xff]  }
  0xf1   : > { %2155 = vmatprep.subr.bf16.mxu1 %v3457_v36  ;;  %v3522_v36 = vld [vmem:[%s4525_s1 + $0x8c0] ss:$8 sps:$4 sm:$0xff]  }
  0xf3   : > { %1894 = vmatpush1.bf16.msra.mxu0 %v3452_v37  ;;  %v3527_v37 = vld [vmem:[%s4525_s1 + $0x8d4] ss:$8 sps:$4 sm:$0xff]  }
  0xf4   : > { %2156 = vmatpush1.bf16.msra.mxu1 %v3455_v38  ;;  %1895 = vmatprep.subr.bf16.mxu0 %v3460_v39  ;;  %v3525_v38 = vld [vmem:[%s4525_s1 + $0x8d0] ss:$8 sps:$4 sm:$0xff]   ;;  %v3530_v39 = vld [vmem:[%s4525_s1 + $0x8e4] ss:$8 sps:$4 sm:$0xff]  }
  0xf5   : > { %2157 = vmatprep.subr.bf16.mxu1 %v3463_v40  ;;  %v3528_v40 = vld [vmem:[%s4525_s1 + $0x8e0] ss:$8 sps:$4 sm:$0xff]  }
  0xf7   : > { %1896 = vmatpush1.bf16.msra.mxu0 %v3458_v41  ;;  %v3533_v41 = vld [vmem:[%s4525_s1 + $0x8f4] ss:$8 sps:$4 sm:$0xff]  }
  0xf8   : > { %2158 = vmatpush1.bf16.msra.mxu1 %v3461_v42  ;;  %1897 = vmatprep.subr.bf16.mxu0 %v3466_v43  ;;  %v3038_v42 = vcombine.low %v4404_v55, %v4183_v30  ;;  %v3531_v43 = vld [vmem:[%s4525_s1 + $0x8f0] ss:$8 sps:$4 sm:$0xff]  }
  0xf9   : > { %2159 = vmatprep.subr.bf16.mxu1 %v3469_v44 }
  0xfa   : > { %v2215_v44 = vrot.slane %v3038_v42, 1 }
  0xfb   : > { %1898 = vmatpush1.bf16.msra.mxu0 %v3464_v48 }
  0xfc   : > { %2160 = vmatpush1.bf16.msra.mxu1 %v3467_v49  ;;  %1899 = vmatprep.subr.bf16.mxu0 %v3472_v50 }
  0xfd   : > { %2161 = vmatprep.subr.bf16.mxu1 %v3475_v51 }
  0xff   : > { %1900 = vmatpush1.bf16.msra.mxu0 %v3470_v53 }
 0x100   : > { %2162 = vmatpush1.bf16.msra.mxu1 %v3473_v54  ;;  %1901 = vmatprep.subr.bf16.mxu0 %v3478_v31 }
 0x101   : > { %2163 = vmatprep.subr.bf16.mxu1 %v3481_v34 }
 0x103   : > { %1902 = vmatpush1.bf16.msra.mxu0 %v3476_v58 }
 0x104   : > { %2164 = vmatpush1.bf16.msra.mxu1 %v3479_v59  ;;  %2379 = vmatprep.subr.bf16.mxu0 %v3486_v61 }
 0x106   : > { %1904 = vmatmul.mubr.bf16.vlgmr.msra.gmra.mrb[12].mxu0 %v2906_v62 }
 0x107   : > { %2166 = vmatmul.mubr.bf16.vlgmr.msra.gmra.mrb[12].mxu1 %v1963_v63  ;;  %2380 = vmatpush1.bf16.msra.mxu0 %v3484_v0 }
 0x108   : > { %2411 = vmatprep.mubr.bf16.mxu0 %v2216_v1  ;;  %2381 = vmatprep.subr.bf16.mxu0 %v3491_v2 }
 0x10b   : > { %2382 = vmatpush1.bf16.msra.mxu0 %v3489_v29 }
 0x10c   : > { %2383 = vmatprep.subr.bf16.mxu0 %v3494_v3 }
 0x10f   : > { %2384 = vmatpush1.bf16.msra.mxu0 %v3492_v4 }
 0x110   : > { %2385 = vmatprep.subr.bf16.mxu0 %v3497_v5 }
 0x113   : > { %2386 = vmatpush1.bf16.msra.mxu0 %v3495_v6 }
 0x114   : > { %2387 = vmatprep.subr.bf16.mxu0 %v3500_v7 }
 0x117   : > { %2388 = vmatpush1.bf16.msra.mxu0 %v3498_v8 }
 0x118   : > { %2389 = vmatprep.subr.bf16.mxu0 %v3503_v9 }
 0x119   : > { %v456_v12 = vpop.f32.mrb[0].mxu0 }
 0x11a   : > { %v661_v13 = vpop.f32.mrb[0].mxu1  ;;  %v458_v15 = vpop.f32.mrb[1].mxu0 }
 0x11b   : > { %v662_v14 = vadd.f32 %v661_v13, %v456_v12  ;;  %v663_v16 = vpop.f32.mrb[1].mxu1  ;;  %v460_v18 = vpop.f32.mrb[2].mxu0  ;;  %2390 = vmatpush1.bf16.msra.mxu0 %v3501_v10 }
 0x11c   : > { %v664_v17 = vadd.f32 %v663_v16, %v458_v15  ;;  %v665_v20 = vpop.f32.mrb[2].mxu1  ;;  %v461_v21 = vpop.f32.mrb[3].mxu0  ;;  %2391 = vmatprep.subr.bf16.mxu0 %v3506_v11  ;;  %v2424_v15 = vlaneseq  ;;  %v2422_v18 = vld [vmem:[%s4526_s2] sm:$0x3] }
 0x11d   : > { %v666_v23 = vpop.f32.mrb[3].mxu1 }
 0x11e   : > { %v2425_v16 = vshrl.u32 %v2424_v15, 7 }
 0x11f   : > { %2392 = vmatpush1.bf16.msra.mxu0 %v3504_v19 }
 0x120   : > { %2393 = vmatprep.subr.bf16.mxu0 %v3509_v22  ;;  %v2430_v19 = vsub.s32 1, %v2425_v16 }
 0x122   : > { %v2431_v22 = vrot.slane %v2422_v18, %v2430_v19 }
 0x123   : > { %2394 = vmatpush1.bf16.msra.mxu0 %v3507_v47 }
 0x124   : > { %2395 = vmatprep.subr.bf16.mxu0 %v3512_v24 }
 0x127   : > { %2396 = vmatpush1.bf16.msra.mxu0 %v3510_v25 }
 0x128   : > { %2397 = vmatprep.subr.bf16.mxu0 %v3515_v26 }
 0x12b   : > { %2398 = vmatpush1.bf16.msra.mxu0 %v3513_v27 }
 0x12c   : > { %2399 = vmatprep.subr.bf16.mxu0 %v3518_v28 }
 0x12f   : > { %2400 = vmatpush1.bf16.msra.mxu0 %v3516_v32 }
 0x130   : > { %2401 = vmatprep.subr.bf16.mxu0 %v3521_v33 }
 0x133   : > { %2402 = vmatpush1.bf16.msra.mxu0 %v3519_v45 }
 0x134   : > { %2403 = vmatprep.subr.bf16.mxu0 %v3524_v35 }
 0x137   : > { %2404 = vmatpush1.bf16.msra.mxu0 %v3522_v36 }
 0x138   : > { %2405 = vmatprep.subr.bf16.mxu0 %v3527_v37 }
 0x13b   : > { %2406 = vmatpush1.bf16.msra.mxu0 %v3525_v38 }
 0x13c   : > { %2407 = vmatprep.subr.bf16.mxu0 %v3530_v39 }
 0x13f   : > { %2408 = vmatpush1.bf16.msra.mxu0 %v3528_v40 }
 0x140   : > { %2409 = vmatprep.subr.bf16.mxu0 %v3533_v41 }
 0x143   : > { %2410 = vmatpush1.bf16.msra.mxu0 %v3531_v43 }
 0x146   : > { %2412 = vmatmul.mubr.bf16.vlgmr.msra.gmra.mrb[16].mxu0 %v2215_v44 }
 0x159   : > { %v905_v46 = vpop.f32.mrb[4].mxu0 }
 0x15a   : > { %v1155_v48 = vpop.f32.mrb[4].mxu1  ;;  %v912_v49 = vadd.f32 %v905_v46, %v662_v14  ;;  %v907_v50 = vpop.f32.mrb[5].mxu0 }
 0x15b   : > { %v1157_v51 = vpop.f32.mrb[5].mxu1  ;;  %v913_v52 = vadd.f32 %v907_v50, %v664_v17  ;;  %v909_v53 = vpop.f32.mrb[6].mxu0  ;;  %v2426_v17 = vsub.s32 0, %v2425_v16 }
 0x15c   : > { %v1159_v54 = vpop.f32.mrb[6].mxu1  ;;  %v1162_v31 = vadd.f32 %v1155_v48, %v912_v49  ;;  %v910_v34 = vpop.f32.mrb[7].mxu0 }
 0x15d   : > { %v1160_v30 = vpop.f32.mrb[7].mxu1  ;;  %v1163_v55 = vadd.f32 %v1157_v51, %v913_v52  ;;  %v2427_v20 = vrot.slane %v2422_v18, %v2426_v17 }
 0x199   : > { %v1415_v56 = vpop.f32.mrb[8].mxu0 }
 0x19a   : > { %v1661_v57 = vpop.f32.mrb[8].mxu1  ;;  %v1422_v58 = vadd.f32 %v1415_v56, %v1162_v31  ;;  %v1417_v59 = vpop.f32.mrb[9].mxu0 }
 0x19b   : > { %v1663_v60 = vpop.f32.mrb[9].mxu1  ;;  %v1423_v61 = vadd.f32 %v1417_v59, %v1163_v55  ;;  %v1419_v62 = vpop.f32.mrb[10].mxu0 }
 0x19c   : > { %v1665_v63 = vpop.f32.mrb[10].mxu1  ;;  %v1668_v0 = vadd.f32 %v1661_v57, %v1422_v58  ;;  %v1420_v1 = vpop.f32.mrb[11].mxu0 }
 0x19d   : > { %v1666_v2 = vpop.f32.mrb[11].mxu1  ;;  %v1669_v29 = vadd.f32 %v1663_v60, %v1423_v61 }
 0x1d9   : > { %v1905_v3 = vpop.f32.mrb[12].mxu0 }
 0x1da   : > { %v2167_v4 = vpop.f32.mrb[12].mxu1  ;;  %v1912_v5 = vadd.f32 %v1905_v3, %v1668_v0  ;;  %v1907_v6 = vpop.f32.mrb[13].mxu0 }
 0x1db   : > { %v2169_v7 = vpop.f32.mrb[13].mxu1  ;;  %v1913_v8 = vadd.f32 %v1907_v6, %v1669_v29  ;;  %v1909_v9 = vpop.f32.mrb[14].mxu0 }
 0x1dc   : > { %v2171_v10 = vpop.f32.mrb[14].mxu1  ;;  %v2174_v11 = vadd.f32 %v2167_v4, %v1912_v5  ;;  %v1910_v12 = vpop.f32.mrb[15].mxu0 }
 0x1dd   : > { %v2172_v13 = vpop.f32.mrb[15].mxu1  ;;  %v2175_v14 = vadd.f32 %v2169_v7, %v1913_v8 }
 0x219   : > { %v2413_v21 = vpop.f32.mrb[16].mxu0 }
 0x21a   : > { %v2420_v23 = vadd.f32 %v2413_v21, %v2174_v11  ;;  %v2415_v47 = vpop.f32.mrb[17].mxu0 }
 0x21b   : > { %v2421_v24 = vadd.f32 %v2415_v47, %v2175_v14  ;;  %v2417_v25 = vpop.f32.mrb[18].mxu0 }
 0x21c   : > { %v2434_v26 = vadd.f32 %v2427_v20, %v2420_v23  ;;  %v2418_v27 = vpop.f32.mrb[19].mxu0 }
 0x21d   : > { %v2435_v28 = vadd.f32 %v2431_v22, %v2421_v24 }
 0x21e   : > { %v2436_v32 = vmax.f32 %v2434_v26, 0.0 }
 0x21f   : > { %v2437_v33 = vmax.f32 %v2435_v28, 0.0 }
 0x221   : > { %v3076_v45 = vpack.c.bf16 %v2437_v33, %v2436_v32 }
 0x223   : > { %2446 = vst [vmem:[%s170_s16] sm:$0xff] %v3076_v45 }
 0x224 PF: > { %s13_s12 = sadd.s32 1, %s3542_s12  }
 0x225   : > { %p10_p4 = scmp.ge.s32.totalorder %s13_s12, 4  }
 0x227   :  { %12 = sbr.rel (!%p10_p4) target bundleno = 1 (0x1), region = 70 }

</bundles_post_ra>
